<compile_context>
chip_gen: v7x
topology: tpu7x:2x2x1
jax: 0.10.0
libtpu: 0.0.40
codegen_flags: <defaults>
</compile_context>

<pallas_src>
import math
import numpy as np

import jax
import jax.numpy as jnp
from jax.experimental import pallas as pl
from jax.experimental.pallas import tpu as pltpu


# ----------------------------------------------------------------------------- utils
def _round_up(x, m):
    return ((x + m - 1) // m) * m


class KeyGen:
    def __init__(self, key):
        self.key = key

    def __call__(self):
        self.key, sub = jax.random.split(self.key)
        return sub


# ----------------------------------------------------------------------------- generation-aware budgets
_HW_CACHE = {}


def _vmem_capacity_bytes():
    if "cap" not in _HW_CACHE:
        cap = 64 << 20                          # conservative fallback (v7x physical VMEM)
        try:
            info = pltpu.get_tpu_info()
            cap = int(getattr(info, "vmem_capacity_bytes", cap)) or cap
        except Exception:
            pass
        _HW_CACHE["cap"] = cap
    return _HW_CACHE["cap"]


def _attn_vmem_budget():
    # ~12 MiB on 128-MiB-VMEM chips (v5e/v6e), ~6 MiB on v7x (64 MiB physical).
    return min(_vmem_capacity_bytes() // 10, 12 << 20)


def _vmem_limit_bytes():
    # scoped-VMEM headroom: 64 MiB on v5e/v6e, 32 MiB on v7x / unknown chips.
    return min(_vmem_capacity_bytes() // 2, 64 << 20)


# ----------------------------------------------------------------------------- exact-GELU fusion probe
_ERF_PROBE = {"ok": None}


def _erf_in_kernel_supported():
    """True iff lax.erf lowers inside a Pallas TPU kernel (enables exact-GELU epilogue fusion)."""
    if _ERF_PROBE["ok"] is None:
        def _k(x_ref, o_ref):
            o_ref[...] = jax.lax.erf(x_ref[...])

        try:
            x = jnp.zeros((8, 128), jnp.float32)
            out = pl.pallas_call(_k, out_shape=jax.ShapeDtypeStruct((8, 128), jnp.float32))(x)
            jax.block_until_ready(out)
            _ERF_PROBE["ok"] = True
        except Exception:
            _ERF_PROBE["ok"] = False
    return _ERF_PROBE["ok"]


def _gelu_exact_f32(y):
    return 0.5 * y * (1.0 + jax.lax.erf(y * (1.0 / math.sqrt(2.0))))


# ----------------------------------------------------------------------------- Pallas matmul (+ fused bias / GELU / residual)
def _make_mm_kernel(multi_k, fuse_gelu, has_residual):
    def epilogue(y, res_ref, o_ref):
        if fuse_gelu:
            y = _gelu_exact_f32(y)
        if has_residual:
            y = y + res_ref[...].astype(jnp.float32)
        o_ref[...] = y.astype(o_ref.dtype)

    if not multi_k:
        # single K step: no scratch accumulator, no zero-init, direct store.
        def kernel(a_ref, b_ref, bias_ref, *rest):
            if has_residual:
                res_ref, o_ref = rest
            else:
                res_ref = None
                (o_ref,) = rest
            y = jnp.dot(a_ref[...], b_ref[...], preferred_element_type=jnp.float32) + bias_ref[...]
            epilogue(y, res_ref, o_ref)

        return kernel

    def kernel(a_ref, b_ref, bias_ref, *rest):
        if has_residual:
            res_ref, o_ref, acc_ref = rest
        else:
            res_ref = None
            o_ref, acc_ref = rest

        @pl.when(pl.program_id(2) == 0)
        def _():
            acc_ref[...] = jnp.zeros_like(acc_ref)

        acc_ref[...] += jnp.dot(a_ref[...], b_ref[...], preferred_element_type=jnp.float32)

        @pl.when(pl.program_id(2) == pl.num_programs(2) - 1)
        def _():
            epilogue(acc_ref[...] + bias_ref[...], res_ref, o_ref)

    return kernel


def pallas_matmul(a, b, bias=None, out_dtype=jnp.float32, fuse_gelu=False, residual=None):
    """(M, K) @ (K, N) + bias [-> GELU] [+ residual].  bf16 MXU operands, f32 accumulation."""
    M, K = a.shape
    K2, N = b.shape
    assert K == K2
    a = a.astype(jnp.bfloat16)
    b = b.astype(jnp.bfloat16)
    bias_f32 = (jnp.zeros((N,), jnp.float32) if bias is None
                else bias.astype(jnp.float32)).reshape(1, N)

    # --- M (sublane axis of `a`): multiples of 16 for bf16, tile at 256 when large ---
    Mp = _round_up(M, 16)
    if Mp <= 256:
        tm = Mp
    else:
        tm = 256
        Mp = _round_up(M, tm)
    # --- K: single full-dim block when small (no padded MACs), else tile at 512 ---
    if K <= 1024:
        tk, Kp = K, K
    else:
        tk = 512
        Kp = _round_up(K, tk)
    # --- N (lane axis of the output): pad to multiples of 128 (lane-dense stores), tile at 256 ---
    Np = _round_up(N, 128)
    if Np <= 256:
        tn = Np
    else:
        tn = 256
        Np = _round_up(N, tn)
    # v7x megacore: avoid a (1,1,k) grid when the row block is big enough to split.
    if (Mp // tm) * (Np // tn) == 1 and Mp >= 256:
        tm = 128

    a_p = a if (Mp == M and Kp == K) else jnp.zeros((Mp, Kp), a.dtype).at[:M, :K].set(a)
    b_p = b if (Kp == K and Np == N) else jnp.zeros((Kp, Np), b.dtype).at[:K, :N].set(b)
    bias_p = bias_f32 if Np == N else jnp.zeros((1, Np), jnp.float32).at[:, :N].set(bias_f32)
    has_res = residual is not None
    if has_res:
        res_p = residual
        if Mp != M or Np != N:
            res_p = jnp.zeros((Mp, Np), residual.dtype).at[:M, :N].set(residual)

    nk = Kp // tk
    multi_k = nk > 1
    kernel = _make_mm_kernel(multi_k, fuse_gelu, has_res)

    if multi_k:
        grid = (Mp // tm, Np // tn, nk)
        in_specs = [
            pl.BlockSpec((tm, tk), lambda i, j, k: (i, k)),
            pl.BlockSpec((tk, tn), lambda i, j, k: (k, j)),
            pl.BlockSpec((1, tn), lambda i, j, k: (0, j)),
        ]
        if has_res:
            in_specs.append(pl.BlockSpec((tm, tn), lambda i, j, k: (i, j)))
        out_spec = pl.BlockSpec((tm, tn), lambda i, j, k: (i, j))
        scratch = [pltpu.VMEM((tm, tn), jnp.float32)]
        dims = ("parallel", "parallel", "arbitrary")
    else:
        grid = (Mp // tm, Np // tn)
        in_specs = [
            pl.BlockSpec((tm, tk), lambda i, j: (i, 0)),
            pl.BlockSpec((tk, tn), lambda i, j: (0, j)),
            pl.BlockSpec((1, tn), lambda i, j: (0, j)),
        ]
        if has_res:
            in_specs.append(pl.BlockSpec((tm, tn), lambda i, j: (i, j)))
        out_spec = pl.BlockSpec((tm, tn), lambda i, j: (i, j))
        scratch = []
        dims = ("parallel", "parallel")

    args = [a_p, b_p, bias_p] + ([res_p] if has_res else [])
    out = pl.pallas_call(
        kernel,
        out_shape=jax.ShapeDtypeStruct((Mp, Np), out_dtype),
        grid_spec=pltpu.PrefetchScalarGridSpec(
            num_scalar_prefetch=0,
            grid=grid,
            in_specs=in_specs,
            out_specs=out_spec,
            scratch_shapes=scratch,
        ),
        compiler_params=pltpu.CompilerParams(dimension_semantics=dims),
    )(*args)
    if Mp != M or Np != N:
        out = out[:M, :N]
    return out


def linear(x, w, b=None, out_dtype=jnp.float32, activation=None, residual=None):
    """x: (..., K), w: (K, N); bias / exact-GELU / residual fused into the matmul epilogue."""
    shape = x.shape
    x2 = x.reshape(-1, shape[-1])
    res2 = None if residual is None else residual.reshape(-1, w.shape[-1])
    fuse_gelu = (activation == "gelu") and _erf_in_kernel_supported()
    if activation == "gelu" and not fuse_gelu:
        # fallback: exact GELU in the wrapper (still correct, one extra HBM pass)
        y = pallas_matmul(x2, w, b, out_dtype=jnp.float32)
        y = jax.nn.gelu(y, approximate=False)
        if res2 is not None:
            y = y + res2
        y = y.astype(out_dtype)
    else:
        y = pallas_matmul(x2, w, b, out_dtype=out_dtype, fuse_gelu=fuse_gelu, residual=res2)
    return y.reshape(shape[:-1] + (w.shape[-1],))


# ----------------------------------------------------------------------------- Pallas LayerNorm (row-gridded)
def _layernorm_kernel(x_ref, g_ref, b_ref, o_ref):
    x = x_ref[...].astype(jnp.float32)            # per-tile cast (no wrapper-side cast / HBM pass)
    mean = jnp.mean(x, axis=-1, keepdims=True)
    var = jnp.mean(jnp.square(x - mean), axis=-1, keepdims=True)
    y = (x - mean) * jax.lax.rsqrt(var + 1e-5)
    o_ref[...] = (y * g_ref[...] + b_ref[...]).astype(o_ref.dtype)


def pallas_layernorm(x, gamma, beta, out_dtype=jnp.bfloat16):
    shape = x.shape
    C = shape[-1]
    x2 = x.reshape(-1, C)
    M = x2.shape[0]
    Mp = _round_up(M, 8)
    if Mp <= 1024:
        tm = Mp
    else:
        tm = 1024
        Mp = _round_up(M, tm)
    if Mp != M:
        x2 = jnp.pad(x2, ((0, Mp - M), (0, 0)))
    out = pl.pallas_call(
        _layernorm_kernel,
        out_shape=jax.ShapeDtypeStruct((Mp, C), out_dtype),
        grid=(Mp // tm,),
        in_specs=[
            pl.BlockSpec((tm, C), lambda i: (i, 0)),
            pl.BlockSpec((1, C), lambda i: (0, 0)),
            pl.BlockSpec((1, C), lambda i: (0, 0)),
        ],
        out_specs=pl.BlockSpec((tm, C), lambda i: (i, 0)),
        compiler_params=pltpu.CompilerParams(dimension_semantics=("parallel",)),
    )(x2, gamma.reshape(1, C).astype(jnp.float32), beta.reshape(1, C).astype(jnp.float32))
    if Mp != M:
        out = out[:M]
    return out.reshape(shape)


# ----------------------------------------------------------------------------- Pallas window attention
def _make_window_attn_kernel(num_heads, head_dim, scale, use_mask, wb, N):
    C = num_heads * head_dim
    H, d = num_heads, head_dim
    HB = H * wb

    def kernel(qkv_ref, bias_ref, *rest):
        if use_mask:
            mask_ref, o_ref = rest
        else:
            (o_ref,) = rest
        qkv = qkv_ref[0]                                          # (wb, N, 3C) bf16 (no f32 upcast)
        bias = bias_ref[...]                                      # (heads, N, N) f32

        # One lane-slice per head, then heads folded into the batch axis so both matmuls are
        # single head-batched MXU einsums (no per-head 16x16 matmul cadence).
        q = jnp.stack([qkv[:, :, h * d:(h + 1) * d] for h in range(H)], axis=0).reshape(HB, N, d)
        k = jnp.stack([qkv[:, :, C + h * d:C + (h + 1) * d] for h in range(H)], axis=0).reshape(HB, N, d)
        v = jnp.stack([qkv[:, :, 2 * C + h * d:2 * C + (h + 1) * d] for h in range(H)], axis=0).reshape(HB, N, d)

        s = jnp.einsum("bqd,bkd->bqk", q, k, preferred_element_type=jnp.float32)   # (HB, N, N) f32
        s = s * scale + jnp.broadcast_to(bias[:, None], (H, wb, N, N)).reshape(HB, N, N)
        if use_mask:
            mask = mask_ref[...]                                   # (wb, N, N) f32
            s = s + jnp.broadcast_to(mask[None], (H, wb, N, N)).reshape(HB, N, N)

        # softmax math in f32 (v5e has no bf16 VPU/EUP); only the PV operand drops to bf16.
        s = s - jnp.max(s, axis=-1, keepdims=True)
        p = jnp.exp(s)
        p = p * pl.reciprocal(jnp.sum(p, axis=-1, keepdims=True), approx=True)

        o = jnp.einsum("bqk,bkd->bqd", p.astype(jnp.bfloat16), v,
                       preferred_element_type=jnp.float32)         # (HB, N, d) f32
        o = o.reshape(H, wb, N, d)
        o = jnp.concatenate([o[h] for h in range(H)], axis=-1)     # (wb, N, C) heads concatenated
        o_ref[0] = o.reshape(wb, N * C).astype(o_ref.dtype)        # lane-dense (wb, N*C) store

    return kernel


def window_attention(qkv, bias, mask, num_heads, head_dim, scale):
    """qkv: (B, nW, N, 3C) bf16 -> attention output (B, nW, N*C) bf16 (heads concatenated)."""
    B, nW, N, threeC = qkv.shape
    C = num_heads * head_dim
    assert threeC == 3 * C
    use_mask = mask is not None

    # per-window VMEM footprint (bytes): double-buffered bf16 qkv in / bf16 out, bf16 q/k/v
    # head-stacked copies, f32 score/softmax temps, bf16 probs, f32 attn output, f32 mask.
    per_window = (2 * 2 * N * 3 * C            # qkv input, bf16, x2 buffers
                  + 3 * 2 * N * C              # q/k/v bf16 copies
                  + 5 * 4 * num_heads * N * N  # f32 scores / max / exp / sum temps
                  + 2 * num_heads * N * N      # bf16 probs
                  + 2 * 4 * N * C              # f32 attention output + concat temp
                  + 2 * 2 * N * C)             # bf16 output, x2 buffers
    if use_mask:
        per_window += 2 * 4 * N * N
    fixed = 4 * num_heads * N * N              # (heads, N, N) bias, single buffer

    budget = _attn_vmem_budget()
    # wb must divide nW and — for the lane-dense (wb, N*C) output block — be a multiple of 8
    # or equal to nW (full second-minor dim).
    valid = [c for c in range(1, nW + 1) if nW % c == 0 and (c == nW or c % 8 == 0)]
    wb = valid[0]
    for c in sorted(valid, reverse=True):
        if fixed + c * per_window <= budget:
            wb = c
            break

    in_specs = [
        pl.BlockSpec((1, wb, N, 3 * C), lambda b, w: (b, w, 0, 0)),
        pl.BlockSpec((num_heads, N, N), lambda b, w: (0, 0, 0)),
    ]
    args = [qkv, bias.astype(jnp.float32)]
    if use_mask:
        in_specs.append(pl.BlockSpec((wb, N, N), lambda b, w: (w, 0, 0)))
        args.append(mask.astype(jnp.float32))

    return pl.pallas_call(
        _make_window_attn_kernel(num_heads, head_dim, scale, use_mask, wb, N),
        out_shape=jax.ShapeDtypeStruct((B, nW, N * C), jnp.bfloat16),
        grid=(B, nW // wb),
        in_specs=in_specs,
        out_specs=pl.BlockSpec((1, wb, N * C), lambda b, w: (b, w, 0)),
        compiler_params=pltpu.CompilerParams(
            dimension_semantics=("parallel", "parallel"),
            vmem_limit_bytes=_vmem_limit_bytes(),
        ),
    )(*args)


# ----------------------------------------------------------------------------- static tables (numpy)
def _relative_position_index(ws):
    coords = np.stack(np.meshgrid(np.arange(ws), np.arange(ws), indexing="ij"))  # (2, ws, ws)
    coords = coords.reshape(2, -1)
    rel = coords[:, :, None] - coords[:, None, :]              # (2, N, N)
    rel = rel.transpose(1, 2, 0).astype(np.int64)
    rel[:, :, 0] += ws - 1
    rel[:, :, 1] += ws - 1
    rel[:, :, 0] *= 2 * ws - 1
    return rel.sum(-1)                                         # (N, N)


def _attn_mask(H, W, ws, shift):
    img_mask = np.zeros((1, H, W, 1), np.float32)
    h_slices = (slice(0, -ws), slice(-ws, -shift), slice(-shift, None))
    w_slices = (slice(0, -ws), slice(-ws, -shift), slice(-shift, None))
    cnt = 0
    for h in h_slices:
        for w in w_slices:
            img_mask[:, h, w, :] = cnt
            cnt += 1
    mw = img_mask.reshape(1, H // ws, ws, W // ws, ws, 1)
    mw = mw.transpose(0, 1, 3, 2, 4, 5).reshape(-1, ws * ws)
    attn_mask = mw[:, None, :] - mw[:, :, None]
    attn_mask = np.where(attn_mask != 0, -100.0, 0.0).astype(np.float32)
    return jnp.asarray(attn_mask)                              # (nW, N, N)


# ----------------------------------------------------------------------------- model pieces
def patch_embed(x, p, patch_size, embed_dim):
    # x: (B, Cin, Himg, Wimg) -> tokens (B, L, embed_dim); conv(k=s=patch) == patch matmul
    B, Cin, Hi, Wi = x.shape
    ps = patch_size
    xp = x.reshape(B, Cin, Hi // ps, ps, Wi // ps, ps)
    xp = xp.transpose(0, 2, 4, 1, 3, 5).reshape(B, (Hi // ps) * (Wi // ps), Cin * ps * ps)
    w = p["proj_w"].reshape(embed_dim, Cin * ps * ps).T        # (Cin*ps*ps, embed_dim) bf16
    xp = linear(xp, w, p["proj_b"], out_dtype=jnp.bfloat16)
    # LN output starts the f32 residual stream
    return pallas_layernorm(xp, p["norm_w"], p["norm_b"], out_dtype=jnp.float32)


def swin_block(x, p, input_resolution, num_heads, window_size, shift_size):
    H, W = input_resolution
    B, L, C = x.shape
    if min(H, W) <= window_size:
        shift_size = 0
        window_size = min(H, W)
    ws = window_size
    nW = (H // ws) * (W // ws)
    N = ws * ws
    head_dim = C // num_heads
    scale = head_dim ** -0.5

    shortcut = x                                               # f32 residual stream
    xn = pallas_layernorm(x, p["norm1_w"], p["norm1_b"])       # bf16 into the qkv matmul
    xn = xn.reshape(B, H, W, C)
    # TODO(synk): cyclic shift + window partition/reverse stay as XLA roll/reshape/transpose;
    # folding them into the attention/proj BlockSpec index_maps would remove ~3 activation HBM
    # passes per block.
    if shift_size > 0:
        xn = jnp.roll(xn, shift=(-shift_size, -shift_size), axis=(1, 2))
    xw = xn.reshape(B, H // ws, ws, W // ws, ws, C)
    xw = xw.transpose(0, 1, 3, 2, 4, 5).reshape(B, nW, N, C)

    # qkv projection; column layout (3, heads, d) exactly like PyTorch's qkv Linear; bf16 output.
    qkv = linear(xw, p["qkv_w"], p["qkv_b"], out_dtype=jnp.bfloat16)       # (B, nW, N, 3C)

    rp_idx = _relative_position_index(ws)
    bias = p["rpb_table"][rp_idx.reshape(-1)].reshape(N, N, num_heads)
    bias = bias.transpose(2, 0, 1).astype(jnp.float32)          # (heads, N, N)

    mask = _attn_mask(H, W, ws, shift_size) if shift_size > 0 else None

    # batched window attention: scale/bias/mask in-kernel, lane-dense (wb, N*C) stores
    attn = window_attention(qkv, bias, mask, num_heads, head_dim, scale)   # (B, nW, N*C) bf16
    attn = attn.reshape(B, nW, N, C)                                       # free (row-major)
    xw = linear(attn, p["proj_w"], p["proj_b"], out_dtype=jnp.bfloat16)

    # window reverse + reverse shift
    xr = xw.reshape(B, H // ws, W // ws, ws, ws, C).transpose(0, 1, 3, 2, 4, 5).reshape(B, H, W, C)
    if shift_size > 0:
        xr = jnp.roll(xr, shift=(shift_size, shift_size), axis=(1, 2))
    x = shortcut + xr.reshape(B, L, C).astype(jnp.float32)      # DropPath == identity (eval)

    y = pallas_layernorm(x, p["norm2_w"], p["norm2_b"])         # bf16
    y = linear(y, p["fc1_w"], p["fc1_b"], out_dtype=jnp.bfloat16, activation="gelu")  # GELU fused
    x = linear(y, p["fc2_w"], p["fc2_b"], out_dtype=jnp.float32, residual=x)          # residual fused
    return x


def patch_merging(x, H, W, p):
    B, L, C = x.shape
    x = x.reshape(B, H, W, C)
    x0 = x[:, 0::2, 0::2, :]
    x1 = x[:, 1::2, 0::2, :]
    x2 = x[:, 0::2, 1::2, :]
    x3 = x[:, 1::2, 1::2, :]
    x = jnp.concatenate([x0, x1, x2, x3], axis=-1).reshape(B, -1, 4 * C)
    x = pallas_layernorm(x, p["norm_w"], p["norm_b"])           # bf16 into the reduction matmul
    x = linear(x, p["red_w"], out_dtype=jnp.float32)            # Linear(4C, 2C, bias=False)
    return x


def outconv_and_head(x_tokens, p_out, head_w, head_b):
    # 1x1 Conv2d + eval-mode BatchNorm2d folded into one fused matmul + exact GELU, then
    # global average pool over tokens (== AdaptiveAvgPool2d(1)), and classifier head.
    # TODO(synk): BatchNorm2d uses eval-mode running stats; train-mode batch statistics not modeled.
    B, L, C = x_tokens.shape
    bn_scale = p_out["bn_gamma"] * jax.lax.rsqrt(p_out["bn_var"] + 1e-5)
    w_eff = p_out["conv_w"] * bn_scale[None, :]
    b_eff = (p_out["conv_b"] - p_out["bn_mean"]) * bn_scale + p_out["bn_beta"]
    y = linear(x_tokens.reshape(B * L, C), w_eff, b_eff, activation="gelu")
    Cout = y.shape[-1]
    y = y.reshape(B, L, Cout).mean(axis=1)                      # GAP (spatial == token mean)
    return linear(y, head_w, head_b)


def swin_trans_forward(params, x, cfg):
    if x.shape[1] == 1:
        x = jnp.tile(x, (1, 3, 1, 1))
    emb = cfg["embed_dim"]
    ps = cfg["patch_size"]
    pr = cfg["img_size"] // ps

    x = patch_embed(x, params["patch_embed"], ps, emb)          # (B, L, emb) f32 stream

    for i, layer in enumerate(params["layers"]):
        H = W = pr // (2 ** i)
        heads = cfg["num_heads"][i]
        for j, blk in enumerate(layer["blocks"]):
            shift = 0 if j % 2 == 0 else cfg["window_size"] // 2
            x = swin_block(x, blk, (H, W), heads, cfg["window_size"], shift)
        if layer["downsample"] is not None:
            x = patch_merging(x, H, W, layer["downsample"])

    x = pallas_layernorm(x, params["norm_w"], params["norm_b"])   # bf16 into OutConv
    return outconv_and_head(x, params["outconv"], params["head_w"], params["head_b"])


# ----------------------------------------------------------------------------- parameter init
def init_params(key, cfg):
    kg = KeyGen(key)

    def tn(shape, dtype=jnp.float32):
        v = 0.02 * jax.random.truncated_normal(kg(), -2.0, 2.0, shape, jnp.float32)
        return v.astype(dtype)

    bf = jnp.bfloat16                 # matmul weights stored bf16 (MXU operand dtype)
    emb = cfg["embed_dim"]
    ps = cfg["patch_size"]
    ci = cfg["in_chans"]
    ws = cfg["window_size"]
    num_layers = len(cfg["depths"])

    params = {
        "patch_embed": dict(
            proj_w=tn((emb, ci, ps, ps), bf),
            proj_b=jnp.zeros((emb,), jnp.float32),
            norm_w=jnp.ones((emb,), jnp.float32),
            norm_b=jnp.zeros((emb,), jnp.float32),
        )
    }

    layers = []
    for i in range(num_layers):
        dim = emb * (2 ** i)
        heads = cfg["num_heads"][i]
        hidden = int(dim * cfg["mlp_ratio"])
        blocks = []
        for _ in range(cfg["depths"][i]):
            blocks.append(dict(
                norm1_w=jnp.ones((dim,), jnp.float32), norm1_b=jnp.zeros((dim,), jnp.float32),
                qkv_w=tn((dim, 3 * dim), bf), qkv_b=jnp.zeros((3 * dim,), jnp.float32),
                rpb_table=tn(((2 * ws - 1) ** 2, heads)),
                proj_w=tn((dim, dim), bf), proj_b=jnp.zeros((dim,), jnp.float32),
                norm2_w=jnp.ones((dim,), jnp.float32), norm2_b=jnp.zeros((dim,), jnp.float32),
                fc1_w=tn((dim, hidden), bf), fc1_b=jnp.zeros((hidden,), jnp.float32),
                fc2_w=tn((hidden, dim), bf), fc2_b=jnp.zeros((dim,), jnp.float32),
            ))
        layer = dict(blocks=blocks, downsample=None)
        if i < num_layers - 1:
            layer["downsample"] = dict(
                norm_w=jnp.ones((4 * dim,), jnp.float32),
                norm_b=jnp.zeros((4 * dim,), jnp.float32),
                red_w=tn((4 * dim, 2 * dim), bf),
            )
        layers.append(layer)
    params["layers"] = layers

    num_features = emb * 2 ** (num_layers - 1)
    out_in = num_features
    out_out = emb * 2 ** num_layers
    params["norm_w"] = jnp.ones((num_features,), jnp.float32)
    params["norm_b"] = jnp.zeros((num_features,), jnp.float32)
    params["outconv"] = dict(
        conv_w=tn((out_in, out_out)),                 # kept f32 for the BN fold
        conv_b=jnp.zeros((out_out,), jnp.float32),
        bn_gamma=jnp.ones((out_out,), jnp.float32),
        bn_beta=jnp.zeros((out_out,), jnp.float32),
        bn_mean=jnp.zeros((out_out,), jnp.float32),
        bn_var=jnp.ones((out_out,), jnp.float32),
    )
    params["head_w"] = tn((out_out, cfg["num_classes"]), bf)
    params["head_b"] = jnp.zeros((cfg["num_classes"],), jnp.float32)
    return params


# ----------------------------------------------------------------------------- main
if __name__ == "__main__":
    # Small but structurally faithful configuration of SwinTrans
    cfg = dict(
        img_size=32, patch_size=4, in_chans=3, num_classes=8,
        embed_dim=32, depths=[2, 2], num_heads=[2, 4],
        window_size=4, mlp_ratio=4.0,
    )

    # decide exact-GELU fusion (probe) eagerly, outside the main jit
    _erf_in_kernel_supported()

    key = jax.random.PRNGKey(0)
    kp, kx = jax.random.split(key)
    params = init_params(kp, cfg)
    x = jax.random.normal(kx, (2, 3, 32, 32), jnp.float32)      # NCHW, like PyTorch

    fwd = jax.jit(lambda p, inp: swin_trans_forward(p, inp, cfg))
    logits = fwd(params, x)
    jax.block_until_ready(logits)

    assert logits.shape == (2, cfg["num_classes"])
    assert bool(jnp.all(jnp.isfinite(logits)))
    print("KERNEL_OK")
</pallas_src>

<mosaic_0001>
module attributes {stable_mosaic.version = 11 : i64} {
  func.func @_k(%arg0: memref<8x128xf32, #tpu.memory_space<vmem>>, %arg1: memref<8x128xf32, #tpu.memory_space<vmem>>) attributes {dimension_semantics = [], scalar_prefetch = 0 : i64, scratch_operands = 0 : i64, tpu.core_type = #tpu.core_type<tc>} {
    %c0 = arith.constant 0 : index
    %c0_0 = arith.constant 0 : index
    %0 = vector.load %arg0[%c0, %c0_0] : memref<8x128xf32, #tpu.memory_space<vmem>>, vector<8x128xf32>
    %1 = math.erf %0 : vector<8x128xf32>
    %c0_1 = arith.constant 0 : index
    %c0_2 = arith.constant 0 : index
    %2 = vector.load %arg1[%c0_1, %c0_2] : memref<8x128xf32, #tpu.memory_space<vmem>>, vector<8x128xf32>
    tpu.vector_store %arg1[%c0_1, %c0_2], %1 {strides = array<i32>} : memref<8x128xf32, #tpu.memory_space<vmem>>, vector<8x128xf32>,
    return
  }
}

module attributes {stable_mosaic.version = 11 : i64} {
  func.func @kernel(%arg0: i32, %arg1: i32, %arg2: memref<128x48xbf16, #tpu.memory_space<vmem>>, %arg3: memref<48x128xbf16, #tpu.memory_space<vmem>>, %arg4: memref<1x128xf32, #tpu.memory_space<vmem>>, %arg5: memref<128x128xbf16, #tpu.memory_space<vmem>>) attributes {dimension_semantics = [#tpu.dimension_semantics<parallel>, #tpu.dimension_semantics<parallel>], iteration_bounds = array<i64: 1, 1>, scalar_prefetch = 0 : i64, scratch_operands = 0 : i64, tpu.core_type = #tpu.core_type<tc>, window_params = [{transform_indices = @transform_0, window_bounds = array<i64: 128, 48>}, {transform_indices = @transform_1, window_bounds = array<i64: 48, 128>}, {transform_indices = @transform_2, window_bounds = array<i64: 1, 128>}, {transform_indices = @transform_3, window_bounds = array<i64: 128, 128>}]} {
    %c0 = arith.constant 0 : index
    %c0_0 = arith.constant 0 : index
    %0 = vector.load %arg2[%c0, %c0_0] : memref<128x48xbf16, #tpu.memory_space<vmem>>, vector<128x48xbf16>
    %c0_1 = arith.constant 0 : index
    %c0_2 = arith.constant 0 : index
    %1 = vector.load %arg3[%c0_1, %c0_2] : memref<48x128xbf16, #tpu.memory_space<vmem>>, vector<48x128xbf16>
    %cst = arith.constant dense<0.000000e+00> : vector<128x128xf32>
    %2 = tpu.matmul %0, %1, %cst {dimension_numbers = #tpu.dot_dimension_numbers<[1], [0], [0], [1], [0, 0, 1, 1], [], []>} : vector<128x48xbf16>, vector<48x128xbf16>, vector<128x128xf32> -> vector<128x128xf32>
    %c0_3 = arith.constant 0 : index
    %c0_4 = arith.constant 0 : index
    %3 = vector.load %arg4[%c0_3, %c0_4] : memref<1x128xf32, #tpu.memory_space<vmem>>, vector<1x128xf32>
    %4 = vector.broadcast %3 : vector<1x128xf32> to vector<128x128xf32>
    %5 = arith.addf %2, %4 : vector<128x128xf32>
    %6 = arith.truncf %5 : vector<128x128xf32> to vector<128x128xbf16>
    %c0_5 = arith.constant 0 : index
    %c0_6 = arith.constant 0 : index
    %7 = vector.load %arg5[%c0_5, %c0_6] : memref<128x128xbf16, #tpu.memory_space<vmem>>, vector<128x128xbf16>
    tpu.vector_store %arg5[%c0_5, %c0_6], %6 {strides = array<i32>} : memref<128x128xbf16, #tpu.memory_space<vmem>>, vector<128x128xbf16>,
    return
  }
  func.func @transform_0(%arg0: i32, %arg1: i32) -> (i32, i32) {
    %c0_i32 = arith.constant 0 : i32
    %c0_i32_0 = arith.constant 0 : i32
    return %arg0, %c0_i32 : i32, i32
  }
  func.func @transform_1(%arg0: i32, %arg1: i32) -> (i32, i32) {
    %c0_i32 = arith.constant 0 : i32
    %c0_i32_0 = arith.constant 0 : i32
    return %c0_i32, %arg1 : i32, i32
  }
  func.func @transform_2(%arg0: i32, %arg1: i32) -> (i32, i32) {
    %c0_i32 = arith.constant 0 : i32
    %c0_i32_0 = arith.constant 0 : i32
    return %c0_i32, %arg1 : i32, i32
  }
  func.func @transform_3(%arg0: i32, %arg1: i32) -> (i32, i32) {
    %c0_i32 = arith.constant 0 : i32
    return %arg0, %arg1 : i32, i32
  }
}

module attributes {stable_mosaic.version = 11 : i64} {
  func.func @_layernorm_kernel(%arg0: i32, %arg1: memref<128x32xbf16, #tpu.memory_space<vmem>>, %arg2: memref<1x32xf32, #tpu.memory_space<vmem>>, %arg3: memref<1x32xf32, #tpu.memory_space<vmem>>, %arg4: memref<128x32xf32, #tpu.memory_space<vmem>>) attributes {dimension_semantics = [#tpu.dimension_semantics<parallel>], iteration_bounds = array<i64: 1>, scalar_prefetch = 0 : i64, scratch_operands = 0 : i64, tpu.core_type = #tpu.core_type<tc>, window_params = [{transform_indices = @transform_0, window_bounds = array<i64: 128, 32>}, {pipeline_mode = #tpu.pipeline_mode<synchronous>, transform_indices = @transform_1, window_bounds = array<i64: 1, 32>}, {pipeline_mode = #tpu.pipeline_mode<synchronous>, transform_indices = @transform_2, window_bounds = array<i64: 1, 32>}, {transform_indices = @transform_3, window_bounds = array<i64: 128, 32>}]} {
    %c0 = arith.constant 0 : index
    %c0_0 = arith.constant 0 : index
    %0 = vector.load %arg1[%c0, %c0_0] : memref<128x32xbf16, #tpu.memory_space<vmem>>, vector<128x32xbf16>
    %1 = arith.extf %0 : vector<128x32xbf16> to vector<128x32xf32>
    %cst = arith.constant dense<0.000000e+00> : vector<128xf32>
    %2 = vector.multi_reduction <add>, %1, %cst [1] : vector<128x32xf32> to vector<128xf32>
    %3 = vector.shape_cast %2 : vector<128xf32> to vector<128x1xf32>
    %cst_1 = arith.constant 3.200000e+01 : f32
    %4 = vector.broadcast %cst_1 : f32 to vector<128x1xf32>
    %5 = arith.divf %3, %4 : vector<128x1xf32>
    %6 = vector.broadcast %5 : vector<128x1xf32> to vector<128x32xf32>
    %7 = arith.subf %1, %6 : vector<128x32xf32>
    %8 = arith.mulf %7, %7 : vector<128x32xf32>
    %cst_2 = arith.constant dense<0.000000e+00> : vector<128xf32>
    %9 = vector.multi_reduction <add>, %8, %cst_2 [1] : vector<128x32xf32> to vector<128xf32>
    %10 = vector.shape_cast %9 : vector<128xf32> to vector<128x1xf32>
    %cst_3 = arith.constant 3.200000e+01 : f32
    %11 = vector.broadcast %cst_3 : f32 to vector<128x1xf32>
    %12 = arith.divf %10, %11 : vector<128x1xf32>
    %13 = vector.broadcast %5 : vector<128x1xf32> to vector<128x32xf32>
    %14 = arith.subf %1, %13 : vector<128x32xf32>
    %cst_4 = arith.constant 9.99999974E-6 : f32
    %15 = vector.broadcast %cst_4 : f32 to vector<128x1xf32>
    %16 = arith.addf %12, %15 : vector<128x1xf32>
    %17 = math.rsqrt %16 : vector<128x1xf32>
    %18 = vector.broadcast %17 : vector<128x1xf32> to vector<128x32xf32>
    %19 = arith.mulf %14, %18 : vector<128x32xf32>
    %c0_5 = arith.constant 0 : index
    %c0_6 = arith.constant 0 : index
    %20 = vector.load %arg2[%c0_5, %c0_6] : memref<1x32xf32, #tpu.memory_space<vmem>>, vector<1x32xf32>
    %21 = vector.broadcast %20 : vector<1x32xf32> to vector<128x32xf32>
    %22 = arith.mulf %19, %21 : vector<128x32xf32>
    %c0_7 = arith.constant 0 : index
    %c0_8 = arith.constant 0 : index
    %23 = vector.load %arg3[%c0_7, %c0_8] : memref<1x32xf32, #tpu.memory_space<vmem>>, vector<1x32xf32>
    %24 = vector.broadcast %23 : vector<1x32xf32> to vector<128x32xf32>
    %25 = arith.addf %22, %24 : vector<128x32xf32>
    %c0_9 = arith.constant 0 : index
    %c0_10 = arith.constant 0 : index
    %26 = vector.load %arg4[%c0_9, %c0_10] : memref<128x32xf32, #tpu.memory_space<vmem>>, vector<128x32xf32>
    tpu.vector_store %arg4[%c0_9, %c0_10], %25 {strides = array<i32>} : memref<128x32xf32, #tpu.memory_space<vmem>>, vector<128x32xf32>,
    return
  }
  func.func @transform_0(%arg0: i32) -> (i32, i32) {
    %c0_i32 = arith.constant 0 : i32
    %c0_i32_0 = arith.constant 0 : i32
    return %arg0, %c0_i32 : i32, i32
  }
  func.func @transform_1(%arg0: i32) -> (i32, i32) {
    %c0_i32 = arith.constant 0 : i32
    %c0_i32_0 = arith.constant 0 : i32
    %c0_i32_1 = arith.constant 0 : i32
    return %c0_i32, %c0_i32_0 : i32, i32
  }
  func.func @transform_2(%arg0: i32) -> (i32, i32) {
    %c0_i32 = arith.constant 0 : i32
    %c0_i32_0 = arith.constant 0 : i32
    %c0_i32_1 = arith.constant 0 : i32
    return %c0_i32, %c0_i32_0 : i32, i32
  }
  func.func @transform_3(%arg0: i32) -> (i32, i32) {
    %c0_i32 = arith.constant 0 : i32
    %c0_i32_0 = arith.constant 0 : i32
    return %arg0, %c0_i32 : i32, i32
  }
}

module attributes {stable_mosaic.version = 11 : i64} {
  func.func @_layernorm_kernel(%arg0: i32, %arg1: memref<128x32xf32, #tpu.memory_space<vmem>>, %arg2: memref<1x32xf32, #tpu.memory_space<vmem>>, %arg3: memref<1x32xf32, #tpu.memory_space<vmem>>, %arg4: memref<128x32xbf16, #tpu.memory_space<vmem>>) attributes {dimension_semantics = [#tpu.dimension_semantics<parallel>], iteration_bounds = array<i64: 1>, scalar_prefetch = 0 : i64, scratch_operands = 0 : i64, tpu.core_type = #tpu.core_type<tc>, window_params = [{transform_indices = @transform_0, window_bounds = array<i64: 128, 32>}, {pipeline_mode = #tpu.pipeline_mode<synchronous>, transform_indices = @transform_1, window_bounds = array<i64: 1, 32>}, {pipeline_mode = #tpu.pipeline_mode<synchronous>, transform_indices = @transform_2, window_bounds = array<i64: 1, 32>}, {transform_indices = @transform_3, window_bounds = array<i64: 128, 32>}]} {
    %c0 = arith.constant 0 : index
    %c0_0 = arith.constant 0 : index
    %0 = vector.load %arg1[%c0, %c0_0] : memref<128x32xf32, #tpu.memory_space<vmem>>, vector<128x32xf32>
    %cst = arith.constant dense<0.000000e+00> : vector<128xf32>
    %1 = vector.multi_reduction <add>, %0, %cst [1] : vector<128x32xf32> to vector<128xf32>
    %2 = vector.shape_cast %1 : vector<128xf32> to vector<128x1xf32>
    %cst_1 = arith.constant 3.200000e+01 : f32
    %3 = vector.broadcast %cst_1 : f32 to vector<128x1xf32>
    %4 = arith.divf %2, %3 : vector<128x1xf32>
    %5 = vector.broadcast %4 : vector<128x1xf32> to vector<128x32xf32>
    %6 = arith.subf %0, %5 : vector<128x32xf32>
    %7 = arith.mulf %6, %6 : vector<128x32xf32>
    %cst_2 = arith.constant dense<0.000000e+00> : vector<128xf32>
    %8 = vector.multi_reduction <add>, %7, %cst_2 [1] : vector<128x32xf32> to vector<128xf32>
    %9 = vector.shape_cast %8 : vector<128xf32> to vector<128x1xf32>
    %cst_3 = arith.constant 3.200000e+01 : f32
    %10 = vector.broadcast %cst_3 : f32 to vector<128x1xf32>
    %11 = arith.divf %9, %10 : vector<128x1xf32>
    %12 = vector.broadcast %4 : vector<128x1xf32> to vector<128x32xf32>
    %13 = arith.subf %0, %12 : vector<128x32xf32>
    %cst_4 = arith.constant 9.99999974E-6 : f32
    %14 = vector.broadcast %cst_4 : f32 to vector<128x1xf32>
    %15 = arith.addf %11, %14 : vector<128x1xf32>
    %16 = math.rsqrt %15 : vector<128x1xf32>
    %17 = vector.broadcast %16 : vector<128x1xf32> to vector<128x32xf32>
    %18 = arith.mulf %13, %17 : vector<128x32xf32>
    %c0_5 = arith.constant 0 : index
    %c0_6 = arith.constant 0 : index
    %19 = vector.load %arg2[%c0_5, %c0_6] : memref<1x32xf32, #tpu.memory_space<vmem>>, vector<1x32xf32>
    %20 = vector.broadcast %19 : vector<1x32xf32> to vector<128x32xf32>
    %21 = arith.mulf %18, %20 : vector<128x32xf32>
    %c0_7 = arith.constant 0 : index
    %c0_8 = arith.constant 0 : index
    %22 = vector.load %arg3[%c0_7, %c0_8] : memref<1x32xf32, #tpu.memory_space<vmem>>, vector<1x32xf32>
    %23 = vector.broadcast %22 : vector<1x32xf32> to vector<128x32xf32>
    %24 = arith.addf %21, %23 : vector<128x32xf32>
    %25 = arith.truncf %24 : vector<128x32xf32> to vector<128x32xbf16>
    %c0_9 = arith.constant 0 : index
    %c0_10 = arith.constant 0 : index
    %26 = vector.load %arg4[%c0_9, %c0_10] : memref<128x32xbf16, #tpu.memory_space<vmem>>, vector<128x32xbf16>
    tpu.vector_store %arg4[%c0_9, %c0_10], %25 {strides = array<i32>} : memref<128x32xbf16, #tpu.memory_space<vmem>>, vector<128x32xbf16>,
    return
  }
  func.func @transform_0(%arg0: i32) -> (i32, i32) {
    %c0_i32 = arith.constant 0 : i32
    %c0_i32_0 = arith.constant 0 : i32
    return %arg0, %c0_i32 : i32, i32
  }
  func.func @transform_1(%arg0: i32) -> (i32, i32) {
    %c0_i32 = arith.constant 0 : i32
    %c0_i32_0 = arith.constant 0 : i32
    %c0_i32_1 = arith.constant 0 : i32
    return %c0_i32, %c0_i32_0 : i32, i32
  }
  func.func @transform_2(%arg0: i32) -> (i32, i32) {
    %c0_i32 = arith.constant 0 : i32
    %c0_i32_0 = arith.constant 0 : i32
    %c0_i32_1 = arith.constant 0 : i32
    return %c0_i32, %c0_i32_0 : i32, i32
  }
  func.func @transform_3(%arg0: i32) -> (i32, i32) {
    %c0_i32 = arith.constant 0 : i32
    %c0_i32_0 = arith.constant 0 : i32
    return %arg0, %c0_i32 : i32, i32
  }
}

module attributes {stable_mosaic.version = 11 : i64} {
  func.func @kernel(%arg0: i32, %arg1: i32, %arg2: memref<128x32xbf16, #tpu.memory_space<vmem>>, %arg3: memref<32x128xbf16, #tpu.memory_space<vmem>>, %arg4: memref<1x128xf32, #tpu.memory_space<vmem>>, %arg5: memref<128x128xbf16, #tpu.memory_space<vmem>>) attributes {dimension_semantics = [#tpu.dimension_semantics<parallel>, #tpu.dimension_semantics<parallel>], iteration_bounds = array<i64: 1, 1>, scalar_prefetch = 0 : i64, scratch_operands = 0 : i64, tpu.core_type = #tpu.core_type<tc>, window_params = [{transform_indices = @transform_0, window_bounds = array<i64: 128, 32>}, {transform_indices = @transform_1, window_bounds = array<i64: 32, 128>}, {transform_indices = @transform_2, window_bounds = array<i64: 1, 128>}, {transform_indices = @transform_3, window_bounds = array<i64: 128, 128>}]} {
    %c0 = arith.constant 0 : index
    %c0_0 = arith.constant 0 : index
    %0 = vector.load %arg2[%c0, %c0_0] : memref<128x32xbf16, #tpu.memory_space<vmem>>, vector<128x32xbf16>
    %c0_1 = arith.constant 0 : index
    %c0_2 = arith.constant 0 : index
    %1 = vector.load %arg3[%c0_1, %c0_2] : memref<32x128xbf16, #tpu.memory_space<vmem>>, vector<32x128xbf16>
    %cst = arith.constant dense<0.000000e+00> : vector<128x128xf32>
    %2 = tpu.matmul %0, %1, %cst {dimension_numbers = #tpu.dot_dimension_numbers<[1], [0], [0], [1], [0, 0, 1, 1], [], []>} : vector<128x32xbf16>, vector<32x128xbf16>, vector<128x128xf32> -> vector<128x128xf32>
    %c0_3 = arith.constant 0 : index
    %c0_4 = arith.constant 0 : index
    %3 = vector.load %arg4[%c0_3, %c0_4] : memref<1x128xf32, #tpu.memory_space<vmem>>, vector<1x128xf32>
    %4 = vector.broadcast %3 : vector<1x128xf32> to vector<128x128xf32>
    %5 = arith.addf %2, %4 : vector<128x128xf32>
    %6 = arith.truncf %5 : vector<128x128xf32> to vector<128x128xbf16>
    %c0_5 = arith.constant 0 : index
    %c0_6 = arith.constant 0 : index
    %7 = vector.load %arg5[%c0_5, %c0_6] : memref<128x128xbf16, #tpu.memory_space<vmem>>, vector<128x128xbf16>
    tpu.vector_store %arg5[%c0_5, %c0_6], %6 {strides = array<i32>} : memref<128x128xbf16, #tpu.memory_space<vmem>>, vector<128x128xbf16>,
    return
  }
  func.func @transform_0(%arg0: i32, %arg1: i32) -> (i32, i32) {
    %c0_i32 = arith.constant 0 : i32
    %c0_i32_0 = arith.constant 0 : i32
    return %arg0, %c0_i32 : i32, i32
  }
  func.func @transform_1(%arg0: i32, %arg1: i32) -> (i32, i32) {
    %c0_i32 = arith.constant 0 : i32
    %c0_i32_0 = arith.constant 0 : i32
    return %c0_i32, %arg1 : i32, i32
  }
  func.func @transform_2(%arg0: i32, %arg1: i32) -> (i32, i32) {
    %c0_i32 = arith.constant 0 : i32
    %c0_i32_0 = arith.constant 0 : i32
    return %c0_i32, %arg1 : i32, i32
  }
  func.func @transform_3(%arg0: i32, %arg1: i32) -> (i32, i32) {
    %c0_i32 = arith.constant 0 : i32
    return %arg0, %arg1 : i32, i32
  }
}

module attributes {stable_mosaic.version = 11 : i64} {
  func.func @kernel(%arg0: i32, %arg1: i32, %arg2: memref<1x4x16x96xbf16, #tpu.memory_space<vmem>>, %arg3: memref<2x16x16xf32, #tpu.memory_space<vmem>>, %arg4: memref<1x4x512xbf16, #tpu.memory_space<vmem>>) attributes {dimension_semantics = [#tpu.dimension_semantics<parallel>, #tpu.dimension_semantics<parallel>], iteration_bounds = array<i64: 2, 1>, scalar_prefetch = 0 : i64, scratch_operands = 0 : i64, tpu.core_type = #tpu.core_type<tc>, window_params = [{transform_indices = @transform_0, window_bounds = array<i64: 1, 4, 16, 96>}, {pipeline_mode = #tpu.pipeline_mode<synchronous>, transform_indices = @transform_1, window_bounds = array<i64: 2, 16, 16>}, {transform_indices = @transform_2, window_bounds = array<i64: 1, 4, 512>}]} {
    %c0 = arith.constant 0 : index
    %c0_0 = arith.constant 0 : index
    %c0_1 = arith.constant 0 : index
    %c0_2 = arith.constant 0 : index
    %0 = vector.load %arg2[%c0, %c0_0, %c0_1, %c0_2] : memref<1x4x16x96xbf16, #tpu.memory_space<vmem>>, vector<1x4x16x96xbf16>
    %1 = vector.shape_cast %0 : vector<1x4x16x96xbf16> to vector<4x16x96xbf16>
    %c0_3 = arith.constant 0 : index
    %c0_4 = arith.constant 0 : index
    %c0_5 = arith.constant 0 : index
    %2 = vector.load %arg3[%c0_3, %c0_4, %c0_5] : memref<2x16x16xf32, #tpu.memory_space<vmem>>, vector<2x16x16xf32>
    %3 = vector.extract_strided_slice %1 {offsets = [0, 0, 0], sizes = [4, 16, 16], strides = [1, 1, 1]} : vector<4x16x96xbf16> to vector<4x16x16xbf16>
    %4 = vector.extract_strided_slice %1 {offsets = [0, 0, 16], sizes = [4, 16, 16], strides = [1, 1, 1]} : vector<4x16x96xbf16> to vector<4x16x16xbf16>
    %5 = vector.shape_cast %3 : vector<4x16x16xbf16> to vector<1x4x16x16xbf16>
    %6 = vector.shape_cast %4 : vector<4x16x16xbf16> to vector<1x4x16x16xbf16>
    %7 = tpu.concatenate %5, %6 in 0 : vector<1x4x16x16xbf16>, vector<1x4x16x16xbf16> -> vector<2x4x16x16xbf16>
    %8 = vector.shape_cast %7 : vector<2x4x16x16xbf16> to vector<8x16x16xbf16>
    %9 = vector.extract_strided_slice %1 {offsets = [0, 0, 32], sizes = [4, 16, 16], strides = [1, 1, 1]} : vector<4x16x96xbf16> to vector<4x16x16xbf16>
    %10 = vector.extract_strided_slice %1 {offsets = [0, 0, 48], sizes = [4, 16, 16], strides = [1, 1, 1]} : vector<4x16x96xbf16> to vector<4x16x16xbf16>
    %11 = vector.shape_cast %9 : vector<4x16x16xbf16> to vector<1x4x16x16xbf16>
    %12 = vector.shape_cast %10 : vector<4x16x16xbf16> to vector<1x4x16x16xbf16>
    %13 = tpu.concatenate %11, %12 in 0 : vector<1x4x16x16xbf16>, vector<1x4x16x16xbf16> -> vector<2x4x16x16xbf16>
    %14 = vector.shape_cast %13 : vector<2x4x16x16xbf16> to vector<8x16x16xbf16>
    %15 = vector.extract_strided_slice %1 {offsets = [0, 0, 64], sizes = [4, 16, 16], strides = [1, 1, 1]} : vector<4x16x96xbf16> to vector<4x16x16xbf16>
    %16 = vector.extract_strided_slice %1 {offsets = [0, 0, 80], sizes = [4, 16, 16], strides = [1, 1, 1]} : vector<4x16x96xbf16> to vector<4x16x16xbf16>
    %17 = vector.shape_cast %15 : vector<4x16x16xbf16> to vector<1x4x16x16xbf16>
    %18 = vector.shape_cast %16 : vector<4x16x16xbf16> to vector<1x4x16x16xbf16>
    %19 = tpu.concatenate %17, %18 in 0 : vector<1x4x16x16xbf16>, vector<1x4x16x16xbf16> -> vector<2x4x16x16xbf16>
    %20 = vector.shape_cast %19 : vector<2x4x16x16xbf16> to vector<8x16x16xbf16>
    "tpu.trace_start"() <{level = 10 : i32, message = "bqd,bkd->bqk"}> : () -> ()
    %cst = arith.constant dense<0.000000e+00> : vector<8x16x16xf32>
    %21 = tpu.matmul %8, %14, %cst {dimension_numbers = #tpu.dot_dimension_numbers<[2], [2], [1], [1], [0, 0, 0, 1, 1, 1], [0], [0]>} : vector<8x16x16xbf16>, vector<8x16x16xbf16>, vector<8x16x16xf32> -> vector<8x16x16xf32>
    "tpu.trace_stop"() : () -> ()
    %cst_6 = arith.constant 2.500000e-01 : f32
    %22 = vector.broadcast %cst_6 : f32 to vector<8x16x16xf32>
    %23 = arith.mulf %21, %22 : vector<8x16x16xf32>
    %24 = vector.shape_cast %2 : vector<2x16x16xf32> to vector<2x1x16x16xf32>
    %25 = vector.shape_cast %24 : vector<2x1x16x16xf32> to vector<2x1x16x16xf32>
    %26 = vector.broadcast %25 : vector<2x1x16x16xf32> to vector<2x4x16x16xf32>
    %27 = vector.shape_cast %26 : vector<2x4x16x16xf32> to vector<8x16x16xf32>
    %28 = arith.addf %23, %27 : vector<8x16x16xf32>
    %cst_7 = arith.constant dense<0xFF800000> : vector<8x16xf32>
    %29 = vector.multi_reduction <maximumf>, %28, %cst_7 [2] : vector<8x16x16xf32> to vector<8x16xf32>
    %30 = vector.shape_cast %29 : vector<8x16xf32> to vector<8x16x1xf32>
    %31 = vector.broadcast %30 : vector<8x16x1xf32> to vector<8x16x16xf32>
    %32 = arith.subf %28, %31 : vector<8x16x16xf32>
    %33 = math.exp %32 : vector<8x16x16xf32>
    %cst_8 = arith.constant dense<0.000000e+00> : vector<8x16xf32>
    %34 = vector.multi_reduction <add>, %33, %cst_8 [2] : vector<8x16x16xf32> to vector<8x16xf32>
    %35 = vector.shape_cast %34 : vector<8x16xf32> to vector<8x16x1xf32>
    %36 = tpu.reciprocal %35 {approx = true} : vector<8x16x1xf32> -> vector<8x16x1xf32>
    %37 = vector.broadcast %36 : vector<8x16x1xf32> to vector<8x16x16xf32>
    %38 = arith.mulf %33, %37 : vector<8x16x16xf32>
    %39 = arith.truncf %38 : vector<8x16x16xf32> to vector<8x16x16xbf16>
    "tpu.trace_start"() <{level = 10 : i32, message = "bqk,bkd->bqd"}> : () -> ()
    %cst_9 = arith.constant dense<0.000000e+00> : vector<8x16x16xf32>
    %40 = tpu.matmul %39, %20, %cst_9 {dimension_numbers = #tpu.dot_dimension_numbers<[2], [1], [1], [2], [0, 0, 0, 1, 1, 2], [0], [0]>} : vector<8x16x16xbf16>, vector<8x16x16xbf16>, vector<8x16x16xf32> -> vector<8x16x16xf32>
    "tpu.trace_stop"() : () -> ()
    %41 = vector.shape_cast %40 : vector<8x16x16xf32> to vector<2x4x16x16xf32>
    %42 = vector.extract_strided_slice %41 {offsets = [0, 0, 0, 0], sizes = [1, 4, 16, 16], strides = [1, 1, 1, 1]} : vector<2x4x16x16xf32> to vector<1x4x16x16xf32>
    %43 = vector.shape_cast %42 : vector<1x4x16x16xf32> to vector<4x16x16xf32>
    %44 = vector.extract_strided_slice %41 {offsets = [1, 0, 0, 0], sizes = [1, 4, 16, 16], strides = [1, 1, 1, 1]} : vector<2x4x16x16xf32> to vector<1x4x16x16xf32>
    %45 = vector.shape_cast %44 : vector<1x4x16x16xf32> to vector<4x16x16xf32>
    %46 = tpu.concatenate %43, %45 in 2 : vector<4x16x16xf32>, vector<4x16x16xf32> -> vector<4x16x32xf32>
    %47 = vector.shape_cast %46 : vector<4x16x32xf32> to vector<4x512xf32>
    %48 = arith.truncf %47 : vector<4x512xf32> to vector<4x512xbf16>
    %c0_10 = arith.constant 0 : index
    %c0_11 = arith.constant 0 : index
    %c0_12 = arith.constant 0 : index
    %49 = vector.load %arg4[%c0_10, %c0_11, %c0_12] : memref<1x4x512xbf16, #tpu.memory_space<vmem>>, vector<1x4x512xbf16>
    %50 = vector.shape_cast %49 : vector<1x4x512xbf16> to vector<4x512xbf16>
    %51 = vector.shape_cast %48 : vector<4x512xbf16> to vector<1x4x512xbf16>
    tpu.vector_store %arg4[%c0_10, %c0_11, %c0_12], %51 {strides = array<i32>} : memref<1x4x512xbf16, #tpu.memory_space<vmem>>, vector<1x4x512xbf16>,
    return
  }
  func.func @transform_0(%arg0: i32, %arg1: i32) -> (i32, i32, i32, i32) {
    %c0_i32 = arith.constant 0 : i32
    %c0_i32_0 = arith.constant 0 : i32
    %c0_i32_1 = arith.constant 0 : i32
    return %arg0, %arg1, %c0_i32, %c0_i32_0 : i32, i32, i32, i32
  }
  func.func @transform_1(%arg0: i32, %arg1: i32) -> (i32, i32, i32) {
    %c0_i32 = arith.constant 0 : i32
    %c0_i32_0 = arith.constant 0 : i32
    %c0_i32_1 = arith.constant 0 : i32
    %c0_i32_2 = arith.constant 0 : i32
    return %c0_i32, %c0_i32_0, %c0_i32_1 : i32, i32, i32
  }
  func.func @transform_2(%arg0: i32, %arg1: i32) -> (i32, i32, i32) {
    %c0_i32 = arith.constant 0 : i32
    %c0_i32_0 = arith.constant 0 : i32
    return %arg0, %arg1, %c0_i32 : i32, i32, i32
  }
}

module attributes {stable_mosaic.version = 11 : i64} {
  func.func @kernel(%arg0: i32, %arg1: i32, %arg2: memref<128x32xbf16, #tpu.memory_space<vmem>>, %arg3: memref<32x128xbf16, #tpu.memory_space<vmem>>, %arg4: memref<1x128xf32, #tpu.memory_space<vmem>>, %arg5: memref<128x128xf32, #tpu.memory_space<vmem>>) attributes {dimension_semantics = [#tpu.dimension_semantics<parallel>, #tpu.dimension_semantics<parallel>], iteration_bounds = array<i64: 1, 1>, scalar_prefetch = 0 : i64, scratch_operands = 0 : i64, tpu.core_type = #tpu.core_type<tc>, window_params = [{transform_indices = @transform_0, window_bounds = array<i64: 128, 32>}, {transform_indices = @transform_1, window_bounds = array<i64: 32, 128>}, {transform_indices = @transform_2, window_bounds = array<i64: 1, 128>}, {transform_indices = @transform_3, window_bounds = array<i64: 128, 128>}]} {
    %c0 = arith.constant 0 : index
    %c0_0 = arith.constant 0 : index
    %0 = vector.load %arg2[%c0, %c0_0] : memref<128x32xbf16, #tpu.memory_space<vmem>>, vector<128x32xbf16>
    %c0_1 = arith.constant 0 : index
    %c0_2 = arith.constant 0 : index
    %1 = vector.load %arg3[%c0_1, %c0_2] : memref<32x128xbf16, #tpu.memory_space<vmem>>, vector<32x128xbf16>
    %cst = arith.constant dense<0.000000e+00> : vector<128x128xf32>
    %2 = tpu.matmul %0, %1, %cst {dimension_numbers = #tpu.dot_dimension_numbers<[1], [0], [0], [1], [0, 0, 1, 1], [], []>} : vector<128x32xbf16>, vector<32x128xbf16>, vector<128x128xf32> -> vector<128x128xf32>
    %c0_3 = arith.constant 0 : index
    %c0_4 = arith.constant 0 : index
    %3 = vector.load %arg4[%c0_3, %c0_4] : memref<1x128xf32, #tpu.memory_space<vmem>>, vector<1x128xf32>
    %4 = vector.broadcast %3 : vector<1x128xf32> to vector<128x128xf32>
    %5 = arith.addf %2, %4 : vector<128x128xf32>
    %c0_5 = arith.constant 0 : index
    %c0_6 = arith.constant 0 : index
    %6 = vector.load %arg5[%c0_5, %c0_6] : memref<128x128xf32, #tpu.memory_space<vmem>>, vector<128x128xf32>
    tpu.vector_store %arg5[%c0_5, %c0_6], %5 {strides = array<i32>} : memref<128x128xf32, #tpu.memory_space<vmem>>, vector<128x128xf32>,
    return
  }
  func.func @transform_0(%arg0: i32, %arg1: i32) -> (i32, i32) {
    %c0_i32 = arith.constant 0 : i32
    %c0_i32_0 = arith.constant 0 : i32
    return %arg0, %c0_i32 : i32, i32
  }
  func.func @transform_1(%arg0: i32, %arg1: i32) -> (i32, i32) {
    %c0_i32 = arith.constant 0 : i32
    %c0_i32_0 = arith.constant 0 : i32
    return %c0_i32, %arg1 : i32, i32
  }
  func.func @transform_2(%arg0: i32, %arg1: i32) -> (i32, i32) {
    %c0_i32 = arith.constant 0 : i32
    %c0_i32_0 = arith.constant 0 : i32
    return %c0_i32, %arg1 : i32, i32
  }
  func.func @transform_3(%arg0: i32, %arg1: i32) -> (i32, i32) {
    %c0_i32 = arith.constant 0 : i32
    return %arg0, %arg1 : i32, i32
  }
}

module attributes {stable_mosaic.version = 11 : i64} {
  func.func @kernel(%arg0: i32, %arg1: i32, %arg2: memref<128x128xbf16, #tpu.memory_space<vmem>>, %arg3: memref<128x128xbf16, #tpu.memory_space<vmem>>, %arg4: memref<1x128xf32, #tpu.memory_space<vmem>>, %arg5: memref<128x128xf32, #tpu.memory_space<vmem>>, %arg6: memref<128x128xf32, #tpu.memory_space<vmem>>) attributes {dimension_semantics = [#tpu.dimension_semantics<parallel>, #tpu.dimension_semantics<parallel>], iteration_bounds = array<i64: 1, 1>, scalar_prefetch = 0 : i64, scratch_operands = 0 : i64, tpu.core_type = #tpu.core_type<tc>, window_params = [{transform_indices = @transform_0, window_bounds = array<i64: 128, 128>}, {transform_indices = @transform_1, window_bounds = array<i64: 128, 128>}, {transform_indices = @transform_2, window_bounds = array<i64: 1, 128>}, {transform_indices = @transform_3, window_bounds = array<i64: 128, 128>}, {transform_indices = @transform_4, window_bounds = array<i64: 128, 128>}]} {
    %c0 = arith.constant 0 : index
    %c0_0 = arith.constant 0 : index
    %0 = vector.load %arg2[%c0, %c0_0] : memref<128x128xbf16, #tpu.memory_space<vmem>>, vector<128x128xbf16>
    %c0_1 = arith.constant 0 : index
    %c0_2 = arith.constant 0 : index
    %1 = vector.load %arg3[%c0_1, %c0_2] : memref<128x128xbf16, #tpu.memory_space<vmem>>, vector<128x128xbf16>
    %cst = arith.constant dense<0.000000e+00> : vector<128x128xf32>
    %2 = tpu.matmul %0, %1, %cst {dimension_numbers = #tpu.dot_dimension_numbers<[1], [0], [0], [1], [0, 0, 1, 1], [], []>} : vector<128x128xbf16>, vector<128x128xbf16>, vector<128x128xf32> -> vector<128x128xf32>
    %c0_3 = arith.constant 0 : index
    %c0_4 = arith.constant 0 : index
    %3 = vector.load %arg4[%c0_3, %c0_4] : memref<1x128xf32, #tpu.memory_space<vmem>>, vector<1x128xf32>
    %4 = vector.broadcast %3 : vector<1x128xf32> to vector<128x128xf32>
    %5 = arith.addf %2, %4 : vector<128x128xf32>
    %c0_5 = arith.constant 0 : index
    %c0_6 = arith.constant 0 : index
    %6 = vector.load %arg5[%c0_5, %c0_6] : memref<128x128xf32, #tpu.memory_space<vmem>>, vector<128x128xf32>
    %7 = arith.addf %5, %6 : vector<128x128xf32>
    %c0_7 = arith.constant 0 : index
    %c0_8 = arith.constant 0 : index
    %8 = vector.load %arg6[%c0_7, %c0_8] : memref<128x128xf32, #tpu.memory_space<vmem>>, vector<128x128xf32>
    tpu.vector_store %arg6[%c0_7, %c0_8], %7 {strides = array<i32>} : memref<128x128xf32, #tpu.memory_space<vmem>>, vector<128x128xf32>,
    return
  }
  func.func @transform_0(%arg0: i32, %arg1: i32) -> (i32, i32) {
    %c0_i32 = arith.constant 0 : i32
    %c0_i32_0 = arith.constant 0 : i32
    return %arg0, %c0_i32 : i32, i32
  }
  func.func @transform_1(%arg0: i32, %arg1: i32) -> (i32, i32) {
    %c0_i32 = arith.constant 0 : i32
    %c0_i32_0 = arith.constant 0 : i32
    return %c0_i32, %arg1 : i32, i32
  }
  func.func @transform_2(%arg0: i32, %arg1: i32) -> (i32, i32) {
    %c0_i32 = arith.constant 0 : i32
    %c0_i32_0 = arith.constant 0 : i32
    return %c0_i32, %arg1 : i32, i32
  }
  func.func @transform_3(%arg0: i32, %arg1: i32) -> (i32, i32) {
    %c0_i32 = arith.constant 0 : i32
    return %arg0, %arg1 : i32, i32
  }
  func.func @transform_4(%arg0: i32, %arg1: i32) -> (i32, i32) {
    %c0_i32 = arith.constant 0 : i32
    return %arg0, %arg1 : i32, i32
  }
}

module attributes {stable_mosaic.version = 11 : i64} {
  func.func @kernel(%arg0: i32, %arg1: i32, %arg2: memref<1x4x16x96xbf16, #tpu.memory_space<vmem>>, %arg3: memref<2x16x16xf32, #tpu.memory_space<vmem>>, %arg4: memref<4x16x16xf32, #tpu.memory_space<vmem>>, %arg5: memref<1x4x512xbf16, #tpu.memory_space<vmem>>) attributes {dimension_semantics = [#tpu.dimension_semantics<parallel>, #tpu.dimension_semantics<parallel>], iteration_bounds = array<i64: 2, 1>, scalar_prefetch = 0 : i64, scratch_operands = 0 : i64, tpu.core_type = #tpu.core_type<tc>, window_params = [{transform_indices = @transform_0, window_bounds = array<i64: 1, 4, 16, 96>}, {pipeline_mode = #tpu.pipeline_mode<synchronous>, transform_indices = @transform_1, window_bounds = array<i64: 2, 16, 16>}, {transform_indices = @transform_2, window_bounds = array<i64: 4, 16, 16>}, {transform_indices = @transform_3, window_bounds = array<i64: 1, 4, 512>}]} {
    %c0 = arith.constant 0 : index
    %c0_0 = arith.constant 0 : index
    %c0_1 = arith.constant 0 : index
    %c0_2 = arith.constant 0 : index
    %0 = vector.load %arg2[%c0, %c0_0, %c0_1, %c0_2] : memref<1x4x16x96xbf16, #tpu.memory_space<vmem>>, vector<1x4x16x96xbf16>
    %1 = vector.shape_cast %0 : vector<1x4x16x96xbf16> to vector<4x16x96xbf16>
    %c0_3 = arith.constant 0 : index
    %c0_4 = arith.constant 0 : index
    %c0_5 = arith.constant 0 : index
    %2 = vector.load %arg3[%c0_3, %c0_4, %c0_5] : memref<2x16x16xf32, #tpu.memory_space<vmem>>, vector<2x16x16xf32>
    %3 = vector.extract_strided_slice %1 {offsets = [0, 0, 0], sizes = [4, 16, 16], strides = [1, 1, 1]} : vector<4x16x96xbf16> to vector<4x16x16xbf16>
    %4 = vector.extract_strided_slice %1 {offsets = [0, 0, 16], sizes = [4, 16, 16], strides = [1, 1, 1]} : vector<4x16x96xbf16> to vector<4x16x16xbf16>
    %5 = vector.shape_cast %3 : vector<4x16x16xbf16> to vector<1x4x16x16xbf16>
    %6 = vector.shape_cast %4 : vector<4x16x16xbf16> to vector<1x4x16x16xbf16>
    %7 = tpu.concatenate %5, %6 in 0 : vector<1x4x16x16xbf16>, vector<1x4x16x16xbf16> -> vector<2x4x16x16xbf16>
    %8 = vector.shape_cast %7 : vector<2x4x16x16xbf16> to vector<8x16x16xbf16>
    %9 = vector.extract_strided_slice %1 {offsets = [0, 0, 32], sizes = [4, 16, 16], strides = [1, 1, 1]} : vector<4x16x96xbf16> to vector<4x16x16xbf16>
    %10 = vector.extract_strided_slice %1 {offsets = [0, 0, 48], sizes = [4, 16, 16], strides = [1, 1, 1]} : vector<4x16x96xbf16> to vector<4x16x16xbf16>
    %11 = vector.shape_cast %9 : vector<4x16x16xbf16> to vector<1x4x16x16xbf16>
    %12 = vector.shape_cast %10 : vector<4x16x16xbf16> to vector<1x4x16x16xbf16>
    %13 = tpu.concatenate %11, %12 in 0 : vector<1x4x16x16xbf16>, vector<1x4x16x16xbf16> -> vector<2x4x16x16xbf16>
    %14 = vector.shape_cast %13 : vector<2x4x16x16xbf16> to vector<8x16x16xbf16>
    %15 = vector.extract_strided_slice %1 {offsets = [0, 0, 64], sizes = [4, 16, 16], strides = [1, 1, 1]} : vector<4x16x96xbf16> to vector<4x16x16xbf16>
    %16 = vector.extract_strided_slice %1 {offsets = [0, 0, 80], sizes = [4, 16, 16], strides = [1, 1, 1]} : vector<4x16x96xbf16> to vector<4x16x16xbf16>
    %17 = vector.shape_cast %15 : vector<4x16x16xbf16> to vector<1x4x16x16xbf16>
    %18 = vector.shape_cast %16 : vector<4x16x16xbf16> to vector<1x4x16x16xbf16>
    %19 = tpu.concatenate %17, %18 in 0 : vector<1x4x16x16xbf16>, vector<1x4x16x16xbf16> -> vector<2x4x16x16xbf16>
    %20 = vector.shape_cast %19 : vector<2x4x16x16xbf16> to vector<8x16x16xbf16>
    "tpu.trace_start"() <{level = 10 : i32, message = "bqd,bkd->bqk"}> : () -> ()
    %cst = arith.constant dense<0.000000e+00> : vector<8x16x16xf32>
    %21 = tpu.matmul %8, %14, %cst {dimension_numbers = #tpu.dot_dimension_numbers<[2], [2], [1], [1], [0, 0, 0, 1, 1, 1], [0], [0]>} : vector<8x16x16xbf16>, vector<8x16x16xbf16>, vector<8x16x16xf32> -> vector<8x16x16xf32>
    "tpu.trace_stop"() : () -> ()
    %cst_6 = arith.constant 2.500000e-01 : f32
    %22 = vector.broadcast %cst_6 : f32 to vector<8x16x16xf32>
    %23 = arith.mulf %21, %22 : vector<8x16x16xf32>
    %24 = vector.shape_cast %2 : vector<2x16x16xf32> to vector<2x1x16x16xf32>
    %25 = vector.shape_cast %24 : vector<2x1x16x16xf32> to vector<2x1x16x16xf32>
    %26 = vector.broadcast %25 : vector<2x1x16x16xf32> to vector<2x4x16x16xf32>
    %27 = vector.shape_cast %26 : vector<2x4x16x16xf32> to vector<8x16x16xf32>
    %28 = arith.addf %23, %27 : vector<8x16x16xf32>
    %c0_7 = arith.constant 0 : index
    %c0_8 = arith.constant 0 : index
    %c0_9 = arith.constant 0 : index
    %29 = vector.load %arg4[%c0_7, %c0_8, %c0_9] : memref<4x16x16xf32, #tpu.memory_space<vmem>>, vector<4x16x16xf32>
    %30 = vector.shape_cast %29 : vector<4x16x16xf32> to vector<1x4x16x16xf32>
    %31 = vector.shape_cast %30 : vector<1x4x16x16xf32> to vector<1x4x16x16xf32>
    %32 = vector.broadcast %31 : vector<1x4x16x16xf32> to vector<2x4x16x16xf32>
    %33 = vector.shape_cast %32 : vector<2x4x16x16xf32> to vector<8x16x16xf32>
    %34 = arith.addf %28, %33 : vector<8x16x16xf32>
    %cst_10 = arith.constant dense<0xFF800000> : vector<8x16xf32>
    %35 = vector.multi_reduction <maximumf>, %34, %cst_10 [2] : vector<8x16x16xf32> to vector<8x16xf32>
    %36 = vector.shape_cast %35 : vector<8x16xf32> to vector<8x16x1xf32>
    %37 = vector.broadcast %36 : vector<8x16x1xf32> to vector<8x16x16xf32>
    %38 = arith.subf %34, %37 : vector<8x16x16xf32>
    %39 = math.exp %38 : vector<8x16x16xf32>
    %cst_11 = arith.constant dense<0.000000e+00> : vector<8x16xf32>
    %40 = vector.multi_reduction <add>, %39, %cst_11 [2] : vector<8x16x16xf32> to vector<8x16xf32>
    %41 = vector.shape_cast %40 : vector<8x16xf32> to vector<8x16x1xf32>
    %42 = tpu.reciprocal %41 {approx = true} : vector<8x16x1xf32> -> vector<8x16x1xf32>
    %43 = vector.broadcast %42 : vector<8x16x1xf32> to vector<8x16x16xf32>
    %44 = arith.mulf %39, %43 : vector<8x16x16xf32>
    %45 = arith.truncf %44 : vector<8x16x16xf32> to vector<8x16x16xbf16>
    "tpu.trace_start"() <{level = 10 : i32, message = "bqk,bkd->bqd"}> : () -> ()
    %cst_12 = arith.constant dense<0.000000e+00> : vector<8x16x16xf32>
    %46 = tpu.matmul %45, %20, %cst_12 {dimension_numbers = #tpu.dot_dimension_numbers<[2], [1], [1], [2], [0, 0, 0, 1, 1, 2], [0], [0]>} : vector<8x16x16xbf16>, vector<8x16x16xbf16>, vector<8x16x16xf32> -> vector<8x16x16xf32>
    "tpu.trace_stop"() : () -> ()
    %47 = vector.shape_cast %46 : vector<8x16x16xf32> to vector<2x4x16x16xf32>
    %48 = vector.extract_strided_slice %47 {offsets = [0, 0, 0, 0], sizes = [1, 4, 16, 16], strides = [1, 1, 1, 1]} : vector<2x4x16x16xf32> to vector<1x4x16x16xf32>
    %49 = vector.shape_cast %48 : vector<1x4x16x16xf32> to vector<4x16x16xf32>
    %50 = vector.extract_strided_slice %47 {offsets = [1, 0, 0, 0], sizes = [1, 4, 16, 16], strides = [1, 1, 1, 1]} : vector<2x4x16x16xf32> to vector<1x4x16x16xf32>
    %51 = vector.shape_cast %50 : vector<1x4x16x16xf32> to vector<4x16x16xf32>
    %52 = tpu.concatenate %49, %51 in 2 : vector<4x16x16xf32>, vector<4x16x16xf32> -> vector<4x16x32xf32>
    %53 = vector.shape_cast %52 : vector<4x16x32xf32> to vector<4x512xf32>
    %54 = arith.truncf %53 : vector<4x512xf32> to vector<4x512xbf16>
    %c0_13 = arith.constant 0 : index
    %c0_14 = arith.constant 0 : index
    %c0_15 = arith.constant 0 : index
    %55 = vector.load %arg5[%c0_13, %c0_14, %c0_15] : memref<1x4x512xbf16, #tpu.memory_space<vmem>>, vector<1x4x512xbf16>
    %56 = vector.shape_cast %55 : vector<1x4x512xbf16> to vector<4x512xbf16>
    %57 = vector.shape_cast %54 : vector<4x512xbf16> to vector<1x4x512xbf16>
    tpu.vector_store %arg5[%c0_13, %c0_14, %c0_15], %57 {strides = array<i32>} : memref<1x4x512xbf16, #tpu.memory_space<vmem>>, vector<1x4x512xbf16>,
    return
  }
  func.func @transform_0(%arg0: i32, %arg1: i32) -> (i32, i32, i32, i32) {
    %c0_i32 = arith.constant 0 : i32
    %c0_i32_0 = arith.constant 0 : i32
    %c0_i32_1 = arith.constant 0 : i32
    return %arg0, %arg1, %c0_i32, %c0_i32_0 : i32, i32, i32, i32
  }
  func.func @transform_1(%arg0: i32, %arg1: i32) -> (i32, i32, i32) {
    %c0_i32 = arith.constant 0 : i32
    %c0_i32_0 = arith.constant 0 : i32
    %c0_i32_1 = arith.constant 0 : i32
    %c0_i32_2 = arith.constant 0 : i32
    return %c0_i32, %c0_i32_0, %c0_i32_1 : i32, i32, i32
  }
  func.func @transform_2(%arg0: i32, %arg1: i32) -> (i32, i32, i32) {
    %c0_i32 = arith.constant 0 : i32
    %c0_i32_0 = arith.constant 0 : i32
    %c0_i32_1 = arith.constant 0 : i32
    return %arg1, %c0_i32, %c0_i32_0 : i32, i32, i32
  }
  func.func @transform_3(%arg0: i32, %arg1: i32) -> (i32, i32, i32) {
    %c0_i32 = arith.constant 0 : i32
    %c0_i32_0 = arith.constant 0 : i32
    return %arg0, %arg1, %c0_i32 : i32, i32, i32
  }
}

module attributes {stable_mosaic.version = 11 : i64} {
  func.func @_layernorm_kernel(%arg0: i32, %arg1: memref<32x128xf32, #tpu.memory_space<vmem>>, %arg2: memref<1x128xf32, #tpu.memory_space<vmem>>, %arg3: memref<1x128xf32, #tpu.memory_space<vmem>>, %arg4: memref<32x128xbf16, #tpu.memory_space<vmem>>) attributes {dimension_semantics = [#tpu.dimension_semantics<parallel>], iteration_bounds = array<i64: 1>, scalar_prefetch = 0 : i64, scratch_operands = 0 : i64, tpu.core_type = #tpu.core_type<tc>, window_params = [{transform_indices = @transform_0, window_bounds = array<i64: 32, 128>}, {pipeline_mode = #tpu.pipeline_mode<synchronous>, transform_indices = @transform_1, window_bounds = array<i64: 1, 128>}, {pipeline_mode = #tpu.pipeline_mode<synchronous>, transform_indices = @transform_2, window_bounds = array<i64: 1, 128>}, {transform_indices = @transform_3, window_bounds = array<i64: 32, 128>}]} {
    %c0 = arith.constant 0 : index
    %c0_0 = arith.constant 0 : index
    %0 = vector.load %arg1[%c0, %c0_0] : memref<32x128xf32, #tpu.memory_space<vmem>>, vector<32x128xf32>
    %cst = arith.constant dense<0.000000e+00> : vector<32xf32>
    %1 = vector.multi_reduction <add>, %0, %cst [1] : vector<32x128xf32> to vector<32xf32>
    %2 = vector.shape_cast %1 : vector<32xf32> to vector<32x1xf32>
    %cst_1 = arith.constant 1.280000e+02 : f32
    %3 = vector.broadcast %cst_1 : f32 to vector<32x1xf32>
    %4 = arith.divf %2, %3 : vector<32x1xf32>
    %5 = vector.broadcast %4 : vector<32x1xf32> to vector<32x128xf32>
    %6 = arith.subf %0, %5 : vector<32x128xf32>
    %7 = arith.mulf %6, %6 : vector<32x128xf32>
    %cst_2 = arith.constant dense<0.000000e+00> : vector<32xf32>
    %8 = vector.multi_reduction <add>, %7, %cst_2 [1] : vector<32x128xf32> to vector<32xf32>
    %9 = vector.shape_cast %8 : vector<32xf32> to vector<32x1xf32>
    %cst_3 = arith.constant 1.280000e+02 : f32
    %10 = vector.broadcast %cst_3 : f32 to vector<32x1xf32>
    %11 = arith.divf %9, %10 : vector<32x1xf32>
    %12 = vector.broadcast %4 : vector<32x1xf32> to vector<32x128xf32>
    %13 = arith.subf %0, %12 : vector<32x128xf32>
    %cst_4 = arith.constant 9.99999974E-6 : f32
    %14 = vector.broadcast %cst_4 : f32 to vector<32x1xf32>
    %15 = arith.addf %11, %14 : vector<32x1xf32>
    %16 = math.rsqrt %15 : vector<32x1xf32>
    %17 = vector.broadcast %16 : vector<32x1xf32> to vector<32x128xf32>
    %18 = arith.mulf %13, %17 : vector<32x128xf32>
    %c0_5 = arith.constant 0 : index
    %c0_6 = arith.constant 0 : index
    %19 = vector.load %arg2[%c0_5, %c0_6] : memref<1x128xf32, #tpu.memory_space<vmem>>, vector<1x128xf32>
    %20 = vector.broadcast %19 : vector<1x128xf32> to vector<32x128xf32>
    %21 = arith.mulf %18, %20 : vector<32x128xf32>
    %c0_7 = arith.constant 0 : index
    %c0_8 = arith.constant 0 : index
    %22 = vector.load %arg3[%c0_7, %c0_8] : memref<1x128xf32, #tpu.memory_space<vmem>>, vector<1x128xf32>
    %23 = vector.broadcast %22 : vector<1x128xf32> to vector<32x128xf32>
    %24 = arith.addf %21, %23 : vector<32x128xf32>
    %25 = arith.truncf %24 : vector<32x128xf32> to vector<32x128xbf16>
    %c0_9 = arith.constant 0 : index
    %c0_10 = arith.constant 0 : index
    %26 = vector.load %arg4[%c0_9, %c0_10] : memref<32x128xbf16, #tpu.memory_space<vmem>>, vector<32x128xbf16>
    tpu.vector_store %arg4[%c0_9, %c0_10], %25 {strides = array<i32>} : memref<32x128xbf16, #tpu.memory_space<vmem>>, vector<32x128xbf16>,
    return
  }
  func.func @transform_0(%arg0: i32) -> (i32, i32) {
    %c0_i32 = arith.constant 0 : i32
    %c0_i32_0 = arith.constant 0 : i32
    return %arg0, %c0_i32 : i32, i32
  }
  func.func @transform_1(%arg0: i32) -> (i32, i32) {
    %c0_i32 = arith.constant 0 : i32
    %c0_i32_0 = arith.constant 0 : i32
    %c0_i32_1 = arith.constant 0 : i32
    return %c0_i32, %c0_i32_0 : i32, i32
  }
  func.func @transform_2(%arg0: i32) -> (i32, i32) {
    %c0_i32 = arith.constant 0 : i32
    %c0_i32_0 = arith.constant 0 : i32
    %c0_i32_1 = arith.constant 0 : i32
    return %c0_i32, %c0_i32_0 : i32, i32
  }
  func.func @transform_3(%arg0: i32) -> (i32, i32) {
    %c0_i32 = arith.constant 0 : i32
    %c0_i32_0 = arith.constant 0 : i32
    return %arg0, %c0_i32 : i32, i32
  }
}

module attributes {stable_mosaic.version = 11 : i64} {
  func.func @kernel(%arg0: i32, %arg1: i32, %arg2: memref<32x128xbf16, #tpu.memory_space<vmem>>, %arg3: memref<128x128xbf16, #tpu.memory_space<vmem>>, %arg4: memref<1x128xf32, #tpu.memory_space<vmem>>, %arg5: memref<32x128xf32, #tpu.memory_space<vmem>>) attributes {dimension_semantics = [#tpu.dimension_semantics<parallel>, #tpu.dimension_semantics<parallel>], iteration_bounds = array<i64: 1, 1>, scalar_prefetch = 0 : i64, scratch_operands = 0 : i64, tpu.core_type = #tpu.core_type<tc>, window_params = [{transform_indices = @transform_0, window_bounds = array<i64: 32, 128>}, {transform_indices = @transform_1, window_bounds = array<i64: 128, 128>}, {transform_indices = @transform_2, window_bounds = array<i64: 1, 128>}, {transform_indices = @transform_3, window_bounds = array<i64: 32, 128>}]} {
    %c0 = arith.constant 0 : index
    %c0_0 = arith.constant 0 : index
    %0 = vector.load %arg2[%c0, %c0_0] : memref<32x128xbf16, #tpu.memory_space<vmem>>, vector<32x128xbf16>
    %c0_1 = arith.constant 0 : index
    %c0_2 = arith.constant 0 : index
    %1 = vector.load %arg3[%c0_1, %c0_2] : memref<128x128xbf16, #tpu.memory_space<vmem>>, vector<128x128xbf16>
    %cst = arith.constant dense<0.000000e+00> : vector<32x128xf32>
    %2 = tpu.matmul %0, %1, %cst {dimension_numbers = #tpu.dot_dimension_numbers<[1], [0], [0], [1], [0, 0, 1, 1], [], []>} : vector<32x128xbf16>, vector<128x128xbf16>, vector<32x128xf32> -> vector<32x128xf32>
    %c0_3 = arith.constant 0 : index
    %c0_4 = arith.constant 0 : index
    %3 = vector.load %arg4[%c0_3, %c0_4] : memref<1x128xf32, #tpu.memory_space<vmem>>, vector<1x128xf32>
    %4 = vector.broadcast %3 : vector<1x128xf32> to vector<32x128xf32>
    %5 = arith.addf %2, %4 : vector<32x128xf32>
    %c0_5 = arith.constant 0 : index
    %c0_6 = arith.constant 0 : index
    %6 = vector.load %arg5[%c0_5, %c0_6] : memref<32x128xf32, #tpu.memory_space<vmem>>, vector<32x128xf32>
    tpu.vector_store %arg5[%c0_5, %c0_6], %5 {strides = array<i32>} : memref<32x128xf32, #tpu.memory_space<vmem>>, vector<32x128xf32>,
    return
  }
  func.func @transform_0(%arg0: i32, %arg1: i32) -> (i32, i32) {
    %c0_i32 = arith.constant 0 : i32
    %c0_i32_0 = arith.constant 0 : i32
    return %arg0, %c0_i32 : i32, i32
  }
  func.func @transform_1(%arg0: i32, %arg1: i32) -> (i32, i32) {
    %c0_i32 = arith.constant 0 : i32
    %c0_i32_0 = arith.constant 0 : i32
    return %c0_i32, %arg1 : i32, i32
  }
  func.func @transform_2(%arg0: i32, %arg1: i32) -> (i32, i32) {
    %c0_i32 = arith.constant 0 : i32
    %c0_i32_0 = arith.constant 0 : i32
    return %c0_i32, %arg1 : i32, i32
  }
  func.func @transform_3(%arg0: i32, %arg1: i32) -> (i32, i32) {
    %c0_i32 = arith.constant 0 : i32
    return %arg0, %arg1 : i32, i32
  }
}

module attributes {stable_mosaic.version = 11 : i64} {
  func.func @_layernorm_kernel(%arg0: i32, %arg1: memref<32x64xf32, #tpu.memory_space<vmem>>, %arg2: memref<1x64xf32, #tpu.memory_space<vmem>>, %arg3: memref<1x64xf32, #tpu.memory_space<vmem>>, %arg4: memref<32x64xbf16, #tpu.memory_space<vmem>>) attributes {dimension_semantics = [#tpu.dimension_semantics<parallel>], iteration_bounds = array<i64: 1>, scalar_prefetch = 0 : i64, scratch_operands = 0 : i64, tpu.core_type = #tpu.core_type<tc>, window_params = [{transform_indices = @transform_0, window_bounds = array<i64: 32, 64>}, {pipeline_mode = #tpu.pipeline_mode<synchronous>, transform_indices = @transform_1, window_bounds = array<i64: 1, 64>}, {pipeline_mode = #tpu.pipeline_mode<synchronous>, transform_indices = @transform_2, window_bounds = array<i64: 1, 64>}, {transform_indices = @transform_3, window_bounds = array<i64: 32, 64>}]} {
    %c0 = arith.constant 0 : index
    %c0_0 = arith.constant 0 : index
    %0 = vector.load %arg1[%c0, %c0_0] : memref<32x64xf32, #tpu.memory_space<vmem>>, vector<32x64xf32>
    %cst = arith.constant dense<0.000000e+00> : vector<32xf32>
    %1 = vector.multi_reduction <add>, %0, %cst [1] : vector<32x64xf32> to vector<32xf32>
    %2 = vector.shape_cast %1 : vector<32xf32> to vector<32x1xf32>
    %cst_1 = arith.constant 6.400000e+01 : f32
    %3 = vector.broadcast %cst_1 : f32 to vector<32x1xf32>
    %4 = arith.divf %2, %3 : vector<32x1xf32>
    %5 = vector.broadcast %4 : vector<32x1xf32> to vector<32x64xf32>
    %6 = arith.subf %0, %5 : vector<32x64xf32>
    %7 = arith.mulf %6, %6 : vector<32x64xf32>
    %cst_2 = arith.constant dense<0.000000e+00> : vector<32xf32>
    %8 = vector.multi_reduction <add>, %7, %cst_2 [1] : vector<32x64xf32> to vector<32xf32>
    %9 = vector.shape_cast %8 : vector<32xf32> to vector<32x1xf32>
    %cst_3 = arith.constant 6.400000e+01 : f32
    %10 = vector.broadcast %cst_3 : f32 to vector<32x1xf32>
    %11 = arith.divf %9, %10 : vector<32x1xf32>
    %12 = vector.broadcast %4 : vector<32x1xf32> to vector<32x64xf32>
    %13 = arith.subf %0, %12 : vector<32x64xf32>
    %cst_4 = arith.constant 9.99999974E-6 : f32
    %14 = vector.broadcast %cst_4 : f32 to vector<32x1xf32>
    %15 = arith.addf %11, %14 : vector<32x1xf32>
    %16 = math.rsqrt %15 : vector<32x1xf32>
    %17 = vector.broadcast %16 : vector<32x1xf32> to vector<32x64xf32>
    %18 = arith.mulf %13, %17 : vector<32x64xf32>
    %c0_5 = arith.constant 0 : index
    %c0_6 = arith.constant 0 : index
    %19 = vector.load %arg2[%c0_5, %c0_6] : memref<1x64xf32, #tpu.memory_space<vmem>>, vector<1x64xf32>
    %20 = vector.broadcast %19 : vector<1x64xf32> to vector<32x64xf32>
    %21 = arith.mulf %18, %20 : vector<32x64xf32>
    %c0_7 = arith.constant 0 : index
    %c0_8 = arith.constant 0 : index
    %22 = vector.load %arg3[%c0_7, %c0_8] : memref<1x64xf32, #tpu.memory_space<vmem>>, vector<1x64xf32>
    %23 = vector.broadcast %22 : vector<1x64xf32> to vector<32x64xf32>
    %24 = arith.addf %21, %23 : vector<32x64xf32>
    %25 = arith.truncf %24 : vector<32x64xf32> to vector<32x64xbf16>
    %c0_9 = arith.constant 0 : index
    %c0_10 = arith.constant 0 : index
    %26 = vector.load %arg4[%c0_9, %c0_10] : memref<32x64xbf16, #tpu.memory_space<vmem>>, vector<32x64xbf16>
    tpu.vector_store %arg4[%c0_9, %c0_10], %25 {strides = array<i32>} : memref<32x64xbf16, #tpu.memory_space<vmem>>, vector<32x64xbf16>,
    return
  }
  func.func @transform_0(%arg0: i32) -> (i32, i32) {
    %c0_i32 = arith.constant 0 : i32
    %c0_i32_0 = arith.constant 0 : i32
    return %arg0, %c0_i32 : i32, i32
  }
  func.func @transform_1(%arg0: i32) -> (i32, i32) {
    %c0_i32 = arith.constant 0 : i32
    %c0_i32_0 = arith.constant 0 : i32
    %c0_i32_1 = arith.constant 0 : i32
    return %c0_i32, %c0_i32_0 : i32, i32
  }
  func.func @transform_2(%arg0: i32) -> (i32, i32) {
    %c0_i32 = arith.constant 0 : i32
    %c0_i32_0 = arith.constant 0 : i32
    %c0_i32_1 = arith.constant 0 : i32
    return %c0_i32, %c0_i32_0 : i32, i32
  }
  func.func @transform_3(%arg0: i32) -> (i32, i32) {
    %c0_i32 = arith.constant 0 : i32
    %c0_i32_0 = arith.constant 0 : i32
    return %arg0, %c0_i32 : i32, i32
  }
}

module attributes {stable_mosaic.version = 11 : i64} {
  func.func @kernel(%arg0: i32, %arg1: i32, %arg2: memref<32x64xbf16, #tpu.memory_space<vmem>>, %arg3: memref<64x256xbf16, #tpu.memory_space<vmem>>, %arg4: memref<1x256xf32, #tpu.memory_space<vmem>>, %arg5: memref<32x256xbf16, #tpu.memory_space<vmem>>) attributes {dimension_semantics = [#tpu.dimension_semantics<parallel>, #tpu.dimension_semantics<parallel>], iteration_bounds = array<i64: 1, 1>, scalar_prefetch = 0 : i64, scratch_operands = 0 : i64, tpu.core_type = #tpu.core_type<tc>, window_params = [{transform_indices = @transform_0, window_bounds = array<i64: 32, 64>}, {transform_indices = @transform_1, window_bounds = array<i64: 64, 256>}, {transform_indices = @transform_2, window_bounds = array<i64: 1, 256>}, {transform_indices = @transform_3, window_bounds = array<i64: 32, 256>}]} {
    %c0 = arith.constant 0 : index
    %c0_0 = arith.constant 0 : index
    %0 = vector.load %arg2[%c0, %c0_0] : memref<32x64xbf16, #tpu.memory_space<vmem>>, vector<32x64xbf16>
    %c0_1 = arith.constant 0 : index
    %c0_2 = arith.constant 0 : index
    %1 = vector.load %arg3[%c0_1, %c0_2] : memref<64x256xbf16, #tpu.memory_space<vmem>>, vector<64x256xbf16>
    %cst = arith.constant dense<0.000000e+00> : vector<32x256xf32>
    %2 = tpu.matmul %0, %1, %cst {dimension_numbers = #tpu.dot_dimension_numbers<[1], [0], [0], [1], [0, 0, 1, 1], [], []>} : vector<32x64xbf16>, vector<64x256xbf16>, vector<32x256xf32> -> vector<32x256xf32>
    %c0_3 = arith.constant 0 : index
    %c0_4 = arith.constant 0 : index
    %3 = vector.load %arg4[%c0_3, %c0_4] : memref<1x256xf32, #tpu.memory_space<vmem>>, vector<1x256xf32>
    %4 = vector.broadcast %3 : vector<1x256xf32> to vector<32x256xf32>
    %5 = arith.addf %2, %4 : vector<32x256xf32>
    %6 = arith.truncf %5 : vector<32x256xf32> to vector<32x256xbf16>
    %c0_5 = arith.constant 0 : index
    %c0_6 = arith.constant 0 : index
    %7 = vector.load %arg5[%c0_5, %c0_6] : memref<32x256xbf16, #tpu.memory_space<vmem>>, vector<32x256xbf16>
    tpu.vector_store %arg5[%c0_5, %c0_6], %6 {strides = array<i32>} : memref<32x256xbf16, #tpu.memory_space<vmem>>, vector<32x256xbf16>,
    return
  }
  func.func @transform_0(%arg0: i32, %arg1: i32) -> (i32, i32) {
    %c0_i32 = arith.constant 0 : i32
    %c0_i32_0 = arith.constant 0 : i32
    return %arg0, %c0_i32 : i32, i32
  }
  func.func @transform_1(%arg0: i32, %arg1: i32) -> (i32, i32) {
    %c0_i32 = arith.constant 0 : i32
    %c0_i32_0 = arith.constant 0 : i32
    return %c0_i32, %arg1 : i32, i32
  }
  func.func @transform_2(%arg0: i32, %arg1: i32) -> (i32, i32) {
    %c0_i32 = arith.constant 0 : i32
    %c0_i32_0 = arith.constant 0 : i32
    return %c0_i32, %arg1 : i32, i32
  }
  func.func @transform_3(%arg0: i32, %arg1: i32) -> (i32, i32) {
    %c0_i32 = arith.constant 0 : i32
    return %arg0, %arg1 : i32, i32
  }
}

module attributes {stable_mosaic.version = 11 : i64} {
  func.func @kernel(%arg0: i32, %arg1: i32, %arg2: memref<1x1x16x192xbf16, #tpu.memory_space<vmem>>, %arg3: memref<4x16x16xf32, #tpu.memory_space<vmem>>, %arg4: memref<1x1x1024xbf16, #tpu.memory_space<vmem>>) attributes {dimension_semantics = [#tpu.dimension_semantics<parallel>, #tpu.dimension_semantics<parallel>], iteration_bounds = array<i64: 2, 1>, scalar_prefetch = 0 : i64, scratch_operands = 0 : i64, tpu.core_type = #tpu.core_type<tc>, window_params = [{transform_indices = @transform_0, window_bounds = array<i64: 1, 1, 16, 192>}, {pipeline_mode = #tpu.pipeline_mode<synchronous>, transform_indices = @transform_1, window_bounds = array<i64: 4, 16, 16>}, {transform_indices = @transform_2, window_bounds = array<i64: 1, 1, 1024>}]} {
    %c0 = arith.constant 0 : index
    %c0_0 = arith.constant 0 : index
    %c0_1 = arith.constant 0 : index
    %c0_2 = arith.constant 0 : index
    %0 = vector.load %arg2[%c0, %c0_0, %c0_1, %c0_2] : memref<1x1x16x192xbf16, #tpu.memory_space<vmem>>, vector<1x1x16x192xbf16>
    %1 = vector.shape_cast %0 : vector<1x1x16x192xbf16> to vector<1x16x192xbf16>
    %c0_3 = arith.constant 0 : index
    %c0_4 = arith.constant 0 : index
    %c0_5 = arith.constant 0 : index
    %2 = vector.load %arg3[%c0_3, %c0_4, %c0_5] : memref<4x16x16xf32, #tpu.memory_space<vmem>>, vector<4x16x16xf32>
    %3 = vector.extract_strided_slice %1 {offsets = [0, 0, 0], sizes = [1, 16, 16], strides = [1, 1, 1]} : vector<1x16x192xbf16> to vector<1x16x16xbf16>
    %4 = vector.extract_strided_slice %1 {offsets = [0, 0, 16], sizes = [1, 16, 16], strides = [1, 1, 1]} : vector<1x16x192xbf16> to vector<1x16x16xbf16>
    %5 = vector.extract_strided_slice %1 {offsets = [0, 0, 32], sizes = [1, 16, 16], strides = [1, 1, 1]} : vector<1x16x192xbf16> to vector<1x16x16xbf16>
    %6 = vector.extract_strided_slice %1 {offsets = [0, 0, 48], sizes = [1, 16, 16], strides = [1, 1, 1]} : vector<1x16x192xbf16> to vector<1x16x16xbf16>
    %7 = vector.shape_cast %3 : vector<1x16x16xbf16> to vector<1x1x16x16xbf16>
    %8 = vector.shape_cast %4 : vector<1x16x16xbf16> to vector<1x1x16x16xbf16>
    %9 = vector.shape_cast %5 : vector<1x16x16xbf16> to vector<1x1x16x16xbf16>
    %10 = vector.shape_cast %6 : vector<1x16x16xbf16> to vector<1x1x16x16xbf16>
    %11 = tpu.concatenate %7, %8, %9, %10 in 0 : vector<1x1x16x16xbf16>, vector<1x1x16x16xbf16>, vector<1x1x16x16xbf16>, vector<1x1x16x16xbf16> -> vector<4x1x16x16xbf16>
    %12 = vector.shape_cast %11 : vector<4x1x16x16xbf16> to vector<4x16x16xbf16>
    %13 = vector.extract_strided_slice %1 {offsets = [0, 0, 64], sizes = [1, 16, 16], strides = [1, 1, 1]} : vector<1x16x192xbf16> to vector<1x16x16xbf16>
    %14 = vector.extract_strided_slice %1 {offsets = [0, 0, 80], sizes = [1, 16, 16], strides = [1, 1, 1]} : vector<1x16x192xbf16> to vector<1x16x16xbf16>
    %15 = vector.extract_strided_slice %1 {offsets = [0, 0, 96], sizes = [1, 16, 16], strides = [1, 1, 1]} : vector<1x16x192xbf16> to vector<1x16x16xbf16>
    %16 = vector.extract_strided_slice %1 {offsets = [0, 0, 112], sizes = [1, 16, 16], strides = [1, 1, 1]} : vector<1x16x192xbf16> to vector<1x16x16xbf16>
    %17 = vector.shape_cast %13 : vector<1x16x16xbf16> to vector<1x1x16x16xbf16>
    %18 = vector.shape_cast %14 : vector<1x16x16xbf16> to vector<1x1x16x16xbf16>
    %19 = vector.shape_cast %15 : vector<1x16x16xbf16> to vector<1x1x16x16xbf16>
    %20 = vector.shape_cast %16 : vector<1x16x16xbf16> to vector<1x1x16x16xbf16>
    %21 = tpu.concatenate %17, %18, %19, %20 in 0 : vector<1x1x16x16xbf16>, vector<1x1x16x16xbf16>, vector<1x1x16x16xbf16>, vector<1x1x16x16xbf16> -> vector<4x1x16x16xbf16>
    %22 = vector.shape_cast %21 : vector<4x1x16x16xbf16> to vector<4x16x16xbf16>
    %23 = vector.extract_strided_slice %1 {offsets = [0, 0, 128], sizes = [1, 16, 16], strides = [1, 1, 1]} : vector<1x16x192xbf16> to vector<1x16x16xbf16>
    %24 = vector.extract_strided_slice %1 {offsets = [0, 0, 144], sizes = [1, 16, 16], strides = [1, 1, 1]} : vector<1x16x192xbf16> to vector<1x16x16xbf16>
    %25 = vector.extract_strided_slice %1 {offsets = [0, 0, 160], sizes = [1, 16, 16], strides = [1, 1, 1]} : vector<1x16x192xbf16> to vector<1x16x16xbf16>
    %26 = vector.extract_strided_slice %1 {offsets = [0, 0, 176], sizes = [1, 16, 16], strides = [1, 1, 1]} : vector<1x16x192xbf16> to vector<1x16x16xbf16>
    %27 = vector.shape_cast %23 : vector<1x16x16xbf16> to vector<1x1x16x16xbf16>
    %28 = vector.shape_cast %24 : vector<1x16x16xbf16> to vector<1x1x16x16xbf16>
    %29 = vector.shape_cast %25 : vector<1x16x16xbf16> to vector<1x1x16x16xbf16>
    %30 = vector.shape_cast %26 : vector<1x16x16xbf16> to vector<1x1x16x16xbf16>
    %31 = tpu.concatenate %27, %28, %29, %30 in 0 : vector<1x1x16x16xbf16>, vector<1x1x16x16xbf16>, vector<1x1x16x16xbf16>, vector<1x1x16x16xbf16> -> vector<4x1x16x16xbf16>
    %32 = vector.shape_cast %31 : vector<4x1x16x16xbf16> to vector<4x16x16xbf16>
    "tpu.trace_start"() <{level = 10 : i32, message = "bqd,bkd->bqk"}> : () -> ()
    %cst = arith.constant dense<0.000000e+00> : vector<4x16x16xf32>
    %33 = tpu.matmul %12, %22, %cst {dimension_numbers = #tpu.dot_dimension_numbers<[2], [2], [1], [1], [0, 0, 0, 1, 1, 1], [0], [0]>} : vector<4x16x16xbf16>, vector<4x16x16xbf16>, vector<4x16x16xf32> -> vector<4x16x16xf32>
    "tpu.trace_stop"() : () -> ()
    %cst_6 = arith.constant 2.500000e-01 : f32
    %34 = vector.broadcast %cst_6 : f32 to vector<4x16x16xf32>
    %35 = arith.mulf %33, %34 : vector<4x16x16xf32>
    %36 = vector.shape_cast %2 : vector<4x16x16xf32> to vector<4x1x16x16xf32>
    %37 = vector.shape_cast %36 : vector<4x1x16x16xf32> to vector<4x16x16xf32>
    %38 = arith.addf %35, %37 : vector<4x16x16xf32>
    %cst_7 = arith.constant dense<0xFF800000> : vector<4x16xf32>
    %39 = vector.multi_reduction <maximumf>, %38, %cst_7 [2] : vector<4x16x16xf32> to vector<4x16xf32>
    %40 = vector.shape_cast %39 : vector<4x16xf32> to vector<4x16x1xf32>
    %41 = vector.broadcast %40 : vector<4x16x1xf32> to vector<4x16x16xf32>
    %42 = arith.subf %38, %41 : vector<4x16x16xf32>
    %43 = math.exp %42 : vector<4x16x16xf32>
    %cst_8 = arith.constant dense<0.000000e+00> : vector<4x16xf32>
    %44 = vector.multi_reduction <add>, %43, %cst_8 [2] : vector<4x16x16xf32> to vector<4x16xf32>
    %45 = vector.shape_cast %44 : vector<4x16xf32> to vector<4x16x1xf32>
    %46 = tpu.reciprocal %45 {approx = true} : vector<4x16x1xf32> -> vector<4x16x1xf32>
    %47 = vector.broadcast %46 : vector<4x16x1xf32> to vector<4x16x16xf32>
    %48 = arith.mulf %43, %47 : vector<4x16x16xf32>
    %49 = arith.truncf %48 : vector<4x16x16xf32> to vector<4x16x16xbf16>
    "tpu.trace_start"() <{level = 10 : i32, message = "bqk,bkd->bqd"}> : () -> ()
    %cst_9 = arith.constant dense<0.000000e+00> : vector<4x16x16xf32>
    %50 = tpu.matmul %49, %32, %cst_9 {dimension_numbers = #tpu.dot_dimension_numbers<[2], [1], [1], [2], [0, 0, 0, 1, 1, 2], [0], [0]>} : vector<4x16x16xbf16>, vector<4x16x16xbf16>, vector<4x16x16xf32> -> vector<4x16x16xf32>
    "tpu.trace_stop"() : () -> ()
    %51 = vector.shape_cast %50 : vector<4x16x16xf32> to vector<4x1x16x16xf32>
    %52 = vector.extract_strided_slice %51 {offsets = [0, 0, 0, 0], sizes = [1, 1, 16, 16], strides = [1, 1, 1, 1]} : vector<4x1x16x16xf32> to vector<1x1x16x16xf32>
    %53 = vector.shape_cast %52 : vector<1x1x16x16xf32> to vector<1x16x16xf32>
    %54 = vector.extract_strided_slice %51 {offsets = [1, 0, 0, 0], sizes = [1, 1, 16, 16], strides = [1, 1, 1, 1]} : vector<4x1x16x16xf32> to vector<1x1x16x16xf32>
    %55 = vector.shape_cast %54 : vector<1x1x16x16xf32> to vector<1x16x16xf32>
    %56 = vector.extract_strided_slice %51 {offsets = [2, 0, 0, 0], sizes = [1, 1, 16, 16], strides = [1, 1, 1, 1]} : vector<4x1x16x16xf32> to vector<1x1x16x16xf32>
    %57 = vector.shape_cast %56 : vector<1x1x16x16xf32> to vector<1x16x16xf32>
    %58 = vector.extract_strided_slice %51 {offsets = [3, 0, 0, 0], sizes = [1, 1, 16, 16], strides = [1, 1, 1, 1]} : vector<4x1x16x16xf32> to vector<1x1x16x16xf32>
    %59 = vector.shape_cast %58 : vector<1x1x16x16xf32> to vector<1x16x16xf32>
    %60 = tpu.concatenate %53, %55, %57, %59 in 2 : vector<1x16x16xf32>, vector<1x16x16xf32>, vector<1x16x16xf32>, vector<1x16x16xf32> -> vector<1x16x64xf32>
    %61 = vector.shape_cast %60 : vector<1x16x64xf32> to vector<1x1024xf32>
    %62 = arith.truncf %61 : vector<1x1024xf32> to vector<1x1024xbf16>
    %c0_10 = arith.constant 0 : index
    %c0_11 = arith.constant 0 : index
    %c0_12 = arith.constant 0 : index
    %63 = vector.load %arg4[%c0_10, %c0_11, %c0_12] : memref<1x1x1024xbf16, #tpu.memory_space<vmem>>, vector<1x1x1024xbf16>
    %64 = vector.shape_cast %63 : vector<1x1x1024xbf16> to vector<1x1024xbf16>
    %65 = vector.shape_cast %62 : vector<1x1024xbf16> to vector<1x1x1024xbf16>
    tpu.vector_store %arg4[%c0_10, %c0_11, %c0_12], %65 {strides = array<i32>} : memref<1x1x1024xbf16, #tpu.memory_space<vmem>>, vector<1x1x1024xbf16>,
    return
  }
  func.func @transform_0(%arg0: i32, %arg1: i32) -> (i32, i32, i32, i32) {
    %c0_i32 = arith.constant 0 : i32
    %c0_i32_0 = arith.constant 0 : i32
    %c0_i32_1 = arith.constant 0 : i32
    return %arg0, %arg1, %c0_i32, %c0_i32_0 : i32, i32, i32, i32
  }
  func.func @transform_1(%arg0: i32, %arg1: i32) -> (i32, i32, i32) {
    %c0_i32 = arith.constant 0 : i32
    %c0_i32_0 = arith.constant 0 : i32
    %c0_i32_1 = arith.constant 0 : i32
    %c0_i32_2 = arith.constant 0 : i32
    return %c0_i32, %c0_i32_0, %c0_i32_1 : i32, i32, i32
  }
  func.func @transform_2(%arg0: i32, %arg1: i32) -> (i32, i32, i32) {
    %c0_i32 = arith.constant 0 : i32
    %c0_i32_0 = arith.constant 0 : i32
    return %arg0, %arg1, %c0_i32 : i32, i32, i32
  }
}

module attributes {stable_mosaic.version = 11 : i64} {
  func.func @kernel(%arg0: i32, %arg1: i32, %arg2: memref<32x64xbf16, #tpu.memory_space<vmem>>, %arg3: memref<64x128xbf16, #tpu.memory_space<vmem>>, %arg4: memref<1x128xf32, #tpu.memory_space<vmem>>, %arg5: memref<32x128xbf16, #tpu.memory_space<vmem>>) attributes {dimension_semantics = [#tpu.dimension_semantics<parallel>, #tpu.dimension_semantics<parallel>], iteration_bounds = array<i64: 1, 1>, scalar_prefetch = 0 : i64, scratch_operands = 0 : i64, tpu.core_type = #tpu.core_type<tc>, window_params = [{transform_indices = @transform_0, window_bounds = array<i64: 32, 64>}, {transform_indices = @transform_1, window_bounds = array<i64: 64, 128>}, {transform_indices = @transform_2, window_bounds = array<i64: 1, 128>}, {transform_indices = @transform_3, window_bounds = array<i64: 32, 128>}]} {
    %c0 = arith.constant 0 : index
    %c0_0 = arith.constant 0 : index
    %0 = vector.load %arg2[%c0, %c0_0] : memref<32x64xbf16, #tpu.memory_space<vmem>>, vector<32x64xbf16>
    %c0_1 = arith.constant 0 : index
    %c0_2 = arith.constant 0 : index
    %1 = vector.load %arg3[%c0_1, %c0_2] : memref<64x128xbf16, #tpu.memory_space<vmem>>, vector<64x128xbf16>
    %cst = arith.constant dense<0.000000e+00> : vector<32x128xf32>
    %2 = tpu.matmul %0, %1, %cst {dimension_numbers = #tpu.dot_dimension_numbers<[1], [0], [0], [1], [0, 0, 1, 1], [], []>} : vector<32x64xbf16>, vector<64x128xbf16>, vector<32x128xf32> -> vector<32x128xf32>
    %c0_3 = arith.constant 0 : index
    %c0_4 = arith.constant 0 : index
    %3 = vector.load %arg4[%c0_3, %c0_4] : memref<1x128xf32, #tpu.memory_space<vmem>>, vector<1x128xf32>
    %4 = vector.broadcast %3 : vector<1x128xf32> to vector<32x128xf32>
    %5 = arith.addf %2, %4 : vector<32x128xf32>
    %6 = arith.truncf %5 : vector<32x128xf32> to vector<32x128xbf16>
    %c0_5 = arith.constant 0 : index
    %c0_6 = arith.constant 0 : index
    %7 = vector.load %arg5[%c0_5, %c0_6] : memref<32x128xbf16, #tpu.memory_space<vmem>>, vector<32x128xbf16>
    tpu.vector_store %arg5[%c0_5, %c0_6], %6 {strides = array<i32>} : memref<32x128xbf16, #tpu.memory_space<vmem>>, vector<32x128xbf16>,
    return
  }
  func.func @transform_0(%arg0: i32, %arg1: i32) -> (i32, i32) {
    %c0_i32 = arith.constant 0 : i32
    %c0_i32_0 = arith.constant 0 : i32
    return %arg0, %c0_i32 : i32, i32
  }
  func.func @transform_1(%arg0: i32, %arg1: i32) -> (i32, i32) {
    %c0_i32 = arith.constant 0 : i32
    %c0_i32_0 = arith.constant 0 : i32
    return %c0_i32, %arg1 : i32, i32
  }
  func.func @transform_2(%arg0: i32, %arg1: i32) -> (i32, i32) {
    %c0_i32 = arith.constant 0 : i32
    %c0_i32_0 = arith.constant 0 : i32
    return %c0_i32, %arg1 : i32, i32
  }
  func.func @transform_3(%arg0: i32, %arg1: i32) -> (i32, i32) {
    %c0_i32 = arith.constant 0 : i32
    return %arg0, %arg1 : i32, i32
  }
}

module attributes {stable_mosaic.version = 11 : i64} {
  func.func @kernel(%arg0: i32, %arg1: i32, %arg2: memref<32x64xbf16, #tpu.memory_space<vmem>>, %arg3: memref<64x256xbf16, #tpu.memory_space<vmem>>, %arg4: memref<1x256xf32, #tpu.memory_space<vmem>>, %arg5: memref<32x256xf32, #tpu.memory_space<vmem>>) attributes {dimension_semantics = [#tpu.dimension_semantics<parallel>, #tpu.dimension_semantics<parallel>], iteration_bounds = array<i64: 1, 1>, scalar_prefetch = 0 : i64, scratch_operands = 0 : i64, tpu.core_type = #tpu.core_type<tc>, window_params = [{transform_indices = @transform_0, window_bounds = array<i64: 32, 64>}, {transform_indices = @transform_1, window_bounds = array<i64: 64, 256>}, {transform_indices = @transform_2, window_bounds = array<i64: 1, 256>}, {transform_indices = @transform_3, window_bounds = array<i64: 32, 256>}]} {
    %c0 = arith.constant 0 : index
    %c0_0 = arith.constant 0 : index
    %0 = vector.load %arg2[%c0, %c0_0] : memref<32x64xbf16, #tpu.memory_space<vmem>>, vector<32x64xbf16>
    %c0_1 = arith.constant 0 : index
    %c0_2 = arith.constant 0 : index
    %1 = vector.load %arg3[%c0_1, %c0_2] : memref<64x256xbf16, #tpu.memory_space<vmem>>, vector<64x256xbf16>
    %cst = arith.constant dense<0.000000e+00> : vector<32x256xf32>
    %2 = tpu.matmul %0, %1, %cst {dimension_numbers = #tpu.dot_dimension_numbers<[1], [0], [0], [1], [0, 0, 1, 1], [], []>} : vector<32x64xbf16>, vector<64x256xbf16>, vector<32x256xf32> -> vector<32x256xf32>
    %c0_3 = arith.constant 0 : index
    %c0_4 = arith.constant 0 : index
    %3 = vector.load %arg4[%c0_3, %c0_4] : memref<1x256xf32, #tpu.memory_space<vmem>>, vector<1x256xf32>
    %4 = vector.broadcast %3 : vector<1x256xf32> to vector<32x256xf32>
    %5 = arith.addf %2, %4 : vector<32x256xf32>
    %c0_5 = arith.constant 0 : index
    %c0_6 = arith.constant 0 : index
    %6 = vector.load %arg5[%c0_5, %c0_6] : memref<32x256xf32, #tpu.memory_space<vmem>>, vector<32x256xf32>
    tpu.vector_store %arg5[%c0_5, %c0_6], %5 {strides = array<i32>} : memref<32x256xf32, #tpu.memory_space<vmem>>, vector<32x256xf32>,
    return
  }
  func.func @transform_0(%arg0: i32, %arg1: i32) -> (i32, i32) {
    %c0_i32 = arith.constant 0 : i32
    %c0_i32_0 = arith.constant 0 : i32
    return %arg0, %c0_i32 : i32, i32
  }
  func.func @transform_1(%arg0: i32, %arg1: i32) -> (i32, i32) {
    %c0_i32 = arith.constant 0 : i32
    %c0_i32_0 = arith.constant 0 : i32
    return %c0_i32, %arg1 : i32, i32
  }
  func.func @transform_2(%arg0: i32, %arg1: i32) -> (i32, i32) {
    %c0_i32 = arith.constant 0 : i32
    %c0_i32_0 = arith.constant 0 : i32
    return %c0_i32, %arg1 : i32, i32
  }
  func.func @transform_3(%arg0: i32, %arg1: i32) -> (i32, i32) {
    %c0_i32 = arith.constant 0 : i32
    return %arg0, %arg1 : i32, i32
  }
}

module attributes {stable_mosaic.version = 11 : i64} {
  func.func @kernel(%arg0: i32, %arg1: i32, %arg2: memref<32x256xbf16, #tpu.memory_space<vmem>>, %arg3: memref<256x128xbf16, #tpu.memory_space<vmem>>, %arg4: memref<1x128xf32, #tpu.memory_space<vmem>>, %arg5: memref<32x128xf32, #tpu.memory_space<vmem>>, %arg6: memref<32x128xf32, #tpu.memory_space<vmem>>) attributes {dimension_semantics = [#tpu.dimension_semantics<parallel>, #tpu.dimension_semantics<parallel>], iteration_bounds = array<i64: 1, 1>, scalar_prefetch = 0 : i64, scratch_operands = 0 : i64, tpu.core_type = #tpu.core_type<tc>, window_params = [{transform_indices = @transform_0, window_bounds = array<i64: 32, 256>}, {transform_indices = @transform_1, window_bounds = array<i64: 256, 128>}, {transform_indices = @transform_2, window_bounds = array<i64: 1, 128>}, {transform_indices = @transform_3, window_bounds = array<i64: 32, 128>}, {transform_indices = @transform_4, window_bounds = array<i64: 32, 128>}]} {
    %c0 = arith.constant 0 : index
    %c0_0 = arith.constant 0 : index
    %0 = vector.load %arg2[%c0, %c0_0] : memref<32x256xbf16, #tpu.memory_space<vmem>>, vector<32x256xbf16>
    %c0_1 = arith.constant 0 : index
    %c0_2 = arith.constant 0 : index
    %1 = vector.load %arg3[%c0_1, %c0_2] : memref<256x128xbf16, #tpu.memory_space<vmem>>, vector<256x128xbf16>
    %cst = arith.constant dense<0.000000e+00> : vector<32x128xf32>
    %2 = tpu.matmul %0, %1, %cst {dimension_numbers = #tpu.dot_dimension_numbers<[1], [0], [0], [1], [0, 0, 1, 1], [], []>} : vector<32x256xbf16>, vector<256x128xbf16>, vector<32x128xf32> -> vector<32x128xf32>
    %c0_3 = arith.constant 0 : index
    %c0_4 = arith.constant 0 : index
    %3 = vector.load %arg4[%c0_3, %c0_4] : memref<1x128xf32, #tpu.memory_space<vmem>>, vector<1x128xf32>
    %4 = vector.broadcast %3 : vector<1x128xf32> to vector<32x128xf32>
    %5 = arith.addf %2, %4 : vector<32x128xf32>
    %c0_5 = arith.constant 0 : index
    %c0_6 = arith.constant 0 : index
    %6 = vector.load %arg5[%c0_5, %c0_6] : memref<32x128xf32, #tpu.memory_space<vmem>>, vector<32x128xf32>
    %7 = arith.addf %5, %6 : vector<32x128xf32>
    %c0_7 = arith.constant 0 : index
    %c0_8 = arith.constant 0 : index
    %8 = vector.load %arg6[%c0_7, %c0_8] : memref<32x128xf32, #tpu.memory_space<vmem>>, vector<32x128xf32>
    tpu.vector_store %arg6[%c0_7, %c0_8], %7 {strides = array<i32>} : memref<32x128xf32, #tpu.memory_space<vmem>>, vector<32x128xf32>,
    return
  }
  func.func @transform_0(%arg0: i32, %arg1: i32) -> (i32, i32) {
    %c0_i32 = arith.constant 0 : i32
    %c0_i32_0 = arith.constant 0 : i32
    return %arg0, %c0_i32 : i32, i32
  }
  func.func @transform_1(%arg0: i32, %arg1: i32) -> (i32, i32) {
    %c0_i32 = arith.constant 0 : i32
    %c0_i32_0 = arith.constant 0 : i32
    return %c0_i32, %arg1 : i32, i32
  }
  func.func @transform_2(%arg0: i32, %arg1: i32) -> (i32, i32) {
    %c0_i32 = arith.constant 0 : i32
    %c0_i32_0 = arith.constant 0 : i32
    return %c0_i32, %arg1 : i32, i32
  }
  func.func @transform_3(%arg0: i32, %arg1: i32) -> (i32, i32) {
    %c0_i32 = arith.constant 0 : i32
    return %arg0, %arg1 : i32, i32
  }
  func.func @transform_4(%arg0: i32, %arg1: i32) -> (i32, i32) {
    %c0_i32 = arith.constant 0 : i32
    return %arg0, %arg1 : i32, i32
  }
}

module attributes {stable_mosaic.version = 11 : i64} {
  func.func @kernel(%arg0: i32, %arg1: i32, %arg2: memref<32x64xbf16, #tpu.memory_space<vmem>>, %arg3: memref<64x128xbf16, #tpu.memory_space<vmem>>, %arg4: memref<1x128xf32, #tpu.memory_space<vmem>>, %arg5: memref<32x128xf32, #tpu.memory_space<vmem>>) attributes {dimension_semantics = [#tpu.dimension_semantics<parallel>, #tpu.dimension_semantics<parallel>], iteration_bounds = array<i64: 1, 1>, scalar_prefetch = 0 : i64, scratch_operands = 0 : i64, tpu.core_type = #tpu.core_type<tc>, window_params = [{transform_indices = @transform_0, window_bounds = array<i64: 32, 64>}, {transform_indices = @transform_1, window_bounds = array<i64: 64, 128>}, {transform_indices = @transform_2, window_bounds = array<i64: 1, 128>}, {transform_indices = @transform_3, window_bounds = array<i64: 32, 128>}]} {
    %c0 = arith.constant 0 : index
    %c0_0 = arith.constant 0 : index
    %0 = vector.load %arg2[%c0, %c0_0] : memref<32x64xbf16, #tpu.memory_space<vmem>>, vector<32x64xbf16>
    %c0_1 = arith.constant 0 : index
    %c0_2 = arith.constant 0 : index
    %1 = vector.load %arg3[%c0_1, %c0_2] : memref<64x128xbf16, #tpu.memory_space<vmem>>, vector<64x128xbf16>
    %cst = arith.constant dense<0.000000e+00> : vector<32x128xf32>
    %2 = tpu.matmul %0, %1, %cst {dimension_numbers = #tpu.dot_dimension_numbers<[1], [0], [0], [1], [0, 0, 1, 1], [], []>} : vector<32x64xbf16>, vector<64x128xbf16>, vector<32x128xf32> -> vector<32x128xf32>
    %c0_3 = arith.constant 0 : index
    %c0_4 = arith.constant 0 : index
    %3 = vector.load %arg4[%c0_3, %c0_4] : memref<1x128xf32, #tpu.memory_space<vmem>>, vector<1x128xf32>
    %4 = vector.broadcast %3 : vector<1x128xf32> to vector<32x128xf32>
    %5 = arith.addf %2, %4 : vector<32x128xf32>
    %c0_5 = arith.constant 0 : index
    %c0_6 = arith.constant 0 : index
    %6 = vector.load %arg5[%c0_5, %c0_6] : memref<32x128xf32, #tpu.memory_space<vmem>>, vector<32x128xf32>
    tpu.vector_store %arg5[%c0_5, %c0_6], %5 {strides = array<i32>} : memref<32x128xf32, #tpu.memory_space<vmem>>, vector<32x128xf32>,
    return
  }
  func.func @transform_0(%arg0: i32, %arg1: i32) -> (i32, i32) {
    %c0_i32 = arith.constant 0 : i32
    %c0_i32_0 = arith.constant 0 : i32
    return %arg0, %c0_i32 : i32, i32
  }
  func.func @transform_1(%arg0: i32, %arg1: i32) -> (i32, i32) {
    %c0_i32 = arith.constant 0 : i32
    %c0_i32_0 = arith.constant 0 : i32
    return %c0_i32, %arg1 : i32, i32
  }
  func.func @transform_2(%arg0: i32, %arg1: i32) -> (i32, i32) {
    %c0_i32 = arith.constant 0 : i32
    %c0_i32_0 = arith.constant 0 : i32
    return %c0_i32, %arg1 : i32, i32
  }
  func.func @transform_3(%arg0: i32, %arg1: i32) -> (i32, i32) {
    %c0_i32 = arith.constant 0 : i32
    return %arg0, %arg1 : i32, i32
  }
}

module attributes {stable_mosaic.version = 11 : i64} {
  func.func @kernel(%arg0: i32, %arg1: i32, %arg2: memref<16x128xbf16, #tpu.memory_space<vmem>>, %arg3: memref<128x128xbf16, #tpu.memory_space<vmem>>, %arg4: memref<1x128xf32, #tpu.memory_space<vmem>>, %arg5: memref<16x128xf32, #tpu.memory_space<vmem>>) attributes {dimension_semantics = [#tpu.dimension_semantics<parallel>, #tpu.dimension_semantics<parallel>], iteration_bounds = array<i64: 1, 1>, scalar_prefetch = 0 : i64, scratch_operands = 0 : i64, tpu.core_type = #tpu.core_type<tc>, window_params = [{transform_indices = @transform_0, window_bounds = array<i64: 16, 128>}, {transform_indices = @transform_1, window_bounds = array<i64: 128, 128>}, {transform_indices = @transform_2, window_bounds = array<i64: 1, 128>}, {transform_indices = @transform_3, window_bounds = array<i64: 16, 128>}]} {
    %c0 = arith.constant 0 : index
    %c0_0 = arith.constant 0 : index
    %0 = vector.load %arg2[%c0, %c0_0] : memref<16x128xbf16, #tpu.memory_space<vmem>>, vector<16x128xbf16>
    %c0_1 = arith.constant 0 : index
    %c0_2 = arith.constant 0 : index
    %1 = vector.load %arg3[%c0_1, %c0_2] : memref<128x128xbf16, #tpu.memory_space<vmem>>, vector<128x128xbf16>
    %cst = arith.constant dense<0.000000e+00> : vector<16x128xf32>
    %2 = tpu.matmul %0, %1, %cst {dimension_numbers = #tpu.dot_dimension_numbers<[1], [0], [0], [1], [0, 0, 1, 1], [], []>} : vector<16x128xbf16>, vector<128x128xbf16>, vector<16x128xf32> -> vector<16x128xf32>
    %c0_3 = arith.constant 0 : index
    %c0_4 = arith.constant 0 : index
    %3 = vector.load %arg4[%c0_3, %c0_4] : memref<1x128xf32, #tpu.memory_space<vmem>>, vector<1x128xf32>
    %4 = vector.broadcast %3 : vector<1x128xf32> to vector<16x128xf32>
    %5 = arith.addf %2, %4 : vector<16x128xf32>
    %c0_5 = arith.constant 0 : index
    %c0_6 = arith.constant 0 : index
    %6 = vector.load %arg5[%c0_5, %c0_6] : memref<16x128xf32, #tpu.memory_space<vmem>>, vector<16x128xf32>
    tpu.vector_store %arg5[%c0_5, %c0_6], %5 {strides = array<i32>} : memref<16x128xf32, #tpu.memory_space<vmem>>, vector<16x128xf32>,
    return
  }
  func.func @transform_0(%arg0: i32, %arg1: i32) -> (i32, i32) {
    %c0_i32 = arith.constant 0 : i32
    %c0_i32_0 = arith.constant 0 : i32
    return %arg0, %c0_i32 : i32, i32
  }
  func.func @transform_1(%arg0: i32, %arg1: i32) -> (i32, i32) {
    %c0_i32 = arith.constant 0 : i32
    %c0_i32_0 = arith.constant 0 : i32
    return %c0_i32, %arg1 : i32, i32
  }
  func.func @transform_2(%arg0: i32, %arg1: i32) -> (i32, i32) {
    %c0_i32 = arith.constant 0 : i32
    %c0_i32_0 = arith.constant 0 : i32
    return %c0_i32, %arg1 : i32, i32
  }
  func.func @transform_3(%arg0: i32, %arg1: i32) -> (i32, i32) {
    %c0_i32 = arith.constant 0 : i32
    return %arg0, %arg1 : i32, i32
  }
}

</mosaic_0001>

<bundles_post_ra>
// kernel: tpu_custom_call.1
= control target key start
LH: loop header
LB: loop body
LE: loop exit
PB: predicated region body
PF: predicated region fallthrough
CT: control target
= control target key end

     0   :  { %6 = vsyncpa [#allocation3], 0  ;;  %s127_s0 = inlined_call_operand.hbm [shape: f32[8,128], index: 0, kind: input, shape index: {}]   ;;  %s128_s1 = inlined_call_operand.hbm [shape: f32[8,128], index: 1, kind: output, shape index: {}]  }
   0x1   :  { %7 = vsyncpa [#allocation4], 0  ;;  %s91_s6 = smov [#allocation2]   ;;  %s43_s10 = scalar_lea.hbm %s127_s0, 128 }
   0x2   :  { %s14_s7 = sshll.u32 %s91_s6, 4  ;;  %p44_p0 = scmp.ne.s32.totalorder %s127_s0, %s43_s10  ;;  %s15_s7 = int_to_ptr.vmem [resolvable:$true] %s14_s7 }
   0x3   :  { %p47_p1 = scmp.lt.u32.totalorder %s43_s10, %s127_s0 }
   0x5   :  { %p49_p2 = pnand %p47_p1, %p44_p0 }
   0x7   :  { %52 = shalt.err (!%p49_p2)
}
   0x8   :  { %s53_s15 = scalar_lea.vmem %s15_s7, 128  ;;  %p58_p4 = scmp.lt.s32.totalorder %s15_s7, %s15_s7 }
   0x9   :  { %p54_p3 = scmp.ne.s32.totalorder %s15_s7, %s53_s15  ;;  %p59_p5 = scmp.lt.s32.totalorder %s53_s15, %s53_s15 }
   0xb   :  { %p60_p6 = por %p59_p5, %p58_p4 }
   0xd   :  { %p61_p7 = pnand %p60_p6, %p54_p3 }
   0xf   :  { %64 = shalt.err (!%p61_p7)
}
  0x10   :  { %17 = dma.hbm_to_vmem [thread:$0]  %s127_s0, 128, %s15_s7, [#allocation3]  }
  0x11   :  { %87 = dma.done.wait [#allocation3], 128  }
  0x12   :  { %88 = vsyncadd [#allocation3], 4294967168  ;;  %v21_v0 = vld [vmem:[#allocation2] sm:$0xff]  ;;  %s92_s18 = smov [#allocation5]  }
  0x13   :  { %41 = verf.f32 %v21_v0  ;;  %s30_s19 = sshll.u32 %s92_s18, 4  ;;  %s31_s19 = int_to_ptr.vmem [resolvable:$true] %s30_s19 }
  0x14   :  { %s65_s20 = scalar_lea.vmem %s31_s19, 128  ;;  %p70_p9 = scmp.lt.s32.totalorder %s31_s19, %s31_s19 }
  0x15   :  { %p66_p8 = scmp.ne.s32.totalorder %s31_s19, %s65_s20  ;;  %p71_p10 = scmp.lt.s32.totalorder %s65_s20, %s65_s20 }
  0x17   :  { %p72_p11 = por %p71_p10, %p70_p9 }
  0x19   :  { %p73_p12 = pnand %p72_p11, %p66_p8 }
  0x1d   :  { %v42_v1 = vpop.eup %41 }
  0x1e   :  { %23 = vst [vmem:[#allocation5] sm:$0xff] %v42_v1 }
  0x1f   :  { %76 = shalt.err (!%p73_p12)
}
  0x20   :  { %s77_s0 = scalar_lea.hbm %s128_s1, 128 }
  0x21   :  { %p78_p13 = scmp.ne.s32.totalorder %s128_s1, %s77_s0  ;;  %p81_p0 = scmp.lt.u32.totalorder %s77_s0, %s128_s1 }
  0x23   :  { %p83_p1 = pnand %p81_p0, %p78_p13 }
  0x25   :  { %86 = shalt.err (!%p83_p1)
}
  0x26   :  { %33 = dma.vmem_to_hbm [thread:$0]  %s31_s19, 128, %s128_s1, [#allocation4]  }
  0x27   :  { %89 = dma.done.wait [#allocation4], 128  }
  0x28   :  { %90 = vsyncadd [#allocation4], 4294967168 }
  0x29   :  { %37 = vsyncpa [#allocation3], 1 }
  0x2a   :  { %38 = vsyncpa [#allocation4], 1 }

// kernel: _lambda_.35
= control target key start
LH: loop header
LB: loop body
LE: loop exit
PB: predicated region body
PF: predicated region fallthrough
CT: control target
= control target key end

     0   :  { %vm102_vm0 = vcmask 392192   ;;  %s545_s1 = inlined_call_operand.vmem [shape: bf16[48,128], index: 1, kind: input, shape index: {}]   ;;  %s546_s0 = inlined_call_operand.vmem [shape: bf16[128,48], index: 0, kind: input, shape index: {}]   ;;  %s547_s2 = inlined_call_operand.vmem [shape: f32[1,128], index: 2, kind: input, shape index: {}]   ;;  %s548_s3 = inlined_call_operand.vmem [shape: bf16[128,128], index: 3, kind: output, shape index: {}]  }
   0x1   :  { %v446_v0 = vld [vmem:[%s545_s1] sm:$0xff]   ;;  %v447_v1 = vld [vmem:[%s545_s1 + $0x8] sm:$0xff]   ;;  %v448_v2 = vld [vmem:[%s545_s1 + $0x10] sm:$0xff]  }
   0x2   :  { %418 = vmatprep.subr.bf16.mxu0 %v446_v0  ;;  %440 = vmatprep.subr.bf16.mxu1 %v446_v0  ;;  %v449_v3 = vld [vmem:[%s546_s0] sm:$0xff]   ;;  %v451_v5 = vld [vmem:[%s546_s0 + $0x8] sm:$0xff]   ;;  %v453_v7 = vld [vmem:[%s546_s0 + $0x10] sm:$0xff]  }
   0x3   :  { %419 = vmatpush3.bf16.msra.mxu0 %v446_v0  ;;  %443 = vmatpush3.bf16.msra.mxu1 %v446_v0  ;;  %v450_v4 = vld [vmem:[%s546_s0 + $0x20] sm:$0xff]   ;;  %v452_v6 = vld [vmem:[%s546_s0 + $0x28] sm:$0xff]   ;;  %v454_v8 = vld [vmem:[%s546_s0 + $0x30] sm:$0xff]  }
   0x4   :  { %420 = vmatprep.subr.bf16.mxu0 %v447_v1  ;;  %441 = vmatprep.subr.bf16.mxu1 %v447_v1  ;;  %v455_v9 = vld [vmem:[%s546_s0 + $0x18] sm:$0xff]   ;;  %v308_v12 = vld [vmem:[%s547_s2] ss:$0 sm:$0xff] }
   0x5   :  { %424 = vmatprep.mubr.msk.bf16.mxu0 %vm102_vm0, %v449_v3  ;;  %432 = vmatprep.mubr.msk.bf16.mxu1 %vm102_vm0, %v450_v4  ;;  %v456_v10 = vld [vmem:[%s546_s0 + $0x38] sm:$0xff]  }
   0x7   :  { %421 = vmatpush3.bf16.msra.mxu0 %v447_v1  ;;  %444 = vmatpush3.bf16.msra.mxu1 %v447_v1 }
   0x8   :  { %422 = vmatprep.subr.bf16.mxu0 %v448_v2  ;;  %442 = vmatprep.subr.bf16.mxu1 %v448_v2 }
   0xb   :  { %423 = vmatpush3.bf16.msra.mxu0 %v448_v2  ;;  %445 = vmatpush3.bf16.msra.mxu1 %v448_v2 }
   0xe   :  { %425 = vmatmul.mubr.msk.bf16.vlgmr.msra.gmra.mrb[0].mxu0 %vm102_vm0, %v451_v5  ;;  %433 = vmatmul.mubr.msk.bf16.vlgmr.msra.gmra.mrb[0].mxu1 %vm102_vm0, %v452_v6 }
   0xf   :  { %428 = vmatprep.mubr.msk.bf16.mxu0 %vm102_vm0, %v453_v7  ;;  %436 = vmatprep.mubr.msk.bf16.mxu1 %vm102_vm0, %v454_v8 }
  0x16   :  { %429 = vmatmul.mubr.msk.bf16.gmra.mrb[4].mxu0 %vm102_vm0, %v455_v9  ;;  %437 = vmatmul.mubr.msk.bf16.gmra.mrb[4].mxu1 %vm102_vm0, %v456_v10 }
  0xe1   :  { %v426_v11 = vpop.f32.mrb[0].mxu0  ;;  %v434_v13 = vpop.f32.mrb[0].mxu1 }
  0xe2   :  { %v161_v14 = vpop.f32.mrb[1].mxu0  ;;  %v193_v15 = vpop.f32.mrb[1].mxu1  ;;  %v170_v18 = vadd.f32 %v426_v11, %v308_v12  ;;  %v202_v19 = vadd.f32 %v434_v13, %v308_v12 }
  0xe3   :  { %v427_v16 = vpop.f32.mrb[2].mxu0  ;;  %v435_v17 = vpop.f32.mrb[2].mxu1  ;;  %v162_v24 = vadd.f32 %v308_v12, %v161_v14  ;;  %v194_v25 = vadd.f32 %v308_v12, %v193_v15 }
  0xe4   :  { %v173_v20 = vadd.f32 %v427_v16, %v308_v12  ;;  %v205_v21 = vadd.f32 %v435_v17, %v308_v12  ;;  %v164_v22 = vpop.f32.mrb[3].mxu0  ;;  %v196_v23 = vpop.f32.mrb[3].mxu1 }
  0xe5   :  { %v165_v26 = vadd.f32 %v308_v12, %v164_v22  ;;  %v197_v27 = vadd.f32 %v308_v12, %v196_v23 }
  0xe6   :  { %v368_v28 = vpack.c.bf16 %v173_v20, %v170_v18  ;;  %v388_v29 = vpack.c.bf16 %v205_v21, %v202_v19 }
  0xe7   :  { %v363_v30 = vpack.c.bf16 %v165_v26, %v162_v24  ;;  %v383_v31 = vpack.c.bf16 %v197_v27, %v194_v25 }
  0xe8   :  { %400 = vst [vmem:[%s548_s3 + $0x8] sm:$0xff] %v368_v28   ;;  %404 = vst [vmem:[%s548_s3 + $0x28] sm:$0xff] %v388_v29  }
  0xe9   :  { %364 = vst [vmem:[%s548_s3] sm:$0xff] %v363_v30   ;;  %403 = vst [vmem:[%s548_s3 + $0x20] sm:$0xff] %v383_v31   ;;  %v430_v32 = vpop.f32.mrb[4].mxu0  ;;  %v438_v33 = vpop.f32.mrb[4].mxu1 }
  0xea   :  { %v177_v34 = vpop.f32.mrb[5].mxu0  ;;  %v209_v35 = vpop.f32.mrb[5].mxu1  ;;  %v186_v38 = vadd.f32 %v430_v32, %v308_v12  ;;  %v218_v39 = vadd.f32 %v438_v33, %v308_v12 }
  0xeb   :  { %v431_v36 = vpop.f32.mrb[6].mxu0  ;;  %v439_v37 = vpop.f32.mrb[6].mxu1  ;;  %v178_v44 = vadd.f32 %v308_v12, %v177_v34  ;;  %v210_v45 = vadd.f32 %v308_v12, %v209_v35 }
  0xec   :  { %v189_v40 = vadd.f32 %v431_v36, %v308_v12  ;;  %v221_v41 = vadd.f32 %v439_v37, %v308_v12  ;;  %v180_v42 = vpop.f32.mrb[7].mxu0  ;;  %v212_v43 = vpop.f32.mrb[7].mxu1 }
  0xed   :  { %v181_v46 = vadd.f32 %v308_v12, %v180_v42  ;;  %v213_v47 = vadd.f32 %v308_v12, %v212_v43 }
  0xee   :  { %v378_v48 = vpack.c.bf16 %v189_v40, %v186_v38  ;;  %v398_v49 = vpack.c.bf16 %v221_v41, %v218_v39 }
  0xef   :  { %v373_v50 = vpack.c.bf16 %v181_v46, %v178_v44  ;;  %v393_v51 = vpack.c.bf16 %v213_v47, %v210_v45 }
  0xf0   :  { %402 = vst [vmem:[%s548_s3 + $0x18] sm:$0xff] %v378_v48   ;;  %406 = vst [vmem:[%s548_s3 + $0x38] sm:$0xff] %v398_v49  }
  0xf1   :  { %401 = vst [vmem:[%s548_s3 + $0x10] sm:$0xff] %v373_v50   ;;  %405 = vst [vmem:[%s548_s3 + $0x30] sm:$0xff] %v393_v51  }

// kernel: _lambda_.36
= control target key start
LH: loop header
LB: loop body
LE: loop exit
PB: predicated region body
PF: predicated region fallthrough
CT: control target
= control target key end

     0   :  { %vm46_vm0 = vcmask 261120   ;;  %s745_s0 = inlined_call_operand.vmem [shape: bf16[128,32], index: 0, kind: input, shape index: {}]   ;;  %s746_s1 = inlined_call_operand.vmem [shape: f32[1,32], index: 1, kind: input, shape index: {}]   ;;  %s747_s2 = inlined_call_operand.vmem [shape: f32[1,32], index: 2, kind: input, shape index: {}]   ;;  %s748_s3 = inlined_call_operand.vmem [shape: f32[128,32], index: 3, kind: output, shape index: {}]  }
   0x1   :  { %v418_v0 = vld [vmem:[%s745_s0] sm:$0xff]   ;;  %v423_v1 = vld [vmem:[%s745_s0 + $0x8] sm:$0xff]   ;;  %v432_v6 = vld [vmem:[%s745_s0 + $0x10] sm:$0xff]  }
   0x2   :  { %v326_v2 = vunpack.c.l.bf16 %v418_v0  ;;  %v330_v3 = vunpack.c.l.bf16 %v423_v1  ;;  %v327_v4 = vunpack.c.h.bf16 %v418_v0  ;;  %v331_v5 = vunpack.c.h.bf16 %v423_v1  ;;  %v447_v13 = vld [vmem:[%s745_s0 + $0x18] sm:$0xff]   ;;  %v460_v18 = vld [vmem:[%s745_s0 + $0x20] sm:$0xff]   ;;  %v473_v23 = vld [vmem:[%s745_s0 + $0x28] sm:$0xff]  }
   0x3   :  { %v334_v11 = vunpack.c.l.bf16 %v432_v6  ;;  %v335_v12 = vunpack.c.h.bf16 %v432_v6  ;;  %v338_v16 = vunpack.c.l.bf16 %v447_v13  ;;  %v339_v17 = vunpack.c.h.bf16 %v447_v13  ;;  %v486_v28 = vld [vmem:[%s745_s0 + $0x30] sm:$0xff]   ;;  %v499_v33 = vld [vmem:[%s745_s0 + $0x38] sm:$0xff]  }
   0x4   :  { %v47_v7 = vsel %vm46_vm0, %v326_v2, 0.0  ;;  %v53_v8 = vsel %vm46_vm0, %v330_v3, 0.0  ;;  %v50_v9 = vsel %vm46_vm0, %v327_v4, 0.0  ;;  %v56_v10 = vsel %vm46_vm0, %v331_v5, 0.0 }
   0x5   :  { %48 = vadd.xlane.f32.xlu0 %v47_v7  ;;  %54 = vadd.xlane.f32.xlu1 %v53_v8  ;;  %v59_v14 = vsel %vm46_vm0, %v334_v11, 0.0  ;;  %v62_v15 = vsel %vm46_vm0, %v335_v12, 0.0  ;;  %v65_v19 = vsel %vm46_vm0, %v338_v16, 0.0  ;;  %v68_v20 = vsel %vm46_vm0, %v339_v17, 0.0 }
   0x6   :  { %v342_v21 = vunpack.c.l.bf16 %v460_v18  ;;  %v343_v22 = vunpack.c.h.bf16 %v460_v18  ;;  %v346_v26 = vunpack.c.l.bf16 %v473_v23  ;;  %v347_v27 = vunpack.c.h.bf16 %v473_v23 }
   0x7   :  { %v350_v31 = vunpack.c.l.bf16 %v486_v28  ;;  %v351_v32 = vunpack.c.h.bf16 %v486_v28  ;;  %v354_v36 = vunpack.c.l.bf16 %v499_v33  ;;  %v355_v37 = vunpack.c.h.bf16 %v499_v33 }
   0x8   :  { %v71_v24 = vsel %vm46_vm0, %v342_v21, 0.0  ;;  %v74_v25 = vsel %vm46_vm0, %v343_v22, 0.0  ;;  %v77_v29 = vsel %vm46_vm0, %v346_v26, 0.0  ;;  %v80_v30 = vsel %vm46_vm0, %v347_v27, 0.0 }
   0x9   :  { %51 = vadd.xlane.f32.xlu0 %v50_v9  ;;  %57 = vadd.xlane.f32.xlu1 %v56_v10  ;;  %v83_v34 = vsel %vm46_vm0, %v350_v31, 0.0  ;;  %v86_v35 = vsel %vm46_vm0, %v351_v32, 0.0  ;;  %v89_v38 = vsel %vm46_vm0, %v354_v36, 0.0  ;;  %v92_v39 = vsel %vm46_vm0, %v355_v37, 0.0 }
   0xd   :  { %60 = vadd.xlane.f32.xlu0 %v59_v14  ;;  %63 = vadd.xlane.f32.xlu1 %v62_v15 }
  0x11   :  { %66 = vadd.xlane.f32.xlu0 %v65_v19  ;;  %69 = vadd.xlane.f32.xlu1 %v68_v20 }
  0x15   :  { %72 = vadd.xlane.f32.xlu0 %v71_v24  ;;  %75 = vadd.xlane.f32.xlu1 %v74_v25 }
  0x19   :  { %78 = vadd.xlane.f32.xlu0 %v77_v29  ;;  %81 = vadd.xlane.f32.xlu1 %v80_v30 }
  0x1d   :  { %84 = vadd.xlane.f32.xlu0 %v83_v34  ;;  %87 = vadd.xlane.f32.xlu1 %v86_v35 }
  0x21   :  { %90 = vadd.xlane.f32.xlu0 %v89_v38  ;;  %93 = vadd.xlane.f32.xlu1 %v92_v39 }
  0x92   :  { %v49_v40 = vpop.xlane.xlu0 %48  ;;  %v55_v41 = vpop.xlane.xlu1 %54 }
  0x93   :  { %v96_v42 = vmul.f32 0.03125, %v49_v40  ;;  %v98_v43 = vmul.f32 0.03125, %v55_v41 }
  0x95   :  { %v515_v44 = vsub.f32 %v326_v2, %v96_v42  ;;  %v517_v45 = vsub.f32 %v330_v3, %v98_v43 }
  0x96   :  { %v52_v46 = vpop.xlane.xlu0 %51  ;;  %v58_v47 = vpop.xlane.xlu1 %57 }
  0x97   :  { %v97_v48 = vmul.f32 0.03125, %v52_v46  ;;  %v99_v49 = vmul.f32 0.03125, %v58_v47  ;;  %v128_v50 = vmul.f32 %v515_v44, %v515_v44  ;;  %v130_v51 = vmul.f32 %v517_v45, %v517_v45 }
  0x99   :  { %v525_v52 = vsub.f32 %v327_v4, %v97_v48  ;;  %v529_v53 = vsub.f32 %v331_v5, %v99_v49  ;;  %v144_v54 = vsel %vm46_vm0, %v128_v50, 0.0  ;;  %v150_v57 = vsel %vm46_vm0, %v130_v51, 0.0 }
  0x9a   :  { %145 = vadd.xlane.f32.xlu0 %v144_v54  ;;  %v61_v55 = vpop.xlane.xlu0 %60  ;;  %v64_v56 = vpop.xlane.xlu1 %63 }
  0x9b   :  { %v100_v58 = vmul.f32 0.03125, %v61_v55  ;;  %v101_v59 = vmul.f32 0.03125, %v64_v56  ;;  %v129_v60 = vmul.f32 %v525_v52, %v525_v52  ;;  %v131_v61 = vmul.f32 %v529_v53, %v529_v53 }
  0x9d   :  { %v539_v62 = vsub.f32 %v334_v11, %v100_v58  ;;  %v543_v63 = vsub.f32 %v335_v12, %v101_v59  ;;  %v147_v0 = vsel %vm46_vm0, %v129_v60, 0.0  ;;  %v153_v3 = vsel %vm46_vm0, %v131_v61, 0.0 }
  0x9e   :  { %151 = vadd.xlane.f32.xlu0 %v150_v57  ;;  %148 = vadd.xlane.f32.xlu1 %v147_v0  ;;  %v67_v1 = vpop.xlane.xlu0 %66  ;;  %v70_v2 = vpop.xlane.xlu1 %69 }
  0x9f   :  { %v102_v4 = vmul.f32 0.03125, %v67_v1  ;;  %v103_v5 = vmul.f32 0.03125, %v70_v2  ;;  %v132_v7 = vmul.f32 %v539_v62, %v539_v62  ;;  %v133_v8 = vmul.f32 %v543_v63, %v543_v63 }
  0xa1   :  { %v553_v6 = vsub.f32 %v338_v16, %v102_v4  ;;  %v557_v9 = vsub.f32 %v339_v17, %v103_v5  ;;  %v156_v10 = vsel %vm46_vm0, %v132_v7, 0.0  ;;  %v159_v14 = vsel %vm46_vm0, %v133_v8, 0.0 }
  0xa2   :  { %154 = vadd.xlane.f32.xlu1 %v153_v3  ;;  %157 = vadd.xlane.f32.xlu0 %v156_v10  ;;  %v73_v11 = vpop.xlane.xlu0 %72  ;;  %v76_v12 = vpop.xlane.xlu1 %75 }
  0xa3   :  { %v104_v15 = vmul.f32 0.03125, %v73_v11  ;;  %v105_v19 = vmul.f32 0.03125, %v76_v12  ;;  %v134_v20 = vmul.f32 %v553_v6, %v553_v6  ;;  %v135_v16 = vmul.f32 %v557_v9, %v557_v9 }
  0xa5   :  { %v567_v13 = vsub.f32 %v342_v21, %v104_v15  ;;  %v571_v17 = vsub.f32 %v343_v22, %v105_v19  ;;  %v162_v24 = vsel %vm46_vm0, %v134_v20, 0.0  ;;  %v165_v30 = vsel %vm46_vm0, %v135_v16, 0.0 }
  0xa6   :  { %160 = vadd.xlane.f32.xlu1 %v159_v14  ;;  %163 = vadd.xlane.f32.xlu0 %v162_v24  ;;  %v79_v25 = vpop.xlane.xlu0 %78  ;;  %v82_v29 = vpop.xlane.xlu1 %81 }
  0xa7   :  { %v106_v34 = vmul.f32 0.03125, %v79_v25  ;;  %v107_v35 = vmul.f32 0.03125, %v82_v29  ;;  %v136_v38 = vmul.f32 %v567_v13, %v567_v13  ;;  %v137_v21 = vmul.f32 %v571_v17, %v571_v17  ;;  %v626_v29 = vld [vmem:[%s746_s1] ss:$0 sm:$0xff] }
  0xa9   :  { %v581_v18 = vsub.f32 %v346_v26, %v106_v34  ;;  %v585_v22 = vsub.f32 %v347_v27, %v107_v35  ;;  %v168_v39 = vsel %vm46_vm0, %v136_v38, 0.0  ;;  %v171_v42 = vsel %vm46_vm0, %v137_v21, 0.0 }
  0xaa   :  { %166 = vadd.xlane.f32.xlu1 %v165_v30  ;;  %169 = vadd.xlane.f32.xlu0 %v168_v39  ;;  %v85_v40 = vpop.xlane.xlu0 %84  ;;  %v88_v41 = vpop.xlane.xlu1 %87  ;;  %v632_v39 = vld [vmem:[%s747_s2] ss:$0 sm:$0xff] }
  0xab   :  { %v108_v43 = vmul.f32 0.03125, %v85_v40  ;;  %v109_v46 = vmul.f32 0.03125, %v88_v41  ;;  %v138_v47 = vmul.f32 %v581_v18, %v581_v18  ;;  %v139_v26 = vmul.f32 %v585_v22, %v585_v22 }
  0xad   :  { %v595_v23 = vsub.f32 %v350_v31, %v108_v43  ;;  %v599_v27 = vsub.f32 %v351_v32, %v109_v46  ;;  %v174_v48 = vsel %vm46_vm0, %v138_v47, 0.0  ;;  %v177_v51 = vsel %vm46_vm0, %v139_v26, 0.0 }
  0xae   :  { %172 = vadd.xlane.f32.xlu1 %v171_v42  ;;  %175 = vadd.xlane.f32.xlu0 %v174_v48  ;;  %v91_v49 = vpop.xlane.xlu0 %90  ;;  %v94_v50 = vpop.xlane.xlu1 %93 }
  0xaf   :  { %v110_v54 = vmul.f32 0.03125, %v91_v49  ;;  %v111_v55 = vmul.f32 0.03125, %v94_v50  ;;  %v140_v56 = vmul.f32 %v595_v23, %v595_v23  ;;  %v141_v31 = vmul.f32 %v599_v27, %v599_v27 }
  0xb1   :  { %v609_v28 = vsub.f32 %v354_v36, %v110_v54  ;;  %v613_v32 = vsub.f32 %v355_v37, %v111_v55  ;;  %v180_v57 = vsel %vm46_vm0, %v140_v56, 0.0  ;;  %v183_v58 = vsel %vm46_vm0, %v141_v31, 0.0 }
  0xb2   :  { %178 = vadd.xlane.f32.xlu1 %v177_v51  ;;  %181 = vadd.xlane.f32.xlu0 %v180_v57 }
  0xb3   :  { %v142_v59 = vmul.f32 %v609_v28, %v609_v28  ;;  %v143_v60 = vmul.f32 %v613_v32, %v613_v32 }
  0xb5   :  { %v186_v61 = vsel %vm46_vm0, %v142_v59, 0.0  ;;  %v189_v33 = vsel %vm46_vm0, %v143_v60, 0.0 }
  0xb6   :  { %184 = vadd.xlane.f32.xlu1 %v183_v58  ;;  %187 = vadd.xlane.f32.xlu0 %v186_v61 }
  0xba   :  { %190 = vadd.xlane.f32.xlu1 %v189_v33 }
 0x127   :  { %v146_v36 = vpop.xlane.xlu0 %145 }
 0x128   :  { %v192_v37 = vmul.f32 0.03125, %v146_v36 }
 0x12a   :  { %v208_v0 = vadd.f32 1e-05, %v192_v37 }
 0x12b   :  { %v149_v1 = vpop.xlane.xlu1 %148  ;;  %v152_v2 = vpop.xlane.xlu0 %151 }
 0x12c   :  { %363 = vrsqrt.f32 %v208_v0  ;;  %v193_v3 = vmul.f32 0.03125, %v149_v1  ;;  %v194_v4 = vmul.f32 0.03125, %v152_v2 }
 0x12e   :  { %v209_v5 = vadd.f32 1e-05, %v193_v3  ;;  %v210_v7 = vadd.f32 1e-05, %v194_v4 }
 0x12f   :  { %v155_v8 = vpop.xlane.xlu1 %154  ;;  %v158_v10 = vpop.xlane.xlu0 %157 }
 0x130   :  { %365 = vrsqrt.f32 %v209_v5  ;;  %v195_v11 = vmul.f32 0.03125, %v155_v8  ;;  %v196_v12 = vmul.f32 0.03125, %v158_v10 }
 0x131   :  { %367 = vrsqrt.f32 %v210_v7 }
 0x132   :  { %v211_v14 = vadd.f32 1e-05, %v195_v11  ;;  %v212_v15 = vadd.f32 1e-05, %v196_v12 }
 0x133   :  { %v161_v19 = vpop.xlane.xlu1 %160  ;;  %v164_v20 = vpop.xlane.xlu0 %163 }
 0x134   :  { %369 = vrsqrt.f32 %v211_v14  ;;  %v197_v16 = vmul.f32 0.03125, %v161_v19  ;;  %v198_v24 = vmul.f32 0.03125, %v164_v20 }
 0x135   :  { %371 = vrsqrt.f32 %v212_v15 }
 0x136   :  { %v364_v25 = vpop.eup %363  ;;  %v213_v30 = vadd.f32 1e-05, %v197_v16  ;;  %v214_v34 = vadd.f32 1e-05, %v198_v24 }
 0x137   :  { %v240_v35 = vmul.f32 %v364_v25, %v515_v44  ;;  %v167_v38 = vpop.xlane.xlu1 %166  ;;  %v170_v21 = vpop.xlane.xlu0 %169 }
 0x138   :  { %373 = vrsqrt.f32 %v213_v30  ;;  %v199_v40 = vmul.f32 0.03125, %v167_v38  ;;  %v200_v41 = vmul.f32 0.03125, %v170_v21 }
 0x139   :  { %v263_v42 = vmul.f32 %v626_v29, %v240_v35  ;;  %375 = vrsqrt.f32 %v214_v34 }
 0x13a   :  { %v366_v43 = vpop.eup %365  ;;  %v215_v46 = vadd.f32 1e-05, %v199_v40  ;;  %v216_v47 = vadd.f32 1e-05, %v200_v41 }
 0x13b   :  { %v368_v26 = vpop.eup %367  ;;  %v286_v48 = vadd.f32 %v632_v39, %v263_v42  ;;  %v241_v44 = vmul.f32 %v366_v43, %v525_v52  ;;  %v173_v49 = vpop.xlane.xlu1 %172 }
 0x13c   :  { %v176_v50 = vpop.xlane.xlu0 %175  ;;  %v242_v51 = vmul.f32 %v368_v26, %v517_v45  ;;  %377 = vrsqrt.f32 %v215_v46  ;;  %v201_v54 = vmul.f32 0.03125, %v173_v49 }
 0x13d   :  { %v202_v55 = vmul.f32 0.03125, %v176_v50  ;;  %302 = vst.msk [vmem:[%s748_s3] sm:$0xff] %vm46_vm0, %v286_v48  ;;  %v264_v56 = vmul.f32 %v626_v29, %v241_v44  ;;  %379 = vrsqrt.f32 %v216_v47 }
 0x13e   :  { %v370_v31 = vpop.eup %369  ;;  %v265_v57 = vmul.f32 %v626_v29, %v242_v51  ;;  %v217_v58 = vadd.f32 1e-05, %v201_v54 }
 0x13f   :  { %v218_v52 = vadd.f32 1e-05, %v202_v55  ;;  %v372_v59 = vpop.eup %371  ;;  %v287_v60 = vadd.f32 %v632_v39, %v264_v56  ;;  %v243_v45 = vmul.f32 %v370_v31, %v529_v53  ;;  %v179_v61 = vpop.xlane.xlu1 %178 }
 0x140   :  { %v182_v33 = vpop.xlane.xlu0 %181  ;;  %v288_v36 = vadd.f32 %v632_v39, %v265_v57  ;;  %v244_v37 = vmul.f32 %v372_v59, %v539_v62  ;;  %381 = vrsqrt.f32 %v217_v58  ;;  %v203_v0 = vmul.f32 0.03125, %v179_v61 }
 0x141   :  { %303 = vst.msk [vmem:[%s748_s3 + $0x8] sm:$0xff] %vm46_vm0, %v287_v60  ;;  %v266_v1 = vmul.f32 %v626_v29, %v243_v45  ;;  %383 = vrsqrt.f32 %v218_v52  ;;  %v204_v2 = vmul.f32 0.03125, %v182_v33 }
 0x142   :  { %v374_v3 = vpop.eup %373  ;;  %304 = vst.msk [vmem:[%s748_s3 + $0x10] sm:$0xff] %vm46_vm0, %v288_v36  ;;  %v267_v53 = vmul.f32 %v626_v29, %v244_v37  ;;  %v219_v62 = vadd.f32 1e-05, %v203_v0 }
 0x143   :  { %v376_v4 = vpop.eup %375  ;;  %v289_v5 = vadd.f32 %v632_v39, %v266_v1  ;;  %v245_v7 = vmul.f32 %v374_v3, %v543_v63  ;;  %v220_v8 = vadd.f32 1e-05, %v204_v2  ;;  %v185_v10 = vpop.xlane.xlu1 %184 }
 0x144   :  { %v188_v11 = vpop.xlane.xlu0 %187  ;;  %v290_v12 = vadd.f32 %v632_v39, %v267_v53  ;;  %v246_v14 = vmul.f32 %v376_v4, %v553_v6  ;;  %385 = vrsqrt.f32 %v219_v62  ;;  %v205_v15 = vmul.f32 0.03125, %v185_v10 }
 0x145   :  { %305 = vst.msk [vmem:[%s748_s3 + $0x18] sm:$0xff] %vm46_vm0, %v289_v5  ;;  %v268_v19 = vmul.f32 %v626_v29, %v245_v7  ;;  %387 = vrsqrt.f32 %v220_v8  ;;  %v206_v20 = vmul.f32 0.03125, %v188_v11 }
 0x146   :  { %v378_v16 = vpop.eup %377  ;;  %306 = vst.msk [vmem:[%s748_s3 + $0x20] sm:$0xff] %vm46_vm0, %v290_v12  ;;  %v269_v63 = vmul.f32 %v626_v29, %v246_v14  ;;  %v221_v6 = vadd.f32 1e-05, %v205_v15 }
 0x147   :  { %v380_v24 = vpop.eup %379  ;;  %v291_v25 = vadd.f32 %v632_v39, %v268_v19  ;;  %v247_v30 = vmul.f32 %v378_v16, %v557_v9  ;;  %v222_v34 = vadd.f32 1e-05, %v206_v20  ;;  %v191_v35 = vpop.xlane.xlu1 %190 }
 0x148   :  { %v292_v38 = vadd.f32 %v632_v39, %v269_v63  ;;  %v248_v21 = vmul.f32 %v380_v24, %v567_v13  ;;  %389 = vrsqrt.f32 %v221_v6  ;;  %v207_v40 = vmul.f32 0.03125, %v191_v35 }
 0x149   :  { %307 = vst.msk [vmem:[%s748_s3 + $0x28] sm:$0xff] %vm46_vm0, %v291_v25  ;;  %v270_v41 = vmul.f32 %v626_v29, %v247_v30  ;;  %391 = vrsqrt.f32 %v222_v34 }
 0x14a   :  { %v382_v42 = vpop.eup %381  ;;  %308 = vst.msk [vmem:[%s748_s3 + $0x30] sm:$0xff] %vm46_vm0, %v292_v38  ;;  %v271_v9 = vmul.f32 %v626_v29, %v248_v21  ;;  %v223_v43 = vadd.f32 1e-05, %v207_v40 }
 0x14b   :  { %v384_v13 = vpop.eup %383  ;;  %v293_v46 = vadd.f32 %v632_v39, %v270_v41  ;;  %v249_v47 = vmul.f32 %v382_v42, %v571_v17 }
 0x14c   :  { %v294_v26 = vadd.f32 %v632_v39, %v271_v9  ;;  %v250_v48 = vmul.f32 %v384_v13, %v581_v18  ;;  %393 = vrsqrt.f32 %v223_v43 }
 0x14d   :  { %309 = vst.msk [vmem:[%s748_s3 + $0x38] sm:$0xff] %vm46_vm0, %v293_v46  ;;  %v272_v44 = vmul.f32 %v626_v29, %v249_v47 }
 0x14e   :  { %v386_v49 = vpop.eup %385  ;;  %310 = vst.msk [vmem:[%s748_s3 + $0x40] sm:$0xff] %vm46_vm0, %v294_v26  ;;  %v273_v17 = vmul.f32 %v626_v29, %v250_v48 }
 0x14f   :  { %v388_v50 = vpop.eup %387  ;;  %v295_v51 = vadd.f32 %v632_v39, %v272_v44  ;;  %v251_v18 = vmul.f32 %v386_v49, %v585_v22 }
 0x150   :  { %v296_v54 = vadd.f32 %v632_v39, %v273_v17  ;;  %v252_v55 = vmul.f32 %v388_v50, %v595_v23 }
 0x151   :  { %311 = vst.msk [vmem:[%s748_s3 + $0x48] sm:$0xff] %vm46_vm0, %v295_v51  ;;  %v274_v56 = vmul.f32 %v626_v29, %v251_v18 }
 0x152   :  { %v390_v31 = vpop.eup %389  ;;  %312 = vst.msk [vmem:[%s748_s3 + $0x50] sm:$0xff] %vm46_vm0, %v296_v54  ;;  %v275_v57 = vmul.f32 %v626_v29, %v252_v55 }
 0x153   :  { %v392_v22 = vpop.eup %391  ;;  %v297_v58 = vadd.f32 %v632_v39, %v274_v56  ;;  %v253_v23 = vmul.f32 %v390_v31, %v599_v27 }
 0x154   :  { %v298_v52 = vadd.f32 %v632_v39, %v275_v57  ;;  %v254_v59 = vmul.f32 %v392_v22, %v609_v28 }
 0x155   :  { %313 = vst.msk [vmem:[%s748_s3 + $0x58] sm:$0xff] %vm46_vm0, %v297_v58  ;;  %v276_v60 = vmul.f32 %v626_v29, %v253_v23 }
 0x156   :  { %v394_v45 = vpop.eup %393  ;;  %314 = vst.msk [vmem:[%s748_s3 + $0x60] sm:$0xff] %vm46_vm0, %v298_v52  ;;  %v277_v61 = vmul.f32 %v626_v29, %v254_v59 }
 0x157   :  { %v299_v27 = vadd.f32 %v632_v39, %v276_v60  ;;  %v255_v33 = vmul.f32 %v394_v45, %v613_v32 }
 0x158   :  { %v300_v28 = vadd.f32 %v632_v39, %v277_v61 }
 0x159   :  { %315 = vst.msk [vmem:[%s748_s3 + $0x68] sm:$0xff] %vm46_vm0, %v299_v27  ;;  %v278_v36 = vmul.f32 %v626_v29, %v255_v33 }
 0x15a   :  { %316 = vst.msk [vmem:[%s748_s3 + $0x70] sm:$0xff] %vm46_vm0, %v300_v28 }
 0x15b   :  { %v301_v37 = vadd.f32 %v632_v39, %v278_v36 }
 0x15d   :  { %317 = vst.msk [vmem:[%s748_s3 + $0x78] sm:$0xff] %vm46_vm0, %v301_v37 }

// kernel: _lambda_.37
= control target key start
LH: loop header
LB: loop body
LE: loop exit
PB: predicated region body
PF: predicated region fallthrough
CT: control target
= control target key end

     0   :  { %vm30_vm0 = vcmask 261120   ;;  %vm350_vm1 = vcmask 257024   ;;  %s763_s0 = inlined_call_operand.vmem [shape: f32[128,32], index: 0, kind: input, shape index: {}]   ;;  %s764_s1 = inlined_call_operand.vmem [shape: f32[1,32], index: 1, kind: input, shape index: {}]   ;;  %s765_s2 = inlined_call_operand.vmem [shape: f32[1,32], index: 2, kind: input, shape index: {}]   ;;  %s766_s3 = inlined_call_operand.vmem [shape: bf16[128,32], index: 3, kind: output, shape index: {}]  }
   0x1   :  { %v14_v0 = vld [vmem:[%s763_s0] sm:$0xff]  ;;  %v16_v1 = vld [vmem:[%s763_s0 + $0x10] sm:$0xff]  ;;  %v15_v2 = vld [vmem:[%s763_s0 + $0x8] sm:$0xff] }
   0x2   :  { %v31_v3 = vsel %vm30_vm0, %v14_v0, 0.0  ;;  %v37_v4 = vsel %vm30_vm0, %v16_v1, 0.0  ;;  %v17_v5 = vld [vmem:[%s763_s0 + $0x18] sm:$0xff]  ;;  %v34_v6 = vsel %vm30_vm0, %v15_v2, 0.0  ;;  %v18_v8 = vld [vmem:[%s763_s0 + $0x20] sm:$0xff]  ;;  %v19_v9 = vld [vmem:[%s763_s0 + $0x28] sm:$0xff] }
   0x3   :  { %32 = vadd.xlane.f32.xlu0 %v31_v3  ;;  %38 = vadd.xlane.f32.xlu1 %v37_v4  ;;  %v40_v7 = vsel %vm30_vm0, %v17_v5, 0.0  ;;  %v43_v10 = vsel %vm30_vm0, %v18_v8, 0.0  ;;  %v46_v11 = vsel %vm30_vm0, %v19_v9, 0.0  ;;  %v484_v12 = vld [vmem:[%s763_s0 + $0x30] sm:$0xff]  ;;  %v489_v13 = vld [vmem:[%s763_s0 + $0x38] sm:$0xff]  ;;  %v498_v16 = vld [vmem:[%s763_s0 + $0x40] sm:$0xff] }
   0x4   :  { %v49_v14 = vsel %vm30_vm0, %v484_v12, 0.0  ;;  %v52_v15 = vsel %vm30_vm0, %v489_v13, 0.0  ;;  %v503_v17 = vld [vmem:[%s763_s0 + $0x48] sm:$0xff]  ;;  %v55_v18 = vsel %vm30_vm0, %v498_v16, 0.0  ;;  %v512_v20 = vld [vmem:[%s763_s0 + $0x50] sm:$0xff]  ;;  %v517_v21 = vld [vmem:[%s763_s0 + $0x58] sm:$0xff] }
   0x5   :  { %v58_v19 = vsel %vm30_vm0, %v503_v17, 0.0  ;;  %v61_v22 = vsel %vm30_vm0, %v512_v20, 0.0  ;;  %v64_v23 = vsel %vm30_vm0, %v517_v21, 0.0  ;;  %v526_v24 = vld [vmem:[%s763_s0 + $0x60] sm:$0xff]  ;;  %v531_v25 = vld [vmem:[%s763_s0 + $0x68] sm:$0xff]  ;;  %v540_v28 = vld [vmem:[%s763_s0 + $0x70] sm:$0xff] }
   0x6   :  { %v67_v26 = vsel %vm30_vm0, %v526_v24, 0.0  ;;  %v70_v27 = vsel %vm30_vm0, %v531_v25, 0.0  ;;  %v545_v29 = vld [vmem:[%s763_s0 + $0x78] sm:$0xff]  ;;  %v73_v30 = vsel %vm30_vm0, %v540_v28, 0.0 }
   0x7   :  { %35 = vadd.xlane.f32.xlu0 %v34_v6  ;;  %41 = vadd.xlane.f32.xlu1 %v40_v7  ;;  %v76_v31 = vsel %vm30_vm0, %v545_v29, 0.0 }
   0xb   :  { %44 = vadd.xlane.f32.xlu0 %v43_v10  ;;  %47 = vadd.xlane.f32.xlu1 %v46_v11 }
   0xf   :  { %50 = vadd.xlane.f32.xlu0 %v49_v14  ;;  %53 = vadd.xlane.f32.xlu1 %v52_v15 }
  0x13   :  { %56 = vadd.xlane.f32.xlu0 %v55_v18  ;;  %59 = vadd.xlane.f32.xlu1 %v58_v19 }
  0x17   :  { %62 = vadd.xlane.f32.xlu0 %v61_v22  ;;  %65 = vadd.xlane.f32.xlu1 %v64_v23 }
  0x1b   :  { %68 = vadd.xlane.f32.xlu0 %v67_v26  ;;  %71 = vadd.xlane.f32.xlu1 %v70_v27 }
  0x1f   :  { %74 = vadd.xlane.f32.xlu0 %v73_v30  ;;  %77 = vadd.xlane.f32.xlu1 %v76_v31 }
  0x90   :  { %v33_v32 = vpop.xlane.xlu0 %32  ;;  %v39_v33 = vpop.xlane.xlu1 %38 }
  0x91   :  { %v80_v34 = vmul.f32 0.03125, %v33_v32  ;;  %v82_v35 = vmul.f32 0.03125, %v39_v33 }
  0x93   :  { %v551_v36 = vsub.f32 %v14_v0, %v80_v34  ;;  %v553_v37 = vsub.f32 %v16_v1, %v82_v35 }
  0x94   :  { %v36_v38 = vpop.xlane.xlu0 %35  ;;  %v42_v39 = vpop.xlane.xlu1 %41 }
  0x95   :  { %v81_v40 = vmul.f32 0.03125, %v36_v38  ;;  %v83_v41 = vmul.f32 0.03125, %v42_v39  ;;  %v112_v42 = vmul.f32 %v551_v36, %v551_v36  ;;  %v114_v43 = vmul.f32 %v553_v37, %v553_v37 }
  0x97   :  { %v559_v44 = vsub.f32 %v15_v2, %v81_v40  ;;  %v561_v45 = vsub.f32 %v17_v5, %v83_v41  ;;  %v128_v46 = vsel %vm30_vm0, %v112_v42, 0.0  ;;  %v134_v49 = vsel %vm30_vm0, %v114_v43, 0.0 }
  0x98   :  { %129 = vadd.xlane.f32.xlu0 %v128_v46  ;;  %v45_v47 = vpop.xlane.xlu0 %44  ;;  %v48_v48 = vpop.xlane.xlu1 %47 }
  0x99   :  { %v84_v50 = vmul.f32 0.03125, %v45_v47  ;;  %v85_v51 = vmul.f32 0.03125, %v48_v48  ;;  %v113_v52 = vmul.f32 %v559_v44, %v559_v44  ;;  %v115_v53 = vmul.f32 %v561_v45, %v561_v45 }
  0x9b   :  { %v569_v54 = vsub.f32 %v18_v8, %v84_v50  ;;  %v571_v55 = vsub.f32 %v19_v9, %v85_v51  ;;  %v131_v56 = vsel %vm30_vm0, %v113_v52, 0.0  ;;  %v137_v59 = vsel %vm30_vm0, %v115_v53, 0.0 }
  0x9c   :  { %135 = vadd.xlane.f32.xlu0 %v134_v49  ;;  %132 = vadd.xlane.f32.xlu1 %v131_v56  ;;  %v51_v57 = vpop.xlane.xlu0 %50  ;;  %v54_v58 = vpop.xlane.xlu1 %53 }
  0x9d   :  { %v86_v60 = vmul.f32 0.03125, %v51_v57  ;;  %v87_v61 = vmul.f32 0.03125, %v54_v58  ;;  %v116_v62 = vmul.f32 %v569_v54, %v569_v54  ;;  %v117_v63 = vmul.f32 %v571_v55, %v571_v55 }
  0x9f   :  { %v580_v0 = vsub.f32 %v484_v12, %v86_v60  ;;  %v583_v1 = vsub.f32 %v489_v13, %v87_v61  ;;  %v140_v2 = vsel %vm30_vm0, %v116_v62, 0.0  ;;  %v143_v5 = vsel %vm30_vm0, %v117_v63, 0.0 }
  0xa0   :  { %138 = vadd.xlane.f32.xlu1 %v137_v59  ;;  %141 = vadd.xlane.f32.xlu0 %v140_v2  ;;  %v57_v3 = vpop.xlane.xlu0 %56  ;;  %v60_v4 = vpop.xlane.xlu1 %59 }
  0xa1   :  { %v88_v6 = vmul.f32 0.03125, %v57_v3  ;;  %v89_v7 = vmul.f32 0.03125, %v60_v4  ;;  %v118_v8 = vmul.f32 %v580_v0, %v580_v0  ;;  %v119_v9 = vmul.f32 %v583_v1, %v583_v1 }
  0xa3   :  { %v592_v10 = vsub.f32 %v498_v16, %v88_v6  ;;  %v595_v11 = vsub.f32 %v503_v17, %v89_v7  ;;  %v146_v12 = vsel %vm30_vm0, %v118_v8, 0.0  ;;  %v149_v15 = vsel %vm30_vm0, %v119_v9, 0.0 }
  0xa4   :  { %144 = vadd.xlane.f32.xlu1 %v143_v5  ;;  %147 = vadd.xlane.f32.xlu0 %v146_v12  ;;  %v63_v13 = vpop.xlane.xlu0 %62  ;;  %v66_v14 = vpop.xlane.xlu1 %65 }
  0xa5   :  { %v90_v18 = vmul.f32 0.03125, %v63_v13  ;;  %v91_v19 = vmul.f32 0.03125, %v66_v14  ;;  %v120_v22 = vmul.f32 %v592_v10, %v592_v10  ;;  %v121_v16 = vmul.f32 %v595_v11, %v595_v11  ;;  %v644_v14 = vld [vmem:[%s764_s1] ss:$0 sm:$0xff] }
  0xa7   :  { %v604_v23 = vsub.f32 %v512_v20, %v90_v18  ;;  %v607_v17 = vsub.f32 %v517_v21, %v91_v19  ;;  %v152_v26 = vsel %vm30_vm0, %v120_v22, 0.0  ;;  %v155_v31 = vsel %vm30_vm0, %v121_v16, 0.0 }
  0xa8   :  { %150 = vadd.xlane.f32.xlu1 %v149_v15  ;;  %153 = vadd.xlane.f32.xlu0 %v152_v26  ;;  %v69_v27 = vpop.xlane.xlu0 %68  ;;  %v72_v30 = vpop.xlane.xlu1 %71  ;;  %v650_v26 = vld [vmem:[%s765_s2] ss:$0 sm:$0xff] }
  0xa9   :  { %v92_v32 = vmul.f32 0.03125, %v69_v27  ;;  %v93_v33 = vmul.f32 0.03125, %v72_v30  ;;  %v122_v34 = vmul.f32 %v604_v23, %v604_v23  ;;  %v123_v20 = vmul.f32 %v607_v17, %v607_v17 }
  0xab   :  { %v616_v35 = vsub.f32 %v526_v24, %v92_v32  ;;  %v619_v21 = vsub.f32 %v531_v25, %v93_v33  ;;  %v158_v38 = vsel %vm30_vm0, %v122_v34, 0.0  ;;  %v161_v41 = vsel %vm30_vm0, %v123_v20, 0.0 }
  0xac   :  { %156 = vadd.xlane.f32.xlu1 %v155_v31  ;;  %159 = vadd.xlane.f32.xlu0 %v158_v38  ;;  %v75_v39 = vpop.xlane.xlu0 %74  ;;  %v78_v40 = vpop.xlane.xlu1 %77 }
  0xad   :  { %v94_v42 = vmul.f32 0.03125, %v75_v39  ;;  %v95_v43 = vmul.f32 0.03125, %v78_v40  ;;  %v124_v46 = vmul.f32 %v616_v35, %v616_v35  ;;  %v125_v24 = vmul.f32 %v619_v21, %v619_v21 }
  0xaf   :  { %v628_v47 = vsub.f32 %v540_v28, %v94_v42  ;;  %v631_v25 = vsub.f32 %v545_v29, %v95_v43  ;;  %v164_v48 = vsel %vm30_vm0, %v124_v46, 0.0  ;;  %v167_v49 = vsel %vm30_vm0, %v125_v24, 0.0 }
  0xb0   :  { %162 = vadd.xlane.f32.xlu1 %v161_v41  ;;  %165 = vadd.xlane.f32.xlu0 %v164_v48 }
  0xb1   :  { %v126_v50 = vmul.f32 %v628_v47, %v628_v47  ;;  %v127_v51 = vmul.f32 %v631_v25, %v631_v25 }
  0xb3   :  { %v170_v52 = vsel %vm30_vm0, %v126_v50, 0.0  ;;  %v173_v28 = vsel %vm30_vm0, %v127_v51, 0.0 }
  0xb4   :  { %168 = vadd.xlane.f32.xlu1 %v167_v49  ;;  %171 = vadd.xlane.f32.xlu0 %v170_v52 }
  0xb8   :  { %174 = vadd.xlane.f32.xlu1 %v173_v28 }
 0x125   :  { %v130_v29 = vpop.xlane.xlu0 %129 }
 0x126   :  { %v176_v53 = vmul.f32 0.03125, %v130_v29 }
 0x128   :  { %v192_v56 = vadd.f32 1e-05, %v176_v53 }
 0x129   :  { %v133_v57 = vpop.xlane.xlu1 %132  ;;  %v136_v58 = vpop.xlane.xlu0 %135 }
 0x12a   :  { %405 = vrsqrt.f32 %v192_v56  ;;  %v177_v59 = vmul.f32 0.03125, %v133_v57  ;;  %v178_v60 = vmul.f32 0.03125, %v136_v58 }
 0x12c   :  { %v193_v61 = vadd.f32 1e-05, %v177_v59  ;;  %v194_v62 = vadd.f32 1e-05, %v178_v60 }
 0x12d   :  { %v139_v63 = vpop.xlane.xlu1 %138  ;;  %v142_v2 = vpop.xlane.xlu0 %141 }
 0x12e   :  { %407 = vrsqrt.f32 %v193_v61  ;;  %v179_v3 = vmul.f32 0.03125, %v139_v63  ;;  %v180_v4 = vmul.f32 0.03125, %v142_v2 }
 0x12f   :  { %409 = vrsqrt.f32 %v194_v62 }
 0x130   :  { %v195_v5 = vadd.f32 1e-05, %v179_v3  ;;  %v196_v6 = vadd.f32 1e-05, %v180_v4 }
 0x131   :  { %v145_v7 = vpop.xlane.xlu1 %144  ;;  %v148_v8 = vpop.xlane.xlu0 %147 }
 0x132   :  { %411 = vrsqrt.f32 %v195_v5  ;;  %v181_v9 = vmul.f32 0.03125, %v145_v7  ;;  %v182_v12 = vmul.f32 0.03125, %v148_v8 }
 0x133   :  { %413 = vrsqrt.f32 %v196_v6 }
 0x134   :  { %v406_v13 = vpop.eup %405  ;;  %v197_v15 = vadd.f32 1e-05, %v181_v9  ;;  %v198_v18 = vadd.f32 1e-05, %v182_v12 }
 0x135   :  { %v224_v19 = vmul.f32 %v406_v13, %v551_v36  ;;  %v151_v22 = vpop.xlane.xlu1 %150  ;;  %v154_v16 = vpop.xlane.xlu0 %153 }
 0x136   :  { %415 = vrsqrt.f32 %v197_v15  ;;  %v183_v27 = vmul.f32 0.03125, %v151_v22  ;;  %v184_v30 = vmul.f32 0.03125, %v154_v16 }
 0x137   :  { %v247_v31 = vmul.f32 %v644_v14, %v224_v19  ;;  %417 = vrsqrt.f32 %v198_v18 }
 0x138   :  { %v408_v32 = vpop.eup %407  ;;  %v199_v33 = vadd.f32 1e-05, %v183_v27  ;;  %v200_v34 = vadd.f32 1e-05, %v184_v30 }
 0x139   :  { %v410_v20 = vpop.eup %409  ;;  %v270_v36 = vadd.f32 %v650_v26, %v247_v31  ;;  %v225_v38 = vmul.f32 %v408_v32, %v559_v44  ;;  %v157_v39 = vpop.xlane.xlu1 %156 }
 0x13a   :  { %v160_v40 = vpop.xlane.xlu0 %159  ;;  %v226_v41 = vmul.f32 %v410_v20, %v553_v37  ;;  %419 = vrsqrt.f32 %v199_v33  ;;  %v185_v42 = vmul.f32 0.03125, %v157_v39 }
 0x13b   :  { %v186_v43 = vmul.f32 0.03125, %v160_v40  ;;  %v389_v46 = vpack.c.bf16 %v270_v36, %v270_v36  ;;  %v248_v24 = vmul.f32 %v644_v14, %v225_v38  ;;  %421 = vrsqrt.f32 %v200_v34 }
 0x13c   :  { %v412_v48 = vpop.eup %411  ;;  %v249_v49 = vmul.f32 %v644_v14, %v226_v41  ;;  %v201_v50 = vadd.f32 1e-05, %v185_v42 }
 0x13d   :  { %v202_v51 = vadd.f32 1e-05, %v186_v43  ;;  %v414_v52 = vpop.eup %413  ;;  %351 = vst.msk [vmem:[%s766_s3] sm:$0xf] %vm350_vm1, %v389_v46  ;;  %v271_v37 = vadd.f32 %v650_v26, %v248_v24  ;;  %v227_v44 = vmul.f32 %v412_v48, %v561_v45  ;;  %v163_v28 = vpop.xlane.xlu1 %162 }
 0x13e   :  { %v166_v29 = vpop.xlane.xlu0 %165  ;;  %v272_v53 = vadd.f32 %v650_v26, %v249_v49  ;;  %v228_v56 = vmul.f32 %v414_v52, %v569_v54  ;;  %423 = vrsqrt.f32 %v201_v50  ;;  %v187_v57 = vmul.f32 0.03125, %v163_v28 }
 0x13f   :  { %v390_v58 = vpack.c.bf16 %v271_v37, %v271_v37  ;;  %v250_v59 = vmul.f32 %v644_v14, %v227_v44  ;;  %425 = vrsqrt.f32 %v202_v51  ;;  %v188_v60 = vmul.f32 0.03125, %v166_v29 }
 0x140   :  { %v416_v61 = vpop.eup %415  ;;  %v391_v62 = vpack.c.bf16 %v272_v53, %v272_v53  ;;  %v251_v63 = vmul.f32 %v644_v14, %v228_v56  ;;  %v203_v2 = vadd.f32 1e-05, %v187_v57 }
 0x141   :  { %v418_v3 = vpop.eup %417  ;;  %352 = vst.msk [vmem:[%s766_s3 + $0x4] sm:$0xf] %vm350_vm1, %v390_v58  ;;  %v273_v45 = vadd.f32 %v650_v26, %v250_v59  ;;  %v229_v54 = vmul.f32 %v416_v61, %v571_v55  ;;  %v204_v4 = vadd.f32 1e-05, %v188_v60  ;;  %v169_v5 = vpop.xlane.xlu1 %168 }
 0x142   :  { %v172_v6 = vpop.xlane.xlu0 %171  ;;  %353 = vst.msk [vmem:[%s766_s3 + $0x8] sm:$0xf] %vm350_vm1, %v391_v62  ;;  %v274_v7 = vadd.f32 %v650_v26, %v251_v63  ;;  %v230_v8 = vmul.f32 %v418_v3, %v580_v0  ;;  %427 = vrsqrt.f32 %v203_v2  ;;  %v189_v9 = vmul.f32 0.03125, %v169_v5 }
 0x143   :  { %v392_v12 = vpack.c.bf16 %v273_v45, %v273_v45  ;;  %v252_v13 = vmul.f32 %v644_v14, %v229_v54  ;;  %429 = vrsqrt.f32 %v204_v4  ;;  %v190_v15 = vmul.f32 0.03125, %v172_v6 }
 0x144   :  { %v420_v55 = vpop.eup %419  ;;  %v393_v18 = vpack.c.bf16 %v274_v7, %v274_v7  ;;  %v253_v19 = vmul.f32 %v644_v14, %v230_v8  ;;  %v205_v22 = vadd.f32 1e-05, %v189_v9 }
 0x145   :  { %v422_v16 = vpop.eup %421  ;;  %354 = vst.msk [vmem:[%s766_s3 + $0xc] sm:$0xf] %vm350_vm1, %v392_v12  ;;  %v275_v0 = vadd.f32 %v650_v26, %v252_v13  ;;  %v231_v27 = vmul.f32 %v420_v55, %v583_v1  ;;  %v206_v30 = vadd.f32 1e-05, %v190_v15  ;;  %v175_v31 = vpop.xlane.xlu1 %174 }
 0x146   :  { %355 = vst.msk [vmem:[%s766_s3 + $0x10] sm:$0xf] %vm350_vm1, %v393_v18  ;;  %v276_v32 = vadd.f32 %v650_v26, %v253_v19  ;;  %v232_v33 = vmul.f32 %v422_v16, %v592_v10  ;;  %431 = vrsqrt.f32 %v205_v22  ;;  %v191_v34 = vmul.f32 0.03125, %v175_v31 }
 0x147   :  { %v394_v20 = vpack.c.bf16 %v275_v0, %v275_v0  ;;  %v254_v36 = vmul.f32 %v644_v14, %v231_v27  ;;  %433 = vrsqrt.f32 %v206_v30 }
 0x148   :  { %v424_v38 = vpop.eup %423  ;;  %v395_v39 = vpack.c.bf16 %v276_v32, %v276_v32  ;;  %v255_v1 = vmul.f32 %v644_v14, %v232_v33  ;;  %v207_v40 = vadd.f32 1e-05, %v191_v34 }
 0x149   :  { %v426_v41 = vpop.eup %425  ;;  %356 = vst.msk [vmem:[%s766_s3 + $0x14] sm:$0xf] %vm350_vm1, %v394_v20  ;;  %v277_v42 = vadd.f32 %v650_v26, %v254_v36  ;;  %v233_v10 = vmul.f32 %v424_v38, %v595_v11 }
 0x14a   :  { %357 = vst.msk [vmem:[%s766_s3 + $0x18] sm:$0xf] %vm350_vm1, %v395_v39  ;;  %v278_v43 = vadd.f32 %v650_v26, %v255_v1  ;;  %v234_v46 = vmul.f32 %v426_v41, %v604_v23  ;;  %435 = vrsqrt.f32 %v207_v40 }
 0x14b   :  { %v396_v24 = vpack.c.bf16 %v277_v42, %v277_v42  ;;  %v256_v48 = vmul.f32 %v644_v14, %v233_v10 }
 0x14c   :  { %v428_v49 = vpop.eup %427  ;;  %v397_v50 = vpack.c.bf16 %v278_v43, %v278_v43  ;;  %v257_v51 = vmul.f32 %v644_v14, %v234_v46 }
 0x14d   :  { %v430_v52 = vpop.eup %429  ;;  %358 = vst.msk [vmem:[%s766_s3 + $0x1c] sm:$0xf] %vm350_vm1, %v396_v24  ;;  %v279_v11 = vadd.f32 %v650_v26, %v256_v48  ;;  %v235_v37 = vmul.f32 %v428_v49, %v607_v17 }
 0x14e   :  { %359 = vst.msk [vmem:[%s766_s3 + $0x20] sm:$0xf] %vm350_vm1, %v397_v50  ;;  %v280_v23 = vadd.f32 %v650_v26, %v257_v51  ;;  %v236_v44 = vmul.f32 %v430_v52, %v616_v35 }
 0x14f   :  { %v398_v28 = vpack.c.bf16 %v279_v11, %v279_v11  ;;  %v258_v29 = vmul.f32 %v644_v14, %v235_v37 }
 0x150   :  { %v432_v53 = vpop.eup %431  ;;  %v399_v56 = vpack.c.bf16 %v280_v23, %v280_v23  ;;  %v259_v57 = vmul.f32 %v644_v14, %v236_v44 }
 0x151   :  { %v434_v58 = vpop.eup %433  ;;  %360 = vst.msk [vmem:[%s766_s3 + $0x24] sm:$0xf] %vm350_vm1, %v398_v28  ;;  %v281_v17 = vadd.f32 %v650_v26, %v258_v29  ;;  %v237_v59 = vmul.f32 %v432_v53, %v619_v21 }
 0x152   :  { %361 = vst.msk [vmem:[%s766_s3 + $0x28] sm:$0xf] %vm350_vm1, %v399_v56  ;;  %v282_v35 = vadd.f32 %v650_v26, %v259_v57  ;;  %v238_v60 = vmul.f32 %v434_v58, %v628_v47 }
 0x153   :  { %v400_v61 = vpack.c.bf16 %v281_v17, %v281_v17  ;;  %v260_v62 = vmul.f32 %v644_v14, %v237_v59 }
 0x154   :  { %v436_v63 = vpop.eup %435  ;;  %v401_v2 = vpack.c.bf16 %v282_v35, %v282_v35  ;;  %v261_v3 = vmul.f32 %v644_v14, %v238_v60 }
 0x155   :  { %362 = vst.msk [vmem:[%s766_s3 + $0x2c] sm:$0xf] %vm350_vm1, %v400_v61  ;;  %v283_v21 = vadd.f32 %v650_v26, %v260_v62  ;;  %v239_v45 = vmul.f32 %v436_v63, %v631_v25 }
 0x156   :  { %363 = vst.msk [vmem:[%s766_s3 + $0x30] sm:$0xf] %vm350_vm1, %v401_v2  ;;  %v284_v47 = vadd.f32 %v650_v26, %v261_v3 }
 0x157   :  { %v402_v54 = vpack.c.bf16 %v283_v21, %v283_v21  ;;  %v262_v4 = vmul.f32 %v644_v14, %v239_v45 }
 0x158   :  { %v403_v5 = vpack.c.bf16 %v284_v47, %v284_v47 }
 0x159   :  { %364 = vst.msk [vmem:[%s766_s3 + $0x34] sm:$0xf] %vm350_vm1, %v402_v54  ;;  %v285_v6 = vadd.f32 %v650_v26, %v262_v4 }
 0x15a   :  { %365 = vst.msk [vmem:[%s766_s3 + $0x38] sm:$0xf] %vm350_vm1, %v403_v5 }
 0x15b   :  { %v404_v25 = vpack.c.bf16 %v285_v6, %v285_v6 }
 0x15d   :  { %366 = vst.msk [vmem:[%s766_s3 + $0x3c] sm:$0xf] %vm350_vm1, %v404_v25 }

// kernel: _lambda_.38
= control target key start
LH: loop header
LB: loop body
LE: loop exit
PB: predicated region body
PF: predicated region fallthrough
CT: control target
= control target key end

     0   :  { %vm94_vm0 = vcmask 261120   ;;  %s527_s1 = inlined_call_operand.vmem [shape: bf16[32,128], index: 1, kind: input, shape index: {}]   ;;  %s528_s0 = inlined_call_operand.vmem [shape: bf16[128,32], index: 0, kind: input, shape index: {}]   ;;  %s529_s2 = inlined_call_operand.vmem [shape: f32[1,128], index: 2, kind: input, shape index: {}]   ;;  %s530_s3 = inlined_call_operand.vmem [shape: bf16[128,128], index: 3, kind: output, shape index: {}]  }
   0x1   :  { %v432_v0 = vld [vmem:[%s527_s1] sm:$0xff]   ;;  %v433_v1 = vld [vmem:[%s527_s1 + $0x8] sm:$0xff]   ;;  %v438_v6 = vld [vmem:[%s528_s0 + $0x10] sm:$0xff]  }
   0x2   :  { %408 = vmatprep.subr.bf16.mxu0 %v432_v0  ;;  %428 = vmatprep.subr.bf16.mxu1 %v432_v0  ;;  %v434_v2 = vld [vmem:[%s528_s0] sm:$0xff]   ;;  %v436_v4 = vld [vmem:[%s528_s0 + $0x8] sm:$0xff]   ;;  %v439_v7 = vld [vmem:[%s528_s0 + $0x30] sm:$0xff]  }
   0x3   :  { %409 = vmatpush3.bf16.msra.mxu0 %v432_v0  ;;  %430 = vmatpush3.bf16.msra.mxu1 %v432_v0  ;;  %v435_v3 = vld [vmem:[%s528_s0 + $0x20] sm:$0xff]   ;;  %v437_v5 = vld [vmem:[%s528_s0 + $0x28] sm:$0xff]   ;;  %v440_v8 = vld [vmem:[%s528_s0 + $0x18] sm:$0xff]  }
   0x4   :  { %410 = vmatprep.subr.bf16.mxu0 %v433_v1  ;;  %429 = vmatprep.subr.bf16.mxu1 %v433_v1  ;;  %v441_v9 = vld [vmem:[%s528_s0 + $0x38] sm:$0xff]   ;;  %v300_v11 = vld [vmem:[%s529_s2] ss:$0 sm:$0xff] }
   0x5   :  { %412 = vmatprep.mubr.msk.bf16.mxu0 %vm94_vm0, %v434_v2  ;;  %420 = vmatprep.mubr.msk.bf16.mxu1 %vm94_vm0, %v435_v3 }
   0x7   :  { %411 = vmatpush3.bf16.msra.mxu0 %v433_v1  ;;  %431 = vmatpush3.bf16.msra.mxu1 %v433_v1 }
   0xa   :  { %413 = vmatmul.mubr.msk.bf16.vlgmr.msra.gmra.mrb[0].mxu0 %vm94_vm0, %v436_v4  ;;  %421 = vmatmul.mubr.msk.bf16.vlgmr.msra.gmra.mrb[0].mxu1 %vm94_vm0, %v437_v5 }
   0xb   :  { %416 = vmatprep.mubr.msk.bf16.mxu0 %vm94_vm0, %v438_v6  ;;  %424 = vmatprep.mubr.msk.bf16.mxu1 %vm94_vm0, %v439_v7 }
  0x12   :  { %417 = vmatmul.mubr.msk.bf16.gmra.mrb[4].mxu0 %vm94_vm0, %v440_v8  ;;  %425 = vmatmul.mubr.msk.bf16.gmra.mrb[4].mxu1 %vm94_vm0, %v441_v9 }
  0xdd   :  { %v414_v10 = vpop.f32.mrb[0].mxu0  ;;  %v422_v12 = vpop.f32.mrb[0].mxu1 }
  0xde   :  { %v153_v13 = vpop.f32.mrb[1].mxu0  ;;  %v185_v14 = vpop.f32.mrb[1].mxu1  ;;  %v162_v17 = vadd.f32 %v414_v10, %v300_v11  ;;  %v194_v18 = vadd.f32 %v422_v12, %v300_v11 }
  0xdf   :  { %v415_v15 = vpop.f32.mrb[2].mxu0  ;;  %v423_v16 = vpop.f32.mrb[2].mxu1  ;;  %v154_v23 = vadd.f32 %v300_v11, %v153_v13  ;;  %v186_v24 = vadd.f32 %v300_v11, %v185_v14 }
  0xe0   :  { %v165_v19 = vadd.f32 %v415_v15, %v300_v11  ;;  %v197_v20 = vadd.f32 %v423_v16, %v300_v11  ;;  %v156_v21 = vpop.f32.mrb[3].mxu0  ;;  %v188_v22 = vpop.f32.mrb[3].mxu1 }
  0xe1   :  { %v157_v25 = vadd.f32 %v300_v11, %v156_v21  ;;  %v189_v26 = vadd.f32 %v300_v11, %v188_v22 }
  0xe2   :  { %v359_v27 = vpack.c.bf16 %v165_v19, %v162_v17  ;;  %v379_v28 = vpack.c.bf16 %v197_v20, %v194_v18 }
  0xe3   :  { %v354_v29 = vpack.c.bf16 %v157_v25, %v154_v23  ;;  %v374_v30 = vpack.c.bf16 %v189_v26, %v186_v24 }
  0xe4   :  { %391 = vst [vmem:[%s530_s3 + $0x8] sm:$0xff] %v359_v27   ;;  %395 = vst [vmem:[%s530_s3 + $0x28] sm:$0xff] %v379_v28  }
  0xe5   :  { %355 = vst [vmem:[%s530_s3] sm:$0xff] %v354_v29   ;;  %394 = vst [vmem:[%s530_s3 + $0x20] sm:$0xff] %v374_v30   ;;  %v418_v31 = vpop.f32.mrb[4].mxu0  ;;  %v426_v32 = vpop.f32.mrb[4].mxu1 }
  0xe6   :  { %v169_v33 = vpop.f32.mrb[5].mxu0  ;;  %v201_v34 = vpop.f32.mrb[5].mxu1  ;;  %v178_v37 = vadd.f32 %v418_v31, %v300_v11  ;;  %v210_v38 = vadd.f32 %v426_v32, %v300_v11 }
  0xe7   :  { %v419_v35 = vpop.f32.mrb[6].mxu0  ;;  %v427_v36 = vpop.f32.mrb[6].mxu1  ;;  %v170_v43 = vadd.f32 %v300_v11, %v169_v33  ;;  %v202_v44 = vadd.f32 %v300_v11, %v201_v34 }
  0xe8   :  { %v181_v39 = vadd.f32 %v419_v35, %v300_v11  ;;  %v213_v40 = vadd.f32 %v427_v36, %v300_v11  ;;  %v172_v41 = vpop.f32.mrb[7].mxu0  ;;  %v204_v42 = vpop.f32.mrb[7].mxu1 }
  0xe9   :  { %v173_v45 = vadd.f32 %v300_v11, %v172_v41  ;;  %v205_v46 = vadd.f32 %v300_v11, %v204_v42 }
  0xea   :  { %v369_v47 = vpack.c.bf16 %v181_v39, %v178_v37  ;;  %v389_v48 = vpack.c.bf16 %v213_v40, %v210_v38 }
  0xeb   :  { %v364_v49 = vpack.c.bf16 %v173_v45, %v170_v43  ;;  %v384_v50 = vpack.c.bf16 %v205_v46, %v202_v44 }
  0xec   :  { %393 = vst [vmem:[%s530_s3 + $0x18] sm:$0xff] %v369_v47   ;;  %397 = vst [vmem:[%s530_s3 + $0x38] sm:$0xff] %v389_v48  }
  0xed   :  { %392 = vst [vmem:[%s530_s3 + $0x10] sm:$0xff] %v364_v49   ;;  %396 = vst [vmem:[%s530_s3 + $0x30] sm:$0xff] %v384_v50  }

// kernel: _lambda_.39
= control target key start
LH: loop header
LB: loop body
LE: loop exit
PB: predicated region body
PF: predicated region fallthrough
CT: control target
= control target key end

     0   :  { %s1935_s9 = smov 0   ;;  %s1937_s10 = smov 0   ;;  %s2314_s0 = inlined_call_operand.vmem [shape: bf16[2,4,16,96], index: 0, kind: input, shape index: {}]   ;;  %s2315_s1 = inlined_call_operand.vmem [shape: f32[2,16,16], index: 1, kind: input, shape index: {}]   ;;  %s2316_s2 = inlined_call_operand.vmem [shape: bf16[2,4,512], index: 2, kind: output, shape index: {}]  }
   0x1   :  { %s1939_s11 = smov 0  }
   0x2 LB: > { %s24_s12 = sadd.s32 1, %s1905_s10  ;;  %p1593_p0 = scmp.ge.s32.totalorder %s1909_s11, 1  ;;  %s1909_s11 = sphi %s1939_s11, %s12_s11   ;;  %s1905_s10 = sphi %s1937_s10, %s2318_s10   ;;  %s1901_s9 = sphi %s1935_s9, %s2317_s9  }
   0x3   : > { %p26_p1 = scmp.ge.s32.totalorder %s24_s12, 2  ;;  %p134_p2 = scmp.lt.s32.totalorder %s1909_s11, 3 }
   0x5   : > { %s2320_s12 = smov (%p26_p1, %s24_s12), 0  ;;  %p135_p3 = pnand %p1593_p0, %p134_p2 }
   0x6   : > { %p166_p4 = scmp.lt.s32.totalorder (!%p135_p3), %s1901_s9, 1  ;;  %s1911_s17 = smov (!%p135_p3), 112   ;;  %v1912_v4 = vmov (!%p135_p3), 0.0   ;;  %vm1913_vm0 = vmmov (!%p135_p3), 0   ;;  %vm227_vm1 = vcmask (!%p135_p3), 130048   ;;  %v194_v43 = vld [vmem:[%s2315_s1] sm:$0xff] (!%p135_p3) }
   0x7   : > { %138 = sbr.rel (%p135_p3) target bundleno = 1282 (0x502), region = 28  ;;  %1660 = vmatprep.subr.bf16.mxu0 (!%p135_p3), %v1912_v4  ;;  %1666 = vmatprep.subr.bf16.mxu1 (!%p135_p3), %v1912_v4  ;;  %s1914_s18 = smov (!%p135_p3), 96   ;;  %v195_v50 = vld [vmem:[%s2315_s1 + $0x8] sm:$0xff] (!%p135_p3)  ;;  %vm1455_vm2 = vcmask (!%p135_p3), 261120   ;;  %vm1457_vm3 = vcmask (!%p135_p3), 523264   ;;  %vm1459_vm4 = vcmask (!%p135_p3), 785408  }
   0x8   : > { %1662 = vmatprep.mubr.msk.bf16.mxu0 (!%p135_p3), %vm1913_vm0, %v1912_v4  ;;  %1668 = vmatprep.mubr.msk.bf16.mxu1 (!%p135_p3), %vm1913_vm0, %v1912_v4  ;;  %s1915_s19 = smov (!%p135_p3), 64   ;;  %s1916_s28 = smov (!%p135_p3), 16  }
   0x9   : > { %s1919_s29 = smov (!%p135_p3), 32  }
   0xe   : > { %s2322_s9 = smov (!%p166_p4, %s1901_s9), 1 }
   0xf   : > { %s1626_s13 = sshll.u32 %s2322_s9, 5  ;;  %s1627_s30 = sshll.u32 %s2322_s9, 3 }
  0x10   : > { %s174_s16 = scalar_lea.vmem %s2314_s0, %s1626_s13  ;;  %s184_s5 = scalar_lea.vmem %s2316_s2, %s1627_s30 }
  0x11   : > { %v188_v0 = vld [vmem:[%s174_s16 + $0x8] sm:$0xf]  ;;  %v186_v1 = vld [vmem:[%s174_s16] sm:$0xf]  ;;  %v189_v2 = vld [vmem:[%s174_s16 + $0xc] sm:$0xf] }
  0x12   : > { %210 = vrot.lane.b32.xlu1 %v188_v0, %s1911_s17  ;;  %206 = vrot.lane.b32.xlu0 %v186_v1, %s1911_s17  ;;  %v187_v3 = vld [vmem:[%s174_s16 + $0x4] sm:$0xf]  ;;  %v191_v5 = vld [vmem:[%s174_s16 + $0x14] sm:$0xf]  ;;  %v1965_v9 = vcombine.low %v188_v0, %v189_v2 }
  0x13   : > { %v190_v6 = vld [vmem:[%s174_s16 + $0x10] sm:$0xf]  ;;  %v193_v7 = vld [vmem:[%s174_s16 + $0x1c] sm:$0xf]  ;;  %v192_v8 = vld [vmem:[%s174_s16 + $0x18] sm:$0xf]  ;;  %v1598_v10 = vcombine.low %v186_v1, %v187_v3 }
  0x14   : > { %v1967_v11 = vcombine.low %v190_v6, %v191_v5  ;;  %v1969_v12 = vcombine.low %v192_v8, %v193_v7 }
  0x16   : > { %212 = vrot.lane.b32.xlu1 %v189_v2, %s1911_s17  ;;  %208 = vrot.lane.b32.xlu0 %v187_v3, %s1911_s17 }
  0x1a   : > { %216 = vrot.lane.b32.xlu1 %v191_v5, %s1911_s17  ;;  %214 = vrot.lane.b32.xlu0 %v190_v6, %s1911_s17 }
  0x1e   : > { %220 = vrot.lane.b32.xlu1 %v193_v7, %s1911_s17  ;;  %218 = vrot.lane.b32.xlu0 %v192_v8, %s1911_s17 }
  0x22   : > { %225 = vrot.lane.b32.xlu0 %v1598_v10, %s1914_s18  ;;  %278 = vrot.lane.b32.xlu1 %v1965_v9, %s1914_s18 }
  0x26   : > { %330 = vrot.lane.b32.xlu0 %v1967_v11, %s1914_s18  ;;  %382 = vrot.lane.b32.xlu1 %v1969_v12, %s1914_s18 }
  0x84   : > { %v211_v13 = vpop.permute.xlu1 %210  ;;  %v207_v14 = vpop.permute.xlu0 %206 }
  0x88   : > { %v213_v15 = vpop.permute.xlu1 %212  ;;  %v209_v16 = vpop.permute.xlu0 %208 }
  0x89   : > { %v1978_v17 = vcombine.low %v211_v13, %v213_v15  ;;  %v1980_v18 = vcombine.low %v207_v14, %v209_v16 }
  0x8b   : > { %486 = vrot.lane.b32.xlu1 %v1978_v17, %s1914_s18  ;;  %434 = vrot.lane.b32.xlu0 %v1980_v18, %s1914_s18 }
  0x8c   : > { %v217_v19 = vpop.permute.xlu1 %216  ;;  %v215_v20 = vpop.permute.xlu0 %214 }
  0x8d   : > { %v1986_v21 = vcombine.low %v215_v20, %v217_v19 }
  0x8f   : > { %538 = vrot.lane.b32.xlu0 %v1986_v21, %s1914_s18 }
  0x90   : > { %v221_v22 = vpop.permute.xlu1 %220  ;;  %v219_v23 = vpop.permute.xlu0 %218 }
  0x91   : > { %v1990_v24 = vcombine.low %v219_v23, %v221_v22 }
  0x93   : > { %590 = vrot.lane.b32.xlu1 %v1990_v24, %s1914_s18 }
  0x94   : > { %v226_v25 = vpop.permute.xlu0 %225  ;;  %v279_v26 = vpop.permute.xlu1 %278 }
  0x95   : > { %v232_v27 = vsel %vm227_vm1, %v226_v25, 0  ;;  %v284_v28 = vsel %vm227_vm1, %v279_v26, 0 }
  0x96   : > { %1661 = vmatpush3.bf16.xpose.msra.mxu0 %v232_v27  ;;  %1667 = vmatpush3.bf16.xpose.msra.mxu1 %v284_v28 }
  0x97   : > { %1672 = vmatprep.subr.bf16.mxu0 %v1912_v4  ;;  %1678 = vmatprep.subr.bf16.mxu1 %v1912_v4 }
  0x98   : > { %v331_v29 = vpop.permute.xlu0 %330  ;;  %v383_v30 = vpop.permute.xlu1 %382  ;;  %855 = vrot.lane.b32.xlu1 %v1598_v10, %s1915_s19 }
  0x99   : > { %v336_v31 = vsel %vm227_vm1, %v331_v29, 0  ;;  %v388_v32 = vsel %vm227_vm1, %v383_v30, 0  ;;  %v196_v30 = vld [vmem:[%s2315_s1 + $0x10] sm:$0xff] }
  0x9d   : > { %1663 = vmatmul.mubr.msk.bf16.vlgmr.msra.gmra.mrb[0].mxu0 %vm227_vm1, %v1598_v10  ;;  %1669 = vmatmul.mubr.msk.bf16.vlgmr.msra.gmra.mrb[0].mxu1 %vm227_vm1, %v1965_v9 }
  0x9e   : > { %1673 = vmatpush3.bf16.xpose.msra.mxu0 %v336_v31  ;;  %1679 = vmatpush3.bf16.xpose.msra.mxu1 %v388_v32 }
  0x9f   : > { %1674 = vmatprep.mubr.msk.bf16.mxu0 %vm1913_vm0, %v1912_v4  ;;  %1680 = vmatprep.mubr.msk.bf16.mxu1 %vm1913_vm0, %v1912_v4 }
  0xa0   : > { %1684 = vmatprep.subr.bf16.mxu0 %v1912_v4  ;;  %1690 = vmatprep.subr.bf16.mxu1 %v1912_v4 }
  0xa5   : > { %1675 = vmatmul.mubr.msk.bf16.vlgmr.msra.gmra.mrb[4].mxu0 %vm227_vm1, %v1967_v11  ;;  %1681 = vmatmul.mubr.msk.bf16.vlgmr.msra.gmra.mrb[4].mxu1 %vm227_vm1, %v1969_v12 }
  0xa6   : > { %1692 = vmatprep.mubr.msk.bf16.mxu1 %vm1913_vm0, %v1912_v4  ;;  %1686 = vmatprep.mubr.msk.bf16.mxu0 %vm1913_vm0, %v1912_v4 }
  0xfd   : > { %v487_v33 = vpop.permute.xlu1 %486  ;;  %v435_v34 = vpop.permute.xlu0 %434 }
  0xfe   : > { %v492_v35 = vsel %vm227_vm1, %v487_v33, 0  ;;  %v440_v36 = vsel %vm227_vm1, %v435_v34, 0 }
  0xff   : > { %1685 = vmatpush3.bf16.xpose.msra.mxu0 %v440_v36  ;;  %1691 = vmatpush3.bf16.xpose.msra.mxu1 %v492_v35 }
 0x100   : > { %1696 = vmatprep.subr.bf16.mxu0 %v1912_v4  ;;  %1702 = vmatprep.subr.bf16.mxu1 %v1912_v4 }
 0x101   : > { %v539_v37 = vpop.permute.xlu0 %538 }
 0x102   : > { %v544_v38 = vsel %vm227_vm1, %v539_v37, 0  ;;  %v197_v37 = vld [vmem:[%s2315_s1 + $0x18] sm:$0xff] }
 0x105   : > { %v591_v39 = vpop.permute.xlu1 %590 }
 0x106   : > { %v596_v40 = vsel %vm227_vm1, %v591_v39, 0  ;;  %1687 = vmatmul.mubr.msk.bf16.vlgmr.msra.gmra.mrb[8].mxu0 %vm227_vm1, %v1980_v18  ;;  %1693 = vmatmul.mubr.msk.bf16.vlgmr.msra.gmra.mrb[8].mxu1 %vm227_vm1, %v1978_v17 }
 0x107   : > { %1697 = vmatpush3.bf16.xpose.msra.mxu0 %v544_v38  ;;  %1703 = vmatpush3.bf16.xpose.msra.mxu1 %v596_v40 }
 0x108   : > { %1698 = vmatprep.mubr.msk.bf16.mxu0 %vm1913_vm0, %v1912_v4  ;;  %1704 = vmatprep.mubr.msk.bf16.mxu1 %vm1913_vm0, %v1912_v4 }
 0x109   : > { %1708 = vmatprep.subr.bf16.mxu0 %v1912_v4  ;;  %1714 = vmatprep.subr.bf16.mxu1 %v1912_v4 }
 0x10a   : > { %v856_v26 = vpop.permute.xlu1 %855 }
 0x10e   : > { %1699 = vmatmul.mubr.msk.bf16.vlgmr.msra.gmra.mrb[12].mxu0 %vm227_vm1, %v1986_v21  ;;  %1705 = vmatmul.mubr.msk.bf16.vlgmr.msra.gmra.mrb[12].mxu1 %vm227_vm1, %v1990_v24 }
 0x10f   : > { %1710 = vmatprep.mubr.msk.bf16.mxu0 %vm1913_vm0, %v1912_v4  ;;  %1716 = vmatprep.mubr.msk.bf16.mxu1 %vm1913_vm0, %v1912_v4 }
 0x110   : > { %1709 = vmatpush3.bf16.msra.mxu0 %v856_v26 }
 0x111   : > { %1720 = vmatprep.subr.bf16.mxu0 %v1912_v4 }
 0x170   : > { %v268_v41 = vpop.f32.mrb[0].mxu0  ;;  %v320_v42 = vpop.f32.mrb[0].mxu1 }
 0x171   : > { %v639_v44 = vmul.f32 0.25, %v268_v41  ;;  %v1664_v45 = vpop.f32.mrb[1].mxu0  ;;  %v641_v46 = vmul.f32 0.25, %v320_v42  ;;  %v1670_v47 = vpop.f32.mrb[1].mxu1 }
 0x172   : > { %v271_v48 = vpop.f32.mrb[2].mxu0  ;;  %v323_v49 = vpop.f32.mrb[2].mxu1 }
 0x173   : > { %v640_v51 = vmul.f32 0.25, %v271_v48  ;;  %v2048_v52 = vadd.f32 %v639_v44, %v194_v43  ;;  %v1665_v53 = vpop.f32.mrb[3].mxu0  ;;  %v642_v54 = vmul.f32 0.25, %v323_v49  ;;  %v2050_v55 = vadd.f32 %v641_v46, %v194_v43  ;;  %v1671_v56 = vpop.f32.mrb[3].mxu1 }
 0x175   : > { %v671_v57 = vsel %vm227_vm1, %v2048_v52, -inf  ;;  %v2054_v58 = vadd.f32 %v640_v51, %v195_v50  ;;  %v2056_v59 = vadd.f32 %v642_v54, %v195_v50  ;;  %v677_v61 = vsel %vm227_vm1, %v2050_v55, -inf }
 0x176   : > { %672 = vmax.xlane.f32.xlu0 %v671_v57 }
 0x177   : > { %v674_v60 = vsel %vm227_vm1, %v2054_v58, -inf  ;;  %v680_v6 = vsel %vm227_vm1, %v2056_v59, -inf }
 0x178   : > { %675 = vmax.xlane.f32.xlu1 %v674_v60  ;;  %v372_v62 = vpop.f32.mrb[4].mxu0  ;;  %v424_v63 = vpop.f32.mrb[4].mxu1 }
 0x179   : > { %v643_v0 = vmul.f32 0.25, %v372_v62  ;;  %v1676_v1 = vpop.f32.mrb[5].mxu0  ;;  %v645_v2 = vmul.f32 0.25, %v424_v63  ;;  %v1682_v3 = vpop.f32.mrb[5].mxu1 }
 0x17a   : > { %678 = vmax.xlane.f32.xlu0 %v677_v61  ;;  %v375_v5 = vpop.f32.mrb[6].mxu0  ;;  %v427_v7 = vpop.f32.mrb[6].mxu1 }
 0x17b   : > { %v644_v8 = vmul.f32 0.25, %v375_v5  ;;  %v2064_v10 = vadd.f32 %v643_v0, %v194_v43  ;;  %v646_v13 = vmul.f32 0.25, %v427_v7  ;;  %v2066_v14 = vadd.f32 %v645_v2, %v194_v43  ;;  %v1677_v15 = vpop.f32.mrb[7].mxu0  ;;  %v1683_v16 = vpop.f32.mrb[7].mxu1 }
 0x17d   : > { %v683_v19 = vsel %vm227_vm1, %v2064_v10, -inf  ;;  %v2070_v20 = vadd.f32 %v644_v8, %v195_v50  ;;  %v689_v22 = vsel %vm227_vm1, %v2066_v14, -inf  ;;  %v2076_v25 = vadd.f32 %v646_v13, %v195_v50 }
 0x17e   : > { %681 = vmax.xlane.f32.xlu0 %v680_v6  ;;  %684 = vmax.xlane.f32.xlu1 %v683_v19 }
 0x17f   : > { %v686_v23 = vsel %vm227_vm1, %v2070_v20, -inf  ;;  %v692_v27 = vsel %vm227_vm1, %v2076_v25, -inf }
 0x182   : > { %690 = vmax.xlane.f32.xlu1 %v689_v22  ;;  %687 = vmax.xlane.f32.xlu0 %v686_v23 }
 0x186   : > { %693 = vmax.xlane.f32.xlu0 %v692_v27 }
 0x1d9   : > { %v476_v28 = vpop.f32.mrb[8].mxu0  ;;  %v528_v29 = vpop.f32.mrb[8].mxu1 }
 0x1da   : > { %v647_v31 = vmul.f32 0.25, %v476_v28  ;;  %v649_v32 = vmul.f32 0.25, %v528_v29  ;;  %v1688_v33 = vpop.f32.mrb[9].mxu0  ;;  %v1694_v34 = vpop.f32.mrb[9].mxu1 }
 0x1db   : > { %v479_v35 = vpop.f32.mrb[10].mxu0  ;;  %v531_v36 = vpop.f32.mrb[10].mxu1 }
 0x1dc   : > { %v648_v38 = vmul.f32 0.25, %v479_v35  ;;  %v650_v39 = vmul.f32 0.25, %v531_v36  ;;  %v1689_v40 = vpop.f32.mrb[11].mxu0  ;;  %v1695_v41 = vpop.f32.mrb[11].mxu1  ;;  %v2087_v42 = vadd.f32 %v647_v31, %v196_v30  ;;  %v2093_v45 = vadd.f32 %v649_v32, %v196_v30 }
 0x1de   : > { %v695_v43 = vsel %vm227_vm1, %v2087_v42, -inf  ;;  %v2091_v44 = vadd.f32 %v648_v38, %v197_v37  ;;  %v2097_v47 = vadd.f32 %v650_v39, %v197_v37  ;;  %v701_v56 = vsel %vm227_vm1, %v2093_v45, -inf }
 0x1df   : > { %696 = vmax.xlane.f32.xlu1 %v695_v43 }
 0x1e0   : > { %v698_v46 = vsel %vm227_vm1, %v2091_v44, -inf  ;;  %v704_v1 = vsel %vm227_vm1, %v2097_v47, -inf }
 0x1e1   : > { %v632_v48 = vpop.f32.mrb[12].mxu1  ;;  %699 = vmax.xlane.f32.xlu0 %v698_v46  ;;  %v580_v49 = vpop.f32.mrb[12].mxu0 }
 0x1e2   : > { %v653_v50 = vmul.f32 0.25, %v632_v48  ;;  %v651_v51 = vmul.f32 0.25, %v580_v49  ;;  %v1700_v53 = vpop.f32.mrb[13].mxu0  ;;  %v1706_v54 = vpop.f32.mrb[13].mxu1 }
 0x1e3   : > { %v635_v57 = vpop.f32.mrb[14].mxu1  ;;  %702 = vmax.xlane.f32.xlu1 %v701_v56  ;;  %v583_v60 = vpop.f32.mrb[14].mxu0 }
 0x1e4   : > { %v654_v61 = vmul.f32 0.25, %v635_v57  ;;  %v652_v62 = vmul.f32 0.25, %v583_v60  ;;  %v1701_v63 = vpop.f32.mrb[15].mxu0  ;;  %v1707_v0 = vpop.f32.mrb[15].mxu1  ;;  %v2103_v2 = vadd.f32 %v651_v51, %v196_v30  ;;  %v2109_v6 = vadd.f32 %v653_v50, %v196_v30 }
 0x1e5   : > { %705 = vmax.xlane.f32.xlu0 %v704_v1 }
 0x1e6   : > { %v707_v3 = vsel %vm227_vm1, %v2103_v2, -inf  ;;  %v2107_v5 = vadd.f32 %v652_v62, %v197_v37  ;;  %v2113_v8 = vadd.f32 %v654_v61, %v197_v37  ;;  %v713_v13 = vsel %vm227_vm1, %v2109_v6, -inf }
 0x1e7   : > { %708 = vmax.xlane.f32.xlu1 %v707_v3 }
 0x1e8   : > { %v710_v7 = vsel %vm227_vm1, %v2107_v5, -inf  ;;  %v716_v15 = vsel %vm227_vm1, %v2113_v8, -inf }
 0x1e9   : > { %711 = vmax.xlane.f32.xlu0 %v710_v7 }
 0x1eb   : > { %714 = vmax.xlane.f32.xlu1 %v713_v13 }
 0x1ed   : > { %717 = vmax.xlane.f32.xlu0 %v716_v15 }
 0x1fc   : > { %949 = vrot.lane.b32.xlu1 %v1967_v11, %s1915_s19 }
 0x200   : > { %996 = vrot.lane.b32.xlu1 %v1969_v12, %s1915_s19 }
 0x203   : > { %902 = vrot.lane.b32.xlu0 %v1965_v9, %s1915_s19  ;;  %v673_v16 = vpop.xlane.xlu0 %672 }
 0x204   : > { %1090 = vrot.lane.b32.xlu1 %v1978_v17, %s1915_s19  ;;  %v719_v11 = vsub.f32 %v2048_v52, %v673_v16 }
 0x205   : > { %v676_v22 = vpop.xlane.xlu1 %675 }
 0x206   : > { %v720_v26 = vsub.f32 %v2054_v58, %v676_v22  ;;  %v735_v9 = vmul.f32 1.442695, %v719_v11 }
 0x207   : > { %1043 = vrot.lane.b32.xlu0 %v1980_v18, %s1915_s19  ;;  %v679_v19 = vpop.xlane.xlu0 %678 }
 0x208   : > { %v737_v28 = vmul.f32 1.442695, %v720_v26  ;;  %v721_v30 = vsub.f32 %v2050_v55, %v679_v19 }
 0x20a   : > { %1823 = vpow2.f32 %v737_v28  ;;  %v739_v32 = vmul.f32 1.442695, %v721_v30 }
 0x20b   : > { %v682_v23 = vpop.xlane.xlu0 %681  ;;  %v685_v29 = vpop.xlane.xlu1 %684  ;;  %1825 = vpow2.f32 %v735_v9 }
 0x20c   : > { %v722_v12 = vsub.f32 %v2056_v59, %v682_v23  ;;  %v723_v33 = vsub.f32 %v2064_v10, %v685_v29 }
 0x20e   : > { %v741_v17 = vmul.f32 1.442695, %v722_v12  ;;  %v743_v59 = vmul.f32 1.442695, %v723_v33 }
 0x20f   : > { %v688_v27 = vpop.xlane.xlu0 %687  ;;  %v691_v58 = vpop.xlane.xlu1 %690 }
 0x210   : > { %v724_v31 = vsub.f32 %v2070_v20, %v688_v27  ;;  %1827 = vpow2.f32 %v741_v17  ;;  %v725_v35 = vsub.f32 %v2066_v14, %v691_v58 }
 0x211   : > { %1829 = vpow2.f32 %v739_v32 }
 0x212   : > { %v745_v52 = vmul.f32 1.442695, %v724_v31  ;;  %v747_v20 = vmul.f32 1.442695, %v725_v35 }
 0x213   : > { %v694_v18 = vpop.xlane.xlu0 %693 }
 0x214   : > { %v726_v34 = vsub.f32 %v2076_v25, %v694_v18  ;;  %1831 = vpow2.f32 %v745_v52  ;;  %v2137_v36 = vpop.eup %1823 }
 0x215   : > { %1833 = vpow2.f32 %v743_v59  ;;  %v2139_v37 = vpop.eup %1825  ;;  %v770_v10 = vsel %vm227_vm1, %v2137_v36, 0.0 }
 0x216   : > { %v749_v55 = vmul.f32 1.442695, %v726_v34  ;;  %v767_v25 = vsel %vm227_vm1, %v2139_v37, 0.0 }
 0x218   : > { %1835 = vpow2.f32 %v749_v55 }
 0x219   : > { %1837 = vpow2.f32 %v747_v20 }
 0x21a   : > { %v2143_v38 = vpop.eup %1827 }
 0x21b   : > { %v2147_v14 = vpop.eup %1829  ;;  %v776_v39 = vsel %vm227_vm1, %v2143_v38, 0.0 }
 0x21c   : > { %v773_v41 = vsel %vm227_vm1, %v2147_v14, 0.0 }
 0x21e   : > { %v2151_v40 = vpop.eup %1831 }
 0x21f   : > { %v2155_v43 = vpop.eup %1833  ;;  %v782_v46 = vsel %vm227_vm1, %v2151_v40, 0.0 }
 0x220   : > { %v779_v49 = vsel %vm227_vm1, %v2155_v43, 0.0 }
 0x222   : > { %v2159_v48 = vpop.eup %1835 }
 0x223   : > { %v2163_v50 = vpop.eup %1837  ;;  %v788_v51 = vsel %vm227_vm1, %v2159_v48, 0.0 }
 0x224   : > { %v785_v53 = vsel %vm227_vm1, %v2163_v50, 0.0 }
 0x226   : > { %771 = vadd.xlane.f32.xlu0 %v770_v10 }
 0x228   : > { %768 = vadd.xlane.f32.xlu1 %v767_v25 }
 0x22a   : > { %777 = vadd.xlane.f32.xlu0 %v776_v39 }
 0x22c   : > { %774 = vadd.xlane.f32.xlu1 %v773_v41 }
 0x22e   : > { %783 = vadd.xlane.f32.xlu0 %v782_v46 }
 0x230   : > { %780 = vadd.xlane.f32.xlu1 %v779_v49 }
 0x232   : > { %789 = vadd.xlane.f32.xlu0 %v788_v51 }
 0x234   : > { %786 = vadd.xlane.f32.xlu1 %v785_v53 }
 0x26c   : > { %v697_v54 = vpop.xlane.xlu1 %696 }
 0x26d   : > { %v727_v56 = vsub.f32 %v2087_v42, %v697_v54 }
 0x26e   : > { %v700_v57 = vpop.xlane.xlu0 %699 }
 0x26f   : > { %v751_v60 = vmul.f32 1.442695, %v727_v56  ;;  %v728_v61 = vsub.f32 %v2091_v44, %v700_v57 }
 0x270   : > { %v703_v62 = vpop.xlane.xlu1 %702 }
 0x271   : > { %1839 = vpow2.f32 %v751_v60  ;;  %v753_v63 = vmul.f32 1.442695, %v728_v61  ;;  %v729_v0 = vsub.f32 %v2093_v45, %v703_v62 }
 0x272   : > { %v706_v1 = vpop.xlane.xlu0 %705 }
 0x273   : > { %1841 = vpow2.f32 %v753_v63  ;;  %v755_v3 = vmul.f32 1.442695, %v729_v0  ;;  %v730_v7 = vsub.f32 %v2097_v47, %v706_v1 }
 0x274   : > { %v709_v13 = vpop.xlane.xlu1 %708 }
 0x275   : > { %1843 = vpow2.f32 %v755_v3  ;;  %v757_v15 = vmul.f32 1.442695, %v730_v7  ;;  %v731_v16 = vsub.f32 %v2103_v2, %v709_v13 }
 0x276   : > { %v712_v42 = vpop.xlane.xlu0 %711 }
 0x277   : > { %1845 = vpow2.f32 %v757_v15  ;;  %v759_v19 = vmul.f32 1.442695, %v731_v16  ;;  %v732_v44 = vsub.f32 %v2107_v5, %v712_v42 }
 0x278   : > { %v715_v22 = vpop.xlane.xlu1 %714 }
 0x279   : > { %1847 = vpow2.f32 %v759_v19  ;;  %v761_v23 = vmul.f32 1.442695, %v732_v44  ;;  %v733_v45 = vsub.f32 %v2109_v6, %v715_v22 }
 0x27a   : > { %v718_v26 = vpop.xlane.xlu0 %717 }
 0x27b   : > { %v2176_v11 = vpop.eup %1839  ;;  %1849 = vpow2.f32 %v761_v23  ;;  %v763_v47 = vmul.f32 1.442695, %v733_v45  ;;  %v734_v27 = vsub.f32 %v2113_v8, %v718_v26 }
 0x27c   : > { %v791_v2 = vsel %vm227_vm1, %v2176_v11, 0.0  ;;  %v950_v59 = vpop.permute.xlu1 %949 }
 0x27d   : > { %v2181_v28 = vpop.eup %1841  ;;  %1851 = vpow2.f32 %v763_v47  ;;  %v765_v12 = vmul.f32 1.442695, %v734_v27  ;;  %792 = vadd.xlane.f32.xlu1 %v791_v2 }
 0x27e   : > { %v903_v5 = vpop.permute.xlu0 %902  ;;  %v794_v29 = vsel %vm227_vm1, %v2181_v28, 0.0 }
 0x27f   : > { %v2185_v6 = vpop.eup %1843  ;;  %1853 = vpow2.f32 %v765_v12  ;;  %795 = vadd.xlane.f32.xlu0 %v794_v29  ;;  %1715 = vmatpush3.bf16.msra.mxu1 %v903_v5 }
 0x280   : > { %v797_v8 = vsel %vm227_vm1, %v2185_v6, 0.0  ;;  %1726 = vmatprep.subr.bf16.mxu1 %v1912_v4  ;;  %v997_v35 = vpop.permute.xlu1 %996 }
 0x281   : > { %v2190_v9 = vpop.eup %1845  ;;  %798 = vadd.xlane.f32.xlu1 %v797_v8 }
 0x282   : > { %v800_v30 = vsel %vm227_vm1, %v2190_v9, 0.0  ;;  %v1044_v55 = vpop.permute.xlu0 %1043 }
 0x283   : > { %v2194_v17 = vpop.eup %1847  ;;  %801 = vadd.xlane.f32.xlu0 %v800_v30 }
 0x284   : > { %v803_v31 = vsel %vm227_vm1, %v2194_v17, 0.0  ;;  %v1091_v20 = vpop.permute.xlu1 %1090 }
 0x285   : > { %v2198_v18 = vpop.eup %1849  ;;  %804 = vadd.xlane.f32.xlu1 %v803_v31 }
 0x286   : > { %v806_v32 = vsel %vm227_vm1, %v2198_v18, 0.0 }
 0x287   : > { %v2202_v33 = vpop.eup %1851  ;;  %807 = vadd.xlane.f32.xlu0 %v806_v32 }
 0x288   : > { %v809_v58 = vsel %vm227_vm1, %v2202_v33, 0.0 }
 0x289   : > { %v2206_v52 = vpop.eup %1853  ;;  %810 = vadd.xlane.f32.xlu1 %v809_v58 }
 0x28a   : > { %v812_v34 = vsel %vm227_vm1, %v2206_v52, 0.0 }
 0x28b   : > { %813 = vadd.xlane.f32.xlu0 %v812_v34 }
 0x29a   : > { %1184 = vrot.lane.b32.xlu1 %v1990_v24, %s1915_s19 }
 0x2a1   : > { %1137 = vrot.lane.b32.xlu0 %v1986_v21, %s1915_s19 }
 0x2b3   : > { %v772_v10 = vpop.xlane.xlu0 %771 }
 0x2b4   : > { %1855 = vrcp.f32 %v772_v10 }
 0x2b5   : > { %v769_v25 = vpop.xlane.xlu1 %768 }
 0x2b6   : > { %1857 = vrcp.f32 %v769_v25 }
 0x2b7   : > { %v778_v39 = vpop.xlane.xlu0 %777 }
 0x2b8   : > { %1859 = vrcp.f32 %v778_v39 }
 0x2b9   : > { %v775_v41 = vpop.xlane.xlu1 %774 }
 0x2ba   : > { %1861 = vrcp.f32 %v775_v41 }
 0x2bb   : > { %v784_v46 = vpop.xlane.xlu0 %783 }
 0x2bc   : > { %1863 = vrcp.f32 %v784_v46 }
 0x2bd   : > { %v781_v49 = vpop.xlane.xlu1 %780 }
 0x2be   : > { %v1856_v51 = vpop.eup %1855  ;;  %1865 = vrcp.f32 %v781_v49 }
 0x2bf   : > { %v790_v24 = vpop.xlane.xlu0 %789  ;;  %v832_v21 = vmul.f32 %v1856_v51, %v2137_v36 }
 0x2c0   : > { %v1858_v53 = vpop.eup %1857  ;;  %1867 = vrcp.f32 %v790_v24 }
 0x2c1   : > { %v831_v54 = vmul.f32 %v1858_v53, %v2139_v37  ;;  %v787_v56 = vpop.xlane.xlu1 %786 }
 0x2c2   : > { %v1860_v57 = vpop.eup %1859  ;;  %1869 = vrcp.f32 %v787_v56 }
 0x2c3   : > { %v847_v60 = vpack.c.bf16 %v832_v21, %v831_v54  ;;  %v834_v62 = vmul.f32 %v1860_v57, %v2143_v38 }
 0x2c4   : > { %v1862_v61 = vpop.eup %1861 }
 0x2c5   : > { %v833_v63 = vmul.f32 %v1862_v61, %v2147_v14  ;;  %1711 = vmatmul.mubr.msk.bf16.vlgmr.msra.gmra.mrb[16].mxu0 %vm227_vm1, %v847_v60 }
 0x2c6   : > { %v1864_v0 = vpop.eup %1863  ;;  %1721 = vmatpush3.bf16.msra.mxu0 %v950_v59  ;;  %1722 = vmatprep.mubr.msk.bf16.mxu0 %vm1913_vm0, %v1912_v4 }
 0x2c7   : > { %v848_v1 = vpack.c.bf16 %v834_v62, %v833_v63  ;;  %1732 = vmatprep.subr.bf16.mxu0 %v1912_v4  ;;  %v836_v37 = vmul.f32 %v1864_v0, %v2151_v40 }
 0x2c8   : > { %v1866_v36 = vpop.eup %1865 }
 0x2c9   : > { %v835_v3 = vmul.f32 %v1866_v36, %v2155_v43  ;;  %1717 = vmatmul.mubr.msk.bf16.vlgmr.msra.gmra.mrb[16].mxu1 %vm227_vm1, %v848_v1 }
 0x2ca   : > { %v1868_v38 = vpop.eup %1867  ;;  %1727 = vmatpush3.bf16.msra.mxu1 %v997_v35  ;;  %1728 = vmatprep.mubr.msk.bf16.mxu1 %vm1913_vm0, %v1912_v4 }
 0x2cb   : > { %v849_v14 = vpack.c.bf16 %v836_v37, %v835_v3  ;;  %1738 = vmatprep.subr.bf16.mxu1 %v1912_v4  ;;  %v838_v13 = vmul.f32 %v1868_v38, %v2159_v48 }
 0x2cc   : > { %v1870_v7 = vpop.eup %1869 }
 0x2cd   : > { %v837_v15 = vmul.f32 %v1870_v7, %v2163_v50  ;;  %1723 = vmatmul.mubr.msk.bf16.vlgmr.msra.gmra.mrb[20].mxu0 %vm227_vm1, %v849_v14 }
 0x2ce   : > { %1733 = vmatpush3.bf16.msra.mxu0 %v1044_v55  ;;  %1734 = vmatprep.mubr.msk.bf16.mxu0 %vm1913_vm0, %v1912_v4 }
 0x2cf   : > { %v850_v40 = vpack.c.bf16 %v838_v13, %v837_v15  ;;  %1744 = vmatprep.subr.bf16.mxu0 %v1912_v4 }
 0x2d1   : > { %1729 = vmatmul.mubr.msk.bf16.vlgmr.msra.gmra.mrb[20].mxu1 %vm227_vm1, %v850_v40 }
 0x2d2   : > { %1739 = vmatpush3.bf16.msra.mxu1 %v1091_v20  ;;  %1740 = vmatprep.mubr.msk.bf16.mxu1 %vm1913_vm0, %v1912_v4 }
 0x2d3   : > { %1750 = vmatprep.subr.bf16.mxu1 %v1912_v4 }
 0x30a   : > { %v793_v43 = vpop.xlane.xlu1 %792 }
 0x30b   : > { %1871 = vrcp.f32 %v793_v43 }
 0x30c   : > { %v796_v48 = vpop.xlane.xlu0 %795 }
 0x30d   : > { %1873 = vrcp.f32 %v796_v48  ;;  %v1917_v48 = vmov 1983009808  }
 0x30e   : > { %v799_v50 = vpop.xlane.xlu1 %798 }
 0x30f   : > { %1875 = vrcp.f32 %v799_v50  ;;  %v1274_v50 = vunpack.c.l.s4 %v1917_v48 }
 0x310   : > { %v802_v16 = vpop.xlane.xlu0 %801 }
 0x311   : > { %1877 = vrcp.f32 %v802_v16  ;;  %v1276_v16 = vlaneseq }
 0x312   : > { %v805_v42 = vpop.xlane.xlu1 %804 }
 0x313   : > { %1879 = vrcp.f32 %v805_v42 }
 0x314   : > { %v808_v19 = vpop.xlane.xlu0 %807 }
 0x315   : > { %v1872_v44 = vpop.eup %1871  ;;  %1881 = vrcp.f32 %v808_v19 }
 0x316   : > { %v811_v22 = vpop.xlane.xlu1 %810  ;;  %v839_v45 = vmul.f32 %v1872_v44, %v2176_v11  ;;  %v1918_v44 = vmov 1934713408  }
 0x317   : > { %v1874_v23 = vpop.eup %1873  ;;  %1883 = vrcp.f32 %v811_v22  ;;  %v1306_v22 = vunpack.c.l.s4 %v1918_v44 }
 0x318   : > { %v840_v26 = vmul.f32 %v1874_v23, %v2181_v28  ;;  %v814_v47 = vpop.xlane.xlu0 %813  ;;  %v1275_v23 = vunpack.c.0.s8 %v1274_v50 }
 0x319   : > { %v1876_v27 = vpop.eup %1875  ;;  %1885 = vrcp.f32 %v814_v47 }
 0x31a   : > { %v851_v2 = vpack.c.bf16 %v840_v26, %v839_v45  ;;  %v841_v5 = vmul.f32 %v1876_v27, %v2185_v6  ;;  %v1185_v58 = vpop.permute.xlu1 %1184  ;;  %v1277_v45 = vshrl.u32 %v1276_v16, 7 }
 0x31b   : > { %v1878_v12 = vpop.eup %1877 }
 0x31c   : > { %v842_v29 = vmul.f32 %v1878_v12, %v2190_v9  ;;  %1735 = vmatmul.mubr.msk.bf16.vlgmr.msra.gmra.mrb[24].mxu0 %vm227_vm1, %v851_v2  ;;  %v1138_v8 = vpop.permute.xlu0 %1137 }
 0x31d   : > { %v1880_v30 = vpop.eup %1879  ;;  %1745 = vmatpush3.bf16.msra.mxu0 %v1138_v8  ;;  %1746 = vmatprep.mubr.msk.bf16.mxu0 %vm1913_vm0, %v1912_v4 }
 0x31e   : > { %v852_v11 = vpack.c.bf16 %v842_v29, %v841_v5  ;;  %v843_v28 = vmul.f32 %v1880_v30, %v2194_v17  ;;  %v1307_v29 = vunpack.c.0.s8 %v1306_v22  ;;  %v2259_v30 = vsub.s32 %v1275_v23, %v1277_v45 }
 0x31f   : > { %v1882_v31 = vpop.eup %1881 }
 0x320   : > { %v844_v32 = vmul.f32 %v1882_v31, %v2198_v18  ;;  %1741 = vmatmul.mubr.msk.bf16.vlgmr.msra.gmra.mrb[24].mxu1 %vm227_vm1, %v852_v11 }
 0x321   : > { %v1884_v6 = vpop.eup %1883  ;;  %1751 = vmatpush3.bf16.msra.mxu1 %v1185_v58  ;;  %1752 = vmatprep.mubr.msk.bf16.mxu1 %vm1913_vm0, %v1912_v4 }
 0x322   : > { %v853_v9 = vpack.c.bf16 %v844_v32, %v843_v28  ;;  %v845_v59 = vmul.f32 %v1884_v6, %v2202_v33 }
 0x323   : > { %v1886_v34 = vpop.eup %1885 }
 0x324   : > { %v846_v35 = vmul.f32 %v1886_v34, %v2206_v52  ;;  %1747 = vmatmul.mubr.msk.bf16.vlgmr.msra.gmra.mrb[28].mxu0 %vm227_vm1, %v853_v9 }
 0x326   : > { %v854_v55 = vpack.c.bf16 %v846_v35, %v845_v59  ;;  %v1310_v35 = vsub.s32 %v1307_v29, %v1277_v45 }
 0x328   : > { %1753 = vmatmul.mubr.msk.bf16.vlgmr.msra.gmra.mrb[28].mxu1 %vm227_vm1, %v854_v55 }
 0x398   : > { %v895_v17 = vpop.f32.mrb[16].mxu0 }
 0x399   : > { %v1712_v18 = vpop.f32.mrb[17].mxu0 }
 0x39a   : > { %v898_v20 = vpop.f32.mrb[18].mxu0 }
 0x39b   : > { %v1713_v10 = vpop.f32.mrb[19].mxu0 }
 0x39c   : > { %v942_v25 = vpop.f32.mrb[16].mxu1 }
 0x39d   : > { %v1718_v39 = vpop.f32.mrb[17].mxu1 }
 0x39e   : > { %v2254_v41 = vpop.f32.mrb[18].mxu1 }
 0x39f   : > { %v1719_v46 = vpop.f32.mrb[19].mxu1 }
 0x3a0   : > { %v989_v49 = vpop.f32.mrb[20].mxu0 }
 0x3a1   : > { %v1724_v51 = vpop.f32.mrb[21].mxu0 }
 0x3a2   : > { %v992_v24 = vpop.f32.mrb[22].mxu0 }
 0x3a3   : > { %v1725_v33 = vpop.f32.mrb[23].mxu0 }
 0x3a4   : > { %v1036_v53 = vpop.f32.mrb[20].mxu1 }
 0x3a5   : > { %v1730_v52 = vpop.f32.mrb[21].mxu1 }
 0x3a6   : > { %v1039_v21 = vpop.f32.mrb[22].mxu1 }
 0x3a7   : > { %v1731_v54 = vpop.f32.mrb[23].mxu1 }
 0x3ef   : > { %v1083_v56 = vpop.f32.mrb[24].mxu0 }
 0x3f0   : > { %1239 = vrot.lane.b32.xlu0 %v1083_v56, %s1916_s28  ;;  %v1736_v57 = vpop.f32.mrb[25].mxu0 }
 0x3f1   : > { %v1086_v60 = vpop.f32.mrb[26].mxu0 }
 0x3f2   : > { %1241 = vrot.lane.b32.xlu1 %v1086_v60, %s1916_s28  ;;  %v1737_v61 = vpop.f32.mrb[27].mxu0 }
 0x3f3   : > { %v1130_v62 = vpop.f32.mrb[24].mxu1 }
 0x3f4   : > { %1243 = vrot.lane.b32.xlu0 %v1130_v62, %s1916_s28  ;;  %v1742_v63 = vpop.f32.mrb[25].mxu1 }
 0x3f5   : > { %v1133_v0 = vpop.f32.mrb[26].mxu1 }
 0x3f6   : > { %1245 = vrot.lane.b32.xlu1 %v1133_v0, %s1916_s28  ;;  %v1743_v1 = vpop.f32.mrb[27].mxu1 }
 0x3f7   : > { %v1177_v36 = vpop.f32.mrb[28].mxu0 }
 0x3f8   : > { %1247 = vrot.lane.b32.xlu0 %v1177_v36, %s1916_s28  ;;  %v1748_v37 = vpop.f32.mrb[29].mxu0 }
 0x3f9   : > { %v1180_v3 = vpop.f32.mrb[30].mxu0 }
 0x3fa   : > { %1249 = vrot.lane.b32.xlu1 %v1180_v3, %s1916_s28  ;;  %v1749_v38 = vpop.f32.mrb[31].mxu0 }
 0x3fb   : > { %v1224_v14 = vpop.f32.mrb[28].mxu1 }
 0x3fc   : > { %v1754_v7 = vpop.f32.mrb[29].mxu1  ;;  %1251 = vrot.lane.b32.xlu0 %v1224_v14, %s1916_s28 }
 0x3fd   : > { %v1227_v13 = vpop.f32.mrb[30].mxu1 }
 0x3fe   : > { %v1755_v15 = vpop.f32.mrb[31].mxu1  ;;  %1253 = vrot.lane.b32.xlu1 %v1227_v13, %s1916_s28 }
 0x462   : > { %v1240_v40 = vpop.permute.xlu0 %1239 }
 0x463   : > { %v1263_v47 = vsel %vm227_vm1, %v895_v17, %v1240_v40 }
 0x464   : > { %v1242_v43 = vpop.permute.xlu1 %1241 }
 0x465   : > { %v1264_v8 = vsel %vm227_vm1, %v898_v20, %v1242_v43 }
 0x466   : > { %v1244_v42 = vpop.permute.xlu0 %1243 }
 0x467   : > { %v1265_v58 = vsel %vm227_vm1, %v942_v25, %v1244_v42 }
 0x468   : > { %v1246_v19 = vpop.permute.xlu1 %1245 }
 0x469   : > { %v1266_v55 = vsel %vm227_vm1, %v2254_v41, %v1246_v19 }
 0x46a   : > { %v1248_v26 = vpop.permute.xlu0 %1247 }
 0x46b   : > { %v1267_v27 = vsel %vm227_vm1, %v989_v49, %v1248_v26 }
 0x46c   : > { %v1271_v2 = vcombine.low %v1263_v47, %v1267_v27  ;;  %v1272_v12 = vcombine.high %v1263_v47, %v1267_v27  ;;  %v1250_v5 = vpop.permute.xlu1 %1249 }
 0x46d   : > { %v1268_v11 = vsel %vm227_vm1, %v992_v24, %v1250_v5 }
 0x46e   : > { %v1339_v31 = vcombine.low %v1264_v8, %v1268_v11  ;;  %v1340_v28 = vcombine.high %v1264_v8, %v1268_v11  ;;  %v1252_v32 = vpop.permute.xlu0 %1251  ;;  %v1279_v17 = vrot.slane %v1271_v2, %v2259_v30  ;;  %v1286_v18 = vrot.slane %v1272_v12, %v2259_v30 }
 0x46f   : > { %v1269_v6 = vsel %vm227_vm1, %v1036_v53, %v1252_v32 }
 0x470   : > { %v1287_v9 = vcombine.low %v1265_v58, %v1269_v6  ;;  %v1288_v34 = vcombine.high %v1265_v58, %v1269_v6  ;;  %v1254_v59 = vpop.permute.xlu1 %1253  ;;  %v1347_v53 = vrot.slane %v1339_v31, %v2259_v30  ;;  %v1354_v41 = vrot.slane %v1340_v28, %v2259_v30 }
 0x471   : > { %v1270_v20 = vsel %vm227_vm1, %v1039_v21, %v1254_v59 }
 0x472   : > { %v1295_v10 = vrot.slane %v1287_v9, %v2259_v30  ;;  %v1302_v39 = vrot.slane %v1288_v34, %v2259_v30  ;;  %v1355_v25 = vcombine.low %v1266_v55, %v1270_v20  ;;  %v1356_v46 = vcombine.high %v1266_v55, %v1270_v20 }
 0x474   : > { %v1303_v49 = vcombine.low %v1279_v17, %v1295_v10  ;;  %v1304_v51 = vcombine.high %v1279_v17, %v1295_v10  ;;  %v1319_v24 = vcombine.low %v1286_v18, %v1302_v39  ;;  %v1320_v33 = vcombine.high %v1286_v18, %v1302_v39 }
 0x475   : > { %v1363_v52 = vrot.slane %v1355_v25, %v2259_v30  ;;  %v1370_v54 = vrot.slane %v1356_v46, %v2259_v30 }
 0x476   : > { %v1318_v56 = vrot.slane %v1304_v51, %v1310_v35  ;;  %v1334_v21 = vrot.slane %v1320_v33, %v1310_v35  ;;  %v1311_v57 = vrot.slane %v1303_v49, %v1310_v35  ;;  %v1327_v60 = vrot.slane %v1319_v24, %v1310_v35 }
 0x477   : > { %v1371_v61 = vcombine.low %v1347_v53, %v1363_v52  ;;  %v1372_v62 = vcombine.high %v1347_v53, %v1363_v52  ;;  %v1387_v63 = vcombine.low %v1354_v41, %v1370_v54  ;;  %v1388_v0 = vcombine.high %v1354_v41, %v1370_v54 }
 0x478   : > { %v1789_v1 = vpack.i.bf16 %v1334_v21, %v1318_v56  ;;  %v1335_v36 = vcombine.high %v1311_v57, %v1912_v4  ;;  %v1337_v37 = vcombine.high %v1327_v60, %v1912_v4  ;;  %v1336_v3 = vcombine.high %v1318_v56, %v1912_v4 }
 0x479   : > { %v1386_v38 = vrot.slane %v1372_v62, %v1310_v35  ;;  %v1402_v14 = vrot.slane %v1388_v0, %v1310_v35  ;;  %v1379_v7 = vrot.slane %v1371_v61, %v1310_v35  ;;  %v1395_v13 = vrot.slane %v1387_v63, %v1310_v35 }
 0x47a   : > { %1790 = vrot.lane.b32.xlu0 %v1789_v1, %s1915_s19  ;;  %v1338_v15 = vcombine.high %v1334_v21, %v1912_v4  ;;  %v1794_v16 = vpack.i.bf16 %v1337_v37, %v1335_v36 }
 0x47b   : > { %v1799_v40 = vpack.i.bf16 %v1402_v14, %v1386_v38  ;;  %v1403_v43 = vcombine.high %v1379_v7, %v1912_v4  ;;  %v1405_v48 = vcombine.high %v1395_v13, %v1912_v4  ;;  %v1404_v50 = vcombine.high %v1386_v38, %v1912_v4 }
 0x47c   : > { %v1809_v42 = vpack.i.bf16 %v1338_v15, %v1336_v3  ;;  %v1406_v19 = vcombine.high %v1402_v14, %v1912_v4 }
 0x47d   : > { %1800 = vrot.lane.b32.xlu1 %v1799_v40, %s1915_s19  ;;  %v1804_v22 = vpack.i.bf16 %v1405_v48, %v1403_v43 }
 0x47e   : > { %1795 = vrot.lane.b32.xlu0 %v1794_v16, %s1919_s29  ;;  %v1814_v44 = vpack.i.bf16 %v1406_v19, %v1404_v50 }
 0x481   : > { %1805 = vrot.lane.b32.xlu1 %v1804_v22, %s1919_s29 }
 0x482   : > { %1810 = vrot.lane.b32.xlu0 %v1809_v42, %s1914_s18 }
 0x485   : > { %1815 = vrot.lane.b32.xlu1 %v1814_v44, %s1914_s18 }
 0x4ec   : > { %v1791_v23 = vpop.permute.xlu0 %1790 }
 0x4ed   : > { %v1793_v5 = vunpack.i.h.bf16 %v1791_v23  ;;  %v1792_v29 = vunpack.i.l.bf16 %v1791_v23 }
 0x4ef   : > { %v1801_v45 = vpop.permute.xlu1 %1800 }
 0x4f0   : > { %v1796_v26 = vpop.permute.xlu0 %1795  ;;  %v1803_v59 = vunpack.i.h.bf16 %v1801_v45  ;;  %v1802_v35 = vunpack.i.l.bf16 %v1801_v45 }
 0x4f1   : > { %v1798_v47 = vunpack.i.h.bf16 %v1796_v26  ;;  %v1797_v27 = vunpack.i.l.bf16 %v1796_v26 }
 0x4f3   : > { %v1461_v2 = vsel %vm1455_vm2, %v1327_v60, %v1798_v47  ;;  %v1456_v4 = vsel %vm1455_vm2, %v1311_v57, %v1797_v27  ;;  %v1806_v12 = vpop.permute.xlu1 %1805 }
 0x4f4   : > { %v1808_v8 = vunpack.i.h.bf16 %v1806_v12  ;;  %v1807_v11 = vunpack.i.l.bf16 %v1806_v12  ;;  %v1811_v31 = vpop.permute.xlu0 %1810  ;;  %v1458_v9 = vsel %vm1457_vm3, %v1456_v4, %v1792_v29  ;;  %v1462_v34 = vsel %vm1457_vm3, %v1461_v2, %v1793_v5 }
 0x4f5   : > { %v1813_v28 = vunpack.i.h.bf16 %v1811_v31  ;;  %v1812_v32 = vunpack.i.l.bf16 %v1811_v31 }
 0x4f6   : > { %v1467_v58 = vsel %vm1455_vm2, %v1395_v13, %v1808_v8  ;;  %v1464_v6 = vsel %vm1455_vm2, %v1379_v7, %v1807_v11 }
 0x4f7   : > { %v1460_v55 = vsel %vm1459_vm4, %v1458_v9, %v1812_v32  ;;  %v1463_v17 = vsel %vm1459_vm4, %v1462_v34, %v1813_v28  ;;  %v1816_v18 = vpop.permute.xlu1 %1815  ;;  %v1465_v25 = vsel %vm1457_vm3, %v1464_v6, %v1802_v35  ;;  %v1468_v46 = vsel %vm1457_vm3, %v1467_v58, %v1803_v59 }
 0x4f8   : > { %v1818_v20 = vunpack.i.h.bf16 %v1816_v18  ;;  %v1817_v10 = vunpack.i.l.bf16 %v1816_v18  ;;  %v1622_v39 = vpack.c.bf16 %v1463_v17, %v1460_v55 }
 0x4fa   : > { %v1466_v49 = vsel %vm1459_vm4, %v1465_v25, %v1817_v10  ;;  %v1469_v51 = vsel %vm1459_vm4, %v1468_v46, %v1818_v20  ;;  %v1486_v33 = vrot.slane %v1622_v39, %v2259_v30 }
 0x4fb   : > { %v1623_v24 = vpack.c.bf16 %v1469_v51, %v1466_v49 }
 0x4fd   : > { %v1493_v53 = vrot.slane %v1623_v24, %v2259_v30 }
 0x4ff   : > { %v1494_v41 = vcombine.low %v1486_v33, %v1493_v53 }
 0x501   : > { %1496 = vst [vmem:[%s184_s5] sm:$0xff] %v1494_v41 }
 0x502 PF: > { %s12_s11 = sadd.s32 1, %s1909_s11   ;;  %s2317_s9 = smov %s1905_s10 }
 0x503   : > { %p9_p5 = scmp.ge.s32.totalorder %s12_s11, 4   ;;  %s2318_s10 = smov %s2320_s12 }
 0x505   :  { %11 = sbr.rel (!%p9_p5) target bundleno = 2 (0x2), region = 58 }

// kernel: _lambda_.42
= control target key start
LH: loop header
LB: loop body
LE: loop exit
PB: predicated region body
PF: predicated region fallthrough
CT: control target
= control target key end

     0   :  { %vm94_vm0 = vcmask 261120   ;;  %s408_s1 = inlined_call_operand.vmem [shape: bf16[32,128], index: 1, kind: input, shape index: {}]   ;;  %s409_s0 = inlined_call_operand.vmem [shape: bf16[128,32], index: 0, kind: input, shape index: {}]   ;;  %s410_s2 = inlined_call_operand.vmem [shape: f32[1,128], index: 2, kind: input, shape index: {}]   ;;  %s411_s3 = inlined_call_operand.vmem [shape: f32[128,128], index: 3, kind: output, shape index: {}]  }
   0x1   :  { %v289_v0 = vld [vmem:[%s408_s1] sm:$0xff]   ;;  %v290_v1 = vld [vmem:[%s408_s1 + $0x8] sm:$0xff]   ;;  %v295_v6 = vld [vmem:[%s409_s0 + $0x10] sm:$0xff]  }
   0x2   :  { %265 = vmatprep.subr.bf16.mxu0 %v289_v0  ;;  %285 = vmatprep.subr.bf16.mxu1 %v289_v0  ;;  %v291_v2 = vld [vmem:[%s409_s0] sm:$0xff]   ;;  %v293_v4 = vld [vmem:[%s409_s0 + $0x8] sm:$0xff]   ;;  %v296_v7 = vld [vmem:[%s409_s0 + $0x30] sm:$0xff]  }
   0x3   :  { %266 = vmatpush3.bf16.msra.mxu0 %v289_v0  ;;  %287 = vmatpush3.bf16.msra.mxu1 %v289_v0  ;;  %v292_v3 = vld [vmem:[%s409_s0 + $0x20] sm:$0xff]   ;;  %v294_v5 = vld [vmem:[%s409_s0 + $0x28] sm:$0xff]   ;;  %v297_v8 = vld [vmem:[%s409_s0 + $0x18] sm:$0xff]  }
   0x4   :  { %267 = vmatprep.subr.bf16.mxu0 %v290_v1  ;;  %286 = vmatprep.subr.bf16.mxu1 %v290_v1  ;;  %v298_v9 = vld [vmem:[%s409_s0 + $0x38] sm:$0xff]   ;;  %v236_v10 = vld [vmem:[%s410_s2] ss:$0 sm:$0xff] }
   0x5   :  { %269 = vmatprep.mubr.msk.bf16.mxu0 %vm94_vm0, %v291_v2  ;;  %277 = vmatprep.mubr.msk.bf16.mxu1 %vm94_vm0, %v292_v3 }
   0x7   :  { %268 = vmatpush3.bf16.msra.mxu0 %v290_v1  ;;  %288 = vmatpush3.bf16.msra.mxu1 %v290_v1 }
   0xa   :  { %270 = vmatmul.mubr.msk.bf16.vlgmr.msra.gmra.mrb[0].mxu0 %vm94_vm0, %v293_v4  ;;  %278 = vmatmul.mubr.msk.bf16.vlgmr.msra.gmra.mrb[0].mxu1 %vm94_vm0, %v294_v5 }
   0xb   :  { %273 = vmatprep.mubr.msk.bf16.mxu0 %vm94_vm0, %v295_v6  ;;  %281 = vmatprep.mubr.msk.bf16.mxu1 %vm94_vm0, %v296_v7 }
  0x12   :  { %274 = vmatmul.mubr.msk.bf16.gmra.mrb[4].mxu0 %vm94_vm0, %v297_v8  ;;  %282 = vmatmul.mubr.msk.bf16.gmra.mrb[4].mxu1 %vm94_vm0, %v298_v9 }
  0xdd   :  { %v271_v11 = vpop.f32.mrb[0].mxu0  ;;  %v279_v12 = vpop.f32.mrb[0].mxu1 }
  0xde   :  { %v162_v13 = vadd.f32 %v271_v11, %v236_v10  ;;  %v194_v14 = vadd.f32 %v279_v12, %v236_v10  ;;  %v153_v15 = vpop.f32.mrb[1].mxu0  ;;  %v185_v16 = vpop.f32.mrb[1].mxu1 }
  0xdf   :  { %v154_v17 = vadd.f32 %v236_v10, %v153_v15  ;;  %v186_v18 = vadd.f32 %v236_v10, %v185_v16  ;;  %v272_v19 = vpop.f32.mrb[2].mxu0  ;;  %v280_v20 = vpop.f32.mrb[2].mxu1 }
  0xe0   :  { %218 = vst [vmem:[%s411_s3 + $0x10] sm:$0xff] %v162_v13  ;;  %226 = vst [vmem:[%s411_s3 + $0x50] sm:$0xff] %v194_v14  ;;  %v165_v21 = vadd.f32 %v272_v19, %v236_v10  ;;  %v197_v22 = vadd.f32 %v280_v20, %v236_v10  ;;  %v156_v23 = vpop.f32.mrb[3].mxu0  ;;  %v188_v24 = vpop.f32.mrb[3].mxu1 }
  0xe1   :  { %216 = vst [vmem:[%s411_s3] sm:$0xff] %v154_v17  ;;  %224 = vst [vmem:[%s411_s3 + $0x40] sm:$0xff] %v186_v18  ;;  %v157_v25 = vadd.f32 %v236_v10, %v156_v23  ;;  %v189_v26 = vadd.f32 %v236_v10, %v188_v24 }
  0xe2   :  { %219 = vst [vmem:[%s411_s3 + $0x18] sm:$0xff] %v165_v21  ;;  %227 = vst [vmem:[%s411_s3 + $0x58] sm:$0xff] %v197_v22 }
  0xe3   :  { %217 = vst [vmem:[%s411_s3 + $0x8] sm:$0xff] %v157_v25  ;;  %225 = vst [vmem:[%s411_s3 + $0x48] sm:$0xff] %v189_v26 }
  0xe5   :  { %v275_v27 = vpop.f32.mrb[4].mxu0  ;;  %v283_v28 = vpop.f32.mrb[4].mxu1 }
  0xe6   :  { %v178_v29 = vadd.f32 %v275_v27, %v236_v10  ;;  %v210_v30 = vadd.f32 %v283_v28, %v236_v10  ;;  %v169_v31 = vpop.f32.mrb[5].mxu0  ;;  %v201_v32 = vpop.f32.mrb[5].mxu1 }
  0xe7   :  { %v170_v33 = vadd.f32 %v236_v10, %v169_v31  ;;  %v202_v34 = vadd.f32 %v236_v10, %v201_v32  ;;  %v276_v35 = vpop.f32.mrb[6].mxu0  ;;  %v284_v36 = vpop.f32.mrb[6].mxu1 }
  0xe8   :  { %222 = vst [vmem:[%s411_s3 + $0x30] sm:$0xff] %v178_v29  ;;  %230 = vst [vmem:[%s411_s3 + $0x70] sm:$0xff] %v210_v30  ;;  %v181_v37 = vadd.f32 %v276_v35, %v236_v10  ;;  %v213_v38 = vadd.f32 %v284_v36, %v236_v10  ;;  %v172_v39 = vpop.f32.mrb[7].mxu0  ;;  %v204_v40 = vpop.f32.mrb[7].mxu1 }
  0xe9   :  { %220 = vst [vmem:[%s411_s3 + $0x20] sm:$0xff] %v170_v33  ;;  %228 = vst [vmem:[%s411_s3 + $0x60] sm:$0xff] %v202_v34  ;;  %v173_v41 = vadd.f32 %v236_v10, %v172_v39  ;;  %v205_v42 = vadd.f32 %v236_v10, %v204_v40 }
  0xea   :  { %223 = vst [vmem:[%s411_s3 + $0x38] sm:$0xff] %v181_v37  ;;  %231 = vst [vmem:[%s411_s3 + $0x78] sm:$0xff] %v213_v38 }
  0xeb   :  { %221 = vst [vmem:[%s411_s3 + $0x28] sm:$0xff] %v173_v41  ;;  %229 = vst [vmem:[%s411_s3 + $0x68] sm:$0xff] %v205_v42 }

// kernel: _lambda_.43
= control target key start
LH: loop header
LB: loop body
LE: loop exit
PB: predicated region body
PF: predicated region fallthrough
CT: control target
= control target key end

     0   :  { %s589_s1 = inlined_call_operand.vmem [shape: bf16[128,128], index: 1, kind: input, shape index: {}]   ;;  %s590_s0 = inlined_call_operand.vmem [shape: bf16[128,128], index: 0, kind: input, shape index: {}]   ;;  %s591_s2 = inlined_call_operand.vmem [shape: f32[1,128], index: 2, kind: input, shape index: {}]   ;;  %s592_s3 = inlined_call_operand.vmem [shape: f32[128,128], index: 3, kind: input, shape index: {}]   ;;  %s593_s4 = inlined_call_operand.vmem [shape: f32[128,128], index: 4, kind: output, shape index: {}]  }
   0x1   :  { %v383_v0 = vld [vmem:[%s589_s1] sm:$0xff]   ;;  %v384_v1 = vld [vmem:[%s589_s1 + $0x8] sm:$0xff]   ;;  %v385_v2 = vld [vmem:[%s589_s1 + $0x10] sm:$0xff]  }
   0x2   :  { %335 = vmatprep.subr.bf16.mxu0 %v383_v0  ;;  %367 = vmatprep.subr.bf16.mxu1 %v383_v0  ;;  %v386_v3 = vld [vmem:[%s589_s1 + $0x18] sm:$0xff]   ;;  %v391_v4 = vld [vmem:[%s590_s0] sm:$0xff]   ;;  %v388_v7 = vld [vmem:[%s589_s1 + $0x28] sm:$0xff]  }
   0x3   :  { %336 = vmatpush3.bf16.msra.mxu0 %v383_v0  ;;  %375 = vmatpush3.bf16.msra.mxu1 %v383_v0  ;;  %v392_v5 = vld [vmem:[%s590_s0 + $0x20] sm:$0xff]   ;;  %v389_v8 = vld [vmem:[%s589_s1 + $0x30] sm:$0xff]   ;;  %v390_v9 = vld [vmem:[%s589_s1 + $0x38] sm:$0xff]  }
   0x4   :  { %337 = vmatprep.subr.bf16.mxu0 %v384_v1  ;;  %368 = vmatprep.subr.bf16.mxu1 %v384_v1  ;;  %v387_v6 = vld [vmem:[%s589_s1 + $0x20] sm:$0xff]   ;;  %v393_v10 = vld [vmem:[%s590_s0 + $0x8] sm:$0xff]   ;;  %v395_v12 = vld [vmem:[%s590_s0 + $0x10] sm:$0xff]  }
   0x5   :  { %351 = vmatprep.mubr.bf16.mxu0 %v391_v4  ;;  %359 = vmatprep.mubr.bf16.mxu1 %v392_v5  ;;  %v394_v11 = vld [vmem:[%s590_s0 + $0x28] sm:$0xff]   ;;  %v396_v13 = vld [vmem:[%s590_s0 + $0x30] sm:$0xff]   ;;  %v397_v14 = vld [vmem:[%s590_s0 + $0x18] sm:$0xff]  }
   0x6   :  { %v398_v15 = vld [vmem:[%s590_s0 + $0x38] sm:$0xff]   ;;  %v475_v16 = vld [vmem:[%s591_s2] ss:$0 sm:$0xff]  ;;  %v252_v18 = vld [vmem:[%s592_s3 + $0x10] sm:$0xff] }
   0x7   :  { %338 = vmatpush3.bf16.msra.mxu0 %v384_v1  ;;  %376 = vmatpush3.bf16.msra.mxu1 %v384_v1  ;;  %v260_v20 = vld [vmem:[%s592_s3 + $0x50] sm:$0xff]  ;;  %v250_v24 = vld [vmem:[%s592_s3] sm:$0xff]  ;;  %v253_v30 = vld [vmem:[%s592_s3 + $0x18] sm:$0xff] }
   0x8   :  { %339 = vmatprep.subr.bf16.mxu0 %v385_v2  ;;  %369 = vmatprep.subr.bf16.mxu1 %v385_v2  ;;  %v258_v26 = vld [vmem:[%s592_s3 + $0x40] sm:$0xff]  ;;  %v261_v32 = vld [vmem:[%s592_s3 + $0x58] sm:$0xff]  ;;  %v251_v38 = vld [vmem:[%s592_s3 + $0x8] sm:$0xff] }
   0x9   :  { %v259_v40 = vld [vmem:[%s592_s3 + $0x48] sm:$0xff]  ;;  %v256_v50 = vld [vmem:[%s592_s3 + $0x30] sm:$0xff]  ;;  %v254_v56 = vld [vmem:[%s592_s3 + $0x20] sm:$0xff] }
   0xa   :  { %v264_v52 = vld [vmem:[%s592_s3 + $0x70] sm:$0xff]  ;;  %v262_v58 = vld [vmem:[%s592_s3 + $0x60] sm:$0xff]  ;;  %v257_v62 = vld [vmem:[%s592_s3 + $0x38] sm:$0xff] }
   0xb   :  { %340 = vmatpush3.bf16.msra.mxu0 %v385_v2  ;;  %377 = vmatpush3.bf16.msra.mxu1 %v385_v2  ;;  %v265_v0 = vld [vmem:[%s592_s3 + $0x78] sm:$0xff] }
   0xc   :  { %341 = vmatprep.subr.bf16.mxu0 %v386_v3  ;;  %370 = vmatprep.subr.bf16.mxu1 %v386_v3 }
   0xf   :  { %342 = vmatpush3.bf16.msra.mxu0 %v386_v3  ;;  %378 = vmatpush3.bf16.msra.mxu1 %v386_v3 }
  0x10   :  { %343 = vmatprep.subr.bf16.mxu0 %v387_v6  ;;  %371 = vmatprep.subr.bf16.mxu1 %v387_v6 }
  0x13   :  { %344 = vmatpush3.bf16.msra.mxu0 %v387_v6  ;;  %379 = vmatpush3.bf16.msra.mxu1 %v387_v6  ;;  %v255_v6 = vld [vmem:[%s592_s3 + $0x28] sm:$0xff] }
  0x14   :  { %345 = vmatprep.subr.bf16.mxu0 %v388_v7  ;;  %372 = vmatprep.subr.bf16.mxu1 %v388_v7 }
  0x17   :  { %346 = vmatpush3.bf16.msra.mxu0 %v388_v7  ;;  %380 = vmatpush3.bf16.msra.mxu1 %v388_v7 }
  0x18   :  { %347 = vmatprep.subr.bf16.mxu0 %v389_v8  ;;  %373 = vmatprep.subr.bf16.mxu1 %v389_v8 }
  0x1b   :  { %348 = vmatpush3.bf16.msra.mxu0 %v389_v8  ;;  %381 = vmatpush3.bf16.msra.mxu1 %v389_v8  ;;  %v263_v8 = vld [vmem:[%s592_s3 + $0x68] sm:$0xff] }
  0x1c   :  { %349 = vmatprep.subr.bf16.mxu0 %v390_v9  ;;  %374 = vmatprep.subr.bf16.mxu1 %v390_v9 }
  0x1f   :  { %350 = vmatpush3.bf16.msra.mxu0 %v390_v9  ;;  %382 = vmatpush3.bf16.msra.mxu1 %v390_v9 }
  0x22   :  { %352 = vmatmul.mubr.bf16.vlgmr.msra.gmra.mrb[0].mxu0 %v393_v10  ;;  %360 = vmatmul.mubr.bf16.vlgmr.msra.gmra.mrb[0].mxu1 %v394_v11 }
  0x23   :  { %355 = vmatprep.mubr.bf16.mxu0 %v395_v12  ;;  %363 = vmatprep.mubr.bf16.mxu1 %v396_v13 }
  0x2a   :  { %356 = vmatmul.mubr.bf16.gmra.mrb[4].mxu0 %v397_v14  ;;  %364 = vmatmul.mubr.bf16.gmra.mrb[4].mxu1 %v398_v15 }
  0xf5   :  { %v353_v17 = vpop.f32.mrb[0].mxu0  ;;  %v361_v19 = vpop.f32.mrb[0].mxu1 }
  0xf6   :  { %v196_v21 = vadd.f32 %v353_v17, %v475_v16  ;;  %v228_v22 = vadd.f32 %v361_v19, %v475_v16  ;;  %v187_v23 = vpop.f32.mrb[1].mxu0  ;;  %v219_v25 = vpop.f32.mrb[1].mxu1 }
  0xf7   :  { %v188_v27 = vadd.f32 %v475_v16, %v187_v23  ;;  %v220_v28 = vadd.f32 %v475_v16, %v219_v25  ;;  %v354_v29 = vpop.f32.mrb[2].mxu0  ;;  %v362_v31 = vpop.f32.mrb[2].mxu1 }
  0xf8   :  { %v268_v33 = vadd.f32 %v252_v18, %v196_v21  ;;  %v276_v34 = vadd.f32 %v260_v20, %v228_v22  ;;  %v199_v35 = vadd.f32 %v354_v29, %v475_v16  ;;  %v231_v36 = vadd.f32 %v362_v31, %v475_v16  ;;  %v190_v37 = vpop.f32.mrb[3].mxu0  ;;  %v222_v39 = vpop.f32.mrb[3].mxu1 }
  0xf9   :  { %v266_v41 = vadd.f32 %v250_v24, %v188_v27  ;;  %v274_v42 = vadd.f32 %v258_v26, %v220_v28  ;;  %v191_v43 = vadd.f32 %v475_v16, %v190_v37  ;;  %v223_v44 = vadd.f32 %v475_v16, %v222_v39 }
  0xfa   :  { %284 = vst [vmem:[%s593_s4 + $0x10] sm:$0xff] %v268_v33  ;;  %292 = vst [vmem:[%s593_s4 + $0x50] sm:$0xff] %v276_v34  ;;  %v269_v45 = vadd.f32 %v253_v30, %v199_v35  ;;  %v277_v46 = vadd.f32 %v261_v32, %v231_v36 }
  0xfb   :  { %282 = vst [vmem:[%s593_s4] sm:$0xff] %v266_v41  ;;  %290 = vst [vmem:[%s593_s4 + $0x40] sm:$0xff] %v274_v42  ;;  %v267_v47 = vadd.f32 %v251_v38, %v191_v43  ;;  %v275_v48 = vadd.f32 %v259_v40, %v223_v44 }
  0xfc   :  { %285 = vst [vmem:[%s593_s4 + $0x18] sm:$0xff] %v269_v45  ;;  %293 = vst [vmem:[%s593_s4 + $0x58] sm:$0xff] %v277_v46 }
  0xfd   :  { %283 = vst [vmem:[%s593_s4 + $0x8] sm:$0xff] %v267_v47  ;;  %291 = vst [vmem:[%s593_s4 + $0x48] sm:$0xff] %v275_v48  ;;  %v357_v49 = vpop.f32.mrb[4].mxu0  ;;  %v365_v51 = vpop.f32.mrb[4].mxu1 }
  0xfe   :  { %v212_v53 = vadd.f32 %v357_v49, %v475_v16  ;;  %v244_v54 = vadd.f32 %v365_v51, %v475_v16  ;;  %v203_v55 = vpop.f32.mrb[5].mxu0  ;;  %v235_v57 = vpop.f32.mrb[5].mxu1 }
  0xff   :  { %v204_v59 = vadd.f32 %v475_v16, %v203_v55  ;;  %v236_v60 = vadd.f32 %v475_v16, %v235_v57  ;;  %v358_v61 = vpop.f32.mrb[6].mxu0  ;;  %v366_v63 = vpop.f32.mrb[6].mxu1 }
 0x100   :  { %v272_v1 = vadd.f32 %v256_v50, %v212_v53  ;;  %v280_v2 = vadd.f32 %v264_v52, %v244_v54  ;;  %v215_v3 = vadd.f32 %v358_v61, %v475_v16  ;;  %v247_v4 = vadd.f32 %v366_v63, %v475_v16  ;;  %v206_v5 = vpop.f32.mrb[7].mxu0  ;;  %v238_v7 = vpop.f32.mrb[7].mxu1 }
 0x101   :  { %v270_v9 = vadd.f32 %v254_v56, %v204_v59  ;;  %v278_v10 = vadd.f32 %v262_v58, %v236_v60  ;;  %v207_v11 = vadd.f32 %v475_v16, %v206_v5  ;;  %v239_v12 = vadd.f32 %v475_v16, %v238_v7 }
 0x102   :  { %288 = vst [vmem:[%s593_s4 + $0x30] sm:$0xff] %v272_v1  ;;  %296 = vst [vmem:[%s593_s4 + $0x70] sm:$0xff] %v280_v2  ;;  %v273_v13 = vadd.f32 %v257_v62, %v215_v3  ;;  %v281_v14 = vadd.f32 %v265_v0, %v247_v4 }
 0x103   :  { %286 = vst [vmem:[%s593_s4 + $0x20] sm:$0xff] %v270_v9  ;;  %294 = vst [vmem:[%s593_s4 + $0x60] sm:$0xff] %v278_v10  ;;  %v271_v15 = vadd.f32 %v255_v6, %v207_v11  ;;  %v279_v16 = vadd.f32 %v263_v8, %v239_v12 }
 0x104   :  { %289 = vst [vmem:[%s593_s4 + $0x38] sm:$0xff] %v273_v13  ;;  %297 = vst [vmem:[%s593_s4 + $0x78] sm:$0xff] %v281_v14 }
 0x105   :  { %287 = vst [vmem:[%s593_s4 + $0x28] sm:$0xff] %v271_v15  ;;  %295 = vst [vmem:[%s593_s4 + $0x68] sm:$0xff] %v279_v16 }

// kernel: _lambda_.51
= control target key start
LH: loop header
LB: loop body
LE: loop exit
PB: predicated region body
PF: predicated region fallthrough
CT: control target
= control target key end

     0   :  { %s182_s0 = inlined_call_operand.vmem [shape: f32[32,128], index: 0, kind: input, shape index: {}]   ;;  %s183_s1 = inlined_call_operand.vmem [shape: f32[1,128], index: 1, kind: input, shape index: {}]   ;;  %s184_s2 = inlined_call_operand.vmem [shape: f32[1,128], index: 2, kind: input, shape index: {}]   ;;  %s185_s3 = inlined_call_operand.vmem [shape: bf16[32,128], index: 3, kind: output, shape index: {}]  }
   0x1   :  { %v14_v0 = vld [vmem:[%s182_s0] sm:$0xff]  ;;  %v16_v1 = vld [vmem:[%s182_s0 + $0x10] sm:$0xff]  ;;  %v15_v2 = vld [vmem:[%s182_s0 + $0x8] sm:$0xff] }
   0x2   :  { %18 = vadd.xlane.f32.xlu0 %v14_v0  ;;  %22 = vadd.xlane.f32.xlu1 %v16_v1  ;;  %v17_v3 = vld [vmem:[%s182_s0 + $0x18] sm:$0xff]  ;;  %v109_v34 = vld [vmem:[%s183_s1] ss:$0 sm:$0xff] }
   0x3   :  { %v110_v39 = vld [vmem:[%s184_s2] ss:$0 sm:$0xff] }
   0x6   :  { %20 = vadd.xlane.f32.xlu0 %v15_v2  ;;  %24 = vadd.xlane.f32.xlu1 %v17_v3 }
  0x8f   :  { %v19_v4 = vpop.xlane.xlu0 %18  ;;  %v23_v5 = vpop.xlane.xlu1 %22 }
  0x90   :  { %v27_v6 = vmul.f32 0.0078125, %v19_v4  ;;  %v29_v7 = vmul.f32 0.0078125, %v23_v5 }
  0x92   :  { %v31_v8 = vsub.f32 %v14_v0, %v27_v6  ;;  %v33_v9 = vsub.f32 %v16_v1, %v29_v7 }
  0x93   :  { %v21_v10 = vpop.xlane.xlu0 %20  ;;  %v25_v11 = vpop.xlane.xlu1 %24 }
  0x94   :  { %v28_v12 = vmul.f32 0.0078125, %v21_v10  ;;  %v35_v13 = vmul.f32 %v31_v8, %v31_v8  ;;  %v30_v14 = vmul.f32 0.0078125, %v25_v11  ;;  %v37_v17 = vmul.f32 %v33_v9, %v33_v9 }
  0x96   :  { %v32_v15 = vsub.f32 %v15_v2, %v28_v12  ;;  %39 = vadd.xlane.f32.xlu0 %v35_v13  ;;  %v34_v16 = vsub.f32 %v17_v3, %v30_v14 }
  0x98   :  { %v36_v18 = vmul.f32 %v32_v15, %v32_v15  ;;  %v38_v19 = vmul.f32 %v34_v16, %v34_v16 }
  0x9a   :  { %43 = vadd.xlane.f32.xlu0 %v37_v17  ;;  %41 = vadd.xlane.f32.xlu1 %v36_v18 }
  0x9e   :  { %45 = vadd.xlane.f32.xlu1 %v38_v19 }
 0x123   :  { %v40_v20 = vpop.xlane.xlu0 %39 }
 0x124   :  { %v47_v21 = vmul.f32 0.0078125, %v40_v20 }
 0x126   :  { %v51_v22 = vadd.f32 1e-05, %v47_v21 }
 0x127   :  { %v42_v23 = vpop.xlane.xlu1 %41  ;;  %v44_v24 = vpop.xlane.xlu0 %43 }
 0x128   :  { %130 = vrsqrt.f32 %v51_v22  ;;  %v48_v25 = vmul.f32 0.0078125, %v42_v23  ;;  %v49_v26 = vmul.f32 0.0078125, %v44_v24 }
 0x12a   :  { %v52_v27 = vadd.f32 1e-05, %v48_v25  ;;  %v53_v28 = vadd.f32 1e-05, %v49_v26 }
 0x12b   :  { %v46_v29 = vpop.xlane.xlu1 %45 }
 0x12c   :  { %132 = vrsqrt.f32 %v52_v27  ;;  %v50_v30 = vmul.f32 0.0078125, %v46_v29 }
 0x12d   :  { %134 = vrsqrt.f32 %v53_v28 }
 0x12e   :  { %v54_v31 = vadd.f32 1e-05, %v50_v30 }
 0x130   :  { %136 = vrsqrt.f32 %v54_v31 }
 0x132   :  { %v131_v32 = vpop.eup %130 }
 0x133   :  { %v59_v33 = vmul.f32 %v131_v32, %v31_v8 }
 0x135   :  { %v70_v37 = vmul.f32 %v109_v34, %v59_v33 }
 0x136   :  { %v133_v35 = vpop.eup %132 }
 0x137   :  { %v135_v36 = vpop.eup %134  ;;  %v60_v38 = vmul.f32 %v133_v35, %v32_v15  ;;  %v81_v43 = vadd.f32 %v110_v39, %v70_v37 }
 0x138   :  { %v61_v40 = vmul.f32 %v135_v36, %v33_v9 }
 0x139   :  { %v71_v41 = vmul.f32 %v109_v34, %v60_v38 }
 0x13a   :  { %v137_v42 = vpop.eup %136  ;;  %v72_v45 = vmul.f32 %v109_v34, %v61_v40 }
 0x13b   :  { %v82_v44 = vadd.f32 %v110_v39, %v71_v41  ;;  %v62_v46 = vmul.f32 %v137_v42, %v34_v16 }
 0x13c   :  { %v83_v49 = vadd.f32 %v110_v39, %v72_v45 }
 0x13d   :  { %v122_v47 = vpack.c.bf16 %v82_v44, %v81_v43  ;;  %v73_v48 = vmul.f32 %v109_v34, %v62_v46 }
 0x13f   :  { %123 = vst [vmem:[%s185_s3] sm:$0xff] %v122_v47   ;;  %v84_v50 = vadd.f32 %v110_v39, %v73_v48 }
 0x141   :  { %v127_v51 = vpack.c.bf16 %v84_v50, %v83_v49 }
 0x143   :  { %129 = vst [vmem:[%s185_s3 + $0x8] sm:$0xff] %v127_v51  }

// kernel: _lambda_.46
= control target key start
LH: loop header
LB: loop body
LE: loop exit
PB: predicated region body
PF: predicated region fallthrough
CT: control target
= control target key end

     0   :  { %s2033_s12 = smov 0   ;;  %s2035_s13 = smov 0   ;;  %s2468_s0 = inlined_call_operand.vmem [shape: bf16[2,4,16,96], index: 0, kind: input, shape index: {}]   ;;  %s2469_s1 = inlined_call_operand.vmem [shape: f32[2,16,16], index: 1, kind: input, shape index: {}]   ;;  %s2470_s2 = inlined_call_operand.vmem [shape: f32[4,16,16], index: 2, kind: input, shape index: {}]   ;;  %s2471_s3 = inlined_call_operand.vmem [shape: bf16[2,4,512], index: 3, kind: output, shape index: {}]  }
   0x1   :  { %s2037_s14 = smov 0  }
   0x2 LB: > { %s25_s15 = sadd.s32 1, %s1998_s13  ;;  %p1686_p0 = scmp.ge.s32.totalorder %s2002_s14, 1  ;;  %s2002_s14 = sphi %s2037_s14, %s13_s14   ;;  %s1998_s13 = sphi %s2035_s13, %s2473_s13   ;;  %s1994_s12 = sphi %s2033_s12, %s2472_s12  }
   0x3   : > { %p27_p1 = scmp.ge.s32.totalorder %s25_s15, 2  ;;  %p171_p2 = scmp.lt.s32.totalorder %s2002_s14, 3 }
   0x5   : > { %s2475_s15 = smov (%p27_p1, %s25_s15), 0  ;;  %p172_p3 = pnand %p1686_p0, %p171_p2 }
   0x6   : > { %p211_p4 = scmp.lt.s32.totalorder (!%p172_p3), %s1994_s12, 1  ;;  %s2004_s20 = smov (!%p172_p3), 112   ;;  %v2005_v4 = vmov (!%p172_p3), 0.0   ;;  %vm2006_vm0 = vmmov (!%p172_p3), 0   ;;  %vm279_vm1 = vcmask (!%p172_p3), 130048   ;;  %v246_v41 = vld [vmem:[%s2469_s1] sm:$0xff] (!%p172_p3) }
   0x7   : > { %175 = sbr.rel (%p172_p3) target bundleno = 1284 (0x504), region = 32  ;;  %1753 = vmatprep.subr.bf16.mxu0 (!%p172_p3), %v2005_v4  ;;  %1759 = vmatprep.subr.bf16.mxu1 (!%p172_p3), %v2005_v4  ;;  %s2007_s21 = smov (!%p172_p3), 96   ;;  %v247_v48 = vld [vmem:[%s2469_s1 + $0x8] sm:$0xff] (!%p172_p3)  ;;  %v2149_v51 = vld [vmem:[%s2470_s2] sm:$0xff] (!%p172_p3)  ;;  %v2154_v52 = vld [vmem:[%s2470_s2 + $0x10] sm:$0xff] (!%p172_p3)  ;;  %vm1531_vm2 = vcmask (!%p172_p3), 261120  }
   0x8   : > { %1755 = vmatprep.mubr.msk.bf16.mxu0 (!%p172_p3), %vm2006_vm0, %v2005_v4  ;;  %1761 = vmatprep.mubr.msk.bf16.mxu1 (!%p172_p3), %vm2006_vm0, %v2005_v4  ;;  %s2008_s22 = smov (!%p172_p3), 64   ;;  %v2159_v59 = vld [vmem:[%s2470_s2 + $0x8] sm:$0xff] (!%p172_p3)  ;;  %s2009_s26 = smov (!%p172_p3), 16   ;;  %vm1533_vm3 = vcmask (!%p172_p3), 523264   ;;  %vm1535_vm4 = vcmask (!%p172_p3), 785408  }
   0x9   : > { %s2012_s27 = smov (!%p172_p3), 32  }
   0xe   : > { %s2477_s12 = smov (!%p211_p4, %s1994_s12), 1 }
   0xf   : > { %s1719_s16 = sshll.u32 %s2477_s12, 5 }
  0x10   : > { %s219_s19 = scalar_lea.vmem %s2468_s0, %s1719_s16 }
  0x11   : > { %v240_v0 = vld [vmem:[%s219_s19 + $0x8] sm:$0xf]  ;;  %v238_v1 = vld [vmem:[%s219_s19] sm:$0xf]  ;;  %v241_v2 = vld [vmem:[%s219_s19 + $0xc] sm:$0xf] }
  0x12   : > { %262 = vrot.lane.b32.xlu1 %v240_v0, %s2004_s20  ;;  %258 = vrot.lane.b32.xlu0 %v238_v1, %s2004_s20  ;;  %v239_v3 = vld [vmem:[%s219_s19 + $0x4] sm:$0xf]  ;;  %v243_v5 = vld [vmem:[%s219_s19 + $0x14] sm:$0xf]  ;;  %v2063_v9 = vcombine.low %v240_v0, %v241_v2 }
  0x13   : > { %v242_v6 = vld [vmem:[%s219_s19 + $0x10] sm:$0xf]  ;;  %v245_v7 = vld [vmem:[%s219_s19 + $0x1c] sm:$0xf]  ;;  %v244_v8 = vld [vmem:[%s219_s19 + $0x18] sm:$0xf]  ;;  %v1691_v10 = vcombine.low %v238_v1, %v239_v3 }
  0x14   : > { %v2065_v11 = vcombine.low %v242_v6, %v243_v5  ;;  %v2067_v12 = vcombine.low %v244_v8, %v245_v7  ;;  %v2170_v0 = vld [vmem:[%s2470_s2 + $0x18] sm:$0xff] }
  0x16   : > { %264 = vrot.lane.b32.xlu1 %v241_v2, %s2004_s20  ;;  %260 = vrot.lane.b32.xlu0 %v239_v3, %s2004_s20 }
  0x1a   : > { %268 = vrot.lane.b32.xlu1 %v243_v5, %s2004_s20  ;;  %266 = vrot.lane.b32.xlu0 %v242_v6, %s2004_s20 }
  0x1e   : > { %272 = vrot.lane.b32.xlu1 %v245_v7, %s2004_s20  ;;  %270 = vrot.lane.b32.xlu0 %v244_v8, %s2004_s20 }
  0x22   : > { %277 = vrot.lane.b32.xlu0 %v1691_v10, %s2007_s21  ;;  %330 = vrot.lane.b32.xlu1 %v2063_v9, %s2007_s21 }
  0x26   : > { %382 = vrot.lane.b32.xlu0 %v2065_v11, %s2007_s21  ;;  %434 = vrot.lane.b32.xlu1 %v2067_v12, %s2007_s21 }
  0x84   : > { %v263_v13 = vpop.permute.xlu1 %262  ;;  %v259_v14 = vpop.permute.xlu0 %258 }
  0x88   : > { %v265_v15 = vpop.permute.xlu1 %264  ;;  %v261_v16 = vpop.permute.xlu0 %260 }
  0x89   : > { %v2076_v17 = vcombine.low %v263_v13, %v265_v15  ;;  %v2078_v18 = vcombine.low %v259_v14, %v261_v16 }
  0x8b   : > { %538 = vrot.lane.b32.xlu1 %v2076_v17, %s2007_s21  ;;  %486 = vrot.lane.b32.xlu0 %v2078_v18, %s2007_s21 }
  0x8c   : > { %v269_v19 = vpop.permute.xlu1 %268  ;;  %v267_v20 = vpop.permute.xlu0 %266 }
  0x8d   : > { %v2084_v21 = vcombine.low %v267_v20, %v269_v19  ;;  %v2187_v20 = vld [vmem:[%s2470_s2 + $0x20] sm:$0xff] }
  0x8f   : > { %590 = vrot.lane.b32.xlu0 %v2084_v21, %s2007_s21 }
  0x90   : > { %v273_v22 = vpop.permute.xlu1 %272  ;;  %v271_v23 = vpop.permute.xlu0 %270 }
  0x91   : > { %v2088_v24 = vcombine.low %v271_v23, %v273_v22  ;;  %v2192_v22 = vld [vmem:[%s2470_s2 + $0x30] sm:$0xff] }
  0x93   : > { %642 = vrot.lane.b32.xlu1 %v2088_v24, %s2007_s21 }
  0x94   : > { %v278_v25 = vpop.permute.xlu0 %277  ;;  %v331_v26 = vpop.permute.xlu1 %330 }
  0x95   : > { %v284_v27 = vsel %vm279_vm1, %v278_v25, 0  ;;  %v336_v28 = vsel %vm279_vm1, %v331_v26, 0 }
  0x96   : > { %1754 = vmatpush3.bf16.xpose.msra.mxu0 %v284_v27  ;;  %1760 = vmatpush3.bf16.xpose.msra.mxu1 %v336_v28 }
  0x97   : > { %1765 = vmatprep.subr.bf16.mxu0 %v2005_v4  ;;  %1771 = vmatprep.subr.bf16.mxu1 %v2005_v4 }
  0x98   : > { %v383_v29 = vpop.permute.xlu0 %382  ;;  %v435_v30 = vpop.permute.xlu1 %434  ;;  %931 = vrot.lane.b32.xlu1 %v1691_v10, %s2008_s22 }
  0x99   : > { %v388_v31 = vsel %vm279_vm1, %v383_v29, 0  ;;  %v440_v32 = vsel %vm279_vm1, %v435_v30, 0 }
  0x9d   : > { %1756 = vmatmul.mubr.msk.bf16.vlgmr.msra.gmra.mrb[0].mxu0 %vm279_vm1, %v1691_v10  ;;  %1762 = vmatmul.mubr.msk.bf16.vlgmr.msra.gmra.mrb[0].mxu1 %vm279_vm1, %v2063_v9 }
  0x9e   : > { %1766 = vmatpush3.bf16.xpose.msra.mxu0 %v388_v31  ;;  %1772 = vmatpush3.bf16.xpose.msra.mxu1 %v440_v32  ;;  %v2199_v31 = vld [vmem:[%s2470_s2 + $0x28] sm:$0xff] }
  0x9f   : > { %1767 = vmatprep.mubr.msk.bf16.mxu0 %vm2006_vm0, %v2005_v4  ;;  %1773 = vmatprep.mubr.msk.bf16.mxu1 %vm2006_vm0, %v2005_v4 }
  0xa0   : > { %1777 = vmatprep.subr.bf16.mxu0 %v2005_v4  ;;  %1783 = vmatprep.subr.bf16.mxu1 %v2005_v4 }
  0xa5   : > { %1768 = vmatmul.mubr.msk.bf16.vlgmr.msra.gmra.mrb[4].mxu0 %vm279_vm1, %v2065_v11  ;;  %1774 = vmatmul.mubr.msk.bf16.vlgmr.msra.gmra.mrb[4].mxu1 %vm279_vm1, %v2067_v12 }
  0xa6   : > { %1785 = vmatprep.mubr.msk.bf16.mxu1 %vm2006_vm0, %v2005_v4  ;;  %1779 = vmatprep.mubr.msk.bf16.mxu0 %vm2006_vm0, %v2005_v4 }
  0xfd   : > { %v539_v33 = vpop.permute.xlu1 %538  ;;  %v487_v34 = vpop.permute.xlu0 %486 }
  0xfe   : > { %v544_v35 = vsel %vm279_vm1, %v539_v33, 0  ;;  %v492_v36 = vsel %vm279_vm1, %v487_v34, 0 }
  0xff   : > { %1778 = vmatpush3.bf16.xpose.msra.mxu0 %v492_v36  ;;  %1784 = vmatpush3.bf16.xpose.msra.mxu1 %v544_v35  ;;  %v2210_v36 = vld [vmem:[%s2470_s2 + $0x38] sm:$0xff] }
 0x100   : > { %1789 = vmatprep.subr.bf16.mxu0 %v2005_v4  ;;  %1795 = vmatprep.subr.bf16.mxu1 %v2005_v4 }
 0x101   : > { %v591_v37 = vpop.permute.xlu0 %590 }
 0x102   : > { %v596_v38 = vsel %vm279_vm1, %v591_v37, 0 }
 0x105   : > { %v643_v39 = vpop.permute.xlu1 %642 }
 0x106   : > { %v648_v40 = vsel %vm279_vm1, %v643_v39, 0  ;;  %1780 = vmatmul.mubr.msk.bf16.vlgmr.msra.gmra.mrb[8].mxu0 %vm279_vm1, %v2078_v18  ;;  %1786 = vmatmul.mubr.msk.bf16.vlgmr.msra.gmra.mrb[8].mxu1 %vm279_vm1, %v2076_v17 }
 0x107   : > { %1790 = vmatpush3.bf16.xpose.msra.mxu0 %v596_v38  ;;  %1796 = vmatpush3.bf16.xpose.msra.mxu1 %v648_v40 }
 0x108   : > { %1791 = vmatprep.mubr.msk.bf16.mxu0 %vm2006_vm0, %v2005_v4  ;;  %1797 = vmatprep.mubr.msk.bf16.mxu1 %vm2006_vm0, %v2005_v4 }
 0x109   : > { %1801 = vmatprep.subr.bf16.mxu0 %v2005_v4  ;;  %1807 = vmatprep.subr.bf16.mxu1 %v2005_v4 }
 0x10e   : > { %1792 = vmatmul.mubr.msk.bf16.vlgmr.msra.gmra.mrb[12].mxu0 %vm279_vm1, %v2084_v21  ;;  %1798 = vmatmul.mubr.msk.bf16.vlgmr.msra.gmra.mrb[12].mxu1 %vm279_vm1, %v2088_v24 }
 0x10f   : > { %1803 = vmatprep.mubr.msk.bf16.mxu0 %vm2006_vm0, %v2005_v4  ;;  %1809 = vmatprep.mubr.msk.bf16.mxu1 %vm2006_vm0, %v2005_v4 }
 0x170   : > { %v320_v42 = vpop.f32.mrb[0].mxu0  ;;  %v372_v43 = vpop.f32.mrb[0].mxu1 }
 0x171   : > { %v691_v44 = vmul.f32 0.25, %v320_v42  ;;  %v1757_v45 = vpop.f32.mrb[1].mxu0  ;;  %v693_v46 = vmul.f32 0.25, %v372_v43  ;;  %v1763_v47 = vpop.f32.mrb[1].mxu1 }
 0x172   : > { %v323_v49 = vpop.f32.mrb[2].mxu0  ;;  %v375_v50 = vpop.f32.mrb[2].mxu1 }
 0x173   : > { %v707_v53 = vadd.f32 %v691_v44, %v246_v41  ;;  %v692_v54 = vmul.f32 0.25, %v323_v49  ;;  %v709_v55 = vadd.f32 %v693_v46, %v246_v41  ;;  %v1758_v56 = vpop.f32.mrb[3].mxu0  ;;  %v694_v57 = vmul.f32 0.25, %v375_v50  ;;  %v1764_v58 = vpop.f32.mrb[3].mxu1  ;;  %v248_v44 = vld [vmem:[%s2469_s1 + $0x10] sm:$0xff] }
 0x174   : > { %v932_v42 = vpop.permute.xlu1 %931 }
 0x175   : > { %v708_v60 = vadd.f32 %v692_v54, %v247_v48  ;;  %v710_v61 = vadd.f32 %v694_v57, %v247_v48  ;;  %v2162_v62 = vadd.f32 %v2149_v51, %v707_v53  ;;  %v2165_v63 = vadd.f32 %v2154_v52, %v709_v55  ;;  %1802 = vmatpush3.bf16.msra.mxu0 %v932_v42  ;;  %v249_v53 = vld [vmem:[%s2469_s1 + $0x18] sm:$0xff] }
 0x176   : > { %1813 = vmatprep.subr.bf16.mxu0 %v2005_v4 }
 0x177   : > { %v747_v1 = vsel %vm279_vm1, %v2162_v62, -inf  ;;  %v2175_v2 = vadd.f32 %v2159_v59, %v708_v60  ;;  %v2178_v6 = vadd.f32 %v2170_v0, %v710_v61  ;;  %v753_v14 = vsel %vm279_vm1, %v2165_v63, -inf }
 0x178   : > { %748 = vmax.xlane.f32.xlu0 %v747_v1  ;;  %v424_v3 = vpop.f32.mrb[4].mxu0  ;;  %v476_v5 = vpop.f32.mrb[4].mxu1 }
 0x179   : > { %v695_v7 = vmul.f32 0.25, %v424_v3  ;;  %v750_v8 = vsel %vm279_vm1, %v2175_v2, -inf  ;;  %v1769_v10 = vpop.f32.mrb[5].mxu0  ;;  %v697_v13 = vmul.f32 0.25, %v476_v5  ;;  %v1775_v15 = vpop.f32.mrb[5].mxu1  ;;  %v756_v30 = vsel %vm279_vm1, %v2178_v6, -inf }
 0x17a   : > { %751 = vmax.xlane.f32.xlu1 %v750_v8  ;;  %v427_v16 = vpop.f32.mrb[6].mxu0  ;;  %v479_v19 = vpop.f32.mrb[6].mxu1 }
 0x17b   : > { %v711_v23 = vadd.f32 %v695_v7, %v246_v41  ;;  %v713_v25 = vadd.f32 %v697_v13, %v246_v41  ;;  %v696_v26 = vmul.f32 0.25, %v427_v16  ;;  %v698_v27 = vmul.f32 0.25, %v479_v19  ;;  %v1770_v28 = vpop.f32.mrb[7].mxu0  ;;  %v1776_v29 = vpop.f32.mrb[7].mxu1 }
 0x17c   : > { %754 = vmax.xlane.f32.xlu0 %v753_v14 }
 0x17d   : > { %v712_v32 = vadd.f32 %v696_v26, %v247_v48  ;;  %v714_v33 = vadd.f32 %v698_v27, %v247_v48  ;;  %v2202_v34 = vadd.f32 %v2187_v20, %v711_v23  ;;  %v2205_v35 = vadd.f32 %v2192_v22, %v713_v25 }
 0x17f   : > { %v759_v37 = vsel %vm279_vm1, %v2202_v34, -inf  ;;  %v2215_v38 = vadd.f32 %v2199_v31, %v712_v32  ;;  %v765_v39 = vsel %vm279_vm1, %v2205_v35, -inf  ;;  %v2222_v41 = vadd.f32 %v2210_v36, %v714_v33 }
 0x180   : > { %757 = vmax.xlane.f32.xlu0 %v756_v30  ;;  %760 = vmax.xlane.f32.xlu1 %v759_v37 }
 0x181   : > { %v762_v40 = vsel %vm279_vm1, %v2215_v38, -inf  ;;  %v768_v43 = vsel %vm279_vm1, %v2222_v41, -inf }
 0x184   : > { %766 = vmax.xlane.f32.xlu1 %v765_v39  ;;  %763 = vmax.xlane.f32.xlu0 %v762_v40 }
 0x188   : > { %769 = vmax.xlane.f32.xlu0 %v768_v43 }
 0x1d9   : > { %v528_v45 = vpop.f32.mrb[8].mxu0  ;;  %v580_v46 = vpop.f32.mrb[8].mxu1 }
 0x1da   : > { %v699_v47 = vmul.f32 0.25, %v528_v45  ;;  %v701_v48 = vmul.f32 0.25, %v580_v46  ;;  %v1781_v49 = vpop.f32.mrb[9].mxu0  ;;  %v1787_v50 = vpop.f32.mrb[9].mxu1 }
 0x1db   : > { %v531_v54 = vpop.f32.mrb[10].mxu0  ;;  %v583_v55 = vpop.f32.mrb[10].mxu1 }
 0x1dc   : > { %v715_v56 = vadd.f32 %v699_v47, %v248_v44  ;;  %v717_v57 = vadd.f32 %v701_v48, %v248_v44  ;;  %v700_v58 = vmul.f32 0.25, %v531_v54  ;;  %v702_v60 = vmul.f32 0.25, %v583_v55  ;;  %v1782_v61 = vpop.f32.mrb[11].mxu0  ;;  %v1788_v1 = vpop.f32.mrb[11].mxu1 }
 0x1de   : > { %v716_v3 = vadd.f32 %v700_v58, %v249_v53  ;;  %v718_v5 = vadd.f32 %v702_v60, %v249_v53  ;;  %v2234_v7 = vadd.f32 %v2149_v51, %v715_v56  ;;  %v2237_v8 = vadd.f32 %v2154_v52, %v717_v57 }
 0x1e0   : > { %v771_v10 = vsel %vm279_vm1, %v2234_v7, -inf  ;;  %v2242_v13 = vadd.f32 %v2159_v59, %v716_v3  ;;  %v2247_v26 = vadd.f32 %v2170_v0, %v718_v5  ;;  %v777_v59 = vsel %vm279_vm1, %v2237_v8, -inf }
 0x1e1   : > { %v684_v14 = vpop.f32.mrb[12].mxu1  ;;  %772 = vmax.xlane.f32.xlu1 %v771_v10  ;;  %v632_v15 = vpop.f32.mrb[12].mxu0 }
 0x1e2   : > { %v705_v16 = vmul.f32 0.25, %v684_v14  ;;  %v703_v19 = vmul.f32 0.25, %v632_v15  ;;  %v1793_v23 = vpop.f32.mrb[13].mxu0  ;;  %v1799_v25 = vpop.f32.mrb[13].mxu1  ;;  %v774_v51 = vsel %vm279_vm1, %v2242_v13, -inf  ;;  %v780_v42 = vsel %vm279_vm1, %v2247_v26, -inf }
 0x1e3   : > { %v687_v52 = vpop.f32.mrb[14].mxu1  ;;  %775 = vmax.xlane.f32.xlu0 %v774_v51  ;;  %v635_v27 = vpop.f32.mrb[14].mxu0 }
 0x1e4   : > { %v721_v28 = vadd.f32 %v705_v16, %v248_v44  ;;  %v719_v29 = vadd.f32 %v703_v19, %v248_v44  ;;  %v706_v30 = vmul.f32 0.25, %v687_v52  ;;  %v704_v32 = vmul.f32 0.25, %v635_v27  ;;  %v1794_v33 = vpop.f32.mrb[15].mxu0  ;;  %v1800_v37 = vpop.f32.mrb[15].mxu1 }
 0x1e5   : > { %778 = vmax.xlane.f32.xlu1 %v777_v59 }
 0x1e6   : > { %v722_v39 = vadd.f32 %v706_v30, %v249_v53  ;;  %v720_v40 = vadd.f32 %v704_v32, %v249_v53  ;;  %v2254_v0 = vadd.f32 %v2187_v20, %v719_v29  ;;  %v2262_v44 = vadd.f32 %v2192_v22, %v721_v28 }
 0x1e7   : > { %781 = vmax.xlane.f32.xlu0 %v780_v42 }
 0x1e8   : > { %v783_v43 = vsel %vm279_vm1, %v2254_v0, -inf  ;;  %v2259_v45 = vadd.f32 %v2199_v31, %v720_v40  ;;  %v2267_v47 = vadd.f32 %v2210_v36, %v722_v39  ;;  %v789_v20 = vsel %vm279_vm1, %v2262_v44, -inf }
 0x1e9   : > { %784 = vmax.xlane.f32.xlu1 %v783_v43 }
 0x1ea   : > { %v786_v46 = vsel %vm279_vm1, %v2259_v45, -inf  ;;  %v792_v48 = vsel %vm279_vm1, %v2267_v47, -inf }
 0x1eb   : > { %787 = vmax.xlane.f32.xlu0 %v786_v46 }
 0x1ed   : > { %790 = vmax.xlane.f32.xlu1 %v789_v20 }
 0x1ef   : > { %793 = vmax.xlane.f32.xlu0 %v792_v48 }
 0x1fe   : > { %1025 = vrot.lane.b32.xlu1 %v2065_v11, %s2008_s22 }
 0x202   : > { %1072 = vrot.lane.b32.xlu1 %v2067_v12, %s2008_s22 }
 0x205   : > { %978 = vrot.lane.b32.xlu0 %v2063_v9, %s2008_s22  ;;  %v749_v22 = vpop.xlane.xlu0 %748 }
 0x206   : > { %1166 = vrot.lane.b32.xlu1 %v2076_v17, %s2008_s22  ;;  %v795_v11 = vsub.f32 %v2162_v62, %v749_v22 }
 0x207   : > { %v752_v36 = vpop.xlane.xlu1 %751 }
 0x208   : > { %v796_v50 = vsub.f32 %v2175_v2, %v752_v36  ;;  %v811_v9 = vmul.f32 1.442695, %v795_v11 }
 0x209   : > { %1119 = vrot.lane.b32.xlu0 %v2078_v18, %s2008_s22  ;;  %v755_v31 = vpop.xlane.xlu0 %754 }
 0x20a   : > { %v813_v54 = vmul.f32 1.442695, %v796_v50  ;;  %v797_v56 = vsub.f32 %v2165_v63, %v755_v31 }
 0x20c   : > { %1916 = vpow2.f32 %v813_v54  ;;  %v815_v58 = vmul.f32 1.442695, %v797_v56 }
 0x20d   : > { %v758_v49 = vpop.xlane.xlu0 %757  ;;  %v761_v55 = vpop.xlane.xlu1 %760  ;;  %1918 = vpow2.f32 %v811_v9 }
 0x20e   : > { %v798_v12 = vsub.f32 %v2178_v6, %v758_v49  ;;  %v799_v60 = vsub.f32 %v2202_v34, %v761_v55 }
 0x210   : > { %v817_v17 = vmul.f32 1.442695, %v798_v12  ;;  %v819_v6 = vmul.f32 1.442695, %v799_v60 }
 0x211   : > { %v764_v53 = vpop.xlane.xlu0 %763  ;;  %v767_v2 = vpop.xlane.xlu1 %766 }
 0x212   : > { %v800_v57 = vsub.f32 %v2215_v38, %v764_v53  ;;  %1920 = vpow2.f32 %v817_v17  ;;  %v801_v1 = vsub.f32 %v2205_v35, %v767_v2 }
 0x213   : > { %1922 = vpow2.f32 %v815_v58 }
 0x214   : > { %v821_v62 = vmul.f32 1.442695, %v800_v57  ;;  %v823_v38 = vmul.f32 1.442695, %v801_v1 }
 0x215   : > { %v770_v18 = vpop.xlane.xlu0 %769 }
 0x216   : > { %v802_v61 = vsub.f32 %v2222_v41, %v770_v18  ;;  %1924 = vpow2.f32 %v821_v62  ;;  %v2291_v3 = vpop.eup %1916 }
 0x217   : > { %1926 = vpow2.f32 %v819_v6  ;;  %v2293_v5 = vpop.eup %1918  ;;  %v846_v34 = vsel %vm279_vm1, %v2291_v3, 0.0 }
 0x218   : > { %v825_v63 = vmul.f32 1.442695, %v802_v61  ;;  %v843_v41 = vsel %vm279_vm1, %v2293_v5, 0.0 }
 0x21a   : > { %1928 = vpow2.f32 %v825_v63 }
 0x21b   : > { %1930 = vpow2.f32 %v823_v38 }
 0x21c   : > { %v2297_v10 = vpop.eup %1920 }
 0x21d   : > { %v2301_v35 = vpop.eup %1922  ;;  %v852_v14 = vsel %vm279_vm1, %v2297_v10, 0.0 }
 0x21e   : > { %v849_v16 = vsel %vm279_vm1, %v2301_v35, 0.0 }
 0x220   : > { %v2305_v15 = vpop.eup %1924 }
 0x221   : > { %v2309_v19 = vpop.eup %1926  ;;  %v858_v23 = vsel %vm279_vm1, %v2305_v15, 0.0 }
 0x222   : > { %v855_v51 = vsel %vm279_vm1, %v2309_v19, 0.0 }
 0x224   : > { %v2313_v25 = vpop.eup %1928 }
 0x225   : > { %v2317_v52 = vpop.eup %1930  ;;  %v864_v27 = vsel %vm279_vm1, %v2313_v25, 0.0 }
 0x226   : > { %v861_v59 = vsel %vm279_vm1, %v2317_v52, 0.0 }
 0x228   : > { %847 = vadd.xlane.f32.xlu0 %v846_v34 }
 0x22a   : > { %844 = vadd.xlane.f32.xlu1 %v843_v41 }
 0x22c   : > { %853 = vadd.xlane.f32.xlu0 %v852_v14 }
 0x22e   : > { %850 = vadd.xlane.f32.xlu1 %v849_v16 }
 0x230   : > { %859 = vadd.xlane.f32.xlu0 %v858_v23 }
 0x232   : > { %856 = vadd.xlane.f32.xlu1 %v855_v51 }
 0x234   : > { %865 = vadd.xlane.f32.xlu0 %v864_v27 }
 0x236   : > { %862 = vadd.xlane.f32.xlu1 %v861_v59 }
 0x26e   : > { %v773_v28 = vpop.xlane.xlu1 %772 }
 0x26f   : > { %v803_v29 = vsub.f32 %v2234_v7, %v773_v28 }
 0x270   : > { %v776_v30 = vpop.xlane.xlu0 %775 }
 0x271   : > { %v827_v32 = vmul.f32 1.442695, %v803_v29  ;;  %v804_v33 = vsub.f32 %v2242_v13, %v776_v30 }
 0x272   : > { %v779_v37 = vpop.xlane.xlu1 %778 }
 0x273   : > { %1932 = vpow2.f32 %v827_v32  ;;  %v829_v39 = vmul.f32 1.442695, %v804_v33  ;;  %v805_v40 = vsub.f32 %v2237_v8, %v779_v37 }
 0x274   : > { %v782_v42 = vpop.xlane.xlu0 %781 }
 0x275   : > { %1934 = vpow2.f32 %v829_v39  ;;  %v831_v43 = vmul.f32 1.442695, %v805_v40  ;;  %v806_v46 = vsub.f32 %v2247_v26, %v782_v42 }
 0x276   : > { %v785_v20 = vpop.xlane.xlu1 %784 }
 0x277   : > { %1936 = vpow2.f32 %v831_v43  ;;  %v833_v48 = vmul.f32 1.442695, %v806_v46  ;;  %v807_v22 = vsub.f32 %v2254_v0, %v785_v20 }
 0x278   : > { %v788_v7 = vpop.xlane.xlu0 %787 }
 0x279   : > { %1938 = vpow2.f32 %v833_v48  ;;  %v835_v31 = vmul.f32 1.442695, %v807_v22  ;;  %v808_v13 = vsub.f32 %v2259_v45, %v788_v7 }
 0x27a   : > { %v791_v36 = vpop.xlane.xlu1 %790 }
 0x27b   : > { %1940 = vpow2.f32 %v835_v31  ;;  %v837_v49 = vmul.f32 1.442695, %v808_v13  ;;  %v809_v8 = vsub.f32 %v2262_v44, %v791_v36 }
 0x27c   : > { %v794_v50 = vpop.xlane.xlu0 %793 }
 0x27d   : > { %v2330_v11 = vpop.eup %1932  ;;  %1942 = vpow2.f32 %v837_v49  ;;  %v839_v26 = vmul.f32 1.442695, %v809_v8  ;;  %v810_v53 = vsub.f32 %v2267_v47, %v794_v50 }
 0x27e   : > { %v867_v0 = vsel %vm279_vm1, %v2330_v11, 0.0  ;;  %v1026_v6 = vpop.permute.xlu1 %1025 }
 0x27f   : > { %v2335_v54 = vpop.eup %1934  ;;  %1944 = vpow2.f32 %v839_v26  ;;  %v841_v12 = vmul.f32 1.442695, %v810_v53  ;;  %868 = vadd.xlane.f32.xlu1 %v867_v0 }
 0x280   : > { %v979_v45 = vpop.permute.xlu0 %978  ;;  %v870_v55 = vsel %vm279_vm1, %v2335_v54, 0.0 }
 0x281   : > { %v2339_v44 = vpop.eup %1936  ;;  %1946 = vpow2.f32 %v841_v12  ;;  %871 = vadd.xlane.f32.xlu0 %v870_v55  ;;  %1808 = vmatpush3.bf16.msra.mxu1 %v979_v45 }
 0x282   : > { %v873_v47 = vsel %vm279_vm1, %v2339_v44, 0.0  ;;  %1819 = vmatprep.subr.bf16.mxu1 %v2005_v4  ;;  %v1073_v1 = vpop.permute.xlu1 %1072 }
 0x283   : > { %v2344_v9 = vpop.eup %1938  ;;  %874 = vadd.xlane.f32.xlu1 %v873_v47 }
 0x284   : > { %v876_v56 = vsel %vm279_vm1, %v2344_v9, 0.0  ;;  %v1120_v63 = vpop.permute.xlu0 %1119 }
 0x285   : > { %v2348_v17 = vpop.eup %1940  ;;  %877 = vadd.xlane.f32.xlu0 %v876_v56 }
 0x286   : > { %v879_v57 = vsel %vm279_vm1, %v2348_v17, 0.0  ;;  %v1167_v38 = vpop.permute.xlu1 %1166 }
 0x287   : > { %v2352_v18 = vpop.eup %1942  ;;  %880 = vadd.xlane.f32.xlu1 %v879_v57 }
 0x288   : > { %v882_v58 = vsel %vm279_vm1, %v2352_v18, 0.0 }
 0x289   : > { %v2356_v60 = vpop.eup %1944  ;;  %883 = vadd.xlane.f32.xlu0 %v882_v58 }
 0x28a   : > { %v885_v2 = vsel %vm279_vm1, %v2356_v60, 0.0 }
 0x28b   : > { %v2360_v62 = vpop.eup %1946  ;;  %886 = vadd.xlane.f32.xlu1 %v885_v2 }
 0x28c   : > { %v888_v61 = vsel %vm279_vm1, %v2360_v62, 0.0 }
 0x28d   : > { %889 = vadd.xlane.f32.xlu0 %v888_v61 }
 0x29c   : > { %1260 = vrot.lane.b32.xlu1 %v2088_v24, %s2008_s22 }
 0x2a3   : > { %1213 = vrot.lane.b32.xlu0 %v2084_v21, %s2008_s22 }
 0x2b5   : > { %v848_v34 = vpop.xlane.xlu0 %847 }
 0x2b6   : > { %1948 = vrcp.f32 %v848_v34 }
 0x2b7   : > { %v845_v41 = vpop.xlane.xlu1 %844 }
 0x2b8   : > { %1950 = vrcp.f32 %v845_v41 }
 0x2b9   : > { %v854_v14 = vpop.xlane.xlu0 %853 }
 0x2ba   : > { %1952 = vrcp.f32 %v854_v14 }
 0x2bb   : > { %v851_v16 = vpop.xlane.xlu1 %850 }
 0x2bc   : > { %1954 = vrcp.f32 %v851_v16 }
 0x2bd   : > { %v860_v23 = vpop.xlane.xlu0 %859 }
 0x2be   : > { %1956 = vrcp.f32 %v860_v23 }
 0x2bf   : > { %v857_v51 = vpop.xlane.xlu1 %856 }
 0x2c0   : > { %v1949_v27 = vpop.eup %1948  ;;  %1958 = vrcp.f32 %v857_v51 }
 0x2c1   : > { %v866_v24 = vpop.xlane.xlu0 %865  ;;  %v908_v21 = vmul.f32 %v1949_v27, %v2291_v3 }
 0x2c2   : > { %v1951_v59 = vpop.eup %1950  ;;  %1960 = vrcp.f32 %v866_v24 }
 0x2c3   : > { %v907_v28 = vmul.f32 %v1951_v59, %v2293_v5  ;;  %v863_v29 = vpop.xlane.xlu1 %862 }
 0x2c4   : > { %v1953_v30 = vpop.eup %1952  ;;  %1962 = vrcp.f32 %v863_v29 }
 0x2c5   : > { %v923_v32 = vpack.c.bf16 %v908_v21, %v907_v28  ;;  %v910_v37 = vmul.f32 %v1953_v30, %v2297_v10 }
 0x2c6   : > { %v1955_v33 = vpop.eup %1954 }
 0x2c7   : > { %v909_v39 = vmul.f32 %v1955_v33, %v2301_v35  ;;  %1804 = vmatmul.mubr.msk.bf16.vlgmr.msra.gmra.mrb[16].mxu0 %vm279_vm1, %v923_v32 }
 0x2c8   : > { %v1957_v40 = vpop.eup %1956  ;;  %1814 = vmatpush3.bf16.msra.mxu0 %v1026_v6  ;;  %1815 = vmatprep.mubr.msk.bf16.mxu0 %vm2006_vm0, %v2005_v4 }
 0x2c9   : > { %v924_v42 = vpack.c.bf16 %v910_v37, %v909_v39  ;;  %1825 = vmatprep.subr.bf16.mxu0 %v2005_v4  ;;  %v912_v5 = vmul.f32 %v1957_v40, %v2305_v15 }
 0x2ca   : > { %v1959_v3 = vpop.eup %1958 }
 0x2cb   : > { %v911_v43 = vmul.f32 %v1959_v3, %v2309_v19  ;;  %1810 = vmatmul.mubr.msk.bf16.vlgmr.msra.gmra.mrb[16].mxu1 %vm279_vm1, %v924_v42 }
 0x2cc   : > { %v1961_v10 = vpop.eup %1960  ;;  %1820 = vmatpush3.bf16.msra.mxu1 %v1073_v1  ;;  %1821 = vmatprep.mubr.msk.bf16.mxu1 %vm2006_vm0, %v2005_v4 }
 0x2cd   : > { %v925_v35 = vpack.c.bf16 %v912_v5, %v911_v43  ;;  %1831 = vmatprep.subr.bf16.mxu1 %v2005_v4  ;;  %v914_v20 = vmul.f32 %v1961_v10, %v2313_v25 }
 0x2ce   : > { %v1963_v46 = vpop.eup %1962 }
 0x2cf   : > { %v913_v48 = vmul.f32 %v1963_v46, %v2317_v52  ;;  %1816 = vmatmul.mubr.msk.bf16.vlgmr.msra.gmra.mrb[20].mxu0 %vm279_vm1, %v925_v35 }
 0x2d0   : > { %1826 = vmatpush3.bf16.msra.mxu0 %v1120_v63  ;;  %1827 = vmatprep.mubr.msk.bf16.mxu0 %vm2006_vm0, %v2005_v4 }
 0x2d1   : > { %v926_v15 = vpack.c.bf16 %v914_v20, %v913_v48  ;;  %1837 = vmatprep.subr.bf16.mxu0 %v2005_v4 }
 0x2d3   : > { %1822 = vmatmul.mubr.msk.bf16.vlgmr.msra.gmra.mrb[20].mxu1 %vm279_vm1, %v926_v15 }
 0x2d4   : > { %1832 = vmatpush3.bf16.msra.mxu1 %v1167_v38  ;;  %1833 = vmatprep.mubr.msk.bf16.mxu1 %vm2006_vm0, %v2005_v4 }
 0x2d5   : > { %1843 = vmatprep.subr.bf16.mxu1 %v2005_v4 }
 0x30c   : > { %v869_v19 = vpop.xlane.xlu1 %868 }
 0x30d   : > { %1964 = vrcp.f32 %v869_v19 }
 0x30e   : > { %v872_v25 = vpop.xlane.xlu0 %871 }
 0x30f   : > { %1966 = vrcp.f32 %v872_v25  ;;  %v2010_v25 = vmov 1983009808  }
 0x310   : > { %v875_v52 = vpop.xlane.xlu1 %874 }
 0x311   : > { %1968 = vrcp.f32 %v875_v52  ;;  %v1350_v52 = vunpack.c.l.s4 %v2010_v25 }
 0x312   : > { %v878_v22 = vpop.xlane.xlu0 %877 }
 0x313   : > { %1970 = vrcp.f32 %v878_v22  ;;  %v1352_v22 = vlaneseq }
 0x314   : > { %v881_v7 = vpop.xlane.xlu1 %880 }
 0x315   : > { %1972 = vrcp.f32 %v881_v7 }
 0x316   : > { %v884_v31 = vpop.xlane.xlu0 %883 }
 0x317   : > { %v1965_v13 = vpop.eup %1964  ;;  %1974 = vrcp.f32 %v884_v31 }
 0x318   : > { %v887_v36 = vpop.xlane.xlu1 %886  ;;  %v915_v8 = vmul.f32 %v1965_v13, %v2330_v11  ;;  %v2011_v13 = vmov 1934713408  }
 0x319   : > { %v1967_v49 = vpop.eup %1966  ;;  %1976 = vrcp.f32 %v887_v36  ;;  %v1382_v36 = vunpack.c.l.s4 %v2011_v13 }
 0x31a   : > { %v916_v50 = vmul.f32 %v1967_v49, %v2335_v54  ;;  %v890_v26 = vpop.xlane.xlu0 %889  ;;  %v1351_v49 = vunpack.c.0.s8 %v1350_v52 }
 0x31b   : > { %v1969_v53 = vpop.eup %1968  ;;  %1978 = vrcp.f32 %v890_v26 }
 0x31c   : > { %v927_v0 = vpack.c.bf16 %v916_v50, %v915_v8  ;;  %v917_v45 = vmul.f32 %v1969_v53, %v2339_v44  ;;  %v1261_v2 = vpop.permute.xlu1 %1260  ;;  %v1353_v8 = vshrl.u32 %v1352_v22, 7 }
 0x31d   : > { %v1971_v12 = vpop.eup %1970 }
 0x31e   : > { %v918_v55 = vmul.f32 %v1971_v12, %v2344_v9  ;;  %1828 = vmatmul.mubr.msk.bf16.vlgmr.msra.gmra.mrb[24].mxu0 %vm279_vm1, %v927_v0  ;;  %v1214_v47 = vpop.permute.xlu0 %1213 }
 0x31f   : > { %v1973_v56 = vpop.eup %1972  ;;  %1838 = vmatpush3.bf16.msra.mxu0 %v1214_v47  ;;  %1839 = vmatprep.mubr.msk.bf16.mxu0 %vm2006_vm0, %v2005_v4 }
 0x320   : > { %v928_v11 = vpack.c.bf16 %v918_v55, %v917_v45  ;;  %v919_v54 = vmul.f32 %v1973_v56, %v2348_v17  ;;  %v1383_v55 = vunpack.c.0.s8 %v1382_v36  ;;  %v2413_v56 = vsub.s32 %v1351_v49, %v1353_v8 }
 0x321   : > { %v1975_v57 = vpop.eup %1974 }
 0x322   : > { %v920_v58 = vmul.f32 %v1975_v57, %v2352_v18  ;;  %1834 = vmatmul.mubr.msk.bf16.vlgmr.msra.gmra.mrb[24].mxu1 %vm279_vm1, %v928_v11 }
 0x323   : > { %v1977_v44 = vpop.eup %1976  ;;  %1844 = vmatpush3.bf16.msra.mxu1 %v1261_v2  ;;  %1845 = vmatprep.mubr.msk.bf16.mxu1 %vm2006_vm0, %v2005_v4 }
 0x324   : > { %v929_v9 = vpack.c.bf16 %v920_v58, %v919_v54  ;;  %v921_v6 = vmul.f32 %v1977_v44, %v2356_v60 }
 0x325   : > { %v1979_v61 = vpop.eup %1978 }
 0x326   : > { %v922_v1 = vmul.f32 %v1979_v61, %v2360_v62  ;;  %1840 = vmatmul.mubr.msk.bf16.vlgmr.msra.gmra.mrb[28].mxu0 %vm279_vm1, %v929_v9 }
 0x328   : > { %v930_v63 = vpack.c.bf16 %v922_v1, %v921_v6  ;;  %v1386_v1 = vsub.s32 %v1383_v55, %v1353_v8 }
 0x32a   : > { %1846 = vmatmul.mubr.msk.bf16.vlgmr.msra.gmra.mrb[28].mxu1 %vm279_vm1, %v930_v63 }
 0x39a   : > { %v971_v17 = vpop.f32.mrb[16].mxu0 }
 0x39b   : > { %v1805_v18 = vpop.f32.mrb[17].mxu0 }
 0x39c   : > { %v974_v38 = vpop.f32.mrb[18].mxu0 }
 0x39d   : > { %v1806_v34 = vpop.f32.mrb[19].mxu0 }
 0x39e   : > { %v1018_v41 = vpop.f32.mrb[16].mxu1 }
 0x39f   : > { %v1811_v14 = vpop.f32.mrb[17].mxu1 }
 0x3a0   : > { %v2408_v16 = vpop.f32.mrb[18].mxu1 }
 0x3a1   : > { %v1812_v23 = vpop.f32.mrb[19].mxu1 }
 0x3a2   : > { %v1065_v51 = vpop.f32.mrb[20].mxu0 }
 0x3a3   : > { %v1817_v27 = vpop.f32.mrb[21].mxu0 }
 0x3a4   : > { %v1068_v24 = vpop.f32.mrb[22].mxu0 }
 0x3a5   : > { %v1818_v60 = vpop.f32.mrb[23].mxu0 }
 0x3a6   : > { %v1112_v59 = vpop.f32.mrb[20].mxu1 }
 0x3a7   : > { %v1823_v62 = vpop.f32.mrb[21].mxu1 }
 0x3a8   : > { %v1115_v21 = vpop.f32.mrb[22].mxu1 }
 0x3a9   : > { %v1824_v28 = vpop.f32.mrb[23].mxu1 }
 0x3f1   : > { %v1159_v29 = vpop.f32.mrb[24].mxu0 }
 0x3f2   : > { %1315 = vrot.lane.b32.xlu0 %v1159_v29, %s2009_s26  ;;  %v1829_v30 = vpop.f32.mrb[25].mxu0 }
 0x3f3   : > { %v1162_v32 = vpop.f32.mrb[26].mxu0 }
 0x3f4   : > { %1317 = vrot.lane.b32.xlu1 %v1162_v32, %s2009_s26  ;;  %v1830_v33 = vpop.f32.mrb[27].mxu0 }
 0x3f5   : > { %v1206_v37 = vpop.f32.mrb[24].mxu1 }
 0x3f6   : > { %1319 = vrot.lane.b32.xlu0 %v1206_v37, %s2009_s26  ;;  %v1835_v39 = vpop.f32.mrb[25].mxu1 }
 0x3f7   : > { %v1209_v40 = vpop.f32.mrb[26].mxu1 }
 0x3f8   : > { %1321 = vrot.lane.b32.xlu1 %v1209_v40, %s2009_s26  ;;  %v1836_v42 = vpop.f32.mrb[27].mxu1 }
 0x3f9   : > { %v1253_v3 = vpop.f32.mrb[28].mxu0 }
 0x3fa   : > { %1323 = vrot.lane.b32.xlu0 %v1253_v3, %s2009_s26  ;;  %v1841_v5 = vpop.f32.mrb[29].mxu0 }
 0x3fb   : > { %v1256_v43 = vpop.f32.mrb[30].mxu0 }
 0x3fc   : > { %1325 = vrot.lane.b32.xlu1 %v1256_v43, %s2009_s26  ;;  %v1842_v10 = vpop.f32.mrb[31].mxu0 }
 0x3fd   : > { %v1300_v35 = vpop.f32.mrb[28].mxu1 }
 0x3fe   : > { %v1847_v46 = vpop.f32.mrb[29].mxu1  ;;  %1327 = vrot.lane.b32.xlu0 %v1300_v35, %s2009_s26 }
 0x3ff   : > { %v1303_v20 = vpop.f32.mrb[30].mxu1 }
 0x400   : > { %v1848_v48 = vpop.f32.mrb[31].mxu1  ;;  %1329 = vrot.lane.b32.xlu1 %v1303_v20, %s2009_s26 }
 0x464   : > { %v1316_v15 = vpop.permute.xlu0 %1315 }
 0x465   : > { %v1339_v26 = vsel %vm279_vm1, %v971_v17, %v1316_v15 }
 0x466   : > { %v1318_v19 = vpop.permute.xlu1 %1317 }
 0x467   : > { %v1340_v47 = vsel %vm279_vm1, %v974_v38, %v1318_v19 }
 0x468   : > { %v1320_v7 = vpop.permute.xlu0 %1319 }
 0x469   : > { %v1341_v2 = vsel %vm279_vm1, %v1018_v41, %v1320_v7 }
 0x46a   : > { %v1322_v31 = vpop.permute.xlu1 %1321 }
 0x46b   : > { %v1342_v63 = vsel %vm279_vm1, %v2408_v16, %v1322_v31 }
 0x46c   : > { %v1324_v50 = vpop.permute.xlu0 %1323 }
 0x46d   : > { %v1343_v53 = vsel %vm279_vm1, %v1065_v51, %v1324_v50 }
 0x46e   : > { %v1347_v0 = vcombine.low %v1339_v26, %v1343_v53  ;;  %v1348_v12 = vcombine.high %v1339_v26, %v1343_v53  ;;  %v1326_v45 = vpop.permute.xlu1 %1325 }
 0x46f   : > { %v1344_v11 = vsel %vm279_vm1, %v1068_v24, %v1326_v45 }
 0x470   : > { %v1415_v57 = vcombine.low %v1340_v47, %v1344_v11  ;;  %v1416_v54 = vcombine.high %v1340_v47, %v1344_v11  ;;  %v1328_v58 = vpop.permute.xlu0 %1327  ;;  %v1355_v17 = vrot.slane %v1347_v0, %v2413_v56  ;;  %v1362_v18 = vrot.slane %v1348_v12, %v2413_v56 }
 0x471   : > { %v1345_v44 = vsel %vm279_vm1, %v1112_v59, %v1328_v58 }
 0x472   : > { %v1363_v9 = vcombine.low %v1341_v2, %v1345_v44  ;;  %v1364_v61 = vcombine.high %v1341_v2, %v1345_v44  ;;  %v1330_v6 = vpop.permute.xlu1 %1329  ;;  %v1423_v59 = vrot.slane %v1415_v57, %v2413_v56  ;;  %v1430_v16 = vrot.slane %v1416_v54, %v2413_v56 }
 0x473   : > { %v1346_v38 = vsel %vm279_vm1, %v1115_v21, %v1330_v6 }
 0x474   : > { %v1371_v34 = vrot.slane %v1363_v9, %v2413_v56  ;;  %v1378_v14 = vrot.slane %v1364_v61, %v2413_v56  ;;  %v1431_v41 = vcombine.low %v1342_v63, %v1346_v38  ;;  %v1432_v23 = vcombine.high %v1342_v63, %v1346_v38 }
 0x476   : > { %v1379_v51 = vcombine.low %v1355_v17, %v1371_v34  ;;  %v1380_v27 = vcombine.high %v1355_v17, %v1371_v34  ;;  %v1395_v24 = vcombine.low %v1362_v18, %v1378_v14  ;;  %v1396_v60 = vcombine.high %v1362_v18, %v1378_v14 }
 0x477   : > { %v1439_v62 = vrot.slane %v1431_v41, %v2413_v56  ;;  %v1446_v28 = vrot.slane %v1432_v23, %v2413_v56 }
 0x478   : > { %v1394_v29 = vrot.slane %v1380_v27, %v1386_v1  ;;  %v1410_v21 = vrot.slane %v1396_v60, %v1386_v1  ;;  %v1387_v30 = vrot.slane %v1379_v51, %v1386_v1  ;;  %v1403_v32 = vrot.slane %v1395_v24, %v1386_v1 }
 0x479   : > { %v1447_v33 = vcombine.low %v1423_v59, %v1439_v62  ;;  %v1448_v37 = vcombine.high %v1423_v59, %v1439_v62  ;;  %v1463_v39 = vcombine.low %v1430_v16, %v1446_v28  ;;  %v1464_v40 = vcombine.high %v1430_v16, %v1446_v28 }
 0x47a   : > { %v1882_v42 = vpack.i.bf16 %v1410_v21, %v1394_v29  ;;  %v1411_v3 = vcombine.high %v1387_v30, %v2005_v4  ;;  %v1413_v5 = vcombine.high %v1403_v32, %v2005_v4  ;;  %v1412_v43 = vcombine.high %v1394_v29, %v2005_v4 }
 0x47b   : > { %v1462_v10 = vrot.slane %v1448_v37, %v1386_v1  ;;  %v1478_v35 = vrot.slane %v1464_v40, %v1386_v1  ;;  %v1455_v46 = vrot.slane %v1447_v33, %v1386_v1  ;;  %v1471_v20 = vrot.slane %v1463_v39, %v1386_v1 }
 0x47c   : > { %1883 = vrot.lane.b32.xlu0 %v1882_v42, %s2008_s22  ;;  %v1414_v48 = vcombine.high %v1410_v21, %v2005_v4  ;;  %v1887_v22 = vpack.i.bf16 %v1413_v5, %v1411_v3 }
 0x47d   : > { %v1892_v15 = vpack.i.bf16 %v1478_v35, %v1462_v10  ;;  %v1479_v19 = vcombine.high %v1455_v46, %v2005_v4  ;;  %v1481_v25 = vcombine.high %v1471_v20, %v2005_v4  ;;  %v1480_v52 = vcombine.high %v1462_v10, %v2005_v4 }
 0x47e   : > { %v1902_v7 = vpack.i.bf16 %v1414_v48, %v1412_v43  ;;  %v1482_v31 = vcombine.high %v1478_v35, %v2005_v4 }
 0x47f   : > { %1893 = vrot.lane.b32.xlu1 %v1892_v15, %s2008_s22  ;;  %v1897_v36 = vpack.i.bf16 %v1481_v25, %v1479_v19 }
 0x480   : > { %1888 = vrot.lane.b32.xlu0 %v1887_v22, %s2012_s27  ;;  %v1907_v13 = vpack.i.bf16 %v1482_v31, %v1480_v52 }
 0x483   : > { %1898 = vrot.lane.b32.xlu1 %v1897_v36, %s2012_s27 }
 0x484   : > { %1903 = vrot.lane.b32.xlu0 %v1902_v7, %s2007_s21 }
 0x487   : > { %1908 = vrot.lane.b32.xlu1 %v1907_v13, %s2007_s21  ;;  %s1720_s21 = sshll.u32 %s2477_s12, 3 }
 0x488   : > { %s236_s29 = scalar_lea.vmem %s2471_s3, %s1720_s21 }
 0x4ee   : > { %v1884_v49 = vpop.permute.xlu0 %1883 }
 0x4ef   : > { %v1886_v45 = vunpack.i.h.bf16 %v1884_v49  ;;  %v1885_v55 = vunpack.i.l.bf16 %v1884_v49 }
 0x4f1   : > { %v1894_v8 = vpop.permute.xlu1 %1893 }
 0x4f2   : > { %v1889_v50 = vpop.permute.xlu0 %1888  ;;  %v1896_v6 = vunpack.i.h.bf16 %v1894_v8  ;;  %v1895_v1 = vunpack.i.l.bf16 %v1894_v8 }
 0x4f3   : > { %v1891_v26 = vunpack.i.h.bf16 %v1889_v50  ;;  %v1890_v53 = vunpack.i.l.bf16 %v1889_v50 }
 0x4f5   : > { %v1537_v0 = vsel %vm1531_vm2, %v1403_v32, %v1891_v26  ;;  %v1532_v4 = vsel %vm1531_vm2, %v1387_v30, %v1890_v53  ;;  %v1899_v12 = vpop.permute.xlu1 %1898 }
 0x4f6   : > { %v1901_v47 = vunpack.i.h.bf16 %v1899_v12  ;;  %v1900_v11 = vunpack.i.l.bf16 %v1899_v12  ;;  %v1904_v57 = vpop.permute.xlu0 %1903  ;;  %v1534_v9 = vsel %vm1533_vm3, %v1532_v4, %v1885_v55  ;;  %v1538_v61 = vsel %vm1533_vm3, %v1537_v0, %v1886_v45 }
 0x4f7   : > { %v1906_v54 = vunpack.i.h.bf16 %v1904_v57  ;;  %v1905_v58 = vunpack.i.l.bf16 %v1904_v57 }
 0x4f8   : > { %v1543_v2 = vsel %vm1531_vm2, %v1471_v20, %v1901_v47  ;;  %v1540_v44 = vsel %vm1531_vm2, %v1455_v46, %v1900_v11 }
 0x4f9   : > { %v1536_v63 = vsel %vm1535_vm4, %v1534_v9, %v1905_v58  ;;  %v1539_v17 = vsel %vm1535_vm4, %v1538_v61, %v1906_v54  ;;  %v1909_v18 = vpop.permute.xlu1 %1908  ;;  %v1541_v41 = vsel %vm1533_vm3, %v1540_v44, %v1895_v1  ;;  %v1544_v23 = vsel %vm1533_vm3, %v1543_v2, %v1896_v6 }
 0x4fa   : > { %v1911_v38 = vunpack.i.h.bf16 %v1909_v18  ;;  %v1910_v34 = vunpack.i.l.bf16 %v1909_v18  ;;  %v1715_v14 = vpack.c.bf16 %v1539_v17, %v1536_v63 }
 0x4fc   : > { %v1542_v51 = vsel %vm1535_vm4, %v1541_v41, %v1910_v34  ;;  %v1545_v27 = vsel %vm1535_vm4, %v1544_v23, %v1911_v38  ;;  %v1562_v60 = vrot.slane %v1715_v14, %v2413_v56 }
 0x4fd   : > { %v1716_v24 = vpack.c.bf16 %v1545_v27, %v1542_v51 }
 0x4ff   : > { %v1569_v59 = vrot.slane %v1716_v24, %v2413_v56 }
 0x501   : > { %v1570_v16 = vcombine.low %v1562_v60, %v1569_v59 }
 0x503   : > { %1572 = vst [vmem:[%s236_s29] sm:$0xff] %v1570_v16 }
 0x504 PF: > { %s13_s14 = sadd.s32 1, %s2002_s14   ;;  %s2472_s12 = smov %s1998_s13 }
 0x505   : > { %p10_p5 = scmp.ge.s32.totalorder %s13_s14, 4   ;;  %s2473_s13 = smov %s2475_s15 }
 0x507   :  { %12 = sbr.rel (!%p10_p5) target bundleno = 2 (0x2), region = 65 }

// kernel: _lambda_.52
= control target key start
LH: loop header
LB: loop body
LE: loop exit
PB: predicated region body
PF: predicated region fallthrough
CT: control target
= control target key end

     0   :  { %s275_s1 = inlined_call_operand.vmem [shape: bf16[128,128], index: 1, kind: input, shape index: {}]   ;;  %s276_s0 = inlined_call_operand.vmem [shape: bf16[32,128], index: 0, kind: input, shape index: {}]   ;;  %s277_s2 = inlined_call_operand.vmem [shape: f32[1,128], index: 2, kind: input, shape index: {}]   ;;  %s278_s3 = inlined_call_operand.vmem [shape: f32[32,128], index: 3, kind: output, shape index: {}]  }
   0x1   :  { %v200_v0 = vld [vmem:[%s275_s1] sm:$0xff]   ;;  %v201_v1 = vld [vmem:[%s275_s1 + $0x8] sm:$0xff]   ;;  %v202_v2 = vld [vmem:[%s275_s1 + $0x10] sm:$0xff]  }
   0x2   :  { %180 = vmatprep.subr.bf16.mxu0 %v200_v0  ;;  %v203_v3 = vld [vmem:[%s275_s1 + $0x18] sm:$0xff]   ;;  %v208_v4 = vld [vmem:[%s276_s0] sm:$0xff]   ;;  %v205_v6 = vld [vmem:[%s275_s1 + $0x28] sm:$0xff]  }
   0x3   :  { %181 = vmatpush3.bf16.msra.mxu0 %v200_v0  ;;  %196 = vmatprep.mubr.bf16.mxu0 %v208_v4  ;;  %v204_v5 = vld [vmem:[%s275_s1 + $0x20] sm:$0xff]   ;;  %v206_v7 = vld [vmem:[%s275_s1 + $0x30] sm:$0xff]   ;;  %v207_v8 = vld [vmem:[%s275_s1 + $0x38] sm:$0xff]  }
   0x4   :  { %182 = vmatprep.subr.bf16.mxu0 %v201_v1  ;;  %v209_v9 = vld [vmem:[%s276_s0 + $0x8] sm:$0xff]   ;;  %v159_v10 = vld [vmem:[%s277_s2] ss:$0 sm:$0xff] }
   0x7   :  { %183 = vmatpush3.bf16.msra.mxu0 %v201_v1 }
   0x8   :  { %184 = vmatprep.subr.bf16.mxu0 %v202_v2 }
   0xb   :  { %185 = vmatpush3.bf16.msra.mxu0 %v202_v2 }
   0xc   :  { %186 = vmatprep.subr.bf16.mxu0 %v203_v3 }
   0xf   :  { %187 = vmatpush3.bf16.msra.mxu0 %v203_v3 }
  0x10   :  { %188 = vmatprep.subr.bf16.mxu0 %v204_v5 }
  0x13   :  { %189 = vmatpush3.bf16.msra.mxu0 %v204_v5 }
  0x14   :  { %190 = vmatprep.subr.bf16.mxu0 %v205_v6 }
  0x17   :  { %191 = vmatpush3.bf16.msra.mxu0 %v205_v6 }
  0x18   :  { %192 = vmatprep.subr.bf16.mxu0 %v206_v7 }
  0x1b   :  { %193 = vmatpush3.bf16.msra.mxu0 %v206_v7 }
  0x1c   :  { %194 = vmatprep.subr.bf16.mxu0 %v207_v8 }
  0x1f   :  { %195 = vmatpush3.bf16.msra.mxu0 %v207_v8 }
  0x22   :  { %197 = vmatmul.mubr.bf16.vlgmr.msra.gmra.mrb[0].mxu0 %v209_v9 }
  0xf5   :  { %v198_v11 = vpop.f32.mrb[0].mxu0 }
  0xf6   :  { %v145_v12 = vadd.f32 %v198_v11, %v159_v10  ;;  %v136_v13 = vpop.f32.mrb[1].mxu0 }
  0xf7   :  { %v137_v14 = vadd.f32 %v159_v10, %v136_v13  ;;  %v199_v15 = vpop.f32.mrb[2].mxu0 }
  0xf8   :  { %153 = vst [vmem:[%s278_s3 + $0x10] sm:$0xff] %v145_v12  ;;  %v148_v16 = vadd.f32 %v199_v15, %v159_v10  ;;  %v139_v17 = vpop.f32.mrb[3].mxu0 }
  0xf9   :  { %151 = vst [vmem:[%s278_s3] sm:$0xff] %v137_v14  ;;  %v140_v18 = vadd.f32 %v159_v10, %v139_v17 }
  0xfa   :  { %154 = vst [vmem:[%s278_s3 + $0x18] sm:$0xff] %v148_v16 }
  0xfb   :  { %152 = vst [vmem:[%s278_s3 + $0x8] sm:$0xff] %v140_v18 }

// kernel: _lambda_.53
= control target key start
LH: loop header
LB: loop body
LE: loop exit
PB: predicated region body
PF: predicated region fallthrough
CT: control target
= control target key end

     0   :  { %vm18_vm0 = vcmask 523264   ;;  %vm110_vm1 = vcmask 519168   ;;  %s199_s0 = inlined_call_operand.vmem [shape: f32[32,64], index: 0, kind: input, shape index: {}]   ;;  %s200_s1 = inlined_call_operand.vmem [shape: f32[1,64], index: 1, kind: input, shape index: {}]   ;;  %s201_s2 = inlined_call_operand.vmem [shape: f32[1,64], index: 2, kind: input, shape index: {}]   ;;  %s202_s3 = inlined_call_operand.vmem [shape: bf16[32,64], index: 3, kind: output, shape index: {}]  }
   0x1   :  { %v14_v0 = vld [vmem:[%s199_s0] sm:$0xff]  ;;  %v16_v1 = vld [vmem:[%s199_s0 + $0x10] sm:$0xff]  ;;  %v15_v2 = vld [vmem:[%s199_s0 + $0x8] sm:$0xff] }
   0x2   :  { %v19_v3 = vsel %vm18_vm0, %v14_v0, 0.0  ;;  %v25_v4 = vsel %vm18_vm0, %v16_v1, 0.0  ;;  %v17_v5 = vld [vmem:[%s199_s0 + $0x18] sm:$0xff]  ;;  %v22_v6 = vsel %vm18_vm0, %v15_v2, 0.0  ;;  %v119_v41 = vld [vmem:[%s200_s1] ss:$0 sm:$0xff] }
   0x3   :  { %20 = vadd.xlane.f32.xlu0 %v19_v3  ;;  %26 = vadd.xlane.f32.xlu1 %v25_v4  ;;  %v28_v7 = vsel %vm18_vm0, %v17_v5, 0.0  ;;  %v120_v43 = vld [vmem:[%s201_s2] ss:$0 sm:$0xff] }
   0x7   :  { %23 = vadd.xlane.f32.xlu0 %v22_v6  ;;  %29 = vadd.xlane.f32.xlu1 %v28_v7 }
  0x90   :  { %v21_v8 = vpop.xlane.xlu0 %20  ;;  %v27_v9 = vpop.xlane.xlu1 %26 }
  0x91   :  { %v32_v10 = vmul.f32 0.015625, %v21_v8  ;;  %v34_v11 = vmul.f32 0.015625, %v27_v9 }
  0x93   :  { %v36_v12 = vsub.f32 %v14_v0, %v32_v10  ;;  %v38_v13 = vsub.f32 %v16_v1, %v34_v11 }
  0x94   :  { %v24_v14 = vpop.xlane.xlu0 %23  ;;  %v30_v15 = vpop.xlane.xlu1 %29 }
  0x95   :  { %v33_v16 = vmul.f32 0.015625, %v24_v14  ;;  %v35_v17 = vmul.f32 0.015625, %v30_v15  ;;  %v40_v18 = vmul.f32 %v36_v12, %v36_v12  ;;  %v42_v19 = vmul.f32 %v38_v13, %v38_v13 }
  0x97   :  { %v37_v20 = vsub.f32 %v15_v2, %v33_v16  ;;  %v39_v21 = vsub.f32 %v17_v5, %v35_v17  ;;  %v44_v22 = vsel %vm18_vm0, %v40_v18, 0.0  ;;  %v50_v23 = vsel %vm18_vm0, %v42_v19, 0.0 }
  0x98   :  { %45 = vadd.xlane.f32.xlu0 %v44_v22 }
  0x99   :  { %v41_v24 = vmul.f32 %v37_v20, %v37_v20  ;;  %v43_v25 = vmul.f32 %v39_v21, %v39_v21 }
  0x9b   :  { %v47_v26 = vsel %vm18_vm0, %v41_v24, 0.0  ;;  %v53_v27 = vsel %vm18_vm0, %v43_v25, 0.0 }
  0x9c   :  { %51 = vadd.xlane.f32.xlu0 %v50_v23  ;;  %48 = vadd.xlane.f32.xlu1 %v47_v26 }
  0xa0   :  { %54 = vadd.xlane.f32.xlu1 %v53_v27 }
 0x125   :  { %v46_v28 = vpop.xlane.xlu0 %45 }
 0x126   :  { %v56_v29 = vmul.f32 0.015625, %v46_v28 }
 0x128   :  { %v60_v30 = vadd.f32 1e-05, %v56_v29 }
 0x129   :  { %v49_v31 = vpop.xlane.xlu1 %48  ;;  %v52_v32 = vpop.xlane.xlu0 %51 }
 0x12a   :  { %129 = vrsqrt.f32 %v60_v30  ;;  %v57_v33 = vmul.f32 0.015625, %v49_v31  ;;  %v58_v34 = vmul.f32 0.015625, %v52_v32 }
 0x12c   :  { %v61_v35 = vadd.f32 1e-05, %v57_v33  ;;  %v62_v36 = vadd.f32 1e-05, %v58_v34 }
 0x12d   :  { %v55_v37 = vpop.xlane.xlu1 %54 }
 0x12e   :  { %131 = vrsqrt.f32 %v61_v35  ;;  %v59_v38 = vmul.f32 0.015625, %v55_v37 }
 0x12f   :  { %133 = vrsqrt.f32 %v62_v36 }
 0x130   :  { %v63_v39 = vadd.f32 1e-05, %v59_v38 }
 0x132   :  { %135 = vrsqrt.f32 %v63_v39 }
 0x134   :  { %v130_v40 = vpop.eup %129 }
 0x135   :  { %v68_v42 = vmul.f32 %v130_v40, %v36_v12 }
 0x137   :  { %v79_v44 = vmul.f32 %v119_v41, %v68_v42 }
 0x138   :  { %v132_v45 = vpop.eup %131 }
 0x139   :  { %v134_v46 = vpop.eup %133  ;;  %v90_v47 = vadd.f32 %v120_v43, %v79_v44  ;;  %v69_v48 = vmul.f32 %v132_v45, %v37_v20 }
 0x13a   :  { %v70_v49 = vmul.f32 %v134_v46, %v38_v13 }
 0x13b   :  { %v125_v50 = vpack.c.bf16 %v90_v47, %v90_v47  ;;  %v80_v51 = vmul.f32 %v119_v41, %v69_v48 }
 0x13c   :  { %v136_v52 = vpop.eup %135  ;;  %v81_v53 = vmul.f32 %v119_v41, %v70_v49 }
 0x13d   :  { %111 = vst.msk [vmem:[%s202_s3] sm:$0xf] %vm110_vm1, %v125_v50  ;;  %v91_v54 = vadd.f32 %v120_v43, %v80_v51  ;;  %v71_v55 = vmul.f32 %v136_v52, %v39_v21 }
 0x13e   :  { %v92_v56 = vadd.f32 %v120_v43, %v81_v53 }
 0x13f   :  { %v126_v57 = vpack.c.bf16 %v91_v54, %v91_v54  ;;  %v82_v58 = vmul.f32 %v119_v41, %v71_v55 }
 0x140   :  { %v127_v59 = vpack.c.bf16 %v92_v56, %v92_v56 }
 0x141   :  { %112 = vst.msk [vmem:[%s202_s3 + $0x4] sm:$0xf] %vm110_vm1, %v126_v57  ;;  %v93_v60 = vadd.f32 %v120_v43, %v82_v58 }
 0x142   :  { %113 = vst.msk [vmem:[%s202_s3 + $0x8] sm:$0xf] %vm110_vm1, %v127_v59 }
 0x143   :  { %v128_v61 = vpack.c.bf16 %v93_v60, %v93_v60 }
 0x145   :  { %114 = vst.msk [vmem:[%s202_s3 + $0xc] sm:$0xf] %vm110_vm1, %v128_v61 }

// kernel: _lambda_.54
= control target key start
LH: loop header
LB: loop body
LE: loop exit
PB: predicated region body
PF: predicated region fallthrough
CT: control target
= control target key end

     0   :  { %v224_v1 = vmov 0   ;;  %vm89_vm0 = vcmask 523264   ;;  %v29_v11 = vlaneseq  ;;  %s290_s1 = inlined_call_operand.vmem [shape: bf16[64,256], index: 1, kind: input, shape index: {}]   ;;  %s291_s0 = inlined_call_operand.vmem [shape: bf16[32,64], index: 0, kind: input, shape index: {}]   ;;  %s292_s2 = inlined_call_operand.vmem [shape: f32[1,256], index: 2, kind: input, shape index: {}]   ;;  %s293_s3 = inlined_call_operand.vmem [shape: bf16[32,256], index: 3, kind: output, shape index: {}]  }
   0x1   :  { %v210_v0 = vld [vmem:[%s290_s1 + $0x4] ss:$8 sps:$4 sm:$0xff]   ;;  %128 = vmatprep.mubr.bf16.mxu0 %v224_v1  ;;  %138 = vmatprep.mubr.bf16.mxu1 %v224_v1  ;;  %v212_v2 = vld [vmem:[%s290_s1] ss:$8 sps:$4 sm:$0xff]   ;;  %v213_v3 = vld [vmem:[%s290_s1 + $0x14] ss:$8 sps:$4 sm:$0xff]  }
   0x2   :  { %96 = vmatprep.subr.bf16.mxu0 %v210_v0  ;;  %201 = vmatprep.subr.bf16.mxu1 %v210_v0  ;;  %v215_v4 = vld [vmem:[%s290_s1 + $0x10] ss:$8 sps:$4 sm:$0xff]   ;;  %v216_v5 = vld [vmem:[%s290_s1 + $0x24] ss:$8 sps:$4 sm:$0xff]   ;;  %v218_v6 = vld [vmem:[%s290_s1 + $0x20] ss:$8 sps:$4 sm:$0xff]  }
   0x3   :  { %97 = vmatpush1.bf16.msra.mxu0 %v212_v2  ;;  %205 = vmatpush1.bf16.msra.mxu1 %v212_v2  ;;  %v219_v7 = vld [vmem:[%s290_s1 + $0x34] ss:$8 sps:$4 sm:$0xff]   ;;  %v221_v8 = vld [vmem:[%s290_s1 + $0x30] ss:$8 sps:$4 sm:$0xff]   ;;  %v222_v9 = vld [vmem:[%s291_s0] sm:$0xff]   ;;  %v30_v12 = vshrl.u32 %v29_v11, 7 }
   0x4   :  { %98 = vmatprep.subr.bf16.mxu0 %v213_v3  ;;  %202 = vmatprep.subr.bf16.mxu1 %v213_v3  ;;  %v223_v10 = vld [vmem:[%s291_s0 + $0x8] sm:$0xff]   ;;  %v27_v14 = vld [vmem:[%s292_s2] sm:$0x3] }
   0x5   :  { %v31_v13 = vsub.s32 0, %v30_v12  ;;  %v35_v15 = vsub.s32 1, %v30_v12 }
   0x7   :  { %99 = vmatpush1.bf16.msra.mxu0 %v215_v4  ;;  %206 = vmatpush1.bf16.msra.mxu1 %v215_v4  ;;  %v32_v16 = vrot.slane %v27_v14, %v31_v13  ;;  %v36_v17 = vrot.slane %v27_v14, %v35_v15 }
   0x8   :  { %100 = vmatprep.subr.bf16.mxu0 %v216_v5  ;;  %203 = vmatprep.subr.bf16.mxu1 %v216_v5 }
   0xb   :  { %101 = vmatpush1.bf16.msra.mxu0 %v218_v6  ;;  %207 = vmatpush1.bf16.msra.mxu1 %v218_v6 }
   0xc   :  { %102 = vmatprep.subr.bf16.mxu0 %v219_v7  ;;  %204 = vmatprep.subr.bf16.mxu1 %v219_v7 }
   0xf   :  { %103 = vmatpush1.bf16.msra.mxu0 %v221_v8  ;;  %208 = vmatpush1.bf16.msra.mxu1 %v221_v8 }
  0x12   :  { %191 = vmatmul.mubr.msk.bf16.vlgmr.msra.gmra.mrb[0].mxu0 %vm89_vm0, %v222_v9  ;;  %192 = vmatmul.mubr.msk.bf16.vlgmr.msra.gmra.mrb[0].mxu1 %vm89_vm0, %v223_v10 }
  0xe5   :  { %v130_v18 = vpop.f32.mrb[0].mxu0  ;;  %v140_v19 = vpop.f32.mrb[0].mxu1 }
  0xe6   :  { %v131_v20 = vadd.f32 %v130_v18, %v32_v16  ;;  %v141_v21 = vadd.f32 %v140_v19, %v32_v16  ;;  %v132_v22 = vpop.f32.mrb[1].mxu0  ;;  %v142_v23 = vpop.f32.mrb[1].mxu1 }
  0xe7   :  { %v133_v24 = vadd.f32 %v132_v22, %v36_v17  ;;  %v143_v25 = vadd.f32 %v142_v23, %v36_v17  ;;  %v134_v26 = vpop.f32.mrb[2].mxu0  ;;  %v144_v27 = vpop.f32.mrb[2].mxu1 }
  0xe8   :  { %v135_v28 = vadd.f32 %v134_v26, %v32_v16  ;;  %v145_v29 = vadd.f32 %v144_v27, %v32_v16  ;;  %v136_v30 = vpop.f32.mrb[3].mxu0  ;;  %v146_v31 = vpop.f32.mrb[3].mxu1 }
  0xe9   :  { %v197_v32 = vpack.c.bf16 %v133_v24, %v131_v20  ;;  %v199_v33 = vpack.c.bf16 %v143_v25, %v141_v21  ;;  %v137_v34 = vadd.f32 %v136_v30, %v36_v17  ;;  %v147_v35 = vadd.f32 %v146_v31, %v36_v17 }
  0xeb   :  { %173 = vst [vmem:[%s293_s3] sm:$0xff] %v197_v32  ;;  %175 = vst [vmem:[%s293_s3 + $0x10] sm:$0xff] %v199_v33  ;;  %v198_v36 = vpack.c.bf16 %v137_v34, %v135_v28  ;;  %v200_v37 = vpack.c.bf16 %v147_v35, %v145_v29 }
  0xed   :  { %174 = vst [vmem:[%s293_s3 + $0x8] sm:$0xff] %v198_v36  ;;  %176 = vst [vmem:[%s293_s3 + $0x18] sm:$0xff] %v200_v37 }

// kernel: _lambda_.55
= control target key start
LH: loop header
LB: loop body
LE: loop exit
PB: predicated region body
PF: predicated region fallthrough
CT: control target
= control target key end

     0   :  { %s1312_s9 = smov 0   ;;  %s1314_s10 = smov 0   ;;  %s1529_s0 = inlined_call_operand.vmem [shape: bf16[2,1,16,192], index: 0, kind: input, shape index: {}]   ;;  %s1530_s1 = inlined_call_operand.vmem [shape: f32[4,16,16], index: 1, kind: input, shape index: {}]   ;;  %s1531_s2 = inlined_call_operand.vmem [shape: bf16[2,1,1024], index: 2, kind: output, shape index: {}]  }
   0x1   :  { %s1316_s11 = smov 0  }
   0x2 LB: > { %s24_s12 = sadd.s32 1, %s1279_s10  ;;  %p1081_p0 = scmp.ge.s32.totalorder %s1283_s11, 1  ;;  %s1283_s11 = sphi %s1316_s11, %s12_s11   ;;  %s1279_s10 = sphi %s1314_s10, %s1541_s10   ;;  %s1275_s9 = sphi %s1312_s9, %s1540_s9  }
   0x3   : > { %p26_p1 = scmp.ge.s32.totalorder %s24_s12, 2  ;;  %p132_p2 = scmp.lt.s32.totalorder %s1283_s11, 3 }
   0x5   : > { %s1543_s12 = smov (%p26_p1, %s24_s12), 0  ;;  %p133_p3 = pnand %p1081_p0, %p132_p2 }
   0x6   : > { %p161_p4 = scmp.lt.s32.totalorder (!%p133_p3), %s1275_s9, 1  ;;  %v1285_v1 = vmov (!%p133_p3), 0.0   ;;  %s1286_s17 = smov (!%p133_p3), 96   ;;  %vm1288_vm0 = vmmov (!%p133_p3), 0   ;;  %vm216_vm1 = vcmask (!%p133_p3), 130048   ;;  %v181_v28 = vld [vmem:[%s1530_s1] sm:$0xff] (!%p133_p3) }
   0x7   : > { %136 = sbr.rel (%p133_p3) target bundleno = 1281 (0x501), region = 28  ;;  %1124 = vmatprep.subr.bf16.mxu0 (!%p133_p3), %v1285_v1  ;;  %1130 = vmatprep.subr.bf16.mxu1 (!%p133_p3), %v1285_v1  ;;  %s1287_s18 = smov (!%p133_p3), 112   ;;  %v182_v32 = vld [vmem:[%s1530_s1 + $0x8] sm:$0xff] (!%p133_p3)  ;;  %v183_v41 = vld [vmem:[%s1530_s1 + $0x10] sm:$0xff] (!%p133_p3)  ;;  %v185_v42 = vld [vmem:[%s1530_s1 + $0x20] sm:$0xff] (!%p133_p3)  ;;  %vm746_vm2 = vcmask (!%p133_p3), 261120  }
   0x8   : > { %1126 = vmatprep.mubr.msk.bf16.mxu0 (!%p133_p3), %vm1288_vm0, %v1285_v1  ;;  %1132 = vmatprep.mubr.msk.bf16.mxu1 (!%p133_p3), %vm1288_vm0, %v1285_v1  ;;  %s1289_s19 = smov (!%p133_p3), 80   ;;  %s1290_s20 = smov (!%p133_p3), 64   ;;  %v184_v49 = vld [vmem:[%s1530_s1 + $0x18] sm:$0xff] (!%p133_p3)  ;;  %v186_v59 = vld [vmem:[%s1530_s1 + $0x28] sm:$0xff] (!%p133_p3)  ;;  %v187_v61 = vld [vmem:[%s1530_s1 + $0x30] sm:$0xff] (!%p133_p3)  ;;  %vm749_vm3 = vcmask (!%p133_p3), 392192  }
   0x9   : > { %s1292_s14 = smov (!%p133_p3), 32   ;;  %s1293_s15 = smov (!%p133_p3), 48   ;;  %vm957_vm4 = vcmask (!%p133_p3), 1040384   ;;  %vm958_vm5 = vsmask.f32 (!%p133_p3), 256  ;;  %vm960_vm6 = vcmask (!%p133_p3), 1041409  }
   0xa   : > { %vm961_vm7 = vsmask.f32 (!%p133_p3), 1280  ;;  %vm959_vm8 = vmand (!%p133_p3), %vm957_vm4, %vm958_vm5  ;;  %vm964_vm10 = vcmask (!%p133_p3), 1042434   ;;  %vm965_vm11 = vsmask.f32 (!%p133_p3), 2304  ;;  %vm968_vm14 = vcmask (!%p133_p3), 1043459  }
   0xb   : > { %vm962_vm9 = vmand (!%p133_p3), %vm960_vm6, %vm961_vm7  ;;  %vm969_vm15 = vsmask.f32 (!%p133_p3), 3328  ;;  %vm882_vm4 = vcmask (!%p133_p3), 523264   ;;  %vm976_vm7 = vcmask (!%p133_p3), 1045509  }
   0xc   : > { %vm963_vm12 = vmor (!%p133_p3), %vm962_vm9, %vm959_vm8  ;;  %vm977_vm8 = vsmask.f32 (!%p133_p3), 5376 }
   0xd   : > { %vm966_vm13 = vmand (!%p133_p3), %vm964_vm10, %vm965_vm11  ;;  %vm980_vm11 = vcmask (!%p133_p3), 1046534  }
   0xe   : > { %s1545_s9 = smov (!%p161_p4, %s1275_s9), 1  ;;  %vm1505_vm10 = vmand %vm976_vm7, %vm977_vm8 }
   0xf   : > { %s1107_s13 = sshll.u32 %s1545_s9, 4 }
  0x10   : > { %s169_s16 = scalar_lea.vmem %s1529_s0, %s1107_s13  ;;  %s1291_s13 = smov 16  }
  0x11   : > { %v1336_v0 = vld [vmem:[%s169_s16] sm:$0xff]  ;;  %v1342_v2 = vld [vmem:[%s169_s16 + $0x8] sm:$0xff]  ;;  %s1084_s16 = sshll.u32 %s1545_s9, 3 }
  0x12   : > { %195 = vrot.lane.b32.xlu1 %v1336_v0, %s1286_s17  ;;  %191 = vrot.lane.b32.xlu0 %v1336_v0, %s1287_s18  ;;  %v1085_v3 = vcombine.low %v1336_v0, %v1342_v2 }
  0x16   : > { %197 = vrot.lane.b32.xlu1 %v1342_v2, %s1286_s17  ;;  %193 = vrot.lane.b32.xlu0 %v1342_v2, %s1287_s18 }
  0x1a   : > { %199 = vrot.lane.b32.xlu0 %v1336_v0, %s1289_s19  ;;  %201 = vrot.lane.b32.xlu1 %v1342_v2, %s1289_s19  ;;  %s177_s19 = scalar_lea.vmem %s1531_s2, %s1084_s16 }
  0x1e   : > { %214 = vrot.lane.b32.xlu0 %v1085_v3, %s1290_s20 }
  0x84   : > { %v196_v4 = vpop.permute.xlu1 %195  ;;  %v192_v5 = vpop.permute.xlu0 %191 }
  0x85   : > { %v207_v6 = vrot.slane %v196_v4, 4  ;;  %v205_v7 = vrot.slane %v192_v5, 4 }
  0x88   : > { %v198_v8 = vpop.permute.xlu1 %197  ;;  %v194_v9 = vpop.permute.xlu0 %193 }
  0x89   : > { %v208_v10 = vrot.slane %v198_v8, 4  ;;  %v1089_v11 = vcombine.low %v196_v4, %v198_v8  ;;  %v206_v12 = vrot.slane %v194_v9, 4  ;;  %v1087_v13 = vcombine.low %v192_v5, %v194_v9 }
  0x8b   : > { %v1355_v14 = vcombine.low %v207_v6, %v208_v10  ;;  %v1095_v15 = vcombine.low %v205_v7, %v206_v12  ;;  %267 = vrot.lane.b32.xlu1 %v1087_v13, %s1290_s20  ;;  %319 = vrot.lane.b32.xlu0 %v1089_v11, %s1290_s20  ;;  %v188_v6 = vld [vmem:[%s1530_s1 + $0x38] sm:$0xff] }
  0x8c   : > { %v1359_v16 = vpop.permute.xlu0 %199  ;;  %v1361_v17 = vpop.permute.xlu1 %201 }
  0x8d   : > { %v1091_v18 = vcombine.low %v1359_v16, %v1361_v17 }
  0x8f   : > { %371 = vrot.lane.b32.xlu1 %v1091_v18, %s1290_s20 }
  0x90   : > { %v215_v19 = vpop.permute.xlu0 %214 }
  0x91   : > { %v221_v20 = vsel %vm216_vm1, %v215_v19, 0 }
  0x92   : > { %1125 = vmatpush3.bf16.xpose.msra.mxu0 %v221_v20 }
  0x93   : > { %1136 = vmatprep.subr.bf16.mxu0 %v1285_v1 }
  0x99   : > { %1127 = vmatmul.mubr.msk.bf16.vlgmr.msra.gmra.mrb[0].mxu0 %vm216_vm1, %v1085_v3 }
  0x9a   : > { %1138 = vmatprep.mubr.msk.bf16.mxu0 %vm1288_vm0, %v1285_v1 }
  0xfd   : > { %v268_v21 = vpop.permute.xlu1 %267  ;;  %v320_v22 = vpop.permute.xlu0 %319 }
  0xfe   : > { %v325_v23 = vsel %vm216_vm1, %v320_v22, 0  ;;  %v273_v24 = vsel %vm216_vm1, %v268_v21, 0 }
  0xff   : > { %1131 = vmatpush3.bf16.xpose.msra.mxu1 %v273_v24  ;;  %1137 = vmatpush3.bf16.xpose.msra.mxu0 %v325_v23 }
 0x100   : > { %1142 = vmatprep.subr.bf16.mxu1 %v1285_v1  ;;  %1148 = vmatprep.subr.bf16.mxu0 %v1285_v1 }
 0x101   : > { %v372_v25 = vpop.permute.xlu1 %371 }
 0x102   : > { %v377_v26 = vsel %vm216_vm1, %v372_v25, 0 }
 0x106   : > { %1133 = vmatmul.mubr.msk.bf16.vlgmr.msra.gmra.mrb[0].mxu1 %vm216_vm1, %v1087_v13  ;;  %1139 = vmatmul.mubr.msk.bf16.vlgmr.msra.gmra.mrb[4].mxu0 %vm216_vm1, %v1089_v11 }
 0x107   : > { %1143 = vmatpush3.bf16.xpose.msra.mxu1 %v377_v26  ;;  %1144 = vmatprep.mubr.msk.bf16.mxu1 %vm1288_vm0, %v1285_v1 }
 0x108   : > { %1154 = vmatprep.subr.bf16.mxu1 %v1285_v1  ;;  %1150 = vmatprep.mubr.msk.bf16.mxu0 %vm1288_vm0, %v1285_v1 }
 0x10e   : > { %1145 = vmatmul.mubr.msk.bf16.vlgmr.msra.gmra.mrb[4].mxu1 %vm216_vm1, %v1091_v18 }
 0x10f   : > { %1155 = vmatpush3.bf16.msra.mxu1 %v1095_v15  ;;  %1156 = vmatprep.mubr.msk.bf16.mxu1 %vm1288_vm0, %v1285_v1 }
 0x110   : > { %1166 = vmatprep.subr.bf16.mxu1 %v1285_v1 }
 0x16c   : > { %v257_v27 = vpop.f32.mrb[0].mxu0 }
 0x16d   : > { %v420_v29 = vmul.f32 0.25, %v257_v27  ;;  %v1128_v30 = vpop.f32.mrb[1].mxu0  ;;  %v203_v27 = vrot.slane %v1336_v0, 4 }
 0x16e   : > { %v260_v31 = vpop.f32.mrb[2].mxu0 }
 0x16f   : > { %v421_v33 = vmul.f32 0.25, %v260_v31  ;;  %v428_v34 = vadd.f32 %v420_v29, %v181_v28  ;;  %v1129_v35 = vpop.f32.mrb[3].mxu0  ;;  %v204_v28 = vrot.slane %v1342_v2, 4 }
 0x171   : > { %v436_v36 = vsel %vm216_vm1, %v428_v34, -inf  ;;  %v429_v37 = vadd.f32 %v421_v33, %v182_v32  ;;  %v1093_v29 = vcombine.low %v203_v27, %v204_v28 }
 0x172   : > { %437 = vmax.xlane.f32.xlu0 %v436_v36 }
 0x173   : > { %v439_v38 = vsel %vm216_vm1, %v429_v37, -inf  ;;  %1149 = vmatpush3.bf16.msra.mxu0 %v1093_v29 }
 0x174   : > { %440 = vmax.xlane.f32.xlu1 %v439_v38  ;;  %1160 = vmatprep.subr.bf16.mxu0 %v1285_v1 }
 0x1d9   : > { %v309_v39 = vpop.f32.mrb[0].mxu1  ;;  %v361_v40 = vpop.f32.mrb[4].mxu0 }
 0x1da   : > { %v422_v43 = vmul.f32 0.25, %v309_v39  ;;  %v424_v44 = vmul.f32 0.25, %v361_v40  ;;  %v1134_v45 = vpop.f32.mrb[1].mxu1  ;;  %v1140_v46 = vpop.f32.mrb[5].mxu0 }
 0x1db   : > { %v312_v47 = vpop.f32.mrb[2].mxu1  ;;  %v364_v48 = vpop.f32.mrb[6].mxu0 }
 0x1dc   : > { %v423_v50 = vmul.f32 0.25, %v312_v47  ;;  %v1135_v51 = vpop.f32.mrb[3].mxu1  ;;  %v1141_v52 = vpop.f32.mrb[7].mxu0  ;;  %v430_v53 = vadd.f32 %v422_v43, %v183_v41  ;;  %v432_v54 = vadd.f32 %v424_v44, %v185_v42  ;;  %v425_v55 = vmul.f32 0.25, %v364_v48 }
 0x1de   : > { %v442_v56 = vsel %vm216_vm1, %v430_v53, -inf  ;;  %v448_v57 = vsel %vm216_vm1, %v432_v54, -inf  ;;  %v431_v58 = vadd.f32 %v423_v50, %v184_v49  ;;  %v433_v4 = vadd.f32 %v425_v55, %v186_v59 }
 0x1df   : > { %443 = vmax.xlane.f32.xlu0 %v442_v56  ;;  %449 = vmax.xlane.f32.xlu1 %v448_v57 }
 0x1e0   : > { %v445_v3 = vsel %vm216_vm1, %v431_v58, -inf  ;;  %v451_v11 = vsel %vm216_vm1, %v433_v4, -inf }
 0x1e1   : > { %v413_v60 = vpop.f32.mrb[4].mxu1 }
 0x1e2   : > { %v426_v62 = vmul.f32 0.25, %v413_v60  ;;  %v1146_v63 = vpop.f32.mrb[5].mxu1 }
 0x1e3   : > { %v416_v5 = vpop.f32.mrb[6].mxu1  ;;  %446 = vmax.xlane.f32.xlu0 %v445_v3 }
 0x1e4   : > { %v427_v7 = vmul.f32 0.25, %v416_v5  ;;  %v1147_v8 = vpop.f32.mrb[7].mxu1  ;;  %v434_v9 = vadd.f32 %v426_v62, %v187_v61 }
 0x1e6   : > { %v454_v10 = vsel %vm216_vm1, %v434_v9, -inf  ;;  %v435_v12 = vadd.f32 %v427_v7, %v188_v6 }
 0x1e7   : > { %455 = vmax.xlane.f32.xlu1 %v454_v10  ;;  %452 = vmax.xlane.f32.xlu0 %v451_v11 }
 0x1e8   : > { %v457_v13 = vsel %vm216_vm1, %v435_v12, -inf }
 0x1eb   : > { %458 = vmax.xlane.f32.xlu0 %v457_v13 }
 0x1ff   : > { %v438_v15 = vpop.xlane.xlu0 %437 }
 0x200   : > { %v460_v18 = vsub.f32 %v428_v34, %v438_v15 }
 0x201   : > { %v441_v19 = vpop.xlane.xlu1 %440 }
 0x202   : > { %v468_v20 = vmul.f32 1.442695, %v460_v18  ;;  %v461_v21 = vsub.f32 %v429_v37, %v441_v19 }
 0x204   : > { %1229 = vpow2.f32 %v468_v20  ;;  %v470_v22 = vmul.f32 1.442695, %v461_v21 }
 0x206   : > { %1231 = vpow2.f32 %v470_v22 }
 0x20e   : > { %v1230_v23 = vpop.eup %1229 }
 0x20f   : > { %v484_v24 = vsel %vm216_vm1, %v1230_v23, 0.0 }
 0x210   : > { %v1232_v25 = vpop.eup %1231  ;;  %485 = vadd.xlane.f32.xlu1 %v484_v24 }
 0x211   : > { %v487_v26 = vsel %vm216_vm1, %v1232_v25, 0.0 }
 0x212   : > { %488 = vadd.xlane.f32.xlu0 %v487_v26 }
 0x26c   : > { %v450_v30 = vpop.xlane.xlu1 %449  ;;  %v444_v31 = vpop.xlane.xlu0 %443 }
 0x26d   : > { %v464_v32 = vsub.f32 %v432_v54, %v450_v30  ;;  %v462_v33 = vsub.f32 %v430_v53, %v444_v31 }
 0x26f   : > { %v472_v34 = vmul.f32 1.442695, %v462_v33  ;;  %v476_v35 = vmul.f32 1.442695, %v464_v32 }
 0x270   : > { %v447_v36 = vpop.xlane.xlu0 %446 }
 0x271   : > { %v463_v37 = vsub.f32 %v431_v58, %v447_v36  ;;  %1233 = vpow2.f32 %v472_v34 }
 0x272   : > { %1235 = vpow2.f32 %v476_v35 }
 0x273   : > { %v474_v38 = vmul.f32 1.442695, %v463_v37 }
 0x274   : > { %v456_v39 = vpop.xlane.xlu1 %455  ;;  %v453_v40 = vpop.xlane.xlu0 %452 }
 0x275   : > { %1237 = vpow2.f32 %v474_v38  ;;  %v466_v0 = vsub.f32 %v434_v9, %v456_v39  ;;  %v465_v2 = vsub.f32 %v433_v4, %v453_v40 }
 0x277   : > { %v480_v41 = vmul.f32 1.442695, %v466_v0  ;;  %v478_v42 = vmul.f32 1.442695, %v465_v2 }
 0x278   : > { %v459_v43 = vpop.xlane.xlu0 %458 }
 0x279   : > { %1239 = vpow2.f32 %v480_v41  ;;  %v467_v44 = vsub.f32 %v435_v12, %v459_v43  ;;  %v209_v12 = vrot.slane %v1359_v16, 4 }
 0x27a   : > { %1241 = vpow2.f32 %v478_v42  ;;  %v1294_v42 = vmov 1983009808  }
 0x27b   : > { %v482_v45 = vmul.f32 1.442695, %v467_v44  ;;  %v1234_v46 = vpop.eup %1233  ;;  %v754_v43 = vunpack.c.l.s4 %v1294_v42  ;;  %v756_v44 = vlaneseq }
 0x27c   : > { %v490_v47 = vsel %vm216_vm1, %v1234_v46, 0.0  ;;  %v1236_v48 = vpop.eup %1235 }
 0x27d   : > { %1243 = vpow2.f32 %v482_v45  ;;  %491 = vadd.xlane.f32.xlu1 %v490_v47  ;;  %v496_v51 = vsel %vm216_vm1, %v1236_v48, 0.0 }
 0x27f   : > { %v1238_v49 = vpop.eup %1237 }
 0x280   : > { %v493_v50 = vsel %vm216_vm1, %v1238_v49, 0.0 }
 0x281   : > { %494 = vadd.xlane.f32.xlu0 %v493_v50  ;;  %497 = vadd.xlane.f32.xlu1 %v496_v51 }
 0x283   : > { %v1240_v52 = vpop.eup %1239 }
 0x284   : > { %v1242_v53 = vpop.eup %1241  ;;  %v502_v54 = vsel %vm216_vm1, %v1240_v52, 0.0 }
 0x285   : > { %v499_v55 = vsel %vm216_vm1, %v1242_v53, 0.0  ;;  %503 = vadd.xlane.f32.xlu1 %v502_v54 }
 0x286   : > { %500 = vadd.xlane.f32.xlu0 %v499_v55 }
 0x287   : > { %v1244_v56 = vpop.eup %1243 }
 0x288   : > { %v505_v57 = vsel %vm216_vm1, %v1244_v56, 0.0 }
 0x28a   : > { %506 = vadd.xlane.f32.xlu0 %v505_v57 }
 0x29d   : > { %v486_v58 = vpop.xlane.xlu1 %485 }
 0x29e   : > { %1245 = vrcp.f32 %v486_v58 }
 0x29f   : > { %v489_v59 = vpop.xlane.xlu0 %488 }
 0x2a0   : > { %1247 = vrcp.f32 %v489_v59 }
 0x2a8   : > { %v1246_v60 = vpop.eup %1245 }
 0x2a9   : > { %v516_v62 = vmul.f32 %v1246_v60, %v1230_v23 }
 0x2aa   : > { %v1248_v61 = vpop.eup %1247 }
 0x2ab   : > { %v517_v63 = vmul.f32 %v1248_v61, %v1232_v25 }
 0x2ad   : > { %v524_v3 = vpack.c.bf16 %v517_v63, %v516_v62 }
 0x2af   : > { %1151 = vmatmul.mubr.msk.bf16.vlgmr.msra.gmra.mrb[8].mxu0 %vm216_vm1, %v524_v3 }
 0x2b0   : > { %1161 = vmatpush3.bf16.msra.mxu0 %v1355_v14  ;;  %1162 = vmatprep.mubr.msk.bf16.mxu0 %vm1288_vm0, %v1285_v1  ;;  %v210_v14 = vrot.slane %v1361_v17, 4 }
 0x2b2   : > { %v1099_v20 = vcombine.low %v209_v12, %v210_v14 }
 0x30a   : > { %v492_v4 = vpop.xlane.xlu1 %491 }
 0x30b   : > { %1249 = vrcp.f32 %v492_v4 }
 0x30e   : > { %v495_v5 = vpop.xlane.xlu0 %494  ;;  %v498_v6 = vpop.xlane.xlu1 %497 }
 0x30f   : > { %1251 = vrcp.f32 %v495_v5 }
 0x310   : > { %1253 = vrcp.f32 %v498_v6 }
 0x312   : > { %v504_v7 = vpop.xlane.xlu1 %503 }
 0x313   : > { %v501_v8 = vpop.xlane.xlu0 %500 }
 0x314   : > { %1255 = vrcp.f32 %v501_v8 }
 0x315   : > { %1257 = vrcp.f32 %v504_v7  ;;  %v1250_v9 = vpop.eup %1249 }
 0x316   : > { %v518_v13 = vmul.f32 %v1250_v9, %v1234_v46  ;;  %v1295_v46 = vmov 1934713408  }
 0x317   : > { %v507_v10 = vpop.xlane.xlu0 %506  ;;  %v769_v47 = vunpack.c.l.s4 %v1295_v46 }
 0x318   : > { %1259 = vrcp.f32 %v507_v10 }
 0x319   : > { %v1252_v11 = vpop.eup %1251  ;;  %v770_v51 = vunpack.c.0.s8 %v769_v47 }
 0x31a   : > { %v519_v15 = vmul.f32 %v1252_v11, %v1238_v49  ;;  %v1254_v19 = vpop.eup %1253  ;;  %v1441_v49 = vshrl.u32 %v756_v44, 7 }
 0x31b   : > { %v520_v23 = vmul.f32 %v1254_v19, %v1236_v48  ;;  %v755_v48 = vunpack.c.0.s8 %v754_v43 }
 0x31c   : > { %v525_v18 = vpack.c.bf16 %v519_v15, %v518_v13 }
 0x31e   : > { %1157 = vmatmul.mubr.msk.bf16.vlgmr.msra.gmra.mrb[8].mxu1 %vm216_vm1, %v525_v18  ;;  %v1256_v21 = vpop.eup %1255 }
 0x31f   : > { %1167 = vmatpush3.bf16.msra.mxu1 %v1099_v20  ;;  %1168 = vmatprep.mubr.msk.bf16.mxu1 %vm1288_vm0, %v1285_v1  ;;  %v1258_v22 = vpop.eup %1257  ;;  %v521_v24 = vmul.f32 %v1256_v21, %v1242_v53  ;;  %v758_v53 = vsub.s32 %v755_v48, %v1441_v49  ;;  %vm1478_vm0 = vmor %vm966_vm13, %vm963_vm12  ;;  %vm981_vm12 = vsmask.f32 6400 }
 0x320   : > { %v522_v16 = vmul.f32 %v1258_v22, %v1240_v52 }
 0x321   : > { %v526_v26 = vpack.c.bf16 %v521_v24, %v520_v23 }
 0x322   : > { %v1260_v25 = vpop.eup %1259 }
 0x323   : > { %v523_v27 = vmul.f32 %v1260_v25, %v1244_v56  ;;  %1163 = vmatmul.mubr.msk.bf16.vlgmr.msra.gmra.mrb[12].mxu0 %vm216_vm1, %v526_v26  ;;  %v773_v56 = vsub.s32 %v770_v51, %v1441_v49 }
 0x325   : > { %v527_v17 = vpack.c.bf16 %v523_v27, %v522_v16 }
 0x327   : > { %1169 = vmatmul.mubr.msk.bf16.vlgmr.msra.gmra.mrb[12].mxu1 %vm216_vm1, %v527_v17 }
 0x382   : > { %v569_v28 = vpop.f32.mrb[8].mxu0 }
 0x383   : > { %v1152_v29 = vpop.f32.mrb[9].mxu0 }
 0x384   : > { %v572_v30 = vpop.f32.mrb[10].mxu0 }
 0x385   : > { %v1153_v31 = vpop.f32.mrb[11].mxu0 }
 0x3f1   : > { %v617_v32 = vpop.f32.mrb[8].mxu1 }
 0x3f2   : > { %722 = vrot.lane.b32.xlu1 %v617_v32, %s1291_s13  ;;  %v1158_v33 = vpop.f32.mrb[9].mxu1 }
 0x3f3   : > { %v620_v34 = vpop.f32.mrb[10].mxu1  ;;  %v1296_v33 = vmov 1966171168  }
 0x3f4   : > { %724 = vrot.lane.b32.xlu0 %v620_v34, %s1291_s13  ;;  %v1159_v35 = vpop.f32.mrb[11].mxu1  ;;  %v912_v34 = vunpack.c.l.s4 %v1296_v33 }
 0x3f6   : > { %v665_v36 = vpop.f32.mrb[12].mxu0 }
 0x3f7   : > { %730 = vrot.lane.b32.xlu1 %v665_v36, %s1292_s14  ;;  %v1164_v37 = vpop.f32.mrb[13].mxu0 }
 0x3f8   : > { %v668_v38 = vpop.f32.mrb[14].mxu0 }
 0x3f9   : > { %v1165_v39 = vpop.f32.mrb[15].mxu0 }
 0x3fa   : > { %v713_v40 = vpop.f32.mrb[12].mxu1 }
 0x3fb   : > { %738 = vrot.lane.b32.xlu0 %v713_v40, %s1293_s15  ;;  %v1170_v0 = vpop.f32.mrb[13].mxu1  ;;  %732 = vrot.lane.b32.xlu1 %v668_v38, %s1292_s14  ;;  %v913_v40 = vunpack.c.0.s8 %v912_v34 }
 0x3fc   : > { %v716_v2 = vpop.f32.mrb[14].mxu1 }
 0x3fd   : > { %v1171_v41 = vpop.f32.mrb[15].mxu1 }
 0x3ff   : > { %740 = vrot.lane.b32.xlu1 %v716_v2, %s1293_s15 }
 0x464   : > { %v723_v45 = vpop.permute.xlu1 %722 }
 0x465   : > { %v744_v54 = vsel %vm216_vm1, %v569_v28, %v723_v45 }
 0x466   : > { %v725_v50 = vpop.permute.xlu0 %724 }
 0x467   : > { %v745_v62 = vsel %vm216_vm1, %v572_v30, %v725_v50  ;;  %vm1482_vm1 = vmand %vm968_vm14, %vm969_vm15  ;;  %v916_v50 = vsub.s32 %v913_v40, %v1441_v49  ;;  %vm984_vm15 = vcmask 1047559  }
 0x468   : > { %vm971_vm5 = vmor %vm1482_vm1, %vm1478_vm0  ;;  %vm985_vm0 = vsmask.f32 7424 }
 0x469   : > { %v731_v52 = vpop.permute.xlu1 %730  ;;  %vm982_vm14 = vmand %vm980_vm11, %vm981_vm12 }
 0x46a   : > { %v747_v55 = vsel %vm746_vm2, %v744_v54, %v731_v52 }
 0x46d   : > { %v739_v57 = vpop.permute.xlu0 %738  ;;  %v733_v59 = vpop.permute.xlu1 %732 }
 0x46e   : > { %v750_v58 = vsel %vm749_vm3, %v747_v55, %v739_v57  ;;  %v748_v5 = vsel %vm746_vm2, %v745_v62, %v733_v59  ;;  %vm972_vm2 = vcmask 1044484  }
 0x46f   : > { %v752_v60 = vcombine.high %v750_v58, %v1285_v1  ;;  %v759_v61 = vrot.slane %v750_v58, %v758_v53 }
 0x471   : > { %v766_v63 = vrot.slane %v752_v60, %v758_v53  ;;  %v767_v3 = vcombine.high %v759_v61, %v1285_v1  ;;  %v1451_v4 = vrot.slane %v759_v61, %v773_v56  ;;  %v741_v6 = vpop.permute.xlu1 %740 }
 0x472   : > { %v751_v10 = vsel %vm749_vm3, %v748_v5, %v741_v6  ;;  %vm973_vm3 = vsmask.f32 4352 }
 0x473   : > { %v781_v7 = vrot.slane %v767_v3, %v773_v56  ;;  %v782_v8 = vcombine.high %v766_v63, %v1285_v1  ;;  %v789_v9 = vrot.slane %v766_v63, %v773_v56  ;;  %v801_v11 = vcombine.high %v751_v10, %v1285_v1  ;;  %vm974_vm6 = vmand %vm972_vm2, %vm973_vm3 }
 0x474   : > { %v808_v12 = vrot.slane %v751_v10, %v758_v53  ;;  %v797_v14 = vcombine.high %v1451_v4, %v1285_v1  ;;  %vm1496_vm9 = vmor %vm974_vm6, %vm971_vm5 }
 0x475   : > { %v798_v13 = vcombine.high %v781_v7, %v1285_v1  ;;  %v796_v15 = vrot.slane %v782_v8, %v773_v56  ;;  %v815_v18 = vrot.slane %v801_v11, %v758_v53  ;;  %v799_v22 = vcombine.high %v789_v9, %v1285_v1  ;;  %vm979_vm13 = vmor %vm1505_vm10, %vm1496_vm9 }
 0x476   : > { %v816_v19 = vcombine.high %v808_v12, %v1285_v1  ;;  %v1461_v20 = vrot.slane %v808_v12, %v773_v56  ;;  %vm983_vm1 = vmor %vm982_vm14, %vm979_vm13 }
 0x477   : > { %v1208_v21 = vpack.i.bf16 %v798_v13, %v797_v14  ;;  %v800_v23 = vcombine.high %v796_v15, %v1285_v1  ;;  %v831_v25 = vcombine.high %v815_v18, %v1285_v1  ;;  %v1466_v26 = vrot.slane %v815_v18, %v773_v56  ;;  %vm986_vm2 = vmand %vm984_vm15, %vm985_vm0 }
 0x478   : > { %v830_v24 = vrot.slane %v816_v19, %v773_v56  ;;  %v846_v27 = vcombine.high %v1461_v20, %v1285_v1  ;;  %vm987_vm3 = vmor %vm986_vm2, %vm983_vm1 }
 0x479   : > { %1209 = vrot.lane.b32.xlu0 %v1208_v21, %s1290_s20  ;;  %v1213_v16 = vpack.i.bf16 %v800_v23, %v799_v22  ;;  %v845_v28 = vrot.slane %v831_v25, %v773_v56  ;;  %v848_v30 = vcombine.high %v1466_v26, %v1285_v1 }
 0x47a   : > { %v847_v17 = vcombine.high %v830_v24, %v1285_v1 }
 0x47b   : > { %1214 = vrot.lane.b32.xlu1 %v1213_v16, %s1290_s20  ;;  %v849_v31 = vcombine.high %v845_v28, %v1285_v1 }
 0x47c   : > { %v1218_v29 = vpack.i.bf16 %v847_v17, %v846_v27 }
 0x47d   : > { %v1223_v32 = vpack.i.bf16 %v849_v31, %v848_v30 }
 0x47e   : > { %1219 = vrot.lane.b32.xlu0 %v1218_v29, %s1290_s20 }
 0x47f   : > { %1224 = vrot.lane.b32.xlu1 %v1223_v32, %s1290_s20 }
 0x4eb   : > { %v1210_v35 = vpop.permute.xlu0 %1209 }
 0x4ec   : > { %v1212_v37 = vunpack.i.h.bf16 %v1210_v35  ;;  %v1211_v38 = vunpack.i.l.bf16 %v1210_v35 }
 0x4ed   : > { %v1215_v39 = vpop.permute.xlu1 %1214 }
 0x4ee   : > { %v1217_v0 = vunpack.i.h.bf16 %v1215_v39  ;;  %v1216_v2 = vunpack.i.l.bf16 %v1215_v39  ;;  %v884_v41 = vsel %vm882_vm4, %v781_v7, %v1212_v37  ;;  %v883_v42 = vsel %vm882_vm4, %v1451_v4, %v1211_v38 }
 0x4ef   : > { %v1101_v53 = vpack.c.bf16 %v884_v41, %v883_v42 }
 0x4f0   : > { %v886_v43 = vsel %vm882_vm4, %v796_v15, %v1217_v0  ;;  %v885_v44 = vsel %vm882_vm4, %v789_v9, %v1216_v2  ;;  %v1220_v45 = vpop.permute.xlu0 %1219  ;;  %v988_v9 = vld [vmem:[%s177_s19] sm:$0xff] }
 0x4f1   : > { %v1102_v46 = vpack.c.bf16 %v886_v43, %v885_v44  ;;  %v1222_v47 = vunpack.i.h.bf16 %v1220_v45  ;;  %v1221_v48 = vunpack.i.l.bf16 %v1220_v45  ;;  %v1225_v52 = vpop.permute.xlu1 %1224  ;;  %v917_v62 = vrot.slane %v1101_v53, %v916_v50 }
 0x4f2   : > { %v1227_v57 = vunpack.i.h.bf16 %v1225_v52  ;;  %v1226_v49 = vunpack.i.l.bf16 %v1225_v52 }
 0x4f3   : > { %v888_v54 = vsel %vm882_vm4, %v830_v24, %v1222_v47  ;;  %v887_v55 = vsel %vm882_vm4, %v1461_v20, %v1221_v48  ;;  %v924_v58 = vrot.slane %v1102_v46, %v916_v50 }
 0x4f4   : > { %v1103_v59 = vpack.c.bf16 %v888_v54, %v887_v55  ;;  %v890_v60 = vsel %vm882_vm4, %v845_v28, %v1227_v57  ;;  %v889_v61 = vsel %vm882_vm4, %v1466_v26, %v1226_v49 }
 0x4f5   : > { %v1104_v63 = vpack.c.bf16 %v890_v60, %v889_v61  ;;  %v939_v3 = vcombine.low %v917_v62, %v924_v58 }
 0x4f6   : > { %v931_v4 = vrot.slane %v1103_v59, %v916_v50 }
 0x4f7   : > { %v938_v5 = vrot.slane %v1104_v63, %v916_v50  ;;  %v947_v7 = vrot.slane %v939_v3, %v916_v50 }
 0x4f9   : > { %v940_v6 = vcombine.low %v931_v4, %v938_v5 }
 0x4fb   : > { %v954_v8 = vrot.slane %v940_v6, %v916_v50 }
 0x4fd   : > { %v955_v10 = vcombine.low %v947_v7, %v954_v8 }
 0x4ff   : > { %v989_v11 = vsel %vm987_vm3, %v955_v10, %v988_v9 }
 0x500   : > { %990 = vst [vmem:[%s177_s19] sm:$0xff] %v989_v11 }
 0x501 PF: > { %s12_s11 = sadd.s32 1, %s1283_s11   ;;  %s1540_s9 = smov %s1279_s10 }
 0x502   : > { %p9_p5 = scmp.ge.s32.totalorder %s12_s11, 4   ;;  %s1541_s10 = smov %s1543_s12 }
 0x504   :  { %11 = sbr.rel (!%p9_p5) target bundleno = 2 (0x2), region = 58 }

// kernel: _lambda_.58
= control target key start
LH: loop header
LB: loop body
LE: loop exit
PB: predicated region body
PF: predicated region fallthrough
CT: control target
= control target key end

     0   :  { %v196_v1 = vmov 0   ;;  %vm89_vm0 = vcmask 523264   ;;  %v29_v11 = vlaneseq  ;;  %s274_s1 = inlined_call_operand.vmem [shape: bf16[64,256], index: 1, kind: input, shape index: {}]   ;;  %s275_s0 = inlined_call_operand.vmem [shape: bf16[32,64], index: 0, kind: input, shape index: {}]   ;;  %s276_s2 = inlined_call_operand.vmem [shape: f32[1,256], index: 2, kind: input, shape index: {}]   ;;  %s277_s3 = inlined_call_operand.vmem [shape: f32[32,256], index: 3, kind: output, shape index: {}]  }
   0x1   :  { %v182_v0 = vld [vmem:[%s274_s1 + $0x4] ss:$8 sps:$4 sm:$0xff]   ;;  %128 = vmatprep.mubr.bf16.mxu0 %v196_v1  ;;  %138 = vmatprep.mubr.bf16.mxu1 %v196_v1  ;;  %v184_v2 = vld [vmem:[%s274_s1] ss:$8 sps:$4 sm:$0xff]   ;;  %v185_v3 = vld [vmem:[%s274_s1 + $0x14] ss:$8 sps:$4 sm:$0xff]  }
   0x2   :  { %96 = vmatprep.subr.bf16.mxu0 %v182_v0  ;;  %173 = vmatprep.subr.bf16.mxu1 %v182_v0  ;;  %v187_v4 = vld [vmem:[%s274_s1 + $0x10] ss:$8 sps:$4 sm:$0xff]   ;;  %v188_v5 = vld [vmem:[%s274_s1 + $0x24] ss:$8 sps:$4 sm:$0xff]   ;;  %v190_v6 = vld [vmem:[%s274_s1 + $0x20] ss:$8 sps:$4 sm:$0xff]  }
   0x3   :  { %97 = vmatpush1.bf16.msra.mxu0 %v184_v2  ;;  %177 = vmatpush1.bf16.msra.mxu1 %v184_v2  ;;  %v191_v7 = vld [vmem:[%s274_s1 + $0x34] ss:$8 sps:$4 sm:$0xff]   ;;  %v193_v8 = vld [vmem:[%s274_s1 + $0x30] ss:$8 sps:$4 sm:$0xff]   ;;  %v194_v9 = vld [vmem:[%s275_s0] sm:$0xff]   ;;  %v30_v12 = vshrl.u32 %v29_v11, 7 }
   0x4   :  { %98 = vmatprep.subr.bf16.mxu0 %v185_v3  ;;  %174 = vmatprep.subr.bf16.mxu1 %v185_v3  ;;  %v195_v10 = vld [vmem:[%s275_s0 + $0x8] sm:$0xff]   ;;  %v27_v14 = vld [vmem:[%s276_s2] sm:$0x3] }
   0x5   :  { %v31_v13 = vsub.s32 0, %v30_v12  ;;  %v35_v15 = vsub.s32 1, %v30_v12 }
   0x7   :  { %99 = vmatpush1.bf16.msra.mxu0 %v187_v4  ;;  %178 = vmatpush1.bf16.msra.mxu1 %v187_v4  ;;  %v32_v16 = vrot.slane %v27_v14, %v31_v13  ;;  %v36_v17 = vrot.slane %v27_v14, %v35_v15 }
   0x8   :  { %100 = vmatprep.subr.bf16.mxu0 %v188_v5  ;;  %175 = vmatprep.subr.bf16.mxu1 %v188_v5 }
   0xb   :  { %101 = vmatpush1.bf16.msra.mxu0 %v190_v6  ;;  %179 = vmatpush1.bf16.msra.mxu1 %v190_v6 }
   0xc   :  { %102 = vmatprep.subr.bf16.mxu0 %v191_v7  ;;  %176 = vmatprep.subr.bf16.mxu1 %v191_v7 }
   0xf   :  { %103 = vmatpush1.bf16.msra.mxu0 %v193_v8  ;;  %180 = vmatpush1.bf16.msra.mxu1 %v193_v8 }
  0x12   :  { %171 = vmatmul.mubr.msk.bf16.vlgmr.msra.gmra.mrb[0].mxu0 %vm89_vm0, %v194_v9  ;;  %172 = vmatmul.mubr.msk.bf16.vlgmr.msra.gmra.mrb[0].mxu1 %vm89_vm0, %v195_v10 }
  0xe5   :  { %v130_v18 = vpop.f32.mrb[0].mxu0  ;;  %v140_v19 = vpop.f32.mrb[0].mxu1 }
  0xe6   :  { %v131_v20 = vadd.f32 %v130_v18, %v32_v16  ;;  %v141_v21 = vadd.f32 %v140_v19, %v32_v16  ;;  %v132_v22 = vpop.f32.mrb[1].mxu0  ;;  %v142_v23 = vpop.f32.mrb[1].mxu1 }
  0xe7   :  { %v133_v24 = vadd.f32 %v132_v22, %v36_v17  ;;  %v143_v25 = vadd.f32 %v142_v23, %v36_v17  ;;  %v134_v26 = vpop.f32.mrb[2].mxu0  ;;  %v144_v27 = vpop.f32.mrb[2].mxu1 }
  0xe8   :  { %149 = vst [vmem:[%s277_s3] sm:$0xff] %v131_v20  ;;  %153 = vst [vmem:[%s277_s3 + $0x20] sm:$0xff] %v141_v21  ;;  %v135_v28 = vadd.f32 %v134_v26, %v32_v16  ;;  %v145_v29 = vadd.f32 %v144_v27, %v32_v16  ;;  %v136_v30 = vpop.f32.mrb[3].mxu0  ;;  %v146_v31 = vpop.f32.mrb[3].mxu1 }
  0xe9   :  { %150 = vst [vmem:[%s277_s3 + $0x8] sm:$0xff] %v133_v24  ;;  %154 = vst [vmem:[%s277_s3 + $0x28] sm:$0xff] %v143_v25  ;;  %v137_v32 = vadd.f32 %v136_v30, %v36_v17  ;;  %v147_v33 = vadd.f32 %v146_v31, %v36_v17 }
  0xea   :  { %151 = vst [vmem:[%s277_s3 + $0x10] sm:$0xff] %v135_v28  ;;  %155 = vst [vmem:[%s277_s3 + $0x30] sm:$0xff] %v145_v29 }
  0xeb   :  { %152 = vst [vmem:[%s277_s3 + $0x18] sm:$0xff] %v137_v32  ;;  %156 = vst [vmem:[%s277_s3 + $0x38] sm:$0xff] %v147_v33 }

// kernel: _lambda_.56
= control target key start
LH: loop header
LB: loop body
LE: loop exit
PB: predicated region body
PF: predicated region fallthrough
CT: control target
= control target key end

     0   :  { %vm68_vm0 = vcmask 523264   ;;  %s247_s1 = inlined_call_operand.vmem [shape: bf16[64,128], index: 1, kind: input, shape index: {}]   ;;  %s248_s0 = inlined_call_operand.vmem [shape: bf16[32,64], index: 0, kind: input, shape index: {}]   ;;  %s249_s2 = inlined_call_operand.vmem [shape: f32[1,128], index: 2, kind: input, shape index: {}]   ;;  %s250_s3 = inlined_call_operand.vmem [shape: bf16[32,128], index: 3, kind: output, shape index: {}]  }
   0x1   :  { %v194_v0 = vld [vmem:[%s247_s1] sm:$0xff]   ;;  %v195_v1 = vld [vmem:[%s247_s1 + $0x8] sm:$0xff]   ;;  %v196_v2 = vld [vmem:[%s247_s1 + $0x10] sm:$0xff]  }
   0x2   :  { %182 = vmatprep.subr.bf16.mxu0 %v194_v0  ;;  %v198_v3 = vld [vmem:[%s248_s0] sm:$0xff]   ;;  %v197_v4 = vld [vmem:[%s247_s1 + $0x18] sm:$0xff]   ;;  %v199_v5 = vld [vmem:[%s248_s0 + $0x8] sm:$0xff]  }
   0x3   :  { %183 = vmatpush3.bf16.msra.mxu0 %v194_v0  ;;  %190 = vmatprep.mubr.msk.bf16.mxu0 %vm68_vm0, %v198_v3  ;;  %v148_v7 = vld [vmem:[%s249_s2] ss:$0 sm:$0xff] }
   0x4   :  { %184 = vmatprep.subr.bf16.mxu0 %v195_v1 }
   0x7   :  { %185 = vmatpush3.bf16.msra.mxu0 %v195_v1 }
   0x8   :  { %186 = vmatprep.subr.bf16.mxu0 %v196_v2 }
   0xb   :  { %187 = vmatpush3.bf16.msra.mxu0 %v196_v2 }
   0xc   :  { %188 = vmatprep.subr.bf16.mxu0 %v197_v4 }
   0xf   :  { %189 = vmatpush3.bf16.msra.mxu0 %v197_v4 }
  0x12   :  { %191 = vmatmul.mubr.msk.bf16.vlgmr.msra.gmra.mrb[0].mxu0 %vm68_vm0, %v199_v5 }
  0xe5   :  { %v192_v6 = vpop.f32.mrb[0].mxu0 }
  0xe6   :  { %v109_v8 = vpop.f32.mrb[1].mxu0  ;;  %v118_v10 = vadd.f32 %v192_v6, %v148_v7 }
  0xe7   :  { %v193_v9 = vpop.f32.mrb[2].mxu0  ;;  %v110_v13 = vadd.f32 %v148_v7, %v109_v8 }
  0xe8   :  { %v121_v11 = vadd.f32 %v193_v9, %v148_v7  ;;  %v112_v12 = vpop.f32.mrb[3].mxu0 }
  0xe9   :  { %v113_v14 = vadd.f32 %v148_v7, %v112_v12 }
  0xea   :  { %v173_v15 = vpack.c.bf16 %v121_v11, %v118_v10 }
  0xeb   :  { %v168_v16 = vpack.c.bf16 %v113_v14, %v110_v13 }
  0xec   :  { %175 = vst [vmem:[%s250_s3 + $0x8] sm:$0xff] %v173_v15  }
  0xed   :  { %169 = vst [vmem:[%s250_s3] sm:$0xff] %v168_v16  }

// kernel: _lambda_.68
= control target key start
LH: loop header
LB: loop body
LE: loop exit
PB: predicated region body
PF: predicated region fallthrough
CT: control target
= control target key end

     0   :  { %vm68_vm0 = vcmask 523264   ;;  %s218_s1 = inlined_call_operand.vmem [shape: bf16[64,128], index: 1, kind: input, shape index: {}]   ;;  %s219_s0 = inlined_call_operand.vmem [shape: bf16[32,64], index: 0, kind: input, shape index: {}]   ;;  %s220_s2 = inlined_call_operand.vmem [shape: f32[1,128], index: 2, kind: input, shape index: {}]   ;;  %s221_s3 = inlined_call_operand.vmem [shape: f32[32,128], index: 3, kind: output, shape index: {}]  }
   0x1   :  { %v159_v0 = vld [vmem:[%s218_s1] sm:$0xff]   ;;  %v160_v1 = vld [vmem:[%s218_s1 + $0x8] sm:$0xff]   ;;  %v161_v2 = vld [vmem:[%s218_s1 + $0x10] sm:$0xff]  }
   0x2   :  { %147 = vmatprep.subr.bf16.mxu0 %v159_v0  ;;  %v163_v3 = vld [vmem:[%s219_s0] sm:$0xff]   ;;  %v162_v4 = vld [vmem:[%s218_s1 + $0x18] sm:$0xff]   ;;  %v164_v5 = vld [vmem:[%s219_s0 + $0x8] sm:$0xff]  }
   0x3   :  { %148 = vmatpush3.bf16.msra.mxu0 %v159_v0  ;;  %155 = vmatprep.mubr.msk.bf16.mxu0 %vm68_vm0, %v163_v3  ;;  %v132_v6 = vld [vmem:[%s220_s2] ss:$0 sm:$0xff] }
   0x4   :  { %149 = vmatprep.subr.bf16.mxu0 %v160_v1 }
   0x7   :  { %150 = vmatpush3.bf16.msra.mxu0 %v160_v1 }
   0x8   :  { %151 = vmatprep.subr.bf16.mxu0 %v161_v2 }
   0xb   :  { %152 = vmatpush3.bf16.msra.mxu0 %v161_v2 }
   0xc   :  { %153 = vmatprep.subr.bf16.mxu0 %v162_v4 }
   0xf   :  { %154 = vmatpush3.bf16.msra.mxu0 %v162_v4 }
  0x12   :  { %156 = vmatmul.mubr.msk.bf16.vlgmr.msra.gmra.mrb[0].mxu0 %vm68_vm0, %v164_v5 }
  0xe5   :  { %v157_v7 = vpop.f32.mrb[0].mxu0 }
  0xe6   :  { %v118_v8 = vadd.f32 %v157_v7, %v132_v6  ;;  %v109_v9 = vpop.f32.mrb[1].mxu0 }
  0xe7   :  { %v110_v10 = vadd.f32 %v132_v6, %v109_v9  ;;  %v158_v11 = vpop.f32.mrb[2].mxu0 }
  0xe8   :  { %126 = vst [vmem:[%s221_s3 + $0x10] sm:$0xff] %v118_v8  ;;  %v121_v12 = vadd.f32 %v158_v11, %v132_v6  ;;  %v112_v13 = vpop.f32.mrb[3].mxu0 }
  0xe9   :  { %124 = vst [vmem:[%s221_s3] sm:$0xff] %v110_v10  ;;  %v113_v14 = vadd.f32 %v132_v6, %v112_v13 }
  0xea   :  { %127 = vst [vmem:[%s221_s3 + $0x18] sm:$0xff] %v121_v12 }
  0xeb   :  { %125 = vst [vmem:[%s221_s3 + $0x8] sm:$0xff] %v113_v14 }

// kernel: _lambda_.59
= control target key start
LH: loop header
LB: loop body
LE: loop exit
PB: predicated region body
PF: predicated region fallthrough
CT: control target
= control target key end

     0   :  { %s441_s1 = inlined_call_operand.vmem [shape: bf16[256,128], index: 1, kind: input, shape index: {}]   ;;  %s442_s0 = inlined_call_operand.vmem [shape: bf16[32,256], index: 0, kind: input, shape index: {}]   ;;  %s443_s2 = inlined_call_operand.vmem [shape: f32[1,128], index: 2, kind: input, shape index: {}]   ;;  %s444_s3 = inlined_call_operand.vmem [shape: f32[32,128], index: 3, kind: input, shape index: {}]   ;;  %s445_s4 = inlined_call_operand.vmem [shape: f32[32,128], index: 4, kind: output, shape index: {}]  }
   0x1   :  { %v307_v0 = vld [vmem:[%s441_s1 + $0x40] sm:$0xff]   ;;  %v309_v2 = vld [vmem:[%s441_s1 + $0x48] sm:$0xff]   ;;  %v311_v4 = vld [vmem:[%s441_s1 + $0x50] sm:$0xff]  }
   0x2   :  { %v308_v1 = vld [vmem:[%s441_s1] sm:$0xff]   ;;  %263 = vmatprep.subr.bf16.mxu0 %v307_v0  ;;  %291 = vmatprep.subr.bf16.mxu1 %v307_v0  ;;  %v310_v3 = vld [vmem:[%s441_s1 + $0x8] sm:$0xff]   ;;  %v312_v5 = vld [vmem:[%s441_s1 + $0x10] sm:$0xff]  }
   0x3   :  { %264 = vmatpush3.bf16.msra.mxu0 %v308_v1  ;;  %299 = vmatpush3.bf16.msra.mxu1 %v308_v1  ;;  %v313_v6 = vld [vmem:[%s441_s1 + $0x58] sm:$0xff]   ;;  %v315_v8 = vld [vmem:[%s441_s1 + $0x60] sm:$0xff]   ;;  %v317_v10 = vld [vmem:[%s441_s1 + $0x68] sm:$0xff]  }
   0x4   :  { %265 = vmatprep.subr.bf16.mxu0 %v309_v2  ;;  %292 = vmatprep.subr.bf16.mxu1 %v309_v2  ;;  %v314_v7 = vld [vmem:[%s441_s1 + $0x18] sm:$0xff]   ;;  %v316_v9 = vld [vmem:[%s441_s1 + $0x20] sm:$0xff]   ;;  %v318_v13 = vld [vmem:[%s441_s1 + $0x28] sm:$0xff]  }
   0x5   :  { %v325_v11 = vld [vmem:[%s442_s0 + $0x4] ss:$8 sps:$4 sm:$0xff]   ;;  %v328_v12 = vld [vmem:[%s442_s0 + $0x14] ss:$8 sps:$4 sm:$0xff]   ;;  %v323_v18 = vld [vmem:[%s442_s0] ss:$8 sps:$4 sm:$0xff]  }
   0x6   :  { %v319_v14 = vld [vmem:[%s441_s1 + $0x70] sm:$0xff]   ;;  %209 = vmatprep.mubr.bf16.mxu0 %v325_v11  ;;  %217 = vmatprep.mubr.bf16.mxu1 %v328_v12  ;;  %v321_v16 = vld [vmem:[%s441_s1 + $0x78] sm:$0xff]   ;;  %v242_v22 = vld [vmem:[%s443_s2] ss:$0 sm:$0xff] }
   0x7   :  { %266 = vmatpush3.bf16.msra.mxu0 %v310_v3  ;;  %300 = vmatpush3.bf16.msra.mxu1 %v310_v3  ;;  %v320_v15 = vld [vmem:[%s441_s1 + $0x30] sm:$0xff]   ;;  %v322_v17 = vld [vmem:[%s441_s1 + $0x38] sm:$0xff]   ;;  %v226_v29 = vld [vmem:[%s444_s3] sm:$0xff] }
   0x8   :  { %267 = vmatprep.subr.bf16.mxu0 %v311_v4  ;;  %293 = vmatprep.subr.bf16.mxu1 %v311_v4  ;;  %v326_v19 = vld [vmem:[%s442_s0 + $0x10] ss:$8 sps:$4 sm:$0xff]   ;;  %v227_v37 = vld [vmem:[%s444_s3 + $0x8] sm:$0xff] }
   0x9   :  { %v228_v30 = vld [vmem:[%s444_s3 + $0x10] sm:$0xff]  ;;  %v229_v38 = vld [vmem:[%s444_s3 + $0x18] sm:$0xff] }
   0xb   :  { %268 = vmatpush3.bf16.msra.mxu0 %v312_v5  ;;  %301 = vmatpush3.bf16.msra.mxu1 %v312_v5 }
   0xc   :  { %269 = vmatprep.subr.bf16.mxu0 %v313_v6  ;;  %294 = vmatprep.subr.bf16.mxu1 %v313_v6 }
   0xf   :  { %270 = vmatpush3.bf16.msra.mxu0 %v314_v7  ;;  %302 = vmatpush3.bf16.msra.mxu1 %v314_v7 }
  0x10   :  { %271 = vmatprep.subr.bf16.mxu0 %v315_v8  ;;  %295 = vmatprep.subr.bf16.mxu1 %v315_v8 }
  0x13   :  { %272 = vmatpush3.bf16.msra.mxu0 %v316_v9  ;;  %303 = vmatpush3.bf16.msra.mxu1 %v316_v9 }
  0x14   :  { %273 = vmatprep.subr.bf16.mxu0 %v317_v10  ;;  %296 = vmatprep.subr.bf16.mxu1 %v317_v10 }
  0x17   :  { %274 = vmatpush3.bf16.msra.mxu0 %v318_v13  ;;  %304 = vmatpush3.bf16.msra.mxu1 %v318_v13 }
  0x18   :  { %275 = vmatprep.subr.bf16.mxu0 %v319_v14  ;;  %297 = vmatprep.subr.bf16.mxu1 %v319_v14 }
  0x1b   :  { %276 = vmatpush3.bf16.msra.mxu0 %v320_v15  ;;  %305 = vmatpush3.bf16.msra.mxu1 %v320_v15 }
  0x1c   :  { %277 = vmatprep.subr.bf16.mxu0 %v321_v16  ;;  %298 = vmatprep.subr.bf16.mxu1 %v321_v16 }
  0x1f   :  { %278 = vmatpush3.bf16.msra.mxu0 %v322_v17  ;;  %306 = vmatpush3.bf16.msra.mxu1 %v322_v17 }
  0x22   :  { %210 = vmatmul.mubr.bf16.vlgmr.msra.gmra.mrb[0].mxu0 %v323_v18  ;;  %218 = vmatmul.mubr.bf16.vlgmr.msra.gmra.mrb[0].mxu1 %v326_v19 }
  0xf5   :  { %v279_v20 = vpop.f32.mrb[0].mxu0  ;;  %v285_v21 = vpop.f32.mrb[0].mxu1 }
  0xf6   :  { %v280_v23 = vpop.f32.mrb[1].mxu0  ;;  %v286_v24 = vpop.f32.mrb[1].mxu1 }
  0xf7   :  { %v281_v25 = vadd.f32 %v280_v23, %v279_v20  ;;  %v287_v26 = vadd.f32 %v286_v24, %v285_v21  ;;  %v282_v27 = vpop.f32.mrb[2].mxu0  ;;  %v288_v28 = vpop.f32.mrb[2].mxu1 }
  0xf8   :  { %v283_v31 = vpop.f32.mrb[3].mxu0  ;;  %v289_v32 = vpop.f32.mrb[3].mxu1 }
  0xf9   :  { %v212_v33 = vadd.f32 %v281_v25, %v242_v22  ;;  %v220_v34 = vadd.f32 %v287_v26, %v242_v22  ;;  %v284_v35 = vadd.f32 %v283_v31, %v282_v27  ;;  %v290_v36 = vadd.f32 %v289_v32, %v288_v28 }
  0xfb   :  { %v230_v39 = vadd.f32 %v226_v29, %v212_v33  ;;  %v232_v40 = vadd.f32 %v228_v30, %v220_v34  ;;  %v215_v41 = vadd.f32 %v284_v35, %v242_v22  ;;  %v223_v42 = vadd.f32 %v290_v36, %v242_v22 }
  0xfd   :  { %234 = vst [vmem:[%s445_s4] sm:$0xff] %v230_v39  ;;  %236 = vst [vmem:[%s445_s4 + $0x10] sm:$0xff] %v232_v40  ;;  %v231_v43 = vadd.f32 %v227_v37, %v215_v41  ;;  %v233_v44 = vadd.f32 %v229_v38, %v223_v42 }
  0xff   :  { %235 = vst [vmem:[%s445_s4 + $0x8] sm:$0xff] %v231_v43  ;;  %237 = vst [vmem:[%s445_s4 + $0x18] sm:$0xff] %v233_v44 }

// kernel: _lambda_.69
= control target key start
LH: loop header
LB: loop body
LE: loop exit
PB: predicated region body
PF: predicated region fallthrough
CT: control target
= control target key end

     0   :  { %v191_v0 = vmov 0.0   ;;  %vm192_vm0 = vmmov 0   ;;  %s249_s1 = inlined_call_operand.vmem [shape: bf16[128,128], index: 1, kind: input, shape index: {}]   ;;  %s250_s0 = inlined_call_operand.vmem [shape: bf16[16,128], index: 0, kind: input, shape index: {}]   ;;  %s251_s2 = inlined_call_operand.vmem [shape: f32[1,128], index: 2, kind: input, shape index: {}]   ;;  %s252_s3 = inlined_call_operand.vmem [shape: f32[16,128], index: 3, kind: output, shape index: {}]  }
   0x1   :  { %160 = vmatprep.subr.bf16.mxu0 %v191_v0  ;;  %v182_v1 = vld [vmem:[%s249_s1] sm:$0xff]   ;;  %176 = vmatprep.mubr.msk.bf16.mxu0 %vm192_vm0, %v191_v0  ;;  %v183_v2 = vld [vmem:[%s249_s1 + $0x8] sm:$0xff]   ;;  %v184_v3 = vld [vmem:[%s249_s1 + $0x10] sm:$0xff]  }
   0x2   :  { %161 = vmatpush3.bf16.msra.mxu0 %v182_v1  ;;  %v185_v4 = vld [vmem:[%s249_s1 + $0x18] sm:$0xff]   ;;  %v186_v5 = vld [vmem:[%s249_s1 + $0x20] sm:$0xff]   ;;  %v187_v6 = vld [vmem:[%s249_s1 + $0x28] sm:$0xff]  }
   0x3   :  { %162 = vmatprep.subr.bf16.mxu0 %v191_v0  ;;  %v188_v7 = vld [vmem:[%s249_s1 + $0x30] sm:$0xff]   ;;  %v189_v8 = vld [vmem:[%s249_s1 + $0x38] sm:$0xff]   ;;  %v190_v9 = vld [vmem:[%s250_s0] sm:$0xff]  }
   0x4   :  { %v141_v10 = vld [vmem:[%s251_s2] ss:$0 sm:$0xff] }
   0x6   :  { %163 = vmatpush3.bf16.msra.mxu0 %v183_v2 }
   0x7   :  { %164 = vmatprep.subr.bf16.mxu0 %v191_v0 }
   0xa   :  { %165 = vmatpush3.bf16.msra.mxu0 %v184_v3 }
   0xb   :  { %166 = vmatprep.subr.bf16.mxu0 %v191_v0 }
   0xe   :  { %167 = vmatpush3.bf16.msra.mxu0 %v185_v4 }
   0xf   :  { %168 = vmatprep.subr.bf16.mxu0 %v191_v0 }
  0x12   :  { %169 = vmatpush3.bf16.msra.mxu0 %v186_v5 }
  0x13   :  { %170 = vmatprep.subr.bf16.mxu0 %v191_v0 }
  0x16   :  { %171 = vmatpush3.bf16.msra.mxu0 %v187_v6 }
  0x17   :  { %172 = vmatprep.subr.bf16.mxu0 %v191_v0 }
  0x1a   :  { %173 = vmatpush3.bf16.msra.mxu0 %v188_v7 }
  0x1b   :  { %174 = vmatprep.subr.bf16.mxu0 %v191_v0 }
  0x1e   :  { %175 = vmatpush3.bf16.msra.mxu0 %v189_v8 }
  0x21   :  { %177 = vmatmul.mubr.bf16.vlgmr.msra.gmra.mrb[0].mxu0 %v190_v9 }
  0xf4   :  { %v128_v11 = vpop.f32.mrb[0].mxu0 }
  0xf5   :  { %v129_v12 = vadd.f32 %v141_v10, %v128_v11  ;;  %v178_v13 = vpop.f32.mrb[1].mxu0 }
  0xf6   :  { %v131_v14 = vpop.f32.mrb[2].mxu0 }
  0xf7   :  { %135 = vst [vmem:[%s252_s3] sm:$0xff] %v129_v12  ;;  %v132_v15 = vadd.f32 %v141_v10, %v131_v14  ;;  %v179_v16 = vpop.f32.mrb[3].mxu0 }
  0xf9   :  { %136 = vst [vmem:[%s252_s3 + $0x8] sm:$0xff] %v132_v15 }

</bundles_post_ra>
